<compile_context>
chip_gen: v7x
topology: tpu7x:2x2x1
jax: 0.10.0
libtpu: 0.0.40
codegen_flags: <defaults>
</compile_context>

<pallas_src>
import functools
import math

import jax
import jax.numpy as jnp
from jax.experimental import pallas as pl
from jax.experimental.pallas import tpu as pltpu

LATENT = 32


# ----------------------------- Pallas kernels -----------------------------

def _mm_bias_act_kernel(x_ref, w_ref, b_ref, o_ref, *, act):
    acc = jnp.dot(x_ref[...], w_ref[...], preferred_element_type=jnp.float32)
    acc = acc + b_ref[...]
    if act == "relu":
        acc = jnp.maximum(acc, 0.0)
    elif act == "sigmoid":
        # numerically stable sigmoid (exp stays on the EUP, never overflows)
        pos = acc >= 0.0
        e = jnp.exp(jnp.where(pos, -acc, acc))
        acc = jnp.where(pos, 1.0 / (1.0 + e), e / (1.0 + e))
    o_ref[...] = acc.astype(o_ref.dtype)


def _pick_tm(m):
    if m >= 1024 and m % 512 == 0:
        return 512
    if m >= 512 and m % 256 == 0:
        return 256
    if m >= 256 and m % 128 == 0:
        return 128
    return m  # single full tile (small layers)


def matmul_bias_act(x, w, b, act="none", out_dtype=jnp.bfloat16):
    """out = act(x @ w + b). x:[M,K] bf16, w:[K,N] bf16, b:[1,N] f32."""
    m, k = x.shape
    k2, n = w.shape
    assert k == k2, (k, k2)
    tm = _pick_tm(m)
    grid = (m // tm,)
    return pl.pallas_call(
        functools.partial(_mm_bias_act_kernel, act=act),
        out_shape=jax.ShapeDtypeStruct((m, n), out_dtype),
        grid_spec=pltpu.PrefetchScalarGridSpec(
            num_scalar_prefetch=0,
            grid=grid,
            in_specs=[
                pl.BlockSpec((tm, k), lambda i: (i, 0)),
                pl.BlockSpec((k, n), lambda i: (0, 0)),
                pl.BlockSpec((1, n), lambda i: (0, 0)),
            ],
            out_specs=pl.BlockSpec((tm, n), lambda i: (i, 0)),
        ),
        compiler_params=pltpu.CompilerParams(
            dimension_semantics=("parallel",)),
    )(x, w, b)


def _dense_chain_kernel(x_ref, eps_ref, w5_ref, b5_ref,
                        w6mu_ref, b6mu_ref, w6lv_ref, b6lv_ref,
                        wd1_ref, bd1_ref, wd2_ref, bd2_ref,
                        d2_ref, mu_ref, lv_ref):
    # enc5 (relu) -> enc6 (mu / log_var) -> reparam -> dec1 (relu) -> dec2 (relu)
    x = x_ref[...]
    h = jnp.dot(x, w5_ref[...], preferred_element_type=jnp.float32) + b5_ref[...]
    h = jnp.maximum(h, 0.0).astype(jnp.bfloat16)
    mu = jnp.dot(h, w6mu_ref[...], preferred_element_type=jnp.float32) + b6mu_ref[...]
    lv = jnp.dot(h, w6lv_ref[...], preferred_element_type=jnp.float32) + b6lv_ref[...]
    z = (mu + eps_ref[...] * jnp.exp(0.5 * lv)).astype(jnp.bfloat16)
    d1 = jnp.dot(z, wd1_ref[...], preferred_element_type=jnp.float32) + bd1_ref[...]
    d1 = jnp.maximum(d1, 0.0).astype(jnp.bfloat16)
    d2 = jnp.dot(d1, wd2_ref[...], preferred_element_type=jnp.float32) + bd2_ref[...]
    d2 = jnp.maximum(d2, 0.0)
    d2_ref[...] = d2.astype(d2_ref.dtype)
    mu_ref[...] = mu
    lv_ref[...] = lv


def dense_chain(flat, eps, p):
    """Fused enc5/enc6/reparam/dec1/dec2 (M = batch = 2). One launch."""
    bsz = flat.shape[0]
    return pl.pallas_call(
        _dense_chain_kernel,
        out_shape=(
            jax.ShapeDtypeStruct((bsz, 1024), jnp.bfloat16),   # dec2 output
            jax.ShapeDtypeStruct((bsz, LATENT), jnp.float32),  # mu
            jax.ShapeDtypeStruct((bsz, LATENT), jnp.float32),  # log_var
        ),
    )(flat, eps.astype(jnp.float32),
      p["enc5_w"], p["enc5_b"],
      p["enc6_mu_w"], p["enc6_mu_b"],
      p["enc6_lv_w"], p["enc6_lv_b"],
      p["dec1_w"], p["dec1_b"],
      p["dec2_w"], p["dec2_b"])


# ------------------------------ Conv glue ---------------------------------
# All convs in this model are k=4, stride=2, pad=1.

def conv2d_nhwc(x, wmat, b, act, out_dtype=jnp.bfloat16):
    """x: (B,H,W,C) bf16. wmat: (16*C, Cout) bf16 in (kh,kw,C) feature order."""
    bsz, h, w, c = x.shape
    ho, wo = h // 2, w // 2
    xp = jnp.pad(x, ((0, 0), (1, 1), (1, 1), (0, 0)))
    taps = []
    for i in range(4):
        for j in range(4):
            taps.append(xp[:, i:i + 2 * ho - 1:2, j:j + 2 * wo - 1:2, :])
    patches = jnp.concatenate(taps, axis=-1).reshape(bsz * ho * wo, 16 * c)
    cout = wmat.shape[1]
    out = matmul_bias_act(patches, wmat, b, act=act, out_dtype=out_dtype)
    return out.reshape(bsz, ho, wo, cout)


def conv_transpose2d_nhwc(x, wmat, b, act, out_dtype=jnp.bfloat16):
    """Sub-pixel conv-transpose. wmat: (9*Cin, 4*Cout); output (B,2H,2W,Cout)."""
    bsz, h, w, c = x.shape
    cout = wmat.shape[1] // 4
    xp = jnp.pad(x, ((0, 0), (1, 1), (1, 1), (0, 0)))
    taps = []
    for u in range(3):
        for v in range(3):
            taps.append(xp[:, u:u + h, v:v + w, :])
    patches = jnp.concatenate(taps, axis=-1).reshape(bsz * h * w, 9 * c)
    out = matmul_bias_act(patches, wmat, b, act=act, out_dtype=out_dtype)
    out = out.reshape(bsz, h, w, 2, 2, cout)                 # (.., po, pw, c)
    out = out.transpose(0, 1, 3, 2, 4, 5).reshape(bsz, 2 * h, 2 * w, cout)
    return out


# ------------------------------ Parameters ---------------------------------

def init_params(key):
    """PyTorch-layout / PyTorch-init parameters."""
    keys = jax.random.split(key, 12)

    def normal(k, shape, std):
        return std * jax.random.normal(k, shape, dtype=jnp.float32)

    conv_std = lambda cin: 1.0 / math.sqrt(5 * 2.5 * cin)
    p = {}
    p["enc1_w"] = normal(keys[0], (32, 3, 4, 4), conv_std(3))
    p["enc1_b"] = jnp.zeros((32,), jnp.float32)
    p["enc2_w"] = normal(keys[1], (32, 32, 4, 4), conv_std(32))
    p["enc2_b"] = jnp.zeros((32,), jnp.float32)
    p["enc3_w"] = normal(keys[2], (64, 32, 4, 4), conv_std(32))
    p["enc3_b"] = jnp.zeros((64,), jnp.float32)
    p["enc4_w"] = normal(keys[3], (64, 64, 4, 4), conv_std(64))
    p["enc4_b"] = jnp.zeros((64,), jnp.float32)
    p["enc5_w"] = normal(keys[4], (256, 64 * 4 * 4), math.sqrt(1 / 256))
    p["enc5_b"] = jnp.zeros((256,), jnp.float32)
    p["enc6_w"] = normal(keys[5], (2 * LATENT, 256), math.sqrt(1 / 32))
    p["enc6_b"] = jnp.zeros((2 * LATENT,), jnp.float32)
    p["dec1_w"] = normal(keys[6], (256, LATENT), math.sqrt(1 / 32))
    p["dec1_b"] = jnp.zeros((256,), jnp.float32)
    p["dec2_w"] = normal(keys[7], (64 * 4 * 4, 256), math.sqrt(1 / 256))
    p["dec2_b"] = jnp.zeros((64 * 4 * 4,), jnp.float32)
    # ConvTranspose2d weights: [Cin, Cout, kh, kw]
    p["dec3_w"] = normal(keys[8], (64, 64, 4, 4), conv_std(64))
    p["dec3_b"] = jnp.zeros((64,), jnp.float32)
    p["dec4_w"] = normal(keys[9], (64, 32, 4, 4), conv_std(64))
    p["dec4_b"] = jnp.zeros((32,), jnp.float32)
    p["dec5_w"] = normal(keys[10], (32, 32, 4, 4), conv_std(32))
    p["dec5_b"] = jnp.zeros((32,), jnp.float32)
    p["dec6_w"] = normal(keys[11], (32, 3, 4, 4), conv_std(32))
    p["dec6_b"] = jnp.zeros((3,), jnp.float32)
    return p


def _convT_to_subpixel(wt):
    """ConvTranspose2d (Cin,Cout,4,4), s=2, p=1 -> combined (9*Cin, 4*Cout).

    Output columns are grouped by output parity p_idx = 2*po + pw; rows are the
    (u, v, cin) features of a 3x3 window over the zero-padded (pad=1) input.
    Derivation: oh = 2*ih - 1 + kh  =>  for parity po, taps a in {0,1} read
    padded row (q + po + a) with kernel row kh = 3 - po - 2a (same for width).
    """
    cin, cout = wt.shape[0], wt.shape[1]
    wmat = jnp.zeros((3, 3, cin, 4, cout), jnp.float32)
    for po in range(2):
        for pw in range(2):
            p_idx = 2 * po + pw
            for a in range(2):
                for b_ in range(2):
                    u, v = po + a, pw + b_
                    kh, kw = 3 - po - 2 * a, 3 - pw - 2 * b_
                    wmat = wmat.at[u, v, :, p_idx, :].set(wt[:, :, kh, kw])
    return wmat.reshape(9 * cin, 4 * cout)


def prepare_params(p):
    """One-time reorder / reshape / bf16 cast — hoisted out of the forward."""
    q = {}
    # Encoder convs: (Cout,Cin,4,4) -> (kh,kw,Cin, Cout) matrix, bf16.
    for name in ("enc1", "enc2", "enc3", "enc4"):
        w = p[name + "_w"]
        q[name + "_w"] = (w.transpose(2, 3, 1, 0)
                           .reshape(-1, w.shape[0]).astype(jnp.bfloat16))
        q[name + "_b"] = p[name + "_b"].reshape(1, -1).astype(jnp.float32)
    # enc5: permute in-features from NCHW-flat to NHWC-flat order.
    w5 = p["enc5_w"].reshape(256, 64, 4, 4).transpose(0, 2, 3, 1).reshape(256, 1024)
    q["enc5_w"] = w5.T.astype(jnp.bfloat16)                       # (1024, 256)
    q["enc5_b"] = p["enc5_b"].reshape(1, -1).astype(jnp.float32)
    # enc6 split into mu / log_var heads (avoids lane slicing in-kernel).
    q["enc6_mu_w"] = p["enc6_w"][:LATENT].T.astype(jnp.bfloat16)  # (256, 32)
    q["enc6_lv_w"] = p["enc6_w"][LATENT:].T.astype(jnp.bfloat16)
    q["enc6_mu_b"] = p["enc6_b"][:LATENT].reshape(1, -1).astype(jnp.float32)
    q["enc6_lv_b"] = p["enc6_b"][LATENT:].reshape(1, -1).astype(jnp.float32)
    q["dec1_w"] = p["dec1_w"].T.astype(jnp.bfloat16)              # (32, 256)
    q["dec1_b"] = p["dec1_b"].reshape(1, -1).astype(jnp.float32)
    # dec2: permute out-features from NCHW-flat to NHWC-flat order.
    wd2 = p["dec2_w"].reshape(64, 4, 4, 256).transpose(1, 2, 0, 3).reshape(1024, 256)
    q["dec2_w"] = wd2.T.astype(jnp.bfloat16)                      # (256, 1024)
    q["dec2_b"] = (p["dec2_b"].reshape(64, 4, 4).transpose(1, 2, 0)
                    .reshape(1, 1024).astype(jnp.float32))
    # Decoder transposed convs -> combined sub-pixel GEMM weights.
    for name in ("dec3", "dec4", "dec5", "dec6"):
        q[name + "_w"] = _convT_to_subpixel(p[name + "_w"]).astype(jnp.bfloat16)
        q[name + "_b"] = jnp.tile(p[name + "_b"], 4).reshape(1, -1).astype(jnp.float32)
    return q


# ------------------------------- Forward -----------------------------------

def vae_forward(params, x, eps):
    """x: (B,3,64,64) NCHW f32, eps: (B,LATENT) f32 -> (recon NCHW, mu, log_var)."""
    h = x.transpose(0, 2, 3, 1).astype(jnp.bfloat16)               # NHWC bf16
    h = conv2d_nhwc(h, params["enc1_w"], params["enc1_b"], "relu")
    h = conv2d_nhwc(h, params["enc2_w"], params["enc2_b"], "relu")
    h = conv2d_nhwc(h, params["enc3_w"], params["enc3_b"], "relu")
    h = conv2d_nhwc(h, params["enc4_w"], params["enc4_b"], "relu")  # (B,4,4,64)
    bsz = h.shape[0]
    flat = h.reshape(bsz, -1)                                       # HWC-flat
    d2, mu, log_var = dense_chain(flat, eps, params)                # fused block
    d = d2.reshape(bsz, 4, 4, 64)
    d = conv_transpose2d_nhwc(d, params["dec3_w"], params["dec3_b"], "relu")
    d = conv_transpose2d_nhwc(d, params["dec4_w"], params["dec4_b"], "relu")
    d = conv_transpose2d_nhwc(d, params["dec5_w"], params["dec5_b"], "relu")
    recon = conv_transpose2d_nhwc(d, params["dec6_w"], params["dec6_b"],
                                  "sigmoid", out_dtype=jnp.float32)
    recon = recon.transpose(0, 3, 1, 2)                             # back to NCHW
    return recon, mu, log_var


if __name__ == "__main__":
    key = jax.random.PRNGKey(0)
    k_param, k_x, k_eps = jax.random.split(key, 3)
    params = prepare_params(init_params(k_param))
    # Input must be 64x64 so the encoder bottoms out at 64*4*4 features.
    x = jax.random.normal(k_x, (2, 3, 64, 64), dtype=jnp.float32)
    eps = jax.random.normal(k_eps, (2, LATENT), dtype=jnp.float32)

    recon, mu, log_var = jax.jit(vae_forward)(params, x, eps)
    jax.block_until_ready((recon, mu, log_var))

    assert recon.shape == (2, 3, 64, 64), recon.shape
    assert mu.shape == (2, LATENT) and log_var.shape == (2, LATENT)
    assert bool(jnp.all(jnp.isfinite(recon)))
    assert bool(jnp.all((recon >= 0.0) & (recon <= 1.0)))
    print("KERNEL_OK")
</pallas_src>

<mosaic_0001>
module attributes {stable_mosaic.version = 11 : i64} {
  func.func @_mm_bias_act_kernel(%arg0: i32, %arg1: memref<512x48xbf16, #tpu.memory_space<vmem>>, %arg2: memref<48x32xbf16, #tpu.memory_space<vmem>>, %arg3: memref<1x32xf32, #tpu.memory_space<vmem>>, %arg4: memref<512x32xbf16, #tpu.memory_space<vmem>>) attributes {dimension_semantics = [#tpu.dimension_semantics<parallel>], iteration_bounds = array<i64: 4>, scalar_prefetch = 0 : i64, scratch_operands = 0 : i64, tpu.core_type = #tpu.core_type<tc>, window_params = [{transform_indices = @transform_0, window_bounds = array<i64: 512, 48>}, {pipeline_mode = #tpu.pipeline_mode<synchronous>, transform_indices = @transform_1, window_bounds = array<i64: 48, 32>}, {pipeline_mode = #tpu.pipeline_mode<synchronous>, transform_indices = @transform_2, window_bounds = array<i64: 1, 32>}, {transform_indices = @transform_3, window_bounds = array<i64: 512, 32>}]} {
    %c0 = arith.constant 0 : index
    %c0_0 = arith.constant 0 : index
    %0 = vector.load %arg1[%c0, %c0_0] : memref<512x48xbf16, #tpu.memory_space<vmem>>, vector<512x48xbf16>
    %c0_1 = arith.constant 0 : index
    %c0_2 = arith.constant 0 : index
    %1 = vector.load %arg2[%c0_1, %c0_2] : memref<48x32xbf16, #tpu.memory_space<vmem>>, vector<48x32xbf16>
    %cst = arith.constant dense<0.000000e+00> : vector<512x32xf32>
    %2 = tpu.matmul %0, %1, %cst {dimension_numbers = #tpu.dot_dimension_numbers<[1], [0], [0], [1], [0, 0, 1, 1], [], []>} : vector<512x48xbf16>, vector<48x32xbf16>, vector<512x32xf32> -> vector<512x32xf32>
    %c0_3 = arith.constant 0 : index
    %c0_4 = arith.constant 0 : index
    %3 = vector.load %arg3[%c0_3, %c0_4] : memref<1x32xf32, #tpu.memory_space<vmem>>, vector<1x32xf32>
    %4 = vector.broadcast %3 : vector<1x32xf32> to vector<512x32xf32>
    %5 = arith.addf %2, %4 : vector<512x32xf32>
    %cst_5 = arith.constant 0.000000e+00 : f32
    %6 = vector.broadcast %cst_5 : f32 to vector<512x32xf32>
    %7 = arith.maximumf %5, %6 : vector<512x32xf32>
    %8 = arith.truncf %7 : vector<512x32xf32> to vector<512x32xbf16>
    %c0_6 = arith.constant 0 : index
    %c0_7 = arith.constant 0 : index
    %9 = vector.load %arg4[%c0_6, %c0_7] : memref<512x32xbf16, #tpu.memory_space<vmem>>, vector<512x32xbf16>
    tpu.vector_store %arg4[%c0_6, %c0_7], %8 {strides = array<i32>} : memref<512x32xbf16, #tpu.memory_space<vmem>>, vector<512x32xbf16>,
    return
  }
  func.func @transform_0(%arg0: i32) -> (i32, i32) {
    %c0_i32 = arith.constant 0 : i32
    %c0_i32_0 = arith.constant 0 : i32
    return %arg0, %c0_i32 : i32, i32
  }
  func.func @transform_1(%arg0: i32) -> (i32, i32) {
    %c0_i32 = arith.constant 0 : i32
    %c0_i32_0 = arith.constant 0 : i32
    %c0_i32_1 = arith.constant 0 : i32
    return %c0_i32, %c0_i32_0 : i32, i32
  }
  func.func @transform_2(%arg0: i32) -> (i32, i32) {
    %c0_i32 = arith.constant 0 : i32
    %c0_i32_0 = arith.constant 0 : i32
    %c0_i32_1 = arith.constant 0 : i32
    return %c0_i32, %c0_i32_0 : i32, i32
  }
  func.func @transform_3(%arg0: i32) -> (i32, i32) {
    %c0_i32 = arith.constant 0 : i32
    %c0_i32_0 = arith.constant 0 : i32
    return %arg0, %c0_i32 : i32, i32
  }
}

module attributes {stable_mosaic.version = 11 : i64} {
  func.func @_mm_bias_act_kernel(%arg0: i32, %arg1: memref<256x512xbf16, #tpu.memory_space<vmem>>, %arg2: memref<512x32xbf16, #tpu.memory_space<vmem>>, %arg3: memref<1x32xf32, #tpu.memory_space<vmem>>, %arg4: memref<256x32xbf16, #tpu.memory_space<vmem>>) attributes {dimension_semantics = [#tpu.dimension_semantics<parallel>], iteration_bounds = array<i64: 2>, scalar_prefetch = 0 : i64, scratch_operands = 0 : i64, tpu.core_type = #tpu.core_type<tc>, window_params = [{transform_indices = @transform_0, window_bounds = array<i64: 256, 512>}, {pipeline_mode = #tpu.pipeline_mode<synchronous>, transform_indices = @transform_1, window_bounds = array<i64: 512, 32>}, {pipeline_mode = #tpu.pipeline_mode<synchronous>, transform_indices = @transform_2, window_bounds = array<i64: 1, 32>}, {transform_indices = @transform_3, window_bounds = array<i64: 256, 32>}]} {
    %c0 = arith.constant 0 : index
    %c0_0 = arith.constant 0 : index
    %0 = vector.load %arg1[%c0, %c0_0] : memref<256x512xbf16, #tpu.memory_space<vmem>>, vector<256x512xbf16>
    %c0_1 = arith.constant 0 : index
    %c0_2 = arith.constant 0 : index
    %1 = vector.load %arg2[%c0_1, %c0_2] : memref<512x32xbf16, #tpu.memory_space<vmem>>, vector<512x32xbf16>
    %cst = arith.constant dense<0.000000e+00> : vector<256x32xf32>
    %2 = tpu.matmul %0, %1, %cst {dimension_numbers = #tpu.dot_dimension_numbers<[1], [0], [0], [1], [0, 0, 1, 1], [], []>} : vector<256x512xbf16>, vector<512x32xbf16>, vector<256x32xf32> -> vector<256x32xf32>
    %c0_3 = arith.constant 0 : index
    %c0_4 = arith.constant 0 : index
    %3 = vector.load %arg3[%c0_3, %c0_4] : memref<1x32xf32, #tpu.memory_space<vmem>>, vector<1x32xf32>
    %4 = vector.broadcast %3 : vector<1x32xf32> to vector<256x32xf32>
    %5 = arith.addf %2, %4 : vector<256x32xf32>
    %cst_5 = arith.constant 0.000000e+00 : f32
    %6 = vector.broadcast %cst_5 : f32 to vector<256x32xf32>
    %7 = arith.maximumf %5, %6 : vector<256x32xf32>
    %8 = arith.truncf %7 : vector<256x32xf32> to vector<256x32xbf16>
    %c0_6 = arith.constant 0 : index
    %c0_7 = arith.constant 0 : index
    %9 = vector.load %arg4[%c0_6, %c0_7] : memref<256x32xbf16, #tpu.memory_space<vmem>>, vector<256x32xbf16>
    tpu.vector_store %arg4[%c0_6, %c0_7], %8 {strides = array<i32>} : memref<256x32xbf16, #tpu.memory_space<vmem>>, vector<256x32xbf16>,
    return
  }
  func.func @transform_0(%arg0: i32) -> (i32, i32) {
    %c0_i32 = arith.constant 0 : i32
    %c0_i32_0 = arith.constant 0 : i32
    return %arg0, %c0_i32 : i32, i32
  }
  func.func @transform_1(%arg0: i32) -> (i32, i32) {
    %c0_i32 = arith.constant 0 : i32
    %c0_i32_0 = arith.constant 0 : i32
    %c0_i32_1 = arith.constant 0 : i32
    return %c0_i32, %c0_i32_0 : i32, i32
  }
  func.func @transform_2(%arg0: i32) -> (i32, i32) {
    %c0_i32 = arith.constant 0 : i32
    %c0_i32_0 = arith.constant 0 : i32
    %c0_i32_1 = arith.constant 0 : i32
    return %c0_i32, %c0_i32_0 : i32, i32
  }
  func.func @transform_3(%arg0: i32) -> (i32, i32) {
    %c0_i32 = arith.constant 0 : i32
    %c0_i32_0 = arith.constant 0 : i32
    return %arg0, %c0_i32 : i32, i32
  }
}

module attributes {stable_mosaic.version = 11 : i64} {
  func.func @_mm_bias_act_kernel(%arg0: i32, %arg1: memref<128x512xbf16, #tpu.memory_space<vmem>>, %arg2: memref<512x64xbf16, #tpu.memory_space<vmem>>, %arg3: memref<1x64xf32, #tpu.memory_space<vmem>>, %arg4: memref<128x64xbf16, #tpu.memory_space<vmem>>) attributes {dimension_semantics = [#tpu.dimension_semantics<parallel>], iteration_bounds = array<i64: 1>, scalar_prefetch = 0 : i64, scratch_operands = 0 : i64, tpu.core_type = #tpu.core_type<tc>, window_params = [{transform_indices = @transform_0, window_bounds = array<i64: 128, 512>}, {pipeline_mode = #tpu.pipeline_mode<synchronous>, transform_indices = @transform_1, window_bounds = array<i64: 512, 64>}, {pipeline_mode = #tpu.pipeline_mode<synchronous>, transform_indices = @transform_2, window_bounds = array<i64: 1, 64>}, {transform_indices = @transform_3, window_bounds = array<i64: 128, 64>}]} {
    %c0 = arith.constant 0 : index
    %c0_0 = arith.constant 0 : index
    %0 = vector.load %arg1[%c0, %c0_0] : memref<128x512xbf16, #tpu.memory_space<vmem>>, vector<128x512xbf16>
    %c0_1 = arith.constant 0 : index
    %c0_2 = arith.constant 0 : index
    %1 = vector.load %arg2[%c0_1, %c0_2] : memref<512x64xbf16, #tpu.memory_space<vmem>>, vector<512x64xbf16>
    %cst = arith.constant dense<0.000000e+00> : vector<128x64xf32>
    %2 = tpu.matmul %0, %1, %cst {dimension_numbers = #tpu.dot_dimension_numbers<[1], [0], [0], [1], [0, 0, 1, 1], [], []>} : vector<128x512xbf16>, vector<512x64xbf16>, vector<128x64xf32> -> vector<128x64xf32>
    %c0_3 = arith.constant 0 : index
    %c0_4 = arith.constant 0 : index
    %3 = vector.load %arg3[%c0_3, %c0_4] : memref<1x64xf32, #tpu.memory_space<vmem>>, vector<1x64xf32>
    %4 = vector.broadcast %3 : vector<1x64xf32> to vector<128x64xf32>
    %5 = arith.addf %2, %4 : vector<128x64xf32>
    %cst_5 = arith.constant 0.000000e+00 : f32
    %6 = vector.broadcast %cst_5 : f32 to vector<128x64xf32>
    %7 = arith.maximumf %5, %6 : vector<128x64xf32>
    %8 = arith.truncf %7 : vector<128x64xf32> to vector<128x64xbf16>
    %c0_6 = arith.constant 0 : index
    %c0_7 = arith.constant 0 : index
    %9 = vector.load %arg4[%c0_6, %c0_7] : memref<128x64xbf16, #tpu.memory_space<vmem>>, vector<128x64xbf16>
    tpu.vector_store %arg4[%c0_6, %c0_7], %8 {strides = array<i32>} : memref<128x64xbf16, #tpu.memory_space<vmem>>, vector<128x64xbf16>,
    return
  }
  func.func @transform_0(%arg0: i32) -> (i32, i32) {
    %c0_i32 = arith.constant 0 : i32
    %c0_i32_0 = arith.constant 0 : i32
    return %arg0, %c0_i32 : i32, i32
  }
  func.func @transform_1(%arg0: i32) -> (i32, i32) {
    %c0_i32 = arith.constant 0 : i32
    %c0_i32_0 = arith.constant 0 : i32
    %c0_i32_1 = arith.constant 0 : i32
    return %c0_i32, %c0_i32_0 : i32, i32
  }
  func.func @transform_2(%arg0: i32) -> (i32, i32) {
    %c0_i32 = arith.constant 0 : i32
    %c0_i32_0 = arith.constant 0 : i32
    %c0_i32_1 = arith.constant 0 : i32
    return %c0_i32, %c0_i32_0 : i32, i32
  }
  func.func @transform_3(%arg0: i32) -> (i32, i32) {
    %c0_i32 = arith.constant 0 : i32
    %c0_i32_0 = arith.constant 0 : i32
    return %arg0, %c0_i32 : i32, i32
  }
}

module attributes {stable_mosaic.version = 11 : i64} {
  func.func @_mm_bias_act_kernel(%arg0: i32, %arg1: memref<32x1024xbf16, #tpu.memory_space<vmem>>, %arg2: memref<1024x64xbf16, #tpu.memory_space<vmem>>, %arg3: memref<1x64xf32, #tpu.memory_space<vmem>>, %arg4: memref<32x64xbf16, #tpu.memory_space<vmem>>) attributes {dimension_semantics = [#tpu.dimension_semantics<parallel>], iteration_bounds = array<i64: 1>, scalar_prefetch = 0 : i64, scratch_operands = 0 : i64, tpu.core_type = #tpu.core_type<tc>, window_params = [{transform_indices = @transform_0, window_bounds = array<i64: 32, 1024>}, {pipeline_mode = #tpu.pipeline_mode<synchronous>, transform_indices = @transform_1, window_bounds = array<i64: 1024, 64>}, {pipeline_mode = #tpu.pipeline_mode<synchronous>, transform_indices = @transform_2, window_bounds = array<i64: 1, 64>}, {transform_indices = @transform_3, window_bounds = array<i64: 32, 64>}]} {
    %c0 = arith.constant 0 : index
    %c0_0 = arith.constant 0 : index
    %0 = vector.load %arg1[%c0, %c0_0] : memref<32x1024xbf16, #tpu.memory_space<vmem>>, vector<32x1024xbf16>
    %c0_1 = arith.constant 0 : index
    %c0_2 = arith.constant 0 : index
    %1 = vector.load %arg2[%c0_1, %c0_2] : memref<1024x64xbf16, #tpu.memory_space<vmem>>, vector<1024x64xbf16>
    %cst = arith.constant dense<0.000000e+00> : vector<32x64xf32>
    %2 = tpu.matmul %0, %1, %cst {dimension_numbers = #tpu.dot_dimension_numbers<[1], [0], [0], [1], [0, 0, 1, 1], [], []>} : vector<32x1024xbf16>, vector<1024x64xbf16>, vector<32x64xf32> -> vector<32x64xf32>
    %c0_3 = arith.constant 0 : index
    %c0_4 = arith.constant 0 : index
    %3 = vector.load %arg3[%c0_3, %c0_4] : memref<1x64xf32, #tpu.memory_space<vmem>>, vector<1x64xf32>
    %4 = vector.broadcast %3 : vector<1x64xf32> to vector<32x64xf32>
    %5 = arith.addf %2, %4 : vector<32x64xf32>
    %cst_5 = arith.constant 0.000000e+00 : f32
    %6 = vector.broadcast %cst_5 : f32 to vector<32x64xf32>
    %7 = arith.maximumf %5, %6 : vector<32x64xf32>
    %8 = arith.truncf %7 : vector<32x64xf32> to vector<32x64xbf16>
    %c0_6 = arith.constant 0 : index
    %c0_7 = arith.constant 0 : index
    %9 = vector.load %arg4[%c0_6, %c0_7] : memref<32x64xbf16, #tpu.memory_space<vmem>>, vector<32x64xbf16>
    tpu.vector_store %arg4[%c0_6, %c0_7], %8 {strides = array<i32>} : memref<32x64xbf16, #tpu.memory_space<vmem>>, vector<32x64xbf16>,
    return
  }
  func.func @transform_0(%arg0: i32) -> (i32, i32) {
    %c0_i32 = arith.constant 0 : i32
    %c0_i32_0 = arith.constant 0 : i32
    return %arg0, %c0_i32 : i32, i32
  }
  func.func @transform_1(%arg0: i32) -> (i32, i32) {
    %c0_i32 = arith.constant 0 : i32
    %c0_i32_0 = arith.constant 0 : i32
    %c0_i32_1 = arith.constant 0 : i32
    return %c0_i32, %c0_i32_0 : i32, i32
  }
  func.func @transform_2(%arg0: i32) -> (i32, i32) {
    %c0_i32 = arith.constant 0 : i32
    %c0_i32_0 = arith.constant 0 : i32
    %c0_i32_1 = arith.constant 0 : i32
    return %c0_i32, %c0_i32_0 : i32, i32
  }
  func.func @transform_3(%arg0: i32) -> (i32, i32) {
    %c0_i32 = arith.constant 0 : i32
    %c0_i32_0 = arith.constant 0 : i32
    return %arg0, %c0_i32 : i32, i32
  }
}

module attributes {stable_mosaic.version = 11 : i64} {
  func.func @_dense_chain_kernel(%arg0: memref<2x1024xbf16, #tpu.memory_space<vmem>>, %arg1: memref<2x32xf32, #tpu.memory_space<vmem>>, %arg2: memref<1024x256xbf16, #tpu.memory_space<vmem>>, %arg3: memref<1x256xf32, #tpu.memory_space<vmem>>, %arg4: memref<256x32xbf16, #tpu.memory_space<vmem>>, %arg5: memref<1x32xf32, #tpu.memory_space<vmem>>, %arg6: memref<256x32xbf16, #tpu.memory_space<vmem>>, %arg7: memref<1x32xf32, #tpu.memory_space<vmem>>, %arg8: memref<32x256xbf16, #tpu.memory_space<vmem>>, %arg9: memref<1x256xf32, #tpu.memory_space<vmem>>, %arg10: memref<256x1024xbf16, #tpu.memory_space<vmem>>, %arg11: memref<1x1024xf32, #tpu.memory_space<vmem>>, %arg12: memref<2x1024xbf16, #tpu.memory_space<vmem>>, %arg13: memref<2x32xf32, #tpu.memory_space<vmem>>, %arg14: memref<2x32xf32, #tpu.memory_space<vmem>>) attributes {dimension_semantics = [], scalar_prefetch = 0 : i64, scratch_operands = 0 : i64, tpu.core_type = #tpu.core_type<tc>} {
    %c0 = arith.constant 0 : index
    %c0_0 = arith.constant 0 : index
    %0 = vector.load %arg0[%c0, %c0_0] : memref<2x1024xbf16, #tpu.memory_space<vmem>>, vector<2x1024xbf16>
    %c0_1 = arith.constant 0 : index
    %c0_2 = arith.constant 0 : index
    %1 = vector.load %arg2[%c0_1, %c0_2] : memref<1024x256xbf16, #tpu.memory_space<vmem>>, vector<1024x256xbf16>
    %cst = arith.constant dense<0.000000e+00> : vector<2x256xf32>
    %2 = tpu.matmul %0, %1, %cst {dimension_numbers = #tpu.dot_dimension_numbers<[1], [0], [0], [1], [0, 0, 1, 1], [], []>} : vector<2x1024xbf16>, vector<1024x256xbf16>, vector<2x256xf32> -> vector<2x256xf32>
    %c0_3 = arith.constant 0 : index
    %c0_4 = arith.constant 0 : index
    %3 = vector.load %arg3[%c0_3, %c0_4] : memref<1x256xf32, #tpu.memory_space<vmem>>, vector<1x256xf32>
    %4 = vector.broadcast %3 : vector<1x256xf32> to vector<2x256xf32>
    %5 = arith.addf %2, %4 : vector<2x256xf32>
    %cst_5 = arith.constant 0.000000e+00 : f32
    %6 = vector.broadcast %cst_5 : f32 to vector<2x256xf32>
    %7 = arith.maximumf %5, %6 : vector<2x256xf32>
    %8 = arith.truncf %7 : vector<2x256xf32> to vector<2x256xbf16>
    %c0_6 = arith.constant 0 : index
    %c0_7 = arith.constant 0 : index
    %9 = vector.load %arg4[%c0_6, %c0_7] : memref<256x32xbf16, #tpu.memory_space<vmem>>, vector<256x32xbf16>
    %cst_8 = arith.constant dense<0.000000e+00> : vector<2x32xf32>
    %10 = tpu.matmul %8, %9, %cst_8 {dimension_numbers = #tpu.dot_dimension_numbers<[1], [0], [0], [1], [0, 0, 1, 1], [], []>} : vector<2x256xbf16>, vector<256x32xbf16>, vector<2x32xf32> -> vector<2x32xf32>
    %c0_9 = arith.constant 0 : index
    %c0_10 = arith.constant 0 : index
    %11 = vector.load %arg5[%c0_9, %c0_10] : memref<1x32xf32, #tpu.memory_space<vmem>>, vector<1x32xf32>
    %12 = vector.broadcast %11 : vector<1x32xf32> to vector<2x32xf32>
    %13 = arith.addf %10, %12 : vector<2x32xf32>
    %c0_11 = arith.constant 0 : index
    %c0_12 = arith.constant 0 : index
    %14 = vector.load %arg6[%c0_11, %c0_12] : memref<256x32xbf16, #tpu.memory_space<vmem>>, vector<256x32xbf16>
    %cst_13 = arith.constant dense<0.000000e+00> : vector<2x32xf32>
    %15 = tpu.matmul %8, %14, %cst_13 {dimension_numbers = #tpu.dot_dimension_numbers<[1], [0], [0], [1], [0, 0, 1, 1], [], []>} : vector<2x256xbf16>, vector<256x32xbf16>, vector<2x32xf32> -> vector<2x32xf32>
    %c0_14 = arith.constant 0 : index
    %c0_15 = arith.constant 0 : index
    %16 = vector.load %arg7[%c0_14, %c0_15] : memref<1x32xf32, #tpu.memory_space<vmem>>, vector<1x32xf32>
    %17 = vector.broadcast %16 : vector<1x32xf32> to vector<2x32xf32>
    %18 = arith.addf %15, %17 : vector<2x32xf32>
    %c0_16 = arith.constant 0 : index
    %c0_17 = arith.constant 0 : index
    %19 = vector.load %arg1[%c0_16, %c0_17] : memref<2x32xf32, #tpu.memory_space<vmem>>, vector<2x32xf32>
    %cst_18 = arith.constant 5.000000e-01 : f32
    %20 = vector.broadcast %cst_18 : f32 to vector<2x32xf32>
    %21 = arith.mulf %20, %18 : vector<2x32xf32>
    %22 = math.exp %21 : vector<2x32xf32>
    %23 = arith.mulf %19, %22 : vector<2x32xf32>
    %24 = arith.addf %13, %23 : vector<2x32xf32>
    %25 = arith.truncf %24 : vector<2x32xf32> to vector<2x32xbf16>
    %c0_19 = arith.constant 0 : index
    %c0_20 = arith.constant 0 : index
    %26 = vector.load %arg8[%c0_19, %c0_20] : memref<32x256xbf16, #tpu.memory_space<vmem>>, vector<32x256xbf16>
    %cst_21 = arith.constant dense<0.000000e+00> : vector<2x256xf32>
    %27 = tpu.matmul %25, %26, %cst_21 {dimension_numbers = #tpu.dot_dimension_numbers<[1], [0], [0], [1], [0, 0, 1, 1], [], []>} : vector<2x32xbf16>, vector<32x256xbf16>, vector<2x256xf32> -> vector<2x256xf32>
    %c0_22 = arith.constant 0 : index
    %c0_23 = arith.constant 0 : index
    %28 = vector.load %arg9[%c0_22, %c0_23] : memref<1x256xf32, #tpu.memory_space<vmem>>, vector<1x256xf32>
    %29 = vector.broadcast %28 : vector<1x256xf32> to vector<2x256xf32>
    %30 = arith.addf %27, %29 : vector<2x256xf32>
    %cst_24 = arith.constant 0.000000e+00 : f32
    %31 = vector.broadcast %cst_24 : f32 to vector<2x256xf32>
    %32 = arith.maximumf %30, %31 : vector<2x256xf32>
    %33 = arith.truncf %32 : vector<2x256xf32> to vector<2x256xbf16>
    %c0_25 = arith.constant 0 : index
    %c0_26 = arith.constant 0 : index
    %34 = vector.load %arg10[%c0_25, %c0_26] : memref<256x1024xbf16, #tpu.memory_space<vmem>>, vector<256x1024xbf16>
    %cst_27 = arith.constant dense<0.000000e+00> : vector<2x1024xf32>
    %35 = tpu.matmul %33, %34, %cst_27 {dimension_numbers = #tpu.dot_dimension_numbers<[1], [0], [0], [1], [0, 0, 1, 1], [], []>} : vector<2x256xbf16>, vector<256x1024xbf16>, vector<2x1024xf32> -> vector<2x1024xf32>
    %c0_28 = arith.constant 0 : index
    %c0_29 = arith.constant 0 : index
    %36 = vector.load %arg11[%c0_28, %c0_29] : memref<1x1024xf32, #tpu.memory_space<vmem>>, vector<1x1024xf32>
    %37 = vector.broadcast %36 : vector<1x1024xf32> to vector<2x1024xf32>
    %38 = arith.addf %35, %37 : vector<2x1024xf32>
    %cst_30 = arith.constant 0.000000e+00 : f32
    %39 = vector.broadcast %cst_30 : f32 to vector<2x1024xf32>
    %40 = arith.maximumf %38, %39 : vector<2x1024xf32>
    %41 = arith.truncf %40 : vector<2x1024xf32> to vector<2x1024xbf16>
    %c0_31 = arith.constant 0 : index
    %c0_32 = arith.constant 0 : index
    %42 = vector.load %arg12[%c0_31, %c0_32] : memref<2x1024xbf16, #tpu.memory_space<vmem>>, vector<2x1024xbf16>
    tpu.vector_store %arg12[%c0_31, %c0_32], %41 {strides = array<i32>} : memref<2x1024xbf16, #tpu.memory_space<vmem>>, vector<2x1024xbf16>,
    %c0_33 = arith.constant 0 : index
    %c0_34 = arith.constant 0 : index
    %43 = vector.load %arg13[%c0_33, %c0_34] : memref<2x32xf32, #tpu.memory_space<vmem>>, vector<2x32xf32>
    tpu.vector_store %arg13[%c0_33, %c0_34], %13 {strides = array<i32>} : memref<2x32xf32, #tpu.memory_space<vmem>>, vector<2x32xf32>,
    %c0_35 = arith.constant 0 : index
    %c0_36 = arith.constant 0 : index
    %44 = vector.load %arg14[%c0_35, %c0_36] : memref<2x32xf32, #tpu.memory_space<vmem>>, vector<2x32xf32>
    tpu.vector_store %arg14[%c0_35, %c0_36], %18 {strides = array<i32>} : memref<2x32xf32, #tpu.memory_space<vmem>>, vector<2x32xf32>,
    return
  }
}

module attributes {stable_mosaic.version = 11 : i64} {
  func.func @_mm_bias_act_kernel(%arg0: i32, %arg1: memref<32x576xbf16, #tpu.memory_space<vmem>>, %arg2: memref<576x256xbf16, #tpu.memory_space<vmem>>, %arg3: memref<1x256xf32, #tpu.memory_space<vmem>>, %arg4: memref<32x256xbf16, #tpu.memory_space<vmem>>) attributes {dimension_semantics = [#tpu.dimension_semantics<parallel>], iteration_bounds = array<i64: 1>, scalar_prefetch = 0 : i64, scratch_operands = 0 : i64, tpu.core_type = #tpu.core_type<tc>, window_params = [{transform_indices = @transform_0, window_bounds = array<i64: 32, 576>}, {pipeline_mode = #tpu.pipeline_mode<synchronous>, transform_indices = @transform_1, window_bounds = array<i64: 576, 256>}, {pipeline_mode = #tpu.pipeline_mode<synchronous>, transform_indices = @transform_2, window_bounds = array<i64: 1, 256>}, {transform_indices = @transform_3, window_bounds = array<i64: 32, 256>}]} {
    %c0 = arith.constant 0 : index
    %c0_0 = arith.constant 0 : index
    %0 = vector.load %arg1[%c0, %c0_0] : memref<32x576xbf16, #tpu.memory_space<vmem>>, vector<32x576xbf16>
    %c0_1 = arith.constant 0 : index
    %c0_2 = arith.constant 0 : index
    %1 = vector.load %arg2[%c0_1, %c0_2] : memref<576x256xbf16, #tpu.memory_space<vmem>>, vector<576x256xbf16>
    %cst = arith.constant dense<0.000000e+00> : vector<32x256xf32>
    %2 = tpu.matmul %0, %1, %cst {dimension_numbers = #tpu.dot_dimension_numbers<[1], [0], [0], [1], [0, 0, 1, 1], [], []>} : vector<32x576xbf16>, vector<576x256xbf16>, vector<32x256xf32> -> vector<32x256xf32>
    %c0_3 = arith.constant 0 : index
    %c0_4 = arith.constant 0 : index
    %3 = vector.load %arg3[%c0_3, %c0_4] : memref<1x256xf32, #tpu.memory_space<vmem>>, vector<1x256xf32>
    %4 = vector.broadcast %3 : vector<1x256xf32> to vector<32x256xf32>
    %5 = arith.addf %2, %4 : vector<32x256xf32>
    %cst_5 = arith.constant 0.000000e+00 : f32
    %6 = vector.broadcast %cst_5 : f32 to vector<32x256xf32>
    %7 = arith.maximumf %5, %6 : vector<32x256xf32>
    %8 = arith.truncf %7 : vector<32x256xf32> to vector<32x256xbf16>
    %c0_6 = arith.constant 0 : index
    %c0_7 = arith.constant 0 : index
    %9 = vector.load %arg4[%c0_6, %c0_7] : memref<32x256xbf16, #tpu.memory_space<vmem>>, vector<32x256xbf16>
    tpu.vector_store %arg4[%c0_6, %c0_7], %8 {strides = array<i32>} : memref<32x256xbf16, #tpu.memory_space<vmem>>, vector<32x256xbf16>,
    return
  }
  func.func @transform_0(%arg0: i32) -> (i32, i32) {
    %c0_i32 = arith.constant 0 : i32
    %c0_i32_0 = arith.constant 0 : i32
    return %arg0, %c0_i32 : i32, i32
  }
  func.func @transform_1(%arg0: i32) -> (i32, i32) {
    %c0_i32 = arith.constant 0 : i32
    %c0_i32_0 = arith.constant 0 : i32
    %c0_i32_1 = arith.constant 0 : i32
    return %c0_i32, %c0_i32_0 : i32, i32
  }
  func.func @transform_2(%arg0: i32) -> (i32, i32) {
    %c0_i32 = arith.constant 0 : i32
    %c0_i32_0 = arith.constant 0 : i32
    %c0_i32_1 = arith.constant 0 : i32
    return %c0_i32, %c0_i32_0 : i32, i32
  }
  func.func @transform_3(%arg0: i32) -> (i32, i32) {
    %c0_i32 = arith.constant 0 : i32
    %c0_i32_0 = arith.constant 0 : i32
    return %arg0, %c0_i32 : i32, i32
  }
}

module attributes {stable_mosaic.version = 11 : i64} {
  func.func @_mm_bias_act_kernel(%arg0: i32, %arg1: memref<128x576xbf16, #tpu.memory_space<vmem>>, %arg2: memref<576x128xbf16, #tpu.memory_space<vmem>>, %arg3: memref<1x128xf32, #tpu.memory_space<vmem>>, %arg4: memref<128x128xbf16, #tpu.memory_space<vmem>>) attributes {dimension_semantics = [#tpu.dimension_semantics<parallel>], iteration_bounds = array<i64: 1>, scalar_prefetch = 0 : i64, scratch_operands = 0 : i64, tpu.core_type = #tpu.core_type<tc>, window_params = [{transform_indices = @transform_0, window_bounds = array<i64: 128, 576>}, {pipeline_mode = #tpu.pipeline_mode<synchronous>, transform_indices = @transform_1, window_bounds = array<i64: 576, 128>}, {pipeline_mode = #tpu.pipeline_mode<synchronous>, transform_indices = @transform_2, window_bounds = array<i64: 1, 128>}, {transform_indices = @transform_3, window_bounds = array<i64: 128, 128>}]} {
    %c0 = arith.constant 0 : index
    %c0_0 = arith.constant 0 : index
    %0 = vector.load %arg1[%c0, %c0_0] : memref<128x576xbf16, #tpu.memory_space<vmem>>, vector<128x576xbf16>
    %c0_1 = arith.constant 0 : index
    %c0_2 = arith.constant 0 : index
    %1 = vector.load %arg2[%c0_1, %c0_2] : memref<576x128xbf16, #tpu.memory_space<vmem>>, vector<576x128xbf16>
    %cst = arith.constant dense<0.000000e+00> : vector<128x128xf32>
    %2 = tpu.matmul %0, %1, %cst {dimension_numbers = #tpu.dot_dimension_numbers<[1], [0], [0], [1], [0, 0, 1, 1], [], []>} : vector<128x576xbf16>, vector<576x128xbf16>, vector<128x128xf32> -> vector<128x128xf32>
    %c0_3 = arith.constant 0 : index
    %c0_4 = arith.constant 0 : index
    %3 = vector.load %arg3[%c0_3, %c0_4] : memref<1x128xf32, #tpu.memory_space<vmem>>, vector<1x128xf32>
    %4 = vector.broadcast %3 : vector<1x128xf32> to vector<128x128xf32>
    %5 = arith.addf %2, %4 : vector<128x128xf32>
    %cst_5 = arith.constant 0.000000e+00 : f32
    %6 = vector.broadcast %cst_5 : f32 to vector<128x128xf32>
    %7 = arith.maximumf %5, %6 : vector<128x128xf32>
    %8 = arith.truncf %7 : vector<128x128xf32> to vector<128x128xbf16>
    %c0_6 = arith.constant 0 : index
    %c0_7 = arith.constant 0 : index
    %9 = vector.load %arg4[%c0_6, %c0_7] : memref<128x128xbf16, #tpu.memory_space<vmem>>, vector<128x128xbf16>
    tpu.vector_store %arg4[%c0_6, %c0_7], %8 {strides = array<i32>} : memref<128x128xbf16, #tpu.memory_space<vmem>>, vector<128x128xbf16>,
    return
  }
  func.func @transform_0(%arg0: i32) -> (i32, i32) {
    %c0_i32 = arith.constant 0 : i32
    %c0_i32_0 = arith.constant 0 : i32
    return %arg0, %c0_i32 : i32, i32
  }
  func.func @transform_1(%arg0: i32) -> (i32, i32) {
    %c0_i32 = arith.constant 0 : i32
    %c0_i32_0 = arith.constant 0 : i32
    %c0_i32_1 = arith.constant 0 : i32
    return %c0_i32, %c0_i32_0 : i32, i32
  }
  func.func @transform_2(%arg0: i32) -> (i32, i32) {
    %c0_i32 = arith.constant 0 : i32
    %c0_i32_0 = arith.constant 0 : i32
    %c0_i32_1 = arith.constant 0 : i32
    return %c0_i32, %c0_i32_0 : i32, i32
  }
  func.func @transform_3(%arg0: i32) -> (i32, i32) {
    %c0_i32 = arith.constant 0 : i32
    %c0_i32_0 = arith.constant 0 : i32
    return %arg0, %c0_i32 : i32, i32
  }
}

module attributes {stable_mosaic.version = 11 : i64} {
  func.func @_mm_bias_act_kernel(%arg0: i32, %arg1: memref<256x288xbf16, #tpu.memory_space<vmem>>, %arg2: memref<288x128xbf16, #tpu.memory_space<vmem>>, %arg3: memref<1x128xf32, #tpu.memory_space<vmem>>, %arg4: memref<256x128xbf16, #tpu.memory_space<vmem>>) attributes {dimension_semantics = [#tpu.dimension_semantics<parallel>], iteration_bounds = array<i64: 2>, scalar_prefetch = 0 : i64, scratch_operands = 0 : i64, tpu.core_type = #tpu.core_type<tc>, window_params = [{transform_indices = @transform_0, window_bounds = array<i64: 256, 288>}, {pipeline_mode = #tpu.pipeline_mode<synchronous>, transform_indices = @transform_1, window_bounds = array<i64: 288, 128>}, {pipeline_mode = #tpu.pipeline_mode<synchronous>, transform_indices = @transform_2, window_bounds = array<i64: 1, 128>}, {transform_indices = @transform_3, window_bounds = array<i64: 256, 128>}]} {
    %c0 = arith.constant 0 : index
    %c0_0 = arith.constant 0 : index
    %0 = vector.load %arg1[%c0, %c0_0] : memref<256x288xbf16, #tpu.memory_space<vmem>>, vector<256x288xbf16>
    %c0_1 = arith.constant 0 : index
    %c0_2 = arith.constant 0 : index
    %1 = vector.load %arg2[%c0_1, %c0_2] : memref<288x128xbf16, #tpu.memory_space<vmem>>, vector<288x128xbf16>
    %cst = arith.constant dense<0.000000e+00> : vector<256x128xf32>
    %2 = tpu.matmul %0, %1, %cst {dimension_numbers = #tpu.dot_dimension_numbers<[1], [0], [0], [1], [0, 0, 1, 1], [], []>} : vector<256x288xbf16>, vector<288x128xbf16>, vector<256x128xf32> -> vector<256x128xf32>
    %c0_3 = arith.constant 0 : index
    %c0_4 = arith.constant 0 : index
    %3 = vector.load %arg3[%c0_3, %c0_4] : memref<1x128xf32, #tpu.memory_space<vmem>>, vector<1x128xf32>
    %4 = vector.broadcast %3 : vector<1x128xf32> to vector<256x128xf32>
    %5 = arith.addf %2, %4 : vector<256x128xf32>
    %cst_5 = arith.constant 0.000000e+00 : f32
    %6 = vector.broadcast %cst_5 : f32 to vector<256x128xf32>
    %7 = arith.maximumf %5, %6 : vector<256x128xf32>
    %8 = arith.truncf %7 : vector<256x128xf32> to vector<256x128xbf16>
    %c0_6 = arith.constant 0 : index
    %c0_7 = arith.constant 0 : index
    %9 = vector.load %arg4[%c0_6, %c0_7] : memref<256x128xbf16, #tpu.memory_space<vmem>>, vector<256x128xbf16>
    tpu.vector_store %arg4[%c0_6, %c0_7], %8 {strides = array<i32>} : memref<256x128xbf16, #tpu.memory_space<vmem>>, vector<256x128xbf16>,
    return
  }
  func.func @transform_0(%arg0: i32) -> (i32, i32) {
    %c0_i32 = arith.constant 0 : i32
    %c0_i32_0 = arith.constant 0 : i32
    return %arg0, %c0_i32 : i32, i32
  }
  func.func @transform_1(%arg0: i32) -> (i32, i32) {
    %c0_i32 = arith.constant 0 : i32
    %c0_i32_0 = arith.constant 0 : i32
    %c0_i32_1 = arith.constant 0 : i32
    return %c0_i32, %c0_i32_0 : i32, i32
  }
  func.func @transform_2(%arg0: i32) -> (i32, i32) {
    %c0_i32 = arith.constant 0 : i32
    %c0_i32_0 = arith.constant 0 : i32
    %c0_i32_1 = arith.constant 0 : i32
    return %c0_i32, %c0_i32_0 : i32, i32
  }
  func.func @transform_3(%arg0: i32) -> (i32, i32) {
    %c0_i32 = arith.constant 0 : i32
    %c0_i32_0 = arith.constant 0 : i32
    return %arg0, %c0_i32 : i32, i32
  }
}

module attributes {stable_mosaic.version = 11 : i64} {
  func.func @_mm_bias_act_kernel(%arg0: i32, %arg1: memref<512x288xbf16, #tpu.memory_space<vmem>>, %arg2: memref<288x12xbf16, #tpu.memory_space<vmem>>, %arg3: memref<1x12xf32, #tpu.memory_space<vmem>>, %arg4: memref<512x12xf32, #tpu.memory_space<vmem>>) attributes {dimension_semantics = [#tpu.dimension_semantics<parallel>], iteration_bounds = array<i64: 4>, scalar_prefetch = 0 : i64, scratch_operands = 0 : i64, tpu.core_type = #tpu.core_type<tc>, window_params = [{transform_indices = @transform_0, window_bounds = array<i64: 512, 288>}, {pipeline_mode = #tpu.pipeline_mode<synchronous>, transform_indices = @transform_1, window_bounds = array<i64: 288, 12>}, {pipeline_mode = #tpu.pipeline_mode<synchronous>, transform_indices = @transform_2, window_bounds = array<i64: 1, 12>}, {transform_indices = @transform_3, window_bounds = array<i64: 512, 12>}]} {
    %c0 = arith.constant 0 : index
    %c0_0 = arith.constant 0 : index
    %0 = vector.load %arg1[%c0, %c0_0] : memref<512x288xbf16, #tpu.memory_space<vmem>>, vector<512x288xbf16>
    %c0_1 = arith.constant 0 : index
    %c0_2 = arith.constant 0 : index
    %1 = vector.load %arg2[%c0_1, %c0_2] : memref<288x12xbf16, #tpu.memory_space<vmem>>, vector<288x12xbf16>
    %cst = arith.constant dense<0.000000e+00> : vector<512x12xf32>
    %2 = tpu.matmul %0, %1, %cst {dimension_numbers = #tpu.dot_dimension_numbers<[1], [0], [0], [1], [0, 0, 1, 1], [], []>} : vector<512x288xbf16>, vector<288x12xbf16>, vector<512x12xf32> -> vector<512x12xf32>
    %c0_3 = arith.constant 0 : index
    %c0_4 = arith.constant 0 : index
    %3 = vector.load %arg3[%c0_3, %c0_4] : memref<1x12xf32, #tpu.memory_space<vmem>>, vector<1x12xf32>
    %4 = vector.broadcast %3 : vector<1x12xf32> to vector<512x12xf32>
    %5 = arith.addf %2, %4 : vector<512x12xf32>
    %cst_5 = arith.constant 0.000000e+00 : f32
    %6 = vector.broadcast %cst_5 : f32 to vector<512x12xf32>
    %7 = arith.cmpf oge, %5, %6 : vector<512x12xf32>
    %cst_6 = arith.constant 0.000000e+00 : f32
    %8 = vector.broadcast %cst_6 : f32 to vector<512x12xf32>
    %9 = arith.subf %8, %5 : vector<512x12xf32>
    %10 = arith.select %7, %9, %5 : vector<512x12xi1>, vector<512x12xf32>
    %11 = math.exp %10 : vector<512x12xf32>
    %cst_7 = arith.constant 1.000000e+00 : f32
    %12 = vector.broadcast %cst_7 : f32 to vector<512x12xf32>
    %13 = arith.addf %12, %11 : vector<512x12xf32>
    %cst_8 = arith.constant 1.000000e+00 : f32
    %14 = vector.broadcast %cst_8 : f32 to vector<512x12xf32>
    %15 = arith.divf %14, %13 : vector<512x12xf32>
    %cst_9 = arith.constant 1.000000e+00 : f32
    %16 = vector.broadcast %cst_9 : f32 to vector<512x12xf32>
    %17 = arith.addf %16, %11 : vector<512x12xf32>
    %18 = arith.divf %11, %17 : vector<512x12xf32>
    %19 = arith.select %7, %15, %18 : vector<512x12xi1>, vector<512x12xf32>
    %c0_10 = arith.constant 0 : index
    %c0_11 = arith.constant 0 : index
    %20 = vector.load %arg4[%c0_10, %c0_11] : memref<512x12xf32, #tpu.memory_space<vmem>>, vector<512x12xf32>
    tpu.vector_store %arg4[%c0_10, %c0_11], %19 {strides = array<i32>} : memref<512x12xf32, #tpu.memory_space<vmem>>, vector<512x12xf32>,
    return
  }
  func.func @transform_0(%arg0: i32) -> (i32, i32) {
    %c0_i32 = arith.constant 0 : i32
    %c0_i32_0 = arith.constant 0 : i32
    return %arg0, %c0_i32 : i32, i32
  }
  func.func @transform_1(%arg0: i32) -> (i32, i32) {
    %c0_i32 = arith.constant 0 : i32
    %c0_i32_0 = arith.constant 0 : i32
    %c0_i32_1 = arith.constant 0 : i32
    return %c0_i32, %c0_i32_0 : i32, i32
  }
  func.func @transform_2(%arg0: i32) -> (i32, i32) {
    %c0_i32 = arith.constant 0 : i32
    %c0_i32_0 = arith.constant 0 : i32
    %c0_i32_1 = arith.constant 0 : i32
    return %c0_i32, %c0_i32_0 : i32, i32
  }
  func.func @transform_3(%arg0: i32) -> (i32, i32) {
    %c0_i32 = arith.constant 0 : i32
    %c0_i32_0 = arith.constant 0 : i32
    return %arg0, %c0_i32 : i32, i32
  }
}

</mosaic_0001>

<bundles_post_ra>
// kernel: vae_forward.9
= control target key start
LH: loop header
LB: loop body
LE: loop exit
PB: predicated region body
PF: predicated region fallthrough
CT: control target
= control target key end

     0   :  { %8 = vsyncpa [#allocation3], 0  ;;  %s1717_s12 = smov 0   ;;  %s2054_s0 = inlined_call_operand.vmem [shape: bf16[2048,48], index: 0, kind: input, shape index: {}]   ;;  %s2055_s1 = inlined_call_operand.vmem [shape: bf16[48,32], index: 1, kind: input, shape index: {}]   ;;  %s2056_s2 = inlined_call_operand.hbm [shape: f32[1,32], index: 2, kind: input, shape index: {}]   ;;  %s2057_s3 = inlined_call_operand.vmem [shape: bf16[2048,32], index: 3, kind: output, shape index: {}]  }
   0x1 LB: > { %s1282_s13 = sadd.s32 4294967295, %s1694_s12   ;;  %p1284_p0 = scmp.ge.s32.totalorder %s1694_s12, 1  ;;  %s1694_s12 = sphi %s1717_s12, %s14_s12  }
   0x2   : > { %p113_p1 = scmp.lt.s32.totalorder %s1694_s12, 5  ;;  %p1731_p3 = scmp.eq.s32.totalorder %s1282_s13, 0 }
   0x3   : > { %s1696_s16 = smov [#allocation2]   ;;  %s1656_s21 = scalar_lea.hbm %s2056_s2, 16 }
   0x4   : > { %p1725_p2 = pnand %p1284_p0, %p113_p1  ;;  %s129_s17 = sshll.u32 %s1696_s16, 4  ;;  %s130_s17 = int_to_ptr.vmem [resolvable:$true] %s129_s17 }
   0x5   : > { %s2062_s15 = scalar_select %p1731_p3, 1, 0 }
   0x6   : > { %s2061_s14 = scalar_select %p1725_p2, 1, 0 }
   0x7   : > { %p1606_p4 = pneg %p1725_p2  ;;  %p1657_p6 = scmp.ne.s32.totalorder %s2056_s2, %s1656_s21 }
   0x8   : > { %p1663_p10 = scmp.lt.u32.totalorder %s1656_s21, %s2056_s2 }
   0x9   : > { %p1739_p5 = pnand %p1731_p3, %p1606_p4 }
   0xb   : > { %p1658_p7 = pneg %p1739_p5 }
   0xd   : > { %p1659_p8 = pnand %p1658_p7, %p1657_p6 }
   0xf   : > { %p1660_p9 = pneg %p1659_p8 }
  0x11   : > { %p1665_p11 = pnand %p1663_p10, %p1660_p9 }
  0x13   : > { %1668 = shalt.err (!%p1665_p11)
}
  0x14   : > { %s1669_s26 = scalar_lea.vmem %s130_s17, 16  ;;  %s1676_s27 = scalar_lea.vmem %s130_s17, 32 }
  0x15   : > { %p1670_p12 = scmp.ne.s32.totalorder %s130_s17, %s1669_s26  ;;  %p1677_p1 = scmp.lt.s32.totalorder %s130_s17, %s130_s17 }
  0x16   : > { %p1678_p4 = scmp.lt.s32.totalorder %s1676_s27, %s1669_s26 }
  0x17   : > { %p1672_p13 = pnand %p1670_p12, %p1658_p7 }
  0x18   : > { %p1679_p3 = por %p1678_p4, %p1677_p1 }
  0x19   : > { %p1673_p0 = pneg %p1672_p13 }
  0x1b   : > { %p1680_p2 = pnand %p1679_p3, %p1673_p0 }
  0x1d   : > { %1683 = shalt.err (!%p1680_p2)
}
  0x1e   : > { %1609 = dma.hbm_to_vmem [thread:$0]  (!%p1739_p5), %s2056_s2, 16, %s130_s17, [#allocation3]  }
  0x1f   : > { %p2064_p6 = scmp.ne.s32.totalorder %s2061_s14, 0 }
  0x20   : > { %p2065_p8 = scmp.ne.s32.totalorder (!%p2064_p6), %s2062_s15, 0 }
  0x21   : > { %151 = sbr.rel (%p2064_p6) target bundleno = 332 (0x14c), region = 32 }
  0x28   : > { %1689 = dma.done.wait (%p2065_p8), [#allocation3], 16  }
  0x29   : > { %1691 = vsyncadd (%p2065_p8), [#allocation3], 4294967280  ;;  %s1289_s30 = sshll.u32 %s1282_s13, 6  ;;  %v1621_v0 = vld [vmem:[%s2055_s1] sm:$0xff]   ;;  %v1622_v1 = vld [vmem:[%s2055_s1 + $0x8] sm:$0xff]   ;;  %vm443_vm0 = vcmask 392192  }
  0x2a   : > { %p176_p3 = scmp.lt.s32.totalorder %s1289_s30, 255  ;;  %1526 = vmatprep.subr.bf16.mxu0 %v1621_v0  ;;  %1596 = vmatprep.subr.bf16.mxu1 %v1621_v0  ;;  %v1623_v2 = vld [vmem:[%s2055_s1 + $0x10] sm:$0xff]   ;;  %v1850_v35 = vld [vmem:[#allocation2] ss:$0 sm:$0xff]  ;;  %vm1149_vm1 = vcmask 257024  }
  0x2b   : > { %1527 = vmatpush3.bf16.msra.mxu0 %v1621_v0  ;;  %1599 = vmatpush3.bf16.msra.mxu1 %v1621_v0 }
  0x2c   : > { %s2067_s30 = smov (!%p176_p3, %s1289_s30), 255  ;;  %1528 = vmatprep.subr.bf16.mxu0 %v1622_v1  ;;  %1597 = vmatprep.subr.bf16.mxu1 %v1622_v1 }
  0x2d   : > { %s1290_s4 = sshll.u32 %s2067_s30, 2 }
  0x2e   : > { %s1778_s9 = scalar_lea.vmem %s2054_s0, %s1290_s4  ;;  %s1863_s17 = scalar_lea.vmem %s2057_s3, %s1290_s4 }
  0x2f   : > { %v1624_v3 = vld [vmem:[%s1778_s9] sm:$0xff]   ;;  %1529 = vmatpush3.bf16.msra.mxu0 %v1622_v1  ;;  %1600 = vmatpush3.bf16.msra.mxu1 %v1622_v1  ;;  %v1626_v5 = vld [vmem:[%s1778_s9 + $0x8] sm:$0xff]   ;;  %v1628_v7 = vld [vmem:[%s1778_s9 + $0x10] sm:$0xff]  }
  0x30   : > { %v1625_v4 = vld [vmem:[%s1778_s9 + $0x80] sm:$0xff]   ;;  %1532 = vmatprep.mubr.msk.bf16.mxu0 %vm443_vm0, %v1624_v3  ;;  %1530 = vmatprep.subr.bf16.mxu0 %v1623_v2  ;;  %v1627_v6 = vld [vmem:[%s1778_s9 + $0x88] sm:$0xff]   ;;  %v1629_v8 = vld [vmem:[%s1778_s9 + $0x90] sm:$0xff]  }
  0x31   : > { %1564 = vmatprep.mubr.msk.bf16.mxu1 %vm443_vm0, %v1625_v4  ;;  %1598 = vmatprep.subr.bf16.mxu1 %v1623_v2  ;;  %v1630_v9 = vld [vmem:[%s1778_s9 + $0x18] sm:$0xff]   ;;  %v1632_v11 = vld [vmem:[%s1778_s9 + $0x20] sm:$0xff]   ;;  %v1634_v13 = vld [vmem:[%s1778_s9 + $0x28] sm:$0xff]  }
  0x32   : > { %v1631_v10 = vld [vmem:[%s1778_s9 + $0x98] sm:$0xff]   ;;  %v1633_v12 = vld [vmem:[%s1778_s9 + $0xa0] sm:$0xff]   ;;  %v1635_v14 = vld [vmem:[%s1778_s9 + $0xa8] sm:$0xff]  }
  0x33   : > { %1531 = vmatpush3.bf16.msra.mxu0 %v1623_v2  ;;  %1601 = vmatpush3.bf16.msra.mxu1 %v1623_v2  ;;  %v1636_v15 = vld [vmem:[%s1778_s9 + $0x30] sm:$0xff]   ;;  %v1638_v17 = vld [vmem:[%s1778_s9 + $0x38] sm:$0xff]   ;;  %v1640_v19 = vld [vmem:[%s1778_s9 + $0x40] sm:$0xff]  }
  0x34   : > { %v1637_v16 = vld [vmem:[%s1778_s9 + $0xb0] sm:$0xff]   ;;  %v1639_v18 = vld [vmem:[%s1778_s9 + $0xb8] sm:$0xff]   ;;  %v1641_v20 = vld [vmem:[%s1778_s9 + $0xc0] sm:$0xff]  }
  0x35   : > { %v1642_v21 = vld [vmem:[%s1778_s9 + $0x48] sm:$0xff]   ;;  %v1644_v23 = vld [vmem:[%s1778_s9 + $0x50] sm:$0xff]   ;;  %v1646_v25 = vld [vmem:[%s1778_s9 + $0x58] sm:$0xff]  }
  0x36   : > { %1533 = vmatmul.mubr.msk.bf16.vlgmr.msra.gmra.mrb[0].mxu0 %vm443_vm0, %v1626_v5  ;;  %1565 = vmatmul.mubr.msk.bf16.vlgmr.msra.gmra.mrb[0].mxu1 %vm443_vm0, %v1627_v6  ;;  %v1643_v22 = vld [vmem:[%s1778_s9 + $0xc8] sm:$0xff]   ;;  %v1645_v24 = vld [vmem:[%s1778_s9 + $0xd0] sm:$0xff]   ;;  %v1647_v26 = vld [vmem:[%s1778_s9 + $0xd8] sm:$0xff]  }
  0x37   : > { %1536 = vmatprep.mubr.msk.bf16.mxu0 %vm443_vm0, %v1628_v7  ;;  %1568 = vmatprep.mubr.msk.bf16.mxu1 %vm443_vm0, %v1629_v8  ;;  %v1648_v27 = vld [vmem:[%s1778_s9 + $0x60] sm:$0xff]   ;;  %v1650_v29 = vld [vmem:[%s1778_s9 + $0x68] sm:$0xff]   ;;  %v1652_v31 = vld [vmem:[%s1778_s9 + $0x70] sm:$0xff]  }
  0x38   : > { %v1649_v28 = vld [vmem:[%s1778_s9 + $0xe0] sm:$0xff]   ;;  %v1651_v30 = vld [vmem:[%s1778_s9 + $0xe8] sm:$0xff]   ;;  %v1653_v32 = vld [vmem:[%s1778_s9 + $0xf0] sm:$0xff]  }
  0x39   : > { %v1654_v33 = vld [vmem:[%s1778_s9 + $0x78] sm:$0xff]  }
  0x3a   : > { %v1655_v34 = vld [vmem:[%s1778_s9 + $0xf8] sm:$0xff]  }
  0x3e   : > { %1537 = vmatmul.mubr.msk.bf16.gmra.mrb[4].mxu0 %vm443_vm0, %v1630_v9  ;;  %1569 = vmatmul.mubr.msk.bf16.gmra.mrb[4].mxu1 %vm443_vm0, %v1631_v10 }
  0x3f   : > { %1540 = vmatprep.mubr.msk.bf16.mxu0 %vm443_vm0, %v1632_v11  ;;  %1572 = vmatprep.mubr.msk.bf16.mxu1 %vm443_vm0, %v1633_v12 }
  0x46   : > { %1541 = vmatmul.mubr.msk.bf16.gmra.mrb[8].mxu0 %vm443_vm0, %v1634_v13  ;;  %1573 = vmatmul.mubr.msk.bf16.gmra.mrb[8].mxu1 %vm443_vm0, %v1635_v14 }
  0x47   : > { %1544 = vmatprep.mubr.msk.bf16.mxu0 %vm443_vm0, %v1636_v15  ;;  %1576 = vmatprep.mubr.msk.bf16.mxu1 %vm443_vm0, %v1637_v16 }
  0x4e   : > { %1545 = vmatmul.mubr.msk.bf16.gmra.mrb[12].mxu0 %vm443_vm0, %v1638_v17  ;;  %1577 = vmatmul.mubr.msk.bf16.gmra.mrb[12].mxu1 %vm443_vm0, %v1639_v18 }
  0x4f   : > { %1548 = vmatprep.mubr.msk.bf16.mxu0 %vm443_vm0, %v1640_v19  ;;  %1580 = vmatprep.mubr.msk.bf16.mxu1 %vm443_vm0, %v1641_v20 }
  0x56   : > { %1549 = vmatmul.mubr.msk.bf16.gmra.mrb[16].mxu0 %vm443_vm0, %v1642_v21  ;;  %1581 = vmatmul.mubr.msk.bf16.gmra.mrb[16].mxu1 %vm443_vm0, %v1643_v22 }
  0x57   : > { %1552 = vmatprep.mubr.msk.bf16.mxu0 %vm443_vm0, %v1644_v23  ;;  %1584 = vmatprep.mubr.msk.bf16.mxu1 %vm443_vm0, %v1645_v24 }
  0x5e   : > { %1553 = vmatmul.mubr.msk.bf16.gmra.mrb[20].mxu0 %vm443_vm0, %v1646_v25  ;;  %1585 = vmatmul.mubr.msk.bf16.gmra.mrb[20].mxu1 %vm443_vm0, %v1647_v26 }
  0x5f   : > { %1556 = vmatprep.mubr.msk.bf16.mxu0 %vm443_vm0, %v1648_v27  ;;  %1588 = vmatprep.mubr.msk.bf16.mxu1 %vm443_vm0, %v1649_v28 }
  0x66   : > { %1557 = vmatmul.mubr.msk.bf16.gmra.mrb[24].mxu0 %vm443_vm0, %v1650_v29  ;;  %1589 = vmatmul.mubr.msk.bf16.gmra.mrb[24].mxu1 %vm443_vm0, %v1651_v30 }
  0x67   : > { %1560 = vmatprep.mubr.msk.bf16.mxu0 %vm443_vm0, %v1652_v31  ;;  %1592 = vmatprep.mubr.msk.bf16.mxu1 %vm443_vm0, %v1653_v32 }
  0x6e   : > { %1561 = vmatmul.mubr.msk.bf16.gmra.mrb[28].mxu0 %vm443_vm0, %v1654_v33  ;;  %1593 = vmatmul.mubr.msk.bf16.gmra.mrb[28].mxu1 %vm443_vm0, %v1655_v34 }
 0x109   : > { %v1534_v36 = vpop.f32.mrb[0].mxu0  ;;  %v1566_v37 = vpop.f32.mrb[0].mxu1 }
 0x10a   : > { %v583_v38 = vadd.f32 %v1534_v36, %v1850_v35  ;;  %v711_v39 = vadd.f32 %v1566_v37, %v1850_v35  ;;  %v574_v40 = vpop.f32.mrb[1].mxu0  ;;  %v702_v41 = vpop.f32.mrb[1].mxu1 }
 0x10b   : > { %v575_v42 = vadd.f32 %v1850_v35, %v574_v40  ;;  %v703_v43 = vadd.f32 %v1850_v35, %v702_v41  ;;  %v1535_v44 = vpop.f32.mrb[2].mxu0  ;;  %v1567_v45 = vpop.f32.mrb[2].mxu1 }
 0x10c   : > { %v831_v46 = vmax.f32 %v583_v38, 0.0  ;;  %v863_v47 = vmax.f32 %v711_v39, 0.0  ;;  %v586_v48 = vadd.f32 %v1535_v44, %v1850_v35  ;;  %v714_v49 = vadd.f32 %v1567_v45, %v1850_v35  ;;  %v577_v50 = vpop.f32.mrb[3].mxu0  ;;  %v705_v51 = vpop.f32.mrb[3].mxu1 }
 0x10d   : > { %v829_v52 = vmax.f32 %v575_v42, 0.0  ;;  %v861_v53 = vmax.f32 %v703_v43, 0.0  ;;  %v578_v54 = vadd.f32 %v1850_v35, %v577_v50  ;;  %v706_v55 = vadd.f32 %v1850_v35, %v705_v51 }
 0x10e   : > { %v1429_v56 = vpack.c.bf16 %v831_v46, %v831_v46  ;;  %v1461_v57 = vpack.c.bf16 %v863_v47, %v863_v47  ;;  %v832_v58 = vmax.f32 %v586_v48, 0.0  ;;  %v864_v59 = vmax.f32 %v714_v49, 0.0 }
 0x10f   : > { %v1427_v60 = vpack.c.bf16 %v829_v52, %v829_v52  ;;  %v1459_v61 = vpack.c.bf16 %v861_v53, %v861_v53  ;;  %v830_v62 = vmax.f32 %v578_v54, 0.0  ;;  %v862_v63 = vmax.f32 %v706_v55, 0.0 }
 0x110   : > { %1152 = vst.msk [vmem:[%s1863_s17 + $0x8] sm:$0xf] %vm1149_vm1, %v1429_v56  ;;  %1184 = vst.msk [vmem:[%s1863_s17 + $0x88] sm:$0xf] %vm1149_vm1, %v1461_v57  ;;  %v1430_v0 = vpack.c.bf16 %v832_v58, %v832_v58  ;;  %v1462_v1 = vpack.c.bf16 %v864_v59, %v864_v59 }
 0x111   : > { %1150 = vst.msk [vmem:[%s1863_s17] sm:$0xf] %vm1149_vm1, %v1427_v60  ;;  %1182 = vst.msk [vmem:[%s1863_s17 + $0x80] sm:$0xf] %vm1149_vm1, %v1459_v61  ;;  %v1428_v2 = vpack.c.bf16 %v830_v62, %v830_v62  ;;  %v1460_v3 = vpack.c.bf16 %v862_v63, %v862_v63  ;;  %v1538_v4 = vpop.f32.mrb[4].mxu0  ;;  %v1570_v5 = vpop.f32.mrb[4].mxu1 }
 0x112   : > { %1153 = vst.msk [vmem:[%s1863_s17 + $0xc] sm:$0xf] %vm1149_vm1, %v1430_v0  ;;  %1185 = vst.msk [vmem:[%s1863_s17 + $0x8c] sm:$0xf] %vm1149_vm1, %v1462_v1  ;;  %v599_v6 = vadd.f32 %v1538_v4, %v1850_v35  ;;  %v727_v7 = vadd.f32 %v1570_v5, %v1850_v35  ;;  %v590_v8 = vpop.f32.mrb[5].mxu0  ;;  %v718_v9 = vpop.f32.mrb[5].mxu1 }
 0x113   : > { %1151 = vst.msk [vmem:[%s1863_s17 + $0x4] sm:$0xf] %vm1149_vm1, %v1428_v2  ;;  %1183 = vst.msk [vmem:[%s1863_s17 + $0x84] sm:$0xf] %vm1149_vm1, %v1460_v3  ;;  %v591_v10 = vadd.f32 %v1850_v35, %v590_v8  ;;  %v719_v11 = vadd.f32 %v1850_v35, %v718_v9  ;;  %v1539_v12 = vpop.f32.mrb[6].mxu0  ;;  %v1571_v13 = vpop.f32.mrb[6].mxu1 }
 0x114   : > { %v835_v14 = vmax.f32 %v599_v6, 0.0  ;;  %v867_v15 = vmax.f32 %v727_v7, 0.0  ;;  %v602_v16 = vadd.f32 %v1539_v12, %v1850_v35  ;;  %v730_v17 = vadd.f32 %v1571_v13, %v1850_v35  ;;  %v593_v18 = vpop.f32.mrb[7].mxu0  ;;  %v721_v19 = vpop.f32.mrb[7].mxu1 }
 0x115   : > { %v833_v20 = vmax.f32 %v591_v10, 0.0  ;;  %v865_v21 = vmax.f32 %v719_v11, 0.0  ;;  %v594_v22 = vadd.f32 %v1850_v35, %v593_v18  ;;  %v722_v23 = vadd.f32 %v1850_v35, %v721_v19 }
 0x116   : > { %v1433_v24 = vpack.c.bf16 %v835_v14, %v835_v14  ;;  %v1465_v25 = vpack.c.bf16 %v867_v15, %v867_v15  ;;  %v836_v26 = vmax.f32 %v602_v16, 0.0  ;;  %v868_v27 = vmax.f32 %v730_v17, 0.0 }
 0x117   : > { %v1431_v28 = vpack.c.bf16 %v833_v20, %v833_v20  ;;  %v1463_v29 = vpack.c.bf16 %v865_v21, %v865_v21  ;;  %v834_v30 = vmax.f32 %v594_v22, 0.0  ;;  %v866_v31 = vmax.f32 %v722_v23, 0.0 }
 0x118   : > { %1156 = vst.msk [vmem:[%s1863_s17 + $0x18] sm:$0xf] %vm1149_vm1, %v1433_v24  ;;  %1188 = vst.msk [vmem:[%s1863_s17 + $0x98] sm:$0xf] %vm1149_vm1, %v1465_v25  ;;  %v1434_v32 = vpack.c.bf16 %v836_v26, %v836_v26  ;;  %v1466_v33 = vpack.c.bf16 %v868_v27, %v868_v27 }
 0x119   : > { %1154 = vst.msk [vmem:[%s1863_s17 + $0x10] sm:$0xf] %vm1149_vm1, %v1431_v28  ;;  %1186 = vst.msk [vmem:[%s1863_s17 + $0x90] sm:$0xf] %vm1149_vm1, %v1463_v29  ;;  %v1432_v34 = vpack.c.bf16 %v834_v30, %v834_v30  ;;  %v1464_v36 = vpack.c.bf16 %v866_v31, %v866_v31  ;;  %v1542_v37 = vpop.f32.mrb[8].mxu0  ;;  %v1574_v38 = vpop.f32.mrb[8].mxu1 }
 0x11a   : > { %1157 = vst.msk [vmem:[%s1863_s17 + $0x1c] sm:$0xf] %vm1149_vm1, %v1434_v32  ;;  %1189 = vst.msk [vmem:[%s1863_s17 + $0x9c] sm:$0xf] %vm1149_vm1, %v1466_v33  ;;  %v615_v39 = vadd.f32 %v1542_v37, %v1850_v35  ;;  %v743_v40 = vadd.f32 %v1574_v38, %v1850_v35  ;;  %v606_v41 = vpop.f32.mrb[9].mxu0  ;;  %v734_v42 = vpop.f32.mrb[9].mxu1 }
 0x11b   : > { %1155 = vst.msk [vmem:[%s1863_s17 + $0x14] sm:$0xf] %vm1149_vm1, %v1432_v34  ;;  %1187 = vst.msk [vmem:[%s1863_s17 + $0x94] sm:$0xf] %vm1149_vm1, %v1464_v36  ;;  %v607_v43 = vadd.f32 %v1850_v35, %v606_v41  ;;  %v735_v44 = vadd.f32 %v1850_v35, %v734_v42  ;;  %v1543_v45 = vpop.f32.mrb[10].mxu0  ;;  %v1575_v46 = vpop.f32.mrb[10].mxu1 }
 0x11c   : > { %v839_v47 = vmax.f32 %v615_v39, 0.0  ;;  %v871_v48 = vmax.f32 %v743_v40, 0.0  ;;  %v618_v49 = vadd.f32 %v1543_v45, %v1850_v35  ;;  %v746_v50 = vadd.f32 %v1575_v46, %v1850_v35  ;;  %v609_v51 = vpop.f32.mrb[11].mxu0  ;;  %v737_v52 = vpop.f32.mrb[11].mxu1 }
 0x11d   : > { %v837_v53 = vmax.f32 %v607_v43, 0.0  ;;  %v869_v54 = vmax.f32 %v735_v44, 0.0  ;;  %v610_v55 = vadd.f32 %v1850_v35, %v609_v51  ;;  %v738_v56 = vadd.f32 %v1850_v35, %v737_v52 }
 0x11e   : > { %v1437_v57 = vpack.c.bf16 %v839_v47, %v839_v47  ;;  %v1469_v58 = vpack.c.bf16 %v871_v48, %v871_v48  ;;  %v840_v59 = vmax.f32 %v618_v49, 0.0  ;;  %v872_v60 = vmax.f32 %v746_v50, 0.0 }
 0x11f   : > { %v1435_v61 = vpack.c.bf16 %v837_v53, %v837_v53  ;;  %v1467_v62 = vpack.c.bf16 %v869_v54, %v869_v54  ;;  %v838_v63 = vmax.f32 %v610_v55, 0.0  ;;  %v870_v0 = vmax.f32 %v738_v56, 0.0 }
 0x120   : > { %1160 = vst.msk [vmem:[%s1863_s17 + $0x28] sm:$0xf] %vm1149_vm1, %v1437_v57  ;;  %1192 = vst.msk [vmem:[%s1863_s17 + $0xa8] sm:$0xf] %vm1149_vm1, %v1469_v58  ;;  %v1438_v1 = vpack.c.bf16 %v840_v59, %v840_v59  ;;  %v1470_v2 = vpack.c.bf16 %v872_v60, %v872_v60 }
 0x121   : > { %1158 = vst.msk [vmem:[%s1863_s17 + $0x20] sm:$0xf] %vm1149_vm1, %v1435_v61  ;;  %1190 = vst.msk [vmem:[%s1863_s17 + $0xa0] sm:$0xf] %vm1149_vm1, %v1467_v62  ;;  %v1436_v3 = vpack.c.bf16 %v838_v63, %v838_v63  ;;  %v1468_v4 = vpack.c.bf16 %v870_v0, %v870_v0  ;;  %v1546_v5 = vpop.f32.mrb[12].mxu0  ;;  %v1578_v6 = vpop.f32.mrb[12].mxu1 }
 0x122   : > { %1161 = vst.msk [vmem:[%s1863_s17 + $0x2c] sm:$0xf] %vm1149_vm1, %v1438_v1  ;;  %1193 = vst.msk [vmem:[%s1863_s17 + $0xac] sm:$0xf] %vm1149_vm1, %v1470_v2  ;;  %v631_v7 = vadd.f32 %v1546_v5, %v1850_v35  ;;  %v759_v8 = vadd.f32 %v1578_v6, %v1850_v35  ;;  %v622_v9 = vpop.f32.mrb[13].mxu0  ;;  %v750_v10 = vpop.f32.mrb[13].mxu1 }
 0x123   : > { %1159 = vst.msk [vmem:[%s1863_s17 + $0x24] sm:$0xf] %vm1149_vm1, %v1436_v3  ;;  %1191 = vst.msk [vmem:[%s1863_s17 + $0xa4] sm:$0xf] %vm1149_vm1, %v1468_v4  ;;  %v623_v11 = vadd.f32 %v1850_v35, %v622_v9  ;;  %v751_v12 = vadd.f32 %v1850_v35, %v750_v10  ;;  %v1547_v13 = vpop.f32.mrb[14].mxu0  ;;  %v1579_v14 = vpop.f32.mrb[14].mxu1 }
 0x124   : > { %v843_v15 = vmax.f32 %v631_v7, 0.0  ;;  %v875_v16 = vmax.f32 %v759_v8, 0.0  ;;  %v634_v17 = vadd.f32 %v1547_v13, %v1850_v35  ;;  %v762_v18 = vadd.f32 %v1579_v14, %v1850_v35  ;;  %v625_v19 = vpop.f32.mrb[15].mxu0  ;;  %v753_v20 = vpop.f32.mrb[15].mxu1 }
 0x125   : > { %v841_v21 = vmax.f32 %v623_v11, 0.0  ;;  %v873_v22 = vmax.f32 %v751_v12, 0.0  ;;  %v626_v23 = vadd.f32 %v1850_v35, %v625_v19  ;;  %v754_v24 = vadd.f32 %v1850_v35, %v753_v20 }
 0x126   : > { %v1441_v25 = vpack.c.bf16 %v843_v15, %v843_v15  ;;  %v1473_v26 = vpack.c.bf16 %v875_v16, %v875_v16  ;;  %v844_v27 = vmax.f32 %v634_v17, 0.0  ;;  %v876_v28 = vmax.f32 %v762_v18, 0.0 }
 0x127   : > { %v1439_v29 = vpack.c.bf16 %v841_v21, %v841_v21  ;;  %v1471_v30 = vpack.c.bf16 %v873_v22, %v873_v22  ;;  %v842_v31 = vmax.f32 %v626_v23, 0.0  ;;  %v874_v32 = vmax.f32 %v754_v24, 0.0 }
 0x128   : > { %1164 = vst.msk [vmem:[%s1863_s17 + $0x38] sm:$0xf] %vm1149_vm1, %v1441_v25  ;;  %1196 = vst.msk [vmem:[%s1863_s17 + $0xb8] sm:$0xf] %vm1149_vm1, %v1473_v26  ;;  %v1442_v33 = vpack.c.bf16 %v844_v27, %v844_v27  ;;  %v1474_v34 = vpack.c.bf16 %v876_v28, %v876_v28 }
 0x129   : > { %1162 = vst.msk [vmem:[%s1863_s17 + $0x30] sm:$0xf] %vm1149_vm1, %v1439_v29  ;;  %1194 = vst.msk [vmem:[%s1863_s17 + $0xb0] sm:$0xf] %vm1149_vm1, %v1471_v30  ;;  %v1440_v36 = vpack.c.bf16 %v842_v31, %v842_v31  ;;  %v1472_v37 = vpack.c.bf16 %v874_v32, %v874_v32  ;;  %v1550_v38 = vpop.f32.mrb[16].mxu0  ;;  %v1582_v39 = vpop.f32.mrb[16].mxu1 }
 0x12a   : > { %1165 = vst.msk [vmem:[%s1863_s17 + $0x3c] sm:$0xf] %vm1149_vm1, %v1442_v33  ;;  %1197 = vst.msk [vmem:[%s1863_s17 + $0xbc] sm:$0xf] %vm1149_vm1, %v1474_v34  ;;  %v647_v40 = vadd.f32 %v1550_v38, %v1850_v35  ;;  %v775_v41 = vadd.f32 %v1582_v39, %v1850_v35  ;;  %v638_v42 = vpop.f32.mrb[17].mxu0  ;;  %v766_v43 = vpop.f32.mrb[17].mxu1 }
 0x12b   : > { %1163 = vst.msk [vmem:[%s1863_s17 + $0x34] sm:$0xf] %vm1149_vm1, %v1440_v36  ;;  %1195 = vst.msk [vmem:[%s1863_s17 + $0xb4] sm:$0xf] %vm1149_vm1, %v1472_v37  ;;  %v639_v44 = vadd.f32 %v1850_v35, %v638_v42  ;;  %v767_v45 = vadd.f32 %v1850_v35, %v766_v43  ;;  %v1551_v46 = vpop.f32.mrb[18].mxu0  ;;  %v1583_v47 = vpop.f32.mrb[18].mxu1 }
 0x12c   : > { %v847_v48 = vmax.f32 %v647_v40, 0.0  ;;  %v879_v49 = vmax.f32 %v775_v41, 0.0  ;;  %v650_v50 = vadd.f32 %v1551_v46, %v1850_v35  ;;  %v778_v51 = vadd.f32 %v1583_v47, %v1850_v35  ;;  %v641_v52 = vpop.f32.mrb[19].mxu0  ;;  %v769_v53 = vpop.f32.mrb[19].mxu1 }
 0x12d   : > { %v845_v54 = vmax.f32 %v639_v44, 0.0  ;;  %v877_v55 = vmax.f32 %v767_v45, 0.0  ;;  %v642_v56 = vadd.f32 %v1850_v35, %v641_v52  ;;  %v770_v57 = vadd.f32 %v1850_v35, %v769_v53 }
 0x12e   : > { %v1445_v58 = vpack.c.bf16 %v847_v48, %v847_v48  ;;  %v1477_v59 = vpack.c.bf16 %v879_v49, %v879_v49  ;;  %v848_v60 = vmax.f32 %v650_v50, 0.0  ;;  %v880_v61 = vmax.f32 %v778_v51, 0.0 }
 0x12f   : > { %v1443_v62 = vpack.c.bf16 %v845_v54, %v845_v54  ;;  %v1475_v63 = vpack.c.bf16 %v877_v55, %v877_v55  ;;  %v846_v0 = vmax.f32 %v642_v56, 0.0  ;;  %v878_v1 = vmax.f32 %v770_v57, 0.0 }
 0x130   : > { %1168 = vst.msk [vmem:[%s1863_s17 + $0x48] sm:$0xf] %vm1149_vm1, %v1445_v58  ;;  %1200 = vst.msk [vmem:[%s1863_s17 + $0xc8] sm:$0xf] %vm1149_vm1, %v1477_v59  ;;  %v1446_v2 = vpack.c.bf16 %v848_v60, %v848_v60  ;;  %v1478_v3 = vpack.c.bf16 %v880_v61, %v880_v61 }
 0x131   : > { %1166 = vst.msk [vmem:[%s1863_s17 + $0x40] sm:$0xf] %vm1149_vm1, %v1443_v62  ;;  %1198 = vst.msk [vmem:[%s1863_s17 + $0xc0] sm:$0xf] %vm1149_vm1, %v1475_v63  ;;  %v1444_v4 = vpack.c.bf16 %v846_v0, %v846_v0  ;;  %v1476_v5 = vpack.c.bf16 %v878_v1, %v878_v1  ;;  %v1554_v6 = vpop.f32.mrb[20].mxu0  ;;  %v1586_v7 = vpop.f32.mrb[20].mxu1 }
 0x132   : > { %1169 = vst.msk [vmem:[%s1863_s17 + $0x4c] sm:$0xf] %vm1149_vm1, %v1446_v2  ;;  %1201 = vst.msk [vmem:[%s1863_s17 + $0xcc] sm:$0xf] %vm1149_vm1, %v1478_v3  ;;  %v663_v8 = vadd.f32 %v1554_v6, %v1850_v35  ;;  %v791_v9 = vadd.f32 %v1586_v7, %v1850_v35  ;;  %v654_v10 = vpop.f32.mrb[21].mxu0  ;;  %v782_v11 = vpop.f32.mrb[21].mxu1 }
 0x133   : > { %1167 = vst.msk [vmem:[%s1863_s17 + $0x44] sm:$0xf] %vm1149_vm1, %v1444_v4  ;;  %1199 = vst.msk [vmem:[%s1863_s17 + $0xc4] sm:$0xf] %vm1149_vm1, %v1476_v5  ;;  %v655_v12 = vadd.f32 %v1850_v35, %v654_v10  ;;  %v783_v13 = vadd.f32 %v1850_v35, %v782_v11  ;;  %v1555_v14 = vpop.f32.mrb[22].mxu0  ;;  %v1587_v15 = vpop.f32.mrb[22].mxu1 }
 0x134   : > { %v851_v16 = vmax.f32 %v663_v8, 0.0  ;;  %v883_v17 = vmax.f32 %v791_v9, 0.0  ;;  %v666_v18 = vadd.f32 %v1555_v14, %v1850_v35  ;;  %v794_v19 = vadd.f32 %v1587_v15, %v1850_v35  ;;  %v657_v20 = vpop.f32.mrb[23].mxu0  ;;  %v785_v21 = vpop.f32.mrb[23].mxu1 }
 0x135   : > { %v849_v22 = vmax.f32 %v655_v12, 0.0  ;;  %v881_v23 = vmax.f32 %v783_v13, 0.0  ;;  %v658_v24 = vadd.f32 %v1850_v35, %v657_v20  ;;  %v786_v25 = vadd.f32 %v1850_v35, %v785_v21 }
 0x136   : > { %v1449_v26 = vpack.c.bf16 %v851_v16, %v851_v16  ;;  %v1481_v27 = vpack.c.bf16 %v883_v17, %v883_v17  ;;  %v852_v28 = vmax.f32 %v666_v18, 0.0  ;;  %v884_v29 = vmax.f32 %v794_v19, 0.0 }
 0x137   : > { %v1447_v30 = vpack.c.bf16 %v849_v22, %v849_v22  ;;  %v1479_v31 = vpack.c.bf16 %v881_v23, %v881_v23  ;;  %v850_v32 = vmax.f32 %v658_v24, 0.0  ;;  %v882_v33 = vmax.f32 %v786_v25, 0.0 }
 0x138   : > { %1172 = vst.msk [vmem:[%s1863_s17 + $0x58] sm:$0xf] %vm1149_vm1, %v1449_v26  ;;  %1204 = vst.msk [vmem:[%s1863_s17 + $0xd8] sm:$0xf] %vm1149_vm1, %v1481_v27  ;;  %v1450_v34 = vpack.c.bf16 %v852_v28, %v852_v28  ;;  %v1482_v36 = vpack.c.bf16 %v884_v29, %v884_v29 }
 0x139   : > { %1170 = vst.msk [vmem:[%s1863_s17 + $0x50] sm:$0xf] %vm1149_vm1, %v1447_v30  ;;  %1202 = vst.msk [vmem:[%s1863_s17 + $0xd0] sm:$0xf] %vm1149_vm1, %v1479_v31  ;;  %v1448_v37 = vpack.c.bf16 %v850_v32, %v850_v32  ;;  %v1480_v38 = vpack.c.bf16 %v882_v33, %v882_v33  ;;  %v1558_v39 = vpop.f32.mrb[24].mxu0  ;;  %v1590_v40 = vpop.f32.mrb[24].mxu1 }
 0x13a   : > { %1173 = vst.msk [vmem:[%s1863_s17 + $0x5c] sm:$0xf] %vm1149_vm1, %v1450_v34  ;;  %1205 = vst.msk [vmem:[%s1863_s17 + $0xdc] sm:$0xf] %vm1149_vm1, %v1482_v36  ;;  %v679_v41 = vadd.f32 %v1558_v39, %v1850_v35  ;;  %v807_v42 = vadd.f32 %v1590_v40, %v1850_v35  ;;  %v670_v43 = vpop.f32.mrb[25].mxu0  ;;  %v798_v44 = vpop.f32.mrb[25].mxu1 }
 0x13b   : > { %1171 = vst.msk [vmem:[%s1863_s17 + $0x54] sm:$0xf] %vm1149_vm1, %v1448_v37  ;;  %1203 = vst.msk [vmem:[%s1863_s17 + $0xd4] sm:$0xf] %vm1149_vm1, %v1480_v38  ;;  %v671_v45 = vadd.f32 %v1850_v35, %v670_v43  ;;  %v799_v46 = vadd.f32 %v1850_v35, %v798_v44  ;;  %v1559_v47 = vpop.f32.mrb[26].mxu0  ;;  %v1591_v48 = vpop.f32.mrb[26].mxu1 }
 0x13c   : > { %v855_v49 = vmax.f32 %v679_v41, 0.0  ;;  %v887_v50 = vmax.f32 %v807_v42, 0.0  ;;  %v682_v51 = vadd.f32 %v1559_v47, %v1850_v35  ;;  %v810_v52 = vadd.f32 %v1591_v48, %v1850_v35  ;;  %v673_v53 = vpop.f32.mrb[27].mxu0  ;;  %v801_v54 = vpop.f32.mrb[27].mxu1 }
 0x13d   : > { %v853_v55 = vmax.f32 %v671_v45, 0.0  ;;  %v885_v56 = vmax.f32 %v799_v46, 0.0  ;;  %v674_v57 = vadd.f32 %v1850_v35, %v673_v53  ;;  %v802_v58 = vadd.f32 %v1850_v35, %v801_v54 }
 0x13e   : > { %v1453_v59 = vpack.c.bf16 %v855_v49, %v855_v49  ;;  %v1485_v60 = vpack.c.bf16 %v887_v50, %v887_v50  ;;  %v856_v61 = vmax.f32 %v682_v51, 0.0  ;;  %v888_v62 = vmax.f32 %v810_v52, 0.0 }
 0x13f   : > { %v1451_v63 = vpack.c.bf16 %v853_v55, %v853_v55  ;;  %v1483_v0 = vpack.c.bf16 %v885_v56, %v885_v56  ;;  %v854_v1 = vmax.f32 %v674_v57, 0.0  ;;  %v886_v2 = vmax.f32 %v802_v58, 0.0 }
 0x140   : > { %1176 = vst.msk [vmem:[%s1863_s17 + $0x68] sm:$0xf] %vm1149_vm1, %v1453_v59  ;;  %1208 = vst.msk [vmem:[%s1863_s17 + $0xe8] sm:$0xf] %vm1149_vm1, %v1485_v60  ;;  %v1454_v3 = vpack.c.bf16 %v856_v61, %v856_v61  ;;  %v1486_v4 = vpack.c.bf16 %v888_v62, %v888_v62 }
 0x141   : > { %1174 = vst.msk [vmem:[%s1863_s17 + $0x60] sm:$0xf] %vm1149_vm1, %v1451_v63  ;;  %1206 = vst.msk [vmem:[%s1863_s17 + $0xe0] sm:$0xf] %vm1149_vm1, %v1483_v0  ;;  %v1452_v5 = vpack.c.bf16 %v854_v1, %v854_v1  ;;  %v1484_v6 = vpack.c.bf16 %v886_v2, %v886_v2  ;;  %v1562_v7 = vpop.f32.mrb[28].mxu0  ;;  %v1594_v8 = vpop.f32.mrb[28].mxu1 }
 0x142   : > { %1177 = vst.msk [vmem:[%s1863_s17 + $0x6c] sm:$0xf] %vm1149_vm1, %v1454_v3  ;;  %1209 = vst.msk [vmem:[%s1863_s17 + $0xec] sm:$0xf] %vm1149_vm1, %v1486_v4  ;;  %v695_v9 = vadd.f32 %v1562_v7, %v1850_v35  ;;  %v823_v10 = vadd.f32 %v1594_v8, %v1850_v35  ;;  %v686_v11 = vpop.f32.mrb[29].mxu0  ;;  %v814_v12 = vpop.f32.mrb[29].mxu1 }
 0x143   : > { %1175 = vst.msk [vmem:[%s1863_s17 + $0x64] sm:$0xf] %vm1149_vm1, %v1452_v5  ;;  %1207 = vst.msk [vmem:[%s1863_s17 + $0xe4] sm:$0xf] %vm1149_vm1, %v1484_v6  ;;  %v687_v13 = vadd.f32 %v1850_v35, %v686_v11  ;;  %v815_v14 = vadd.f32 %v1850_v35, %v814_v12  ;;  %v1563_v15 = vpop.f32.mrb[30].mxu0  ;;  %v1595_v16 = vpop.f32.mrb[30].mxu1 }
 0x144   : > { %v859_v17 = vmax.f32 %v695_v9, 0.0  ;;  %v891_v18 = vmax.f32 %v823_v10, 0.0  ;;  %v698_v19 = vadd.f32 %v1563_v15, %v1850_v35  ;;  %v826_v20 = vadd.f32 %v1595_v16, %v1850_v35  ;;  %v689_v21 = vpop.f32.mrb[31].mxu0  ;;  %v817_v22 = vpop.f32.mrb[31].mxu1 }
 0x145   : > { %v857_v23 = vmax.f32 %v687_v13, 0.0  ;;  %v889_v24 = vmax.f32 %v815_v14, 0.0  ;;  %v690_v25 = vadd.f32 %v1850_v35, %v689_v21  ;;  %v818_v26 = vadd.f32 %v1850_v35, %v817_v22 }
 0x146   : > { %v1457_v27 = vpack.c.bf16 %v859_v17, %v859_v17  ;;  %v1489_v28 = vpack.c.bf16 %v891_v18, %v891_v18  ;;  %v860_v29 = vmax.f32 %v698_v19, 0.0  ;;  %v892_v30 = vmax.f32 %v826_v20, 0.0 }
 0x147   : > { %v1455_v31 = vpack.c.bf16 %v857_v23, %v857_v23  ;;  %v1487_v32 = vpack.c.bf16 %v889_v24, %v889_v24  ;;  %v858_v33 = vmax.f32 %v690_v25, 0.0  ;;  %v890_v34 = vmax.f32 %v818_v26, 0.0 }
 0x148   : > { %1180 = vst.msk [vmem:[%s1863_s17 + $0x78] sm:$0xf] %vm1149_vm1, %v1457_v27  ;;  %1212 = vst.msk [vmem:[%s1863_s17 + $0xf8] sm:$0xf] %vm1149_vm1, %v1489_v28  ;;  %v1458_v36 = vpack.c.bf16 %v860_v29, %v860_v29  ;;  %v1490_v37 = vpack.c.bf16 %v892_v30, %v892_v30 }
 0x149   : > { %1178 = vst.msk [vmem:[%s1863_s17 + $0x70] sm:$0xf] %vm1149_vm1, %v1455_v31  ;;  %1210 = vst.msk [vmem:[%s1863_s17 + $0xf0] sm:$0xf] %vm1149_vm1, %v1487_v32  ;;  %v1456_v35 = vpack.c.bf16 %v858_v33, %v858_v33  ;;  %v1488_v38 = vpack.c.bf16 %v890_v34, %v890_v34 }
 0x14a   : > { %1181 = vst.msk [vmem:[%s1863_s17 + $0x7c] sm:$0xf] %vm1149_vm1, %v1458_v36  ;;  %1213 = vst.msk [vmem:[%s1863_s17 + $0xfc] sm:$0xf] %vm1149_vm1, %v1490_v37 }
 0x14b   : > { %1179 = vst.msk [vmem:[%s1863_s17 + $0x74] sm:$0xf] %vm1149_vm1, %v1456_v35  ;;  %1211 = vst.msk [vmem:[%s1863_s17 + $0xf4] sm:$0xf] %vm1149_vm1, %v1488_v38 }
 0x14c PF: > { %s14_s12 = sadd.s32 1, %s1694_s12  }
 0x14d   : > { %p11_p2 = scmp.ge.s32.totalorder %s14_s12, 6  }
 0x14f   :  { %13 = sbr.rel (!%p11_p2) target bundleno = 1 (0x1), region = 67 }
 0x156   :  { %1236 = vsyncpa [#allocation3], 1 }
 0x157   :  { %1238 = vsyncpa [#allocation3 + $0x1], 1 }

// kernel: vae_forward.10
= control target key start
LH: loop header
LB: loop body
LE: loop exit
PB: predicated region body
PF: predicated region fallthrough
CT: control target
= control target key end

     0   :  { %s1958_s12 = smov 0   ;;  %s2246_s0 = inlined_call_operand.vmem [shape: bf16[512,512], index: 0, kind: input, shape index: {}]   ;;  %s2247_s1 = inlined_call_operand.vmem [shape: bf16[512,32], index: 1, kind: input, shape index: {}]   ;;  %s2248_s2 = inlined_call_operand.vmem [shape: f32[1,32], index: 2, kind: input, shape index: {}]   ;;  %s2249_s3 = inlined_call_operand.vmem [shape: bf16[512,32], index: 3, kind: output, shape index: {}]  }
   0x1 LB: > { %s1396_s13 = sadd.s32 4294967295, %s1936_s12   ;;  %p1400_p0 = scmp.ge.s32.totalorder %s1936_s12, 1  ;;  %s1936_s12 = sphi %s1958_s12, %s13_s12  }
   0x2   : > { %p139_p1 = scmp.lt.s32.totalorder %s1936_s12, 3 }
   0x4   : > { %p140_p2 = pnand %p1400_p0, %p139_p1 }
   0x5   : > { %v1802_v0 = vld [vmem:[%s2247_s1 + $0x40] sm:$0xff] (!%p140_p2)   ;;  %v1806_v4 = vld [vmem:[%s2247_s1 + $0x48] sm:$0xff] (!%p140_p2)   ;;  %v1810_v8 = vld [vmem:[%s2247_s1 + $0x50] sm:$0xff] (!%p140_p2)   ;;  %s1401_s21 = sshll.u32 (!%p140_p2), %s1396_s13, 5  ;;  %vm1307_vm0 = vcmask (!%p140_p2), 257024  }
   0x6   : > { %143 = sbr.rel (%p140_p2) target bundleno = 385 (0x181), region = 32  ;;  %v1803_v1 = vld [vmem:[%s2247_s1 + $0xc0] sm:$0xff] (!%p140_p2)   ;;  %1570 = vmatprep.subr.bf16.mxu0 (!%p140_p2), %v1802_v0  ;;  %v1807_v5 = vld [vmem:[%s2247_s1 + $0xc8] sm:$0xff] (!%p140_p2)   ;;  %v1811_v9 = vld [vmem:[%s2247_s1 + $0xd0] sm:$0xff] (!%p140_p2)   ;;  %p165_p3 = scmp.lt.s32.totalorder (!%p140_p2), %s1401_s21, 63 }
   0x7   : > { %v1804_v2 = vld [vmem:[%s2247_s1] sm:$0xff] (!%p140_p2)   ;;  %1682 = vmatprep.subr.bf16.mxu1 (!%p140_p2), %v1803_v1  ;;  %v1808_v6 = vld [vmem:[%s2247_s1 + $0x8] sm:$0xff] (!%p140_p2)   ;;  %v1812_v10 = vld [vmem:[%s2247_s1 + $0x10] sm:$0xff] (!%p140_p2)  }
   0x8   : > { %v1805_v3 = vld [vmem:[%s2247_s1 + $0x80] sm:$0xff] (!%p140_p2)   ;;  %1571 = vmatpush3.bf16.msra.mxu0 (!%p140_p2), %v1804_v2  ;;  %v1809_v7 = vld [vmem:[%s2247_s1 + $0x88] sm:$0xff] (!%p140_p2)   ;;  %v1813_v11 = vld [vmem:[%s2247_s1 + $0x90] sm:$0xff] (!%p140_p2)  }
   0x9   : > { %1683 = vmatpush3.bf16.msra.mxu1 (!%p140_p2), %v1805_v3  ;;  %1572 = vmatprep.subr.bf16.mxu0 (!%p140_p2), %v1806_v4  ;;  %v1814_v12 = vld [vmem:[%s2247_s1 + $0x58] sm:$0xff] (!%p140_p2)   ;;  %v1818_v16 = vld [vmem:[%s2247_s1 + $0x60] sm:$0xff] (!%p140_p2)   ;;  %v1822_v20 = vld [vmem:[%s2247_s1 + $0x68] sm:$0xff] (!%p140_p2)  }
   0xa   : > { %1684 = vmatprep.subr.bf16.mxu1 (!%p140_p2), %v1807_v5  ;;  %v1815_v13 = vld [vmem:[%s2247_s1 + $0xd8] sm:$0xff] (!%p140_p2)   ;;  %v1819_v17 = vld [vmem:[%s2247_s1 + $0xe0] sm:$0xff] (!%p140_p2)   ;;  %v1823_v21 = vld [vmem:[%s2247_s1 + $0xe8] sm:$0xff] (!%p140_p2)  }
   0xb   : > { %v1816_v14 = vld [vmem:[%s2247_s1 + $0x18] sm:$0xff] (!%p140_p2)   ;;  %v1820_v18 = vld [vmem:[%s2247_s1 + $0x20] sm:$0xff] (!%p140_p2)   ;;  %v1824_v22 = vld [vmem:[%s2247_s1 + $0x28] sm:$0xff] (!%p140_p2)  }
   0xc   : > { %1573 = vmatpush3.bf16.msra.mxu0 (!%p140_p2), %v1808_v6  ;;  %v1817_v15 = vld [vmem:[%s2247_s1 + $0x98] sm:$0xff] (!%p140_p2)   ;;  %v1821_v19 = vld [vmem:[%s2247_s1 + $0xa0] sm:$0xff] (!%p140_p2)   ;;  %v1825_v23 = vld [vmem:[%s2247_s1 + $0xa8] sm:$0xff] (!%p140_p2)  }
   0xd   : > { %1685 = vmatpush3.bf16.msra.mxu1 %v1809_v7  ;;  %1574 = vmatprep.subr.bf16.mxu0 %v1810_v8  ;;  %s2251_s21 = smov (!%p165_p3, %s1401_s21), 63  ;;  %v1826_v24 = vld [vmem:[%s2247_s1 + $0x70] sm:$0xff]   ;;  %v1830_v28 = vld [vmem:[%s2247_s1 + $0x78] sm:$0xff]  }
   0xe   : > { %1686 = vmatprep.subr.bf16.mxu1 %v1811_v9  ;;  %v1827_v25 = vld [vmem:[%s2247_s1 + $0xf0] sm:$0xff]   ;;  %s1537_s18 = sshll.u32 %s2251_s21, 4  ;;  %v1831_v29 = vld [vmem:[%s2247_s1 + $0xf8] sm:$0xff]   ;;  %s1405_s7 = sshll.u32 %s2251_s21, 2 }
   0xf   : > { %v1828_v26 = vld [vmem:[%s2247_s1 + $0x30] sm:$0xff]   ;;  %s2064_s28 = scalar_lea.vmem %s2246_s0, %s1537_s18  ;;  %v1832_v30 = vld [vmem:[%s2247_s1 + $0x38] sm:$0xff]   ;;  %s2147_s10 = scalar_lea.vmem %s2249_s3, %s1405_s7 }
  0x10   : > { %1575 = vmatpush3.bf16.msra.mxu0 %v1812_v10  ;;  %v1829_v27 = vld [vmem:[%s2247_s1 + $0xb0] sm:$0xff]   ;;  %v1833_v31 = vld [vmem:[%s2247_s1 + $0xb8] sm:$0xff]  }
  0x11   : > { %1687 = vmatpush3.bf16.msra.mxu1 %v1813_v11  ;;  %1576 = vmatprep.subr.bf16.mxu0 %v1814_v12  ;;  %v1834_v32 = vld [vmem:[%s2064_s28] ss:$16 sps:$4 sm:$0xff]   ;;  %v1836_v33 = vld [vmem:[%s2064_s28 + $0x4] ss:$16 sps:$4 sm:$0xff]   ;;  %v1837_v34 = vld [vmem:[%s2064_s28 + $0x8] ss:$16 sps:$4 sm:$0xff]  }
  0x12   : > { %1688 = vmatprep.subr.bf16.mxu1 %v1815_v13  ;;  %v1839_v35 = vld [vmem:[%s2064_s28 + $0xc] ss:$16 sps:$4 sm:$0xff]   ;;  %857 = vmatprep.mubr.bf16.mxu0 %v1836_v33  ;;  %v1840_v36 = vld [vmem:[%s2064_s28 + $0x24] ss:$16 sps:$4 sm:$0xff]   ;;  %v1844_v38 = vld [vmem:[%s2064_s28 + $0x20] ss:$16 sps:$4 sm:$0xff]  }
  0x13   : > { %1018 = vmatprep.mubr.bf16.mxu1 %v1839_v35  ;;  %v1842_v37 = vld [vmem:[%s2064_s28 + $0x2c] ss:$16 sps:$4 sm:$0xff]   ;;  %v1845_v39 = vld [vmem:[%s2064_s28 + $0x28] ss:$16 sps:$4 sm:$0xff]   ;;  %v1846_v40 = vld [vmem:[%s2064_s28 + $0x44] ss:$16 sps:$4 sm:$0xff]  }
  0x14   : > { %1577 = vmatpush3.bf16.msra.mxu0 %v1816_v14  ;;  %v1848_v41 = vld [vmem:[%s2064_s28 + $0x4c] ss:$16 sps:$4 sm:$0xff]   ;;  %v1850_v42 = vld [vmem:[%s2064_s28 + $0x40] ss:$16 sps:$4 sm:$0xff]   ;;  %v1851_v43 = vld [vmem:[%s2064_s28 + $0x48] ss:$16 sps:$4 sm:$0xff]  }
  0x15   : > { %1689 = vmatpush3.bf16.msra.mxu1 %v1817_v15  ;;  %1578 = vmatprep.subr.bf16.mxu0 %v1818_v16  ;;  %v1852_v44 = vld [vmem:[%s2064_s28 + $0x64] ss:$16 sps:$4 sm:$0xff]   ;;  %v1854_v45 = vld [vmem:[%s2064_s28 + $0x6c] ss:$16 sps:$4 sm:$0xff]   ;;  %v1856_v46 = vld [vmem:[%s2064_s28 + $0x60] ss:$16 sps:$4 sm:$0xff]  }
  0x16   : > { %1690 = vmatprep.subr.bf16.mxu1 %v1819_v17  ;;  %v1857_v47 = vld [vmem:[%s2064_s28 + $0x68] ss:$16 sps:$4 sm:$0xff]   ;;  %v1858_v48 = vld [vmem:[%s2064_s28 + $0x84] ss:$16 sps:$4 sm:$0xff]   ;;  %v1860_v49 = vld [vmem:[%s2064_s28 + $0x8c] ss:$16 sps:$4 sm:$0xff]  }
  0x17   : > { %v1862_v50 = vld [vmem:[%s2064_s28 + $0x80] ss:$16 sps:$4 sm:$0xff]   ;;  %v1863_v51 = vld [vmem:[%s2064_s28 + $0x88] ss:$16 sps:$4 sm:$0xff]   ;;  %v1864_v52 = vld [vmem:[%s2064_s28 + $0xa4] ss:$16 sps:$4 sm:$0xff]  }
  0x18   : > { %1579 = vmatpush3.bf16.msra.mxu0 %v1820_v18  ;;  %v1866_v53 = vld [vmem:[%s2064_s28 + $0xac] ss:$16 sps:$4 sm:$0xff]   ;;  %v1868_v54 = vld [vmem:[%s2064_s28 + $0xa0] ss:$16 sps:$4 sm:$0xff]   ;;  %v1869_v55 = vld [vmem:[%s2064_s28 + $0xa8] ss:$16 sps:$4 sm:$0xff]  }
  0x19   : > { %1691 = vmatpush3.bf16.msra.mxu1 %v1821_v19  ;;  %1580 = vmatprep.subr.bf16.mxu0 %v1822_v20  ;;  %v1870_v56 = vld [vmem:[%s2064_s28 + $0xc4] ss:$16 sps:$4 sm:$0xff]   ;;  %v1872_v57 = vld [vmem:[%s2064_s28 + $0xcc] ss:$16 sps:$4 sm:$0xff]   ;;  %v1874_v58 = vld [vmem:[%s2064_s28 + $0xc0] ss:$16 sps:$4 sm:$0xff]  }
  0x1a   : > { %1692 = vmatprep.subr.bf16.mxu1 %v1823_v21  ;;  %v1875_v59 = vld [vmem:[%s2064_s28 + $0xc8] ss:$16 sps:$4 sm:$0xff]   ;;  %v1876_v60 = vld [vmem:[%s2064_s28 + $0xe4] ss:$16 sps:$4 sm:$0xff]   ;;  %v1878_v61 = vld [vmem:[%s2064_s28 + $0xec] ss:$16 sps:$4 sm:$0xff]  }
  0x1b   : > { %v1880_v62 = vld [vmem:[%s2064_s28 + $0xe0] ss:$16 sps:$4 sm:$0xff]   ;;  %v1881_v63 = vld [vmem:[%s2064_s28 + $0xe8] ss:$16 sps:$4 sm:$0xff]   ;;  %v1882_v0 = vld [vmem:[%s2064_s28 + $0x104] ss:$16 sps:$4 sm:$0xff]  }
  0x1c   : > { %1581 = vmatpush3.bf16.msra.mxu0 %v1824_v22  ;;  %v1884_v1 = vld [vmem:[%s2064_s28 + $0x10c] ss:$16 sps:$4 sm:$0xff]   ;;  %v1886_v2 = vld [vmem:[%s2064_s28 + $0x100] ss:$16 sps:$4 sm:$0xff]   ;;  %v1887_v3 = vld [vmem:[%s2064_s28 + $0x108] ss:$16 sps:$4 sm:$0xff]  }
  0x1d   : > { %1693 = vmatpush3.bf16.msra.mxu1 %v1825_v23  ;;  %1582 = vmatprep.subr.bf16.mxu0 %v1826_v24  ;;  %v1888_v4 = vld [vmem:[%s2064_s28 + $0x124] ss:$16 sps:$4 sm:$0xff]   ;;  %v1890_v5 = vld [vmem:[%s2064_s28 + $0x12c] ss:$16 sps:$4 sm:$0xff]   ;;  %v1892_v6 = vld [vmem:[%s2064_s28 + $0x120] ss:$16 sps:$4 sm:$0xff]  }
  0x1e   : > { %1694 = vmatprep.subr.bf16.mxu1 %v1827_v25  ;;  %v1893_v7 = vld [vmem:[%s2064_s28 + $0x128] ss:$16 sps:$4 sm:$0xff]   ;;  %v1894_v8 = vld [vmem:[%s2064_s28 + $0x144] ss:$16 sps:$4 sm:$0xff]   ;;  %v1896_v9 = vld [vmem:[%s2064_s28 + $0x14c] ss:$16 sps:$4 sm:$0xff]  }
  0x1f   : > { %v1898_v10 = vld [vmem:[%s2064_s28 + $0x140] ss:$16 sps:$4 sm:$0xff]   ;;  %v1899_v11 = vld [vmem:[%s2064_s28 + $0x148] ss:$16 sps:$4 sm:$0xff]   ;;  %v1900_v12 = vld [vmem:[%s2064_s28 + $0x164] ss:$16 sps:$4 sm:$0xff]  }
  0x20   : > { %1583 = vmatpush3.bf16.msra.mxu0 %v1828_v26  ;;  %v1902_v13 = vld [vmem:[%s2064_s28 + $0x16c] ss:$16 sps:$4 sm:$0xff]   ;;  %v1904_v14 = vld [vmem:[%s2064_s28 + $0x160] ss:$16 sps:$4 sm:$0xff]   ;;  %v1905_v15 = vld [vmem:[%s2064_s28 + $0x168] ss:$16 sps:$4 sm:$0xff]  }
  0x21   : > { %1695 = vmatpush3.bf16.msra.mxu1 %v1829_v27  ;;  %1584 = vmatprep.subr.bf16.mxu0 %v1830_v28  ;;  %v1906_v16 = vld [vmem:[%s2064_s28 + $0x184] ss:$16 sps:$4 sm:$0xff]   ;;  %v1908_v17 = vld [vmem:[%s2064_s28 + $0x18c] ss:$16 sps:$4 sm:$0xff]   ;;  %v1910_v18 = vld [vmem:[%s2064_s28 + $0x180] ss:$16 sps:$4 sm:$0xff]  }
  0x22   : > { %1696 = vmatprep.subr.bf16.mxu1 %v1831_v29  ;;  %v1911_v19 = vld [vmem:[%s2064_s28 + $0x188] ss:$16 sps:$4 sm:$0xff]   ;;  %v1912_v20 = vld [vmem:[%s2064_s28 + $0x1a4] ss:$16 sps:$4 sm:$0xff]   ;;  %v1914_v21 = vld [vmem:[%s2064_s28 + $0x1ac] ss:$16 sps:$4 sm:$0xff]  }
  0x23   : > { %v1916_v22 = vld [vmem:[%s2064_s28 + $0x1a0] ss:$16 sps:$4 sm:$0xff]   ;;  %v1917_v23 = vld [vmem:[%s2064_s28 + $0x1a8] ss:$16 sps:$4 sm:$0xff]   ;;  %v1918_v24 = vld [vmem:[%s2064_s28 + $0x1c4] ss:$16 sps:$4 sm:$0xff]  }
  0x24   : > { %1585 = vmatpush3.bf16.msra.mxu0 %v1832_v30  ;;  %v1920_v25 = vld [vmem:[%s2064_s28 + $0x1cc] ss:$16 sps:$4 sm:$0xff]   ;;  %v1922_v26 = vld [vmem:[%s2064_s28 + $0x1c0] ss:$16 sps:$4 sm:$0xff]   ;;  %v1923_v27 = vld [vmem:[%s2064_s28 + $0x1c8] ss:$16 sps:$4 sm:$0xff]  }
  0x25   : > { %1697 = vmatpush3.bf16.msra.mxu1 %v1833_v31  ;;  %v1924_v28 = vld [vmem:[%s2064_s28 + $0x1e4] ss:$16 sps:$4 sm:$0xff]   ;;  %v1926_v29 = vld [vmem:[%s2064_s28 + $0x1ec] ss:$16 sps:$4 sm:$0xff]   ;;  %v1928_v30 = vld [vmem:[%s2064_s28 + $0x1e0] ss:$16 sps:$4 sm:$0xff]  }
  0x26   : > { %v1929_v31 = vld [vmem:[%s2064_s28 + $0x1e8] ss:$16 sps:$4 sm:$0xff]  }
  0x27   : > { %858 = vmatmul.mubr.bf16.vlgmr.msra.gmra.mrb[0].mxu0 %v1834_v32 }
  0x28   : > { %1019 = vmatmul.mubr.bf16.vlgmr.msra.gmra.mrb[0].mxu1 %v1837_v34  ;;  %865 = vmatprep.mubr.bf16.mxu0 %v1840_v36  ;;  %v2139_v34 = vld [vmem:[%s2248_s2] ss:$0 sm:$0xff] }
  0x29   : > { %1026 = vmatprep.mubr.bf16.mxu1 %v1842_v37 }
  0x2f   : > { %866 = vmatmul.mubr.bf16.gmra.mrb[4].mxu0 %v1844_v38 }
  0x30   : > { %1027 = vmatmul.mubr.bf16.gmra.mrb[4].mxu1 %v1845_v39  ;;  %873 = vmatprep.mubr.bf16.mxu0 %v1846_v40 }
  0x31   : > { %1034 = vmatprep.mubr.bf16.mxu1 %v1848_v41 }
  0x37   : > { %874 = vmatmul.mubr.bf16.gmra.mrb[8].mxu0 %v1850_v42 }
  0x38   : > { %1035 = vmatmul.mubr.bf16.gmra.mrb[8].mxu1 %v1851_v43  ;;  %881 = vmatprep.mubr.bf16.mxu0 %v1852_v44 }
  0x39   : > { %1042 = vmatprep.mubr.bf16.mxu1 %v1854_v45 }
  0x3f   : > { %882 = vmatmul.mubr.bf16.gmra.mrb[12].mxu0 %v1856_v46 }
  0x40   : > { %1043 = vmatmul.mubr.bf16.gmra.mrb[12].mxu1 %v1857_v47  ;;  %889 = vmatprep.mubr.bf16.mxu0 %v1858_v48 }
  0x41   : > { %1050 = vmatprep.mubr.bf16.mxu1 %v1860_v49 }
  0x47   : > { %890 = vmatmul.mubr.bf16.gmra.mrb[16].mxu0 %v1862_v50 }
  0x48   : > { %1051 = vmatmul.mubr.bf16.gmra.mrb[16].mxu1 %v1863_v51  ;;  %897 = vmatprep.mubr.bf16.mxu0 %v1864_v52 }
  0x49   : > { %1058 = vmatprep.mubr.bf16.mxu1 %v1866_v53 }
  0x4f   : > { %898 = vmatmul.mubr.bf16.gmra.mrb[20].mxu0 %v1868_v54 }
  0x50   : > { %1059 = vmatmul.mubr.bf16.gmra.mrb[20].mxu1 %v1869_v55  ;;  %905 = vmatprep.mubr.bf16.mxu0 %v1870_v56 }
  0x51   : > { %1066 = vmatprep.mubr.bf16.mxu1 %v1872_v57 }
  0x57   : > { %906 = vmatmul.mubr.bf16.gmra.mrb[24].mxu0 %v1874_v58 }
  0x58   : > { %1067 = vmatmul.mubr.bf16.gmra.mrb[24].mxu1 %v1875_v59  ;;  %913 = vmatprep.mubr.bf16.mxu0 %v1876_v60 }
  0x59   : > { %1074 = vmatprep.mubr.bf16.mxu1 %v1878_v61 }
  0x5f   : > { %914 = vmatmul.mubr.bf16.gmra.mrb[28].mxu0 %v1880_v62 }
  0x60   : > { %1075 = vmatmul.mubr.bf16.gmra.mrb[28].mxu1 %v1881_v63  ;;  %921 = vmatprep.mubr.bf16.mxu0 %v1882_v0 }
  0x61   : > { %1082 = vmatprep.mubr.bf16.mxu1 %v1884_v1 }
  0x67   : > { %922 = vmatmul.mubr.bf16.gmra.mrb[32].mxu0 %v1886_v2 }
  0x68   : > { %1083 = vmatmul.mubr.bf16.gmra.mrb[32].mxu1 %v1887_v3  ;;  %929 = vmatprep.mubr.bf16.mxu0 %v1888_v4 }
  0x69   : > { %1090 = vmatprep.mubr.bf16.mxu1 %v1890_v5 }
  0x6f   : > { %930 = vmatmul.mubr.bf16.gmra.mrb[36].mxu0 %v1892_v6 }
  0x70   : > { %1091 = vmatmul.mubr.bf16.gmra.mrb[36].mxu1 %v1893_v7  ;;  %937 = vmatprep.mubr.bf16.mxu0 %v1894_v8 }
  0x71   : > { %1098 = vmatprep.mubr.bf16.mxu1 %v1896_v9 }
  0x77   : > { %938 = vmatmul.mubr.bf16.gmra.mrb[40].mxu0 %v1898_v10 }
  0x78   : > { %1099 = vmatmul.mubr.bf16.gmra.mrb[40].mxu1 %v1899_v11  ;;  %945 = vmatprep.mubr.bf16.mxu0 %v1900_v12 }
  0x79   : > { %1106 = vmatprep.mubr.bf16.mxu1 %v1902_v13 }
  0x7f   : > { %946 = vmatmul.mubr.bf16.gmra.mrb[44].mxu0 %v1904_v14 }
  0x80   : > { %1107 = vmatmul.mubr.bf16.gmra.mrb[44].mxu1 %v1905_v15  ;;  %953 = vmatprep.mubr.bf16.mxu0 %v1906_v16 }
  0x81   : > { %1114 = vmatprep.mubr.bf16.mxu1 %v1908_v17 }
  0x87   : > { %954 = vmatmul.mubr.bf16.gmra.mrb[48].mxu0 %v1910_v18 }
  0x88   : > { %1115 = vmatmul.mubr.bf16.gmra.mrb[48].mxu1 %v1911_v19  ;;  %961 = vmatprep.mubr.bf16.mxu0 %v1912_v20 }
  0x89   : > { %1122 = vmatprep.mubr.bf16.mxu1 %v1914_v21 }
  0x8f   : > { %962 = vmatmul.mubr.bf16.gmra.mrb[52].mxu0 %v1916_v22 }
  0x90   : > { %1123 = vmatmul.mubr.bf16.gmra.mrb[52].mxu1 %v1917_v23  ;;  %969 = vmatprep.mubr.bf16.mxu0 %v1918_v24 }
  0x91   : > { %1130 = vmatprep.mubr.bf16.mxu1 %v1920_v25 }
  0x97   : > { %970 = vmatmul.mubr.bf16.gmra.mrb[56].mxu0 %v1922_v26 }
  0x98   : > { %1131 = vmatmul.mubr.bf16.gmra.mrb[56].mxu1 %v1923_v27  ;;  %977 = vmatprep.mubr.bf16.mxu0 %v1924_v28 }
  0x99   : > { %1138 = vmatprep.mubr.bf16.mxu1 %v1926_v29 }
  0x9f   : > { %978 = vmatmul.mubr.bf16.gmra.mrb[60].mxu0 %v1928_v30 }
  0xa0   : > { %1139 = vmatmul.mubr.bf16.gmra.mrb[60].mxu1 %v1929_v31 }
  0xfa   : > { %v1586_v32 = vpop.f32.mrb[0].mxu0 }
  0xfb   : > { %v1698_v33 = vpop.f32.mrb[0].mxu1  ;;  %v1587_v35 = vpop.f32.mrb[1].mxu0 }
  0xfc   : > { %v1588_v36 = vadd.f32 %v1587_v35, %v1586_v32  ;;  %v1699_v37 = vpop.f32.mrb[1].mxu1  ;;  %v1589_v38 = vpop.f32.mrb[2].mxu0 }
  0xfd   : > { %v1700_v39 = vadd.f32 %v1699_v37, %v1698_v33  ;;  %v1701_v40 = vpop.f32.mrb[2].mxu1  ;;  %v1590_v41 = vpop.f32.mrb[3].mxu0 }
  0xfe   : > { %v860_v42 = vadd.f32 %v1588_v36, %v2139_v34  ;;  %v1591_v43 = vadd.f32 %v1590_v41, %v1589_v38  ;;  %v1702_v44 = vpop.f32.mrb[3].mxu1 }
  0xff   : > { %v1703_v45 = vadd.f32 %v1702_v44, %v1701_v40 }
 0x100   : > { %v1021_v46 = vadd.f32 %v1700_v39, %v860_v42  ;;  %v863_v47 = vadd.f32 %v1591_v43, %v2139_v34 }
 0x102   : > { %v1147_v48 = vmax.f32 %v1021_v46, 0.0  ;;  %v1024_v49 = vadd.f32 %v1703_v45, %v863_v47  ;;  %v1592_v50 = vpop.f32.mrb[4].mxu0 }
 0x103   : > { %v1704_v51 = vpop.f32.mrb[4].mxu1  ;;  %v1593_v52 = vpop.f32.mrb[5].mxu0 }
 0x104   : > { %v1538_v53 = vpack.c.bf16 %v1147_v48, %v1147_v48  ;;  %v1148_v54 = vmax.f32 %v1024_v49, 0.0  ;;  %v1594_v55 = vadd.f32 %v1593_v52, %v1592_v50  ;;  %v1705_v56 = vpop.f32.mrb[5].mxu1  ;;  %v1595_v57 = vpop.f32.mrb[6].mxu0 }
 0x105   : > { %v1706_v58 = vadd.f32 %v1705_v56, %v1704_v51  ;;  %v1707_v59 = vpop.f32.mrb[6].mxu1  ;;  %v1596_v60 = vpop.f32.mrb[7].mxu0 }
 0x106   : > { %1308 = vst.msk [vmem:[%s2147_s10] sm:$0xf] %vm1307_vm0, %v1538_v53  ;;  %v1539_v61 = vpack.c.bf16 %v1148_v54, %v1148_v54  ;;  %v868_v62 = vadd.f32 %v1594_v55, %v2139_v34  ;;  %v1597_v63 = vadd.f32 %v1596_v60, %v1595_v57  ;;  %v1708_v0 = vpop.f32.mrb[7].mxu1 }
 0x107   : > { %v1709_v1 = vadd.f32 %v1708_v0, %v1707_v59 }
 0x108   : > { %1309 = vst.msk [vmem:[%s2147_s10 + $0x4] sm:$0xf] %vm1307_vm0, %v1539_v61  ;;  %v1029_v2 = vadd.f32 %v1706_v58, %v868_v62  ;;  %v871_v3 = vadd.f32 %v1597_v63, %v2139_v34 }
 0x10a   : > { %v1149_v4 = vmax.f32 %v1029_v2, 0.0  ;;  %v1032_v5 = vadd.f32 %v1709_v1, %v871_v3  ;;  %v1598_v6 = vpop.f32.mrb[8].mxu0 }
 0x10b   : > { %v1710_v7 = vpop.f32.mrb[8].mxu1  ;;  %v1599_v8 = vpop.f32.mrb[9].mxu0 }
 0x10c   : > { %v1540_v9 = vpack.c.bf16 %v1149_v4, %v1149_v4  ;;  %v1150_v10 = vmax.f32 %v1032_v5, 0.0  ;;  %v1600_v11 = vadd.f32 %v1599_v8, %v1598_v6  ;;  %v1711_v12 = vpop.f32.mrb[9].mxu1  ;;  %v1601_v13 = vpop.f32.mrb[10].mxu0 }
 0x10d   : > { %v1712_v14 = vadd.f32 %v1711_v12, %v1710_v7  ;;  %v1713_v15 = vpop.f32.mrb[10].mxu1  ;;  %v1602_v16 = vpop.f32.mrb[11].mxu0 }
 0x10e   : > { %1310 = vst.msk [vmem:[%s2147_s10 + $0x8] sm:$0xf] %vm1307_vm0, %v1540_v9  ;;  %v1541_v17 = vpack.c.bf16 %v1150_v10, %v1150_v10  ;;  %v876_v18 = vadd.f32 %v1600_v11, %v2139_v34  ;;  %v1603_v19 = vadd.f32 %v1602_v16, %v1601_v13  ;;  %v1714_v20 = vpop.f32.mrb[11].mxu1 }
 0x10f   : > { %v1715_v21 = vadd.f32 %v1714_v20, %v1713_v15 }
 0x110   : > { %1311 = vst.msk [vmem:[%s2147_s10 + $0xc] sm:$0xf] %vm1307_vm0, %v1541_v17  ;;  %v1037_v22 = vadd.f32 %v1712_v14, %v876_v18  ;;  %v879_v23 = vadd.f32 %v1603_v19, %v2139_v34 }
 0x112   : > { %v1151_v24 = vmax.f32 %v1037_v22, 0.0  ;;  %v1040_v25 = vadd.f32 %v1715_v21, %v879_v23  ;;  %v1604_v26 = vpop.f32.mrb[12].mxu0 }
 0x113   : > { %v1716_v27 = vpop.f32.mrb[12].mxu1  ;;  %v1605_v28 = vpop.f32.mrb[13].mxu0 }
 0x114   : > { %v1542_v29 = vpack.c.bf16 %v1151_v24, %v1151_v24  ;;  %v1152_v30 = vmax.f32 %v1040_v25, 0.0  ;;  %v1606_v31 = vadd.f32 %v1605_v28, %v1604_v26  ;;  %v1717_v32 = vpop.f32.mrb[13].mxu1  ;;  %v1607_v33 = vpop.f32.mrb[14].mxu0 }
 0x115   : > { %v1718_v35 = vadd.f32 %v1717_v32, %v1716_v27  ;;  %v1719_v36 = vpop.f32.mrb[14].mxu1  ;;  %v1608_v37 = vpop.f32.mrb[15].mxu0 }
 0x116   : > { %1312 = vst.msk [vmem:[%s2147_s10 + $0x10] sm:$0xf] %vm1307_vm0, %v1542_v29  ;;  %v1543_v38 = vpack.c.bf16 %v1152_v30, %v1152_v30  ;;  %v884_v39 = vadd.f32 %v1606_v31, %v2139_v34  ;;  %v1609_v40 = vadd.f32 %v1608_v37, %v1607_v33  ;;  %v1720_v41 = vpop.f32.mrb[15].mxu1 }
 0x117   : > { %v1721_v42 = vadd.f32 %v1720_v41, %v1719_v36 }
 0x118   : > { %1313 = vst.msk [vmem:[%s2147_s10 + $0x14] sm:$0xf] %vm1307_vm0, %v1543_v38  ;;  %v1045_v43 = vadd.f32 %v1718_v35, %v884_v39  ;;  %v887_v44 = vadd.f32 %v1609_v40, %v2139_v34 }
 0x11a   : > { %v1153_v45 = vmax.f32 %v1045_v43, 0.0  ;;  %v1048_v46 = vadd.f32 %v1721_v42, %v887_v44  ;;  %v1610_v47 = vpop.f32.mrb[16].mxu0 }
 0x11b   : > { %v1722_v48 = vpop.f32.mrb[16].mxu1  ;;  %v1611_v49 = vpop.f32.mrb[17].mxu0 }
 0x11c   : > { %v1544_v50 = vpack.c.bf16 %v1153_v45, %v1153_v45  ;;  %v1154_v51 = vmax.f32 %v1048_v46, 0.0  ;;  %v1612_v52 = vadd.f32 %v1611_v49, %v1610_v47  ;;  %v1723_v53 = vpop.f32.mrb[17].mxu1  ;;  %v1613_v54 = vpop.f32.mrb[18].mxu0 }
 0x11d   : > { %v1724_v55 = vadd.f32 %v1723_v53, %v1722_v48  ;;  %v1725_v56 = vpop.f32.mrb[18].mxu1  ;;  %v1614_v57 = vpop.f32.mrb[19].mxu0 }
 0x11e   : > { %1314 = vst.msk [vmem:[%s2147_s10 + $0x18] sm:$0xf] %vm1307_vm0, %v1544_v50  ;;  %v1545_v58 = vpack.c.bf16 %v1154_v51, %v1154_v51  ;;  %v892_v59 = vadd.f32 %v1612_v52, %v2139_v34  ;;  %v1615_v60 = vadd.f32 %v1614_v57, %v1613_v54  ;;  %v1726_v61 = vpop.f32.mrb[19].mxu1 }
 0x11f   : > { %v1727_v62 = vadd.f32 %v1726_v61, %v1725_v56 }
 0x120   : > { %1315 = vst.msk [vmem:[%s2147_s10 + $0x1c] sm:$0xf] %vm1307_vm0, %v1545_v58  ;;  %v1053_v63 = vadd.f32 %v1724_v55, %v892_v59  ;;  %v895_v0 = vadd.f32 %v1615_v60, %v2139_v34 }
 0x122   : > { %v1155_v1 = vmax.f32 %v1053_v63, 0.0  ;;  %v1056_v2 = vadd.f32 %v1727_v62, %v895_v0  ;;  %v1616_v3 = vpop.f32.mrb[20].mxu0 }
 0x123   : > { %v1728_v4 = vpop.f32.mrb[20].mxu1  ;;  %v1617_v5 = vpop.f32.mrb[21].mxu0 }
 0x124   : > { %v1546_v6 = vpack.c.bf16 %v1155_v1, %v1155_v1  ;;  %v1156_v7 = vmax.f32 %v1056_v2, 0.0  ;;  %v1618_v8 = vadd.f32 %v1617_v5, %v1616_v3  ;;  %v1729_v9 = vpop.f32.mrb[21].mxu1  ;;  %v1619_v10 = vpop.f32.mrb[22].mxu0 }
 0x125   : > { %v1730_v11 = vadd.f32 %v1729_v9, %v1728_v4  ;;  %v1731_v12 = vpop.f32.mrb[22].mxu1  ;;  %v1620_v13 = vpop.f32.mrb[23].mxu0 }
 0x126   : > { %1316 = vst.msk [vmem:[%s2147_s10 + $0x20] sm:$0xf] %vm1307_vm0, %v1546_v6  ;;  %v1547_v14 = vpack.c.bf16 %v1156_v7, %v1156_v7  ;;  %v900_v15 = vadd.f32 %v1618_v8, %v2139_v34  ;;  %v1621_v16 = vadd.f32 %v1620_v13, %v1619_v10  ;;  %v1732_v17 = vpop.f32.mrb[23].mxu1 }
 0x127   : > { %v1733_v18 = vadd.f32 %v1732_v17, %v1731_v12 }
 0x128   : > { %1317 = vst.msk [vmem:[%s2147_s10 + $0x24] sm:$0xf] %vm1307_vm0, %v1547_v14  ;;  %v1061_v19 = vadd.f32 %v1730_v11, %v900_v15  ;;  %v903_v20 = vadd.f32 %v1621_v16, %v2139_v34 }
 0x12a   : > { %v1157_v21 = vmax.f32 %v1061_v19, 0.0  ;;  %v1064_v22 = vadd.f32 %v1733_v18, %v903_v20  ;;  %v1622_v23 = vpop.f32.mrb[24].mxu0 }
 0x12b   : > { %v1734_v24 = vpop.f32.mrb[24].mxu1  ;;  %v1623_v25 = vpop.f32.mrb[25].mxu0 }
 0x12c   : > { %v1548_v26 = vpack.c.bf16 %v1157_v21, %v1157_v21  ;;  %v1158_v27 = vmax.f32 %v1064_v22, 0.0  ;;  %v1624_v28 = vadd.f32 %v1623_v25, %v1622_v23  ;;  %v1735_v29 = vpop.f32.mrb[25].mxu1  ;;  %v1625_v30 = vpop.f32.mrb[26].mxu0 }
 0x12d   : > { %v1736_v31 = vadd.f32 %v1735_v29, %v1734_v24  ;;  %v1737_v32 = vpop.f32.mrb[26].mxu1  ;;  %v1626_v33 = vpop.f32.mrb[27].mxu0 }
 0x12e   : > { %1318 = vst.msk [vmem:[%s2147_s10 + $0x28] sm:$0xf] %vm1307_vm0, %v1548_v26  ;;  %v1549_v35 = vpack.c.bf16 %v1158_v27, %v1158_v27  ;;  %v908_v36 = vadd.f32 %v1624_v28, %v2139_v34  ;;  %v1627_v37 = vadd.f32 %v1626_v33, %v1625_v30  ;;  %v1738_v38 = vpop.f32.mrb[27].mxu1 }
 0x12f   : > { %v1739_v39 = vadd.f32 %v1738_v38, %v1737_v32 }
 0x130   : > { %1319 = vst.msk [vmem:[%s2147_s10 + $0x2c] sm:$0xf] %vm1307_vm0, %v1549_v35  ;;  %v1069_v40 = vadd.f32 %v1736_v31, %v908_v36  ;;  %v911_v41 = vadd.f32 %v1627_v37, %v2139_v34 }
 0x132   : > { %v1159_v42 = vmax.f32 %v1069_v40, 0.0  ;;  %v1072_v43 = vadd.f32 %v1739_v39, %v911_v41  ;;  %v1628_v44 = vpop.f32.mrb[28].mxu0 }
 0x133   : > { %v1740_v45 = vpop.f32.mrb[28].mxu1  ;;  %v1629_v46 = vpop.f32.mrb[29].mxu0 }
 0x134   : > { %v1550_v47 = vpack.c.bf16 %v1159_v42, %v1159_v42  ;;  %v1160_v48 = vmax.f32 %v1072_v43, 0.0  ;;  %v1630_v49 = vadd.f32 %v1629_v46, %v1628_v44  ;;  %v1741_v50 = vpop.f32.mrb[29].mxu1  ;;  %v1631_v51 = vpop.f32.mrb[30].mxu0 }
 0x135   : > { %v1742_v52 = vadd.f32 %v1741_v50, %v1740_v45  ;;  %v1743_v53 = vpop.f32.mrb[30].mxu1  ;;  %v1632_v54 = vpop.f32.mrb[31].mxu0 }
 0x136   : > { %1320 = vst.msk [vmem:[%s2147_s10 + $0x30] sm:$0xf] %vm1307_vm0, %v1550_v47  ;;  %v1551_v55 = vpack.c.bf16 %v1160_v48, %v1160_v48  ;;  %v916_v56 = vadd.f32 %v1630_v49, %v2139_v34  ;;  %v1633_v57 = vadd.f32 %v1632_v54, %v1631_v51  ;;  %v1744_v58 = vpop.f32.mrb[31].mxu1 }
 0x137   : > { %v1745_v59 = vadd.f32 %v1744_v58, %v1743_v53 }
 0x138   : > { %1321 = vst.msk [vmem:[%s2147_s10 + $0x34] sm:$0xf] %vm1307_vm0, %v1551_v55  ;;  %v1077_v60 = vadd.f32 %v1742_v52, %v916_v56  ;;  %v919_v61 = vadd.f32 %v1633_v57, %v2139_v34 }
 0x13a   : > { %v1161_v62 = vmax.f32 %v1077_v60, 0.0  ;;  %v1080_v63 = vadd.f32 %v1745_v59, %v919_v61  ;;  %v1634_v0 = vpop.f32.mrb[32].mxu0 }
 0x13b   : > { %v1746_v1 = vpop.f32.mrb[32].mxu1  ;;  %v1635_v2 = vpop.f32.mrb[33].mxu0 }
 0x13c   : > { %v1552_v3 = vpack.c.bf16 %v1161_v62, %v1161_v62  ;;  %v1162_v4 = vmax.f32 %v1080_v63, 0.0  ;;  %v1636_v5 = vadd.f32 %v1635_v2, %v1634_v0  ;;  %v1747_v6 = vpop.f32.mrb[33].mxu1  ;;  %v1637_v7 = vpop.f32.mrb[34].mxu0 }
 0x13d   : > { %v1748_v8 = vadd.f32 %v1747_v6, %v1746_v1  ;;  %v1749_v9 = vpop.f32.mrb[34].mxu1  ;;  %v1638_v10 = vpop.f32.mrb[35].mxu0 }
 0x13e   : > { %1322 = vst.msk [vmem:[%s2147_s10 + $0x38] sm:$0xf] %vm1307_vm0, %v1552_v3  ;;  %v1553_v11 = vpack.c.bf16 %v1162_v4, %v1162_v4  ;;  %v924_v12 = vadd.f32 %v1636_v5, %v2139_v34  ;;  %v1639_v13 = vadd.f32 %v1638_v10, %v1637_v7  ;;  %v1750_v14 = vpop.f32.mrb[35].mxu1 }
 0x13f   : > { %v1751_v15 = vadd.f32 %v1750_v14, %v1749_v9 }
 0x140   : > { %1323 = vst.msk [vmem:[%s2147_s10 + $0x3c] sm:$0xf] %vm1307_vm0, %v1553_v11  ;;  %v1085_v16 = vadd.f32 %v1748_v8, %v924_v12  ;;  %v927_v17 = vadd.f32 %v1639_v13, %v2139_v34 }
 0x142   : > { %v1163_v18 = vmax.f32 %v1085_v16, 0.0  ;;  %v1088_v19 = vadd.f32 %v1751_v15, %v927_v17  ;;  %v1640_v20 = vpop.f32.mrb[36].mxu0 }
 0x143   : > { %v1752_v21 = vpop.f32.mrb[36].mxu1  ;;  %v1641_v22 = vpop.f32.mrb[37].mxu0 }
 0x144   : > { %v1554_v23 = vpack.c.bf16 %v1163_v18, %v1163_v18  ;;  %v1164_v24 = vmax.f32 %v1088_v19, 0.0  ;;  %v1642_v25 = vadd.f32 %v1641_v22, %v1640_v20  ;;  %v1753_v26 = vpop.f32.mrb[37].mxu1  ;;  %v1643_v27 = vpop.f32.mrb[38].mxu0 }
 0x145   : > { %v1754_v28 = vadd.f32 %v1753_v26, %v1752_v21  ;;  %v1755_v29 = vpop.f32.mrb[38].mxu1  ;;  %v1644_v30 = vpop.f32.mrb[39].mxu0 }
 0x146   : > { %1324 = vst.msk [vmem:[%s2147_s10 + $0x40] sm:$0xf] %vm1307_vm0, %v1554_v23  ;;  %v1555_v31 = vpack.c.bf16 %v1164_v24, %v1164_v24  ;;  %v932_v32 = vadd.f32 %v1642_v25, %v2139_v34  ;;  %v1645_v33 = vadd.f32 %v1644_v30, %v1643_v27  ;;  %v1756_v35 = vpop.f32.mrb[39].mxu1 }
 0x147   : > { %v1757_v36 = vadd.f32 %v1756_v35, %v1755_v29 }
 0x148   : > { %1325 = vst.msk [vmem:[%s2147_s10 + $0x44] sm:$0xf] %vm1307_vm0, %v1555_v31  ;;  %v1093_v37 = vadd.f32 %v1754_v28, %v932_v32  ;;  %v935_v38 = vadd.f32 %v1645_v33, %v2139_v34 }
 0x14a   : > { %v1165_v39 = vmax.f32 %v1093_v37, 0.0  ;;  %v1096_v40 = vadd.f32 %v1757_v36, %v935_v38  ;;  %v1646_v41 = vpop.f32.mrb[40].mxu0 }
 0x14b   : > { %v1758_v42 = vpop.f32.mrb[40].mxu1  ;;  %v1647_v43 = vpop.f32.mrb[41].mxu0 }
 0x14c   : > { %v1556_v44 = vpack.c.bf16 %v1165_v39, %v1165_v39  ;;  %v1166_v45 = vmax.f32 %v1096_v40, 0.0  ;;  %v1648_v46 = vadd.f32 %v1647_v43, %v1646_v41  ;;  %v1759_v47 = vpop.f32.mrb[41].mxu1  ;;  %v1649_v48 = vpop.f32.mrb[42].mxu0 }
 0x14d   : > { %v1760_v49 = vadd.f32 %v1759_v47, %v1758_v42  ;;  %v1761_v50 = vpop.f32.mrb[42].mxu1  ;;  %v1650_v51 = vpop.f32.mrb[43].mxu0 }
 0x14e   : > { %1326 = vst.msk [vmem:[%s2147_s10 + $0x48] sm:$0xf] %vm1307_vm0, %v1556_v44  ;;  %v1557_v52 = vpack.c.bf16 %v1166_v45, %v1166_v45  ;;  %v940_v53 = vadd.f32 %v1648_v46, %v2139_v34  ;;  %v1651_v54 = vadd.f32 %v1650_v51, %v1649_v48  ;;  %v1762_v55 = vpop.f32.mrb[43].mxu1 }
 0x14f   : > { %v1763_v56 = vadd.f32 %v1762_v55, %v1761_v50 }
 0x150   : > { %1327 = vst.msk [vmem:[%s2147_s10 + $0x4c] sm:$0xf] %vm1307_vm0, %v1557_v52  ;;  %v1101_v57 = vadd.f32 %v1760_v49, %v940_v53  ;;  %v943_v58 = vadd.f32 %v1651_v54, %v2139_v34 }
 0x152   : > { %v1167_v59 = vmax.f32 %v1101_v57, 0.0  ;;  %v1104_v60 = vadd.f32 %v1763_v56, %v943_v58  ;;  %v1652_v61 = vpop.f32.mrb[44].mxu0 }
 0x153   : > { %v1764_v62 = vpop.f32.mrb[44].mxu1  ;;  %v1653_v63 = vpop.f32.mrb[45].mxu0 }
 0x154   : > { %v1558_v0 = vpack.c.bf16 %v1167_v59, %v1167_v59  ;;  %v1168_v1 = vmax.f32 %v1104_v60, 0.0  ;;  %v1654_v2 = vadd.f32 %v1653_v63, %v1652_v61  ;;  %v1765_v3 = vpop.f32.mrb[45].mxu1  ;;  %v1655_v4 = vpop.f32.mrb[46].mxu0 }
 0x155   : > { %v1766_v5 = vadd.f32 %v1765_v3, %v1764_v62  ;;  %v1767_v6 = vpop.f32.mrb[46].mxu1  ;;  %v1656_v7 = vpop.f32.mrb[47].mxu0 }
 0x156   : > { %1328 = vst.msk [vmem:[%s2147_s10 + $0x50] sm:$0xf] %vm1307_vm0, %v1558_v0  ;;  %v1559_v8 = vpack.c.bf16 %v1168_v1, %v1168_v1  ;;  %v948_v9 = vadd.f32 %v1654_v2, %v2139_v34  ;;  %v1657_v10 = vadd.f32 %v1656_v7, %v1655_v4  ;;  %v1768_v11 = vpop.f32.mrb[47].mxu1 }
 0x157   : > { %v1769_v12 = vadd.f32 %v1768_v11, %v1767_v6 }
 0x158   : > { %1329 = vst.msk [vmem:[%s2147_s10 + $0x54] sm:$0xf] %vm1307_vm0, %v1559_v8  ;;  %v1109_v13 = vadd.f32 %v1766_v5, %v948_v9  ;;  %v951_v14 = vadd.f32 %v1657_v10, %v2139_v34 }
 0x15a   : > { %v1169_v15 = vmax.f32 %v1109_v13, 0.0  ;;  %v1112_v16 = vadd.f32 %v1769_v12, %v951_v14  ;;  %v1658_v17 = vpop.f32.mrb[48].mxu0 }
 0x15b   : > { %v1770_v18 = vpop.f32.mrb[48].mxu1  ;;  %v1659_v19 = vpop.f32.mrb[49].mxu0 }
 0x15c   : > { %v1560_v20 = vpack.c.bf16 %v1169_v15, %v1169_v15  ;;  %v1170_v21 = vmax.f32 %v1112_v16, 0.0  ;;  %v1660_v22 = vadd.f32 %v1659_v19, %v1658_v17  ;;  %v1771_v23 = vpop.f32.mrb[49].mxu1  ;;  %v1661_v24 = vpop.f32.mrb[50].mxu0 }
 0x15d   : > { %v1772_v25 = vadd.f32 %v1771_v23, %v1770_v18  ;;  %v1773_v26 = vpop.f32.mrb[50].mxu1  ;;  %v1662_v27 = vpop.f32.mrb[51].mxu0 }
 0x15e   : > { %1330 = vst.msk [vmem:[%s2147_s10 + $0x58] sm:$0xf] %vm1307_vm0, %v1560_v20  ;;  %v1561_v28 = vpack.c.bf16 %v1170_v21, %v1170_v21  ;;  %v956_v29 = vadd.f32 %v1660_v22, %v2139_v34  ;;  %v1663_v30 = vadd.f32 %v1662_v27, %v1661_v24  ;;  %v1774_v31 = vpop.f32.mrb[51].mxu1 }
 0x15f   : > { %v1775_v32 = vadd.f32 %v1774_v31, %v1773_v26 }
 0x160   : > { %1331 = vst.msk [vmem:[%s2147_s10 + $0x5c] sm:$0xf] %vm1307_vm0, %v1561_v28  ;;  %v1117_v33 = vadd.f32 %v1772_v25, %v956_v29  ;;  %v959_v35 = vadd.f32 %v1663_v30, %v2139_v34 }
 0x162   : > { %v1171_v36 = vmax.f32 %v1117_v33, 0.0  ;;  %v1120_v37 = vadd.f32 %v1775_v32, %v959_v35  ;;  %v1664_v38 = vpop.f32.mrb[52].mxu0 }
 0x163   : > { %v1776_v39 = vpop.f32.mrb[52].mxu1  ;;  %v1665_v40 = vpop.f32.mrb[53].mxu0 }
 0x164   : > { %v1562_v41 = vpack.c.bf16 %v1171_v36, %v1171_v36  ;;  %v1172_v42 = vmax.f32 %v1120_v37, 0.0  ;;  %v1666_v43 = vadd.f32 %v1665_v40, %v1664_v38  ;;  %v1777_v44 = vpop.f32.mrb[53].mxu1  ;;  %v1667_v45 = vpop.f32.mrb[54].mxu0 }
 0x165   : > { %v1778_v46 = vadd.f32 %v1777_v44, %v1776_v39  ;;  %v1779_v47 = vpop.f32.mrb[54].mxu1  ;;  %v1668_v48 = vpop.f32.mrb[55].mxu0 }
 0x166   : > { %1332 = vst.msk [vmem:[%s2147_s10 + $0x60] sm:$0xf] %vm1307_vm0, %v1562_v41  ;;  %v1563_v49 = vpack.c.bf16 %v1172_v42, %v1172_v42  ;;  %v964_v50 = vadd.f32 %v1666_v43, %v2139_v34  ;;  %v1669_v51 = vadd.f32 %v1668_v48, %v1667_v45  ;;  %v1780_v52 = vpop.f32.mrb[55].mxu1 }
 0x167   : > { %v1781_v53 = vadd.f32 %v1780_v52, %v1779_v47 }
 0x168   : > { %1333 = vst.msk [vmem:[%s2147_s10 + $0x64] sm:$0xf] %vm1307_vm0, %v1563_v49  ;;  %v1125_v54 = vadd.f32 %v1778_v46, %v964_v50  ;;  %v967_v55 = vadd.f32 %v1669_v51, %v2139_v34 }
 0x16a   : > { %v1173_v56 = vmax.f32 %v1125_v54, 0.0  ;;  %v1128_v57 = vadd.f32 %v1781_v53, %v967_v55  ;;  %v1670_v58 = vpop.f32.mrb[56].mxu0 }
 0x16b   : > { %v1782_v59 = vpop.f32.mrb[56].mxu1  ;;  %v1671_v60 = vpop.f32.mrb[57].mxu0 }
 0x16c   : > { %v1564_v61 = vpack.c.bf16 %v1173_v56, %v1173_v56  ;;  %v1174_v62 = vmax.f32 %v1128_v57, 0.0  ;;  %v1672_v63 = vadd.f32 %v1671_v60, %v1670_v58  ;;  %v1783_v0 = vpop.f32.mrb[57].mxu1  ;;  %v1673_v1 = vpop.f32.mrb[58].mxu0 }
 0x16d   : > { %v1784_v2 = vadd.f32 %v1783_v0, %v1782_v59  ;;  %v1785_v3 = vpop.f32.mrb[58].mxu1  ;;  %v1674_v4 = vpop.f32.mrb[59].mxu0 }
 0x16e   : > { %1334 = vst.msk [vmem:[%s2147_s10 + $0x68] sm:$0xf] %vm1307_vm0, %v1564_v61  ;;  %v1565_v5 = vpack.c.bf16 %v1174_v62, %v1174_v62  ;;  %v972_v6 = vadd.f32 %v1672_v63, %v2139_v34  ;;  %v1675_v7 = vadd.f32 %v1674_v4, %v1673_v1  ;;  %v1786_v8 = vpop.f32.mrb[59].mxu1 }
 0x16f   : > { %v1787_v9 = vadd.f32 %v1786_v8, %v1785_v3 }
 0x170   : > { %1335 = vst.msk [vmem:[%s2147_s10 + $0x6c] sm:$0xf] %vm1307_vm0, %v1565_v5  ;;  %v1133_v10 = vadd.f32 %v1784_v2, %v972_v6  ;;  %v975_v11 = vadd.f32 %v1675_v7, %v2139_v34 }
 0x172   : > { %v1175_v12 = vmax.f32 %v1133_v10, 0.0  ;;  %v1136_v13 = vadd.f32 %v1787_v9, %v975_v11  ;;  %v1676_v14 = vpop.f32.mrb[60].mxu0 }
 0x173   : > { %v1788_v15 = vpop.f32.mrb[60].mxu1  ;;  %v1677_v16 = vpop.f32.mrb[61].mxu0 }
 0x174   : > { %v1566_v17 = vpack.c.bf16 %v1175_v12, %v1175_v12  ;;  %v1176_v18 = vmax.f32 %v1136_v13, 0.0  ;;  %v1678_v19 = vadd.f32 %v1677_v16, %v1676_v14  ;;  %v1789_v20 = vpop.f32.mrb[61].mxu1  ;;  %v1679_v21 = vpop.f32.mrb[62].mxu0 }
 0x175   : > { %v1790_v22 = vadd.f32 %v1789_v20, %v1788_v15  ;;  %v1791_v23 = vpop.f32.mrb[62].mxu1  ;;  %v1680_v24 = vpop.f32.mrb[63].mxu0 }
 0x176   : > { %1336 = vst.msk [vmem:[%s2147_s10 + $0x70] sm:$0xf] %vm1307_vm0, %v1566_v17  ;;  %v1567_v25 = vpack.c.bf16 %v1176_v18, %v1176_v18  ;;  %v980_v26 = vadd.f32 %v1678_v19, %v2139_v34  ;;  %v1681_v27 = vadd.f32 %v1680_v24, %v1679_v21  ;;  %v1792_v28 = vpop.f32.mrb[63].mxu1 }
 0x177   : > { %v1793_v29 = vadd.f32 %v1792_v28, %v1791_v23 }
 0x178   : > { %1337 = vst.msk [vmem:[%s2147_s10 + $0x74] sm:$0xf] %vm1307_vm0, %v1567_v25  ;;  %v1141_v30 = vadd.f32 %v1790_v22, %v980_v26  ;;  %v983_v31 = vadd.f32 %v1681_v27, %v2139_v34 }
 0x17a   : > { %v1177_v32 = vmax.f32 %v1141_v30, 0.0  ;;  %v1144_v33 = vadd.f32 %v1793_v29, %v983_v31 }
 0x17c   : > { %v1568_v35 = vpack.c.bf16 %v1177_v32, %v1177_v32  ;;  %v1178_v36 = vmax.f32 %v1144_v33, 0.0 }
 0x17e   : > { %1338 = vst.msk [vmem:[%s2147_s10 + $0x78] sm:$0xf] %vm1307_vm0, %v1568_v35  ;;  %v1569_v37 = vpack.c.bf16 %v1178_v36, %v1178_v36 }
 0x180   : > { %1339 = vst.msk [vmem:[%s2147_s10 + $0x7c] sm:$0xf] %vm1307_vm0, %v1569_v37 }
 0x181 PF: > { %s13_s12 = sadd.s32 1, %s1936_s12  }
 0x182   : > { %p10_p4 = scmp.ge.s32.totalorder %s13_s12, 4  }
 0x184   :  { %12 = sbr.rel (!%p10_p4) target bundleno = 1 (0x1), region = 62 }

// kernel: vae_forward.11
= control target key start
LH: loop header
LB: loop body
LE: loop exit
PB: predicated region body
PF: predicated region fallthrough
CT: control target
= control target key end

     0   :  { %vm744_vm0 = vcmask 519168   ;;  %s1367_s1 = inlined_call_operand.vmem [shape: bf16[512,64], index: 1, kind: input, shape index: {}]   ;;  %s1368_s0 = inlined_call_operand.vmem [shape: bf16[128,512], index: 0, kind: input, shape index: {}]   ;;  %s1369_s2 = inlined_call_operand.vmem [shape: f32[1,64], index: 2, kind: input, shape index: {}]   ;;  %s1370_s3 = inlined_call_operand.vmem [shape: bf16[128,64], index: 3, kind: output, shape index: {}]  }
   0x1   :  { %v990_v0 = vld [vmem:[%s1367_s1 + $0x40] sm:$0xff]   ;;  %v994_v4 = vld [vmem:[%s1367_s1 + $0x48] sm:$0xff]   ;;  %v998_v8 = vld [vmem:[%s1367_s1 + $0x50] sm:$0xff]  }
   0x2   :  { %v991_v1 = vld [vmem:[%s1367_s1 + $0xc0] sm:$0xff]   ;;  %862 = vmatprep.subr.bf16.mxu0 %v990_v0  ;;  %v995_v5 = vld [vmem:[%s1367_s1 + $0xc8] sm:$0xff]   ;;  %v999_v9 = vld [vmem:[%s1367_s1 + $0xd0] sm:$0xff]  }
   0x3   :  { %v992_v2 = vld [vmem:[%s1367_s1] sm:$0xff]   ;;  %926 = vmatprep.subr.bf16.mxu1 %v991_v1  ;;  %v996_v6 = vld [vmem:[%s1367_s1 + $0x8] sm:$0xff]   ;;  %v1000_v10 = vld [vmem:[%s1367_s1 + $0x10] sm:$0xff]  }
   0x4   :  { %v993_v3 = vld [vmem:[%s1367_s1 + $0x80] sm:$0xff]   ;;  %863 = vmatpush3.bf16.msra.mxu0 %v992_v2  ;;  %v997_v7 = vld [vmem:[%s1367_s1 + $0x88] sm:$0xff]   ;;  %v1001_v11 = vld [vmem:[%s1367_s1 + $0x90] sm:$0xff]  }
   0x5   :  { %927 = vmatpush3.bf16.msra.mxu1 %v993_v3  ;;  %864 = vmatprep.subr.bf16.mxu0 %v994_v4  ;;  %v1002_v12 = vld [vmem:[%s1367_s1 + $0x58] sm:$0xff]   ;;  %v1006_v16 = vld [vmem:[%s1367_s1 + $0x60] sm:$0xff]   ;;  %v1010_v20 = vld [vmem:[%s1367_s1 + $0x68] sm:$0xff]  }
   0x6   :  { %928 = vmatprep.subr.bf16.mxu1 %v995_v5  ;;  %v1003_v13 = vld [vmem:[%s1367_s1 + $0xd8] sm:$0xff]   ;;  %v1007_v17 = vld [vmem:[%s1367_s1 + $0xe0] sm:$0xff]   ;;  %v1011_v21 = vld [vmem:[%s1367_s1 + $0xe8] sm:$0xff]  }
   0x7   :  { %v1004_v14 = vld [vmem:[%s1367_s1 + $0x18] sm:$0xff]   ;;  %v1008_v18 = vld [vmem:[%s1367_s1 + $0x20] sm:$0xff]   ;;  %v1012_v22 = vld [vmem:[%s1367_s1 + $0x28] sm:$0xff]  }
   0x8   :  { %865 = vmatpush3.bf16.msra.mxu0 %v996_v6  ;;  %v1005_v15 = vld [vmem:[%s1367_s1 + $0x98] sm:$0xff]   ;;  %v1009_v19 = vld [vmem:[%s1367_s1 + $0xa0] sm:$0xff]   ;;  %v1013_v23 = vld [vmem:[%s1367_s1 + $0xa8] sm:$0xff]  }
   0x9   :  { %929 = vmatpush3.bf16.msra.mxu1 %v997_v7  ;;  %866 = vmatprep.subr.bf16.mxu0 %v998_v8  ;;  %v1014_v24 = vld [vmem:[%s1367_s1 + $0x70] sm:$0xff]   ;;  %v1018_v28 = vld [vmem:[%s1367_s1 + $0x78] sm:$0xff]   ;;  %v1285_v2 = vld [vmem:[%s1369_s2] ss:$0 sm:$0xff] }
   0xa   :  { %930 = vmatprep.subr.bf16.mxu1 %v999_v9  ;;  %v1015_v25 = vld [vmem:[%s1367_s1 + $0xf0] sm:$0xff]   ;;  %v1019_v29 = vld [vmem:[%s1367_s1 + $0xf8] sm:$0xff]  }
   0xb   :  { %v1016_v26 = vld [vmem:[%s1367_s1 + $0x30] sm:$0xff]   ;;  %v1020_v30 = vld [vmem:[%s1367_s1 + $0x38] sm:$0xff]  }
   0xc   :  { %867 = vmatpush3.bf16.msra.mxu0 %v1000_v10  ;;  %v1017_v27 = vld [vmem:[%s1367_s1 + $0xb0] sm:$0xff]   ;;  %v1021_v31 = vld [vmem:[%s1367_s1 + $0xb8] sm:$0xff]  }
   0xd   :  { %931 = vmatpush3.bf16.msra.mxu1 %v1001_v11  ;;  %868 = vmatprep.subr.bf16.mxu0 %v1002_v12  ;;  %v1022_v32 = vld [vmem:[%s1368_s0] ss:$16 sps:$4 sm:$0xff]   ;;  %v1024_v33 = vld [vmem:[%s1368_s0 + $0x4] ss:$16 sps:$4 sm:$0xff]   ;;  %v1025_v34 = vld [vmem:[%s1368_s0 + $0x8] ss:$16 sps:$4 sm:$0xff]  }
   0xe   :  { %932 = vmatprep.subr.bf16.mxu1 %v1003_v13  ;;  %v1027_v35 = vld [vmem:[%s1368_s0 + $0xc] ss:$16 sps:$4 sm:$0xff]   ;;  %502 = vmatprep.mubr.bf16.mxu0 %v1024_v33  ;;  %v1028_v36 = vld [vmem:[%s1368_s0 + $0x24] ss:$16 sps:$4 sm:$0xff]   ;;  %v1032_v38 = vld [vmem:[%s1368_s0 + $0x20] ss:$16 sps:$4 sm:$0xff]  }
   0xf   :  { %599 = vmatprep.mubr.bf16.mxu1 %v1027_v35  ;;  %v1030_v37 = vld [vmem:[%s1368_s0 + $0x2c] ss:$16 sps:$4 sm:$0xff]   ;;  %v1033_v39 = vld [vmem:[%s1368_s0 + $0x28] ss:$16 sps:$4 sm:$0xff]   ;;  %v1034_v40 = vld [vmem:[%s1368_s0 + $0x44] ss:$16 sps:$4 sm:$0xff]  }
  0x10   :  { %869 = vmatpush3.bf16.msra.mxu0 %v1004_v14  ;;  %v1036_v41 = vld [vmem:[%s1368_s0 + $0x4c] ss:$16 sps:$4 sm:$0xff]   ;;  %v1038_v42 = vld [vmem:[%s1368_s0 + $0x40] ss:$16 sps:$4 sm:$0xff]   ;;  %v1039_v43 = vld [vmem:[%s1368_s0 + $0x48] ss:$16 sps:$4 sm:$0xff]  }
  0x11   :  { %933 = vmatpush3.bf16.msra.mxu1 %v1005_v15  ;;  %870 = vmatprep.subr.bf16.mxu0 %v1006_v16  ;;  %v1040_v44 = vld [vmem:[%s1368_s0 + $0x64] ss:$16 sps:$4 sm:$0xff]   ;;  %v1042_v45 = vld [vmem:[%s1368_s0 + $0x6c] ss:$16 sps:$4 sm:$0xff]   ;;  %v1044_v46 = vld [vmem:[%s1368_s0 + $0x60] ss:$16 sps:$4 sm:$0xff]  }
  0x12   :  { %934 = vmatprep.subr.bf16.mxu1 %v1007_v17  ;;  %v1045_v47 = vld [vmem:[%s1368_s0 + $0x68] ss:$16 sps:$4 sm:$0xff]   ;;  %v1046_v48 = vld [vmem:[%s1368_s0 + $0x84] ss:$16 sps:$4 sm:$0xff]   ;;  %v1048_v49 = vld [vmem:[%s1368_s0 + $0x8c] ss:$16 sps:$4 sm:$0xff]  }
  0x13   :  { %v1050_v50 = vld [vmem:[%s1368_s0 + $0x80] ss:$16 sps:$4 sm:$0xff]   ;;  %v1051_v51 = vld [vmem:[%s1368_s0 + $0x88] ss:$16 sps:$4 sm:$0xff]   ;;  %v1052_v52 = vld [vmem:[%s1368_s0 + $0xa4] ss:$16 sps:$4 sm:$0xff]  }
  0x14   :  { %871 = vmatpush3.bf16.msra.mxu0 %v1008_v18  ;;  %v1054_v53 = vld [vmem:[%s1368_s0 + $0xac] ss:$16 sps:$4 sm:$0xff]   ;;  %v1056_v54 = vld [vmem:[%s1368_s0 + $0xa0] ss:$16 sps:$4 sm:$0xff]   ;;  %v1057_v55 = vld [vmem:[%s1368_s0 + $0xa8] ss:$16 sps:$4 sm:$0xff]  }
  0x15   :  { %935 = vmatpush3.bf16.msra.mxu1 %v1009_v19  ;;  %872 = vmatprep.subr.bf16.mxu0 %v1010_v20  ;;  %v1058_v56 = vld [vmem:[%s1368_s0 + $0xc4] ss:$16 sps:$4 sm:$0xff]   ;;  %v1060_v57 = vld [vmem:[%s1368_s0 + $0xcc] ss:$16 sps:$4 sm:$0xff]   ;;  %v1062_v58 = vld [vmem:[%s1368_s0 + $0xc0] ss:$16 sps:$4 sm:$0xff]  }
  0x16   :  { %936 = vmatprep.subr.bf16.mxu1 %v1011_v21  ;;  %v1063_v59 = vld [vmem:[%s1368_s0 + $0xc8] ss:$16 sps:$4 sm:$0xff]   ;;  %v1064_v60 = vld [vmem:[%s1368_s0 + $0xe4] ss:$16 sps:$4 sm:$0xff]   ;;  %v1066_v61 = vld [vmem:[%s1368_s0 + $0xec] ss:$16 sps:$4 sm:$0xff]  }
  0x17   :  { %v1068_v62 = vld [vmem:[%s1368_s0 + $0xe0] ss:$16 sps:$4 sm:$0xff]   ;;  %v1069_v63 = vld [vmem:[%s1368_s0 + $0xe8] ss:$16 sps:$4 sm:$0xff]  }
  0x18   :  { %873 = vmatpush3.bf16.msra.mxu0 %v1012_v22 }
  0x19   :  { %937 = vmatpush3.bf16.msra.mxu1 %v1013_v23  ;;  %874 = vmatprep.subr.bf16.mxu0 %v1014_v24 }
  0x1a   :  { %938 = vmatprep.subr.bf16.mxu1 %v1015_v25 }
  0x1c   :  { %875 = vmatpush3.bf16.msra.mxu0 %v1016_v26 }
  0x1d   :  { %939 = vmatpush3.bf16.msra.mxu1 %v1017_v27  ;;  %876 = vmatprep.subr.bf16.mxu0 %v1018_v28 }
  0x1e   :  { %940 = vmatprep.subr.bf16.mxu1 %v1019_v29 }
  0x20   :  { %877 = vmatpush3.bf16.msra.mxu0 %v1020_v30 }
  0x21   :  { %941 = vmatpush3.bf16.msra.mxu1 %v1021_v31 }
  0x23   :  { %503 = vmatmul.mubr.bf16.vlgmr.msra.gmra.mrb[0].mxu0 %v1022_v32 }
  0x24   :  { %600 = vmatmul.mubr.bf16.vlgmr.msra.gmra.mrb[0].mxu1 %v1025_v34  ;;  %510 = vmatprep.mubr.bf16.mxu0 %v1028_v36 }
  0x25   :  { %607 = vmatprep.mubr.bf16.mxu1 %v1030_v37 }
  0x2b   :  { %511 = vmatmul.mubr.bf16.gmra.mrb[4].mxu0 %v1032_v38 }
  0x2c   :  { %608 = vmatmul.mubr.bf16.gmra.mrb[4].mxu1 %v1033_v39  ;;  %518 = vmatprep.mubr.bf16.mxu0 %v1034_v40 }
  0x2d   :  { %615 = vmatprep.mubr.bf16.mxu1 %v1036_v41 }
  0x33   :  { %519 = vmatmul.mubr.bf16.gmra.mrb[8].mxu0 %v1038_v42 }
  0x34   :  { %616 = vmatmul.mubr.bf16.gmra.mrb[8].mxu1 %v1039_v43  ;;  %526 = vmatprep.mubr.bf16.mxu0 %v1040_v44 }
  0x35   :  { %623 = vmatprep.mubr.bf16.mxu1 %v1042_v45 }
  0x3b   :  { %527 = vmatmul.mubr.bf16.gmra.mrb[12].mxu0 %v1044_v46 }
  0x3c   :  { %624 = vmatmul.mubr.bf16.gmra.mrb[12].mxu1 %v1045_v47  ;;  %534 = vmatprep.mubr.bf16.mxu0 %v1046_v48 }
  0x3d   :  { %631 = vmatprep.mubr.bf16.mxu1 %v1048_v49 }
  0x43   :  { %535 = vmatmul.mubr.bf16.gmra.mrb[16].mxu0 %v1050_v50 }
  0x44   :  { %632 = vmatmul.mubr.bf16.gmra.mrb[16].mxu1 %v1051_v51  ;;  %542 = vmatprep.mubr.bf16.mxu0 %v1052_v52 }
  0x45   :  { %639 = vmatprep.mubr.bf16.mxu1 %v1054_v53 }
  0x4b   :  { %543 = vmatmul.mubr.bf16.gmra.mrb[20].mxu0 %v1056_v54 }
  0x4c   :  { %640 = vmatmul.mubr.bf16.gmra.mrb[20].mxu1 %v1057_v55  ;;  %550 = vmatprep.mubr.bf16.mxu0 %v1058_v56 }
  0x4d   :  { %647 = vmatprep.mubr.bf16.mxu1 %v1060_v57 }
  0x53   :  { %551 = vmatmul.mubr.bf16.gmra.mrb[24].mxu0 %v1062_v58 }
  0x54   :  { %648 = vmatmul.mubr.bf16.gmra.mrb[24].mxu1 %v1063_v59  ;;  %558 = vmatprep.mubr.bf16.mxu0 %v1064_v60 }
  0x55   :  { %655 = vmatprep.mubr.bf16.mxu1 %v1066_v61 }
  0x5b   :  { %559 = vmatmul.mubr.bf16.gmra.mrb[28].mxu0 %v1068_v62 }
  0x5c   :  { %656 = vmatmul.mubr.bf16.gmra.mrb[28].mxu1 %v1069_v63 }
  0xf6   :  { %v878_v0 = vpop.f32.mrb[0].mxu0 }
  0xf7   :  { %v942_v1 = vpop.f32.mrb[0].mxu1  ;;  %v879_v3 = vpop.f32.mrb[1].mxu0 }
  0xf8   :  { %v880_v4 = vadd.f32 %v879_v3, %v878_v0  ;;  %v943_v5 = vpop.f32.mrb[1].mxu1  ;;  %v881_v6 = vpop.f32.mrb[2].mxu0 }
  0xf9   :  { %v944_v7 = vadd.f32 %v943_v5, %v942_v1  ;;  %v945_v8 = vpop.f32.mrb[2].mxu1  ;;  %v882_v9 = vpop.f32.mrb[3].mxu0 }
  0xfa   :  { %v505_v10 = vadd.f32 %v880_v4, %v1285_v2  ;;  %v883_v11 = vadd.f32 %v882_v9, %v881_v6  ;;  %v946_v12 = vpop.f32.mrb[3].mxu1 }
  0xfb   :  { %v947_v13 = vadd.f32 %v946_v12, %v945_v8 }
  0xfc   :  { %v602_v14 = vadd.f32 %v944_v7, %v505_v10  ;;  %v508_v15 = vadd.f32 %v883_v11, %v1285_v2 }
  0xfe   :  { %v664_v16 = vmax.f32 %v602_v14, 0.0  ;;  %v605_v17 = vadd.f32 %v947_v13, %v508_v15  ;;  %v884_v18 = vpop.f32.mrb[4].mxu0 }
  0xff   :  { %v948_v19 = vpop.f32.mrb[4].mxu1  ;;  %v885_v20 = vpop.f32.mrb[5].mxu0 }
 0x100   :  { %v846_v21 = vpack.c.bf16 %v664_v16, %v664_v16  ;;  %v665_v22 = vmax.f32 %v605_v17, 0.0  ;;  %v886_v23 = vadd.f32 %v885_v20, %v884_v18  ;;  %v949_v24 = vpop.f32.mrb[5].mxu1  ;;  %v887_v25 = vpop.f32.mrb[6].mxu0 }
 0x101   :  { %v950_v26 = vadd.f32 %v949_v24, %v948_v19  ;;  %v951_v27 = vpop.f32.mrb[6].mxu1  ;;  %v888_v28 = vpop.f32.mrb[7].mxu0 }
 0x102   :  { %745 = vst.msk [vmem:[%s1370_s3] sm:$0xf] %vm744_vm0, %v846_v21  ;;  %v847_v29 = vpack.c.bf16 %v665_v22, %v665_v22  ;;  %v513_v30 = vadd.f32 %v886_v23, %v1285_v2  ;;  %v889_v31 = vadd.f32 %v888_v28, %v887_v25  ;;  %v952_v32 = vpop.f32.mrb[7].mxu1 }
 0x103   :  { %v953_v33 = vadd.f32 %v952_v32, %v951_v27 }
 0x104   :  { %746 = vst.msk [vmem:[%s1370_s3 + $0x4] sm:$0xf] %vm744_vm0, %v847_v29  ;;  %v610_v34 = vadd.f32 %v950_v26, %v513_v30  ;;  %v516_v35 = vadd.f32 %v889_v31, %v1285_v2 }
 0x106   :  { %v666_v36 = vmax.f32 %v610_v34, 0.0  ;;  %v613_v37 = vadd.f32 %v953_v33, %v516_v35  ;;  %v890_v38 = vpop.f32.mrb[8].mxu0 }
 0x107   :  { %v954_v39 = vpop.f32.mrb[8].mxu1  ;;  %v891_v40 = vpop.f32.mrb[9].mxu0 }
 0x108   :  { %v848_v41 = vpack.c.bf16 %v666_v36, %v666_v36  ;;  %v667_v42 = vmax.f32 %v613_v37, 0.0  ;;  %v892_v43 = vadd.f32 %v891_v40, %v890_v38  ;;  %v955_v44 = vpop.f32.mrb[9].mxu1  ;;  %v893_v45 = vpop.f32.mrb[10].mxu0 }
 0x109   :  { %v956_v46 = vadd.f32 %v955_v44, %v954_v39  ;;  %v957_v47 = vpop.f32.mrb[10].mxu1  ;;  %v894_v48 = vpop.f32.mrb[11].mxu0 }
 0x10a   :  { %747 = vst.msk [vmem:[%s1370_s3 + $0x8] sm:$0xf] %vm744_vm0, %v848_v41  ;;  %v849_v49 = vpack.c.bf16 %v667_v42, %v667_v42  ;;  %v521_v50 = vadd.f32 %v892_v43, %v1285_v2  ;;  %v895_v51 = vadd.f32 %v894_v48, %v893_v45  ;;  %v958_v52 = vpop.f32.mrb[11].mxu1 }
 0x10b   :  { %v959_v53 = vadd.f32 %v958_v52, %v957_v47 }
 0x10c   :  { %748 = vst.msk [vmem:[%s1370_s3 + $0xc] sm:$0xf] %vm744_vm0, %v849_v49  ;;  %v618_v54 = vadd.f32 %v956_v46, %v521_v50  ;;  %v524_v55 = vadd.f32 %v895_v51, %v1285_v2 }
 0x10e   :  { %v668_v56 = vmax.f32 %v618_v54, 0.0  ;;  %v621_v57 = vadd.f32 %v959_v53, %v524_v55  ;;  %v896_v58 = vpop.f32.mrb[12].mxu0 }
 0x10f   :  { %v960_v59 = vpop.f32.mrb[12].mxu1  ;;  %v897_v60 = vpop.f32.mrb[13].mxu0 }
 0x110   :  { %v850_v61 = vpack.c.bf16 %v668_v56, %v668_v56  ;;  %v669_v62 = vmax.f32 %v621_v57, 0.0  ;;  %v898_v63 = vadd.f32 %v897_v60, %v896_v58  ;;  %v961_v0 = vpop.f32.mrb[13].mxu1  ;;  %v899_v1 = vpop.f32.mrb[14].mxu0 }
 0x111   :  { %v962_v3 = vadd.f32 %v961_v0, %v960_v59  ;;  %v963_v4 = vpop.f32.mrb[14].mxu1  ;;  %v900_v5 = vpop.f32.mrb[15].mxu0 }
 0x112   :  { %749 = vst.msk [vmem:[%s1370_s3 + $0x10] sm:$0xf] %vm744_vm0, %v850_v61  ;;  %v851_v6 = vpack.c.bf16 %v669_v62, %v669_v62  ;;  %v529_v7 = vadd.f32 %v898_v63, %v1285_v2  ;;  %v901_v8 = vadd.f32 %v900_v5, %v899_v1  ;;  %v964_v9 = vpop.f32.mrb[15].mxu1 }
 0x113   :  { %v965_v10 = vadd.f32 %v964_v9, %v963_v4 }
 0x114   :  { %750 = vst.msk [vmem:[%s1370_s3 + $0x14] sm:$0xf] %vm744_vm0, %v851_v6  ;;  %v626_v11 = vadd.f32 %v962_v3, %v529_v7  ;;  %v532_v12 = vadd.f32 %v901_v8, %v1285_v2 }
 0x116   :  { %v670_v13 = vmax.f32 %v626_v11, 0.0  ;;  %v629_v14 = vadd.f32 %v965_v10, %v532_v12  ;;  %v902_v15 = vpop.f32.mrb[16].mxu0 }
 0x117   :  { %v966_v16 = vpop.f32.mrb[16].mxu1  ;;  %v903_v17 = vpop.f32.mrb[17].mxu0 }
 0x118   :  { %v852_v18 = vpack.c.bf16 %v670_v13, %v670_v13  ;;  %v671_v19 = vmax.f32 %v629_v14, 0.0  ;;  %v904_v20 = vadd.f32 %v903_v17, %v902_v15  ;;  %v967_v21 = vpop.f32.mrb[17].mxu1  ;;  %v905_v22 = vpop.f32.mrb[18].mxu0 }
 0x119   :  { %v968_v23 = vadd.f32 %v967_v21, %v966_v16  ;;  %v969_v24 = vpop.f32.mrb[18].mxu1  ;;  %v906_v25 = vpop.f32.mrb[19].mxu0 }
 0x11a   :  { %751 = vst.msk [vmem:[%s1370_s3 + $0x18] sm:$0xf] %vm744_vm0, %v852_v18  ;;  %v853_v26 = vpack.c.bf16 %v671_v19, %v671_v19  ;;  %v537_v27 = vadd.f32 %v904_v20, %v1285_v2  ;;  %v907_v28 = vadd.f32 %v906_v25, %v905_v22  ;;  %v970_v29 = vpop.f32.mrb[19].mxu1 }
 0x11b   :  { %v971_v30 = vadd.f32 %v970_v29, %v969_v24 }
 0x11c   :  { %752 = vst.msk [vmem:[%s1370_s3 + $0x1c] sm:$0xf] %vm744_vm0, %v853_v26  ;;  %v634_v31 = vadd.f32 %v968_v23, %v537_v27  ;;  %v540_v32 = vadd.f32 %v907_v28, %v1285_v2 }
 0x11e   :  { %v672_v33 = vmax.f32 %v634_v31, 0.0  ;;  %v637_v34 = vadd.f32 %v971_v30, %v540_v32  ;;  %v908_v35 = vpop.f32.mrb[20].mxu0 }
 0x11f   :  { %v972_v36 = vpop.f32.mrb[20].mxu1  ;;  %v909_v37 = vpop.f32.mrb[21].mxu0 }
 0x120   :  { %v854_v38 = vpack.c.bf16 %v672_v33, %v672_v33  ;;  %v673_v39 = vmax.f32 %v637_v34, 0.0  ;;  %v910_v40 = vadd.f32 %v909_v37, %v908_v35  ;;  %v973_v41 = vpop.f32.mrb[21].mxu1  ;;  %v911_v42 = vpop.f32.mrb[22].mxu0 }
 0x121   :  { %v974_v43 = vadd.f32 %v973_v41, %v972_v36  ;;  %v975_v44 = vpop.f32.mrb[22].mxu1  ;;  %v912_v45 = vpop.f32.mrb[23].mxu0 }
 0x122   :  { %753 = vst.msk [vmem:[%s1370_s3 + $0x20] sm:$0xf] %vm744_vm0, %v854_v38  ;;  %v855_v46 = vpack.c.bf16 %v673_v39, %v673_v39  ;;  %v545_v47 = vadd.f32 %v910_v40, %v1285_v2  ;;  %v913_v48 = vadd.f32 %v912_v45, %v911_v42  ;;  %v976_v49 = vpop.f32.mrb[23].mxu1 }
 0x123   :  { %v977_v50 = vadd.f32 %v976_v49, %v975_v44 }
 0x124   :  { %754 = vst.msk [vmem:[%s1370_s3 + $0x24] sm:$0xf] %vm744_vm0, %v855_v46  ;;  %v642_v51 = vadd.f32 %v974_v43, %v545_v47  ;;  %v548_v52 = vadd.f32 %v913_v48, %v1285_v2 }
 0x126   :  { %v674_v53 = vmax.f32 %v642_v51, 0.0  ;;  %v645_v54 = vadd.f32 %v977_v50, %v548_v52  ;;  %v914_v55 = vpop.f32.mrb[24].mxu0 }
 0x127   :  { %v978_v56 = vpop.f32.mrb[24].mxu1  ;;  %v915_v57 = vpop.f32.mrb[25].mxu0 }
 0x128   :  { %v856_v58 = vpack.c.bf16 %v674_v53, %v674_v53  ;;  %v675_v59 = vmax.f32 %v645_v54, 0.0  ;;  %v916_v60 = vadd.f32 %v915_v57, %v914_v55  ;;  %v979_v61 = vpop.f32.mrb[25].mxu1  ;;  %v917_v62 = vpop.f32.mrb[26].mxu0 }
 0x129   :  { %v980_v63 = vadd.f32 %v979_v61, %v978_v56  ;;  %v981_v0 = vpop.f32.mrb[26].mxu1  ;;  %v918_v1 = vpop.f32.mrb[27].mxu0 }
 0x12a   :  { %755 = vst.msk [vmem:[%s1370_s3 + $0x28] sm:$0xf] %vm744_vm0, %v856_v58  ;;  %v857_v3 = vpack.c.bf16 %v675_v59, %v675_v59  ;;  %v553_v4 = vadd.f32 %v916_v60, %v1285_v2  ;;  %v919_v5 = vadd.f32 %v918_v1, %v917_v62  ;;  %v982_v6 = vpop.f32.mrb[27].mxu1 }
 0x12b   :  { %v983_v7 = vadd.f32 %v982_v6, %v981_v0 }
 0x12c   :  { %756 = vst.msk [vmem:[%s1370_s3 + $0x2c] sm:$0xf] %vm744_vm0, %v857_v3  ;;  %v650_v8 = vadd.f32 %v980_v63, %v553_v4  ;;  %v556_v9 = vadd.f32 %v919_v5, %v1285_v2 }
 0x12e   :  { %v676_v10 = vmax.f32 %v650_v8, 0.0  ;;  %v653_v11 = vadd.f32 %v983_v7, %v556_v9  ;;  %v920_v12 = vpop.f32.mrb[28].mxu0 }
 0x12f   :  { %v984_v13 = vpop.f32.mrb[28].mxu1  ;;  %v921_v14 = vpop.f32.mrb[29].mxu0 }
 0x130   :  { %v858_v15 = vpack.c.bf16 %v676_v10, %v676_v10  ;;  %v677_v16 = vmax.f32 %v653_v11, 0.0  ;;  %v922_v17 = vadd.f32 %v921_v14, %v920_v12  ;;  %v985_v18 = vpop.f32.mrb[29].mxu1  ;;  %v923_v19 = vpop.f32.mrb[30].mxu0 }
 0x131   :  { %v986_v20 = vadd.f32 %v985_v18, %v984_v13  ;;  %v987_v21 = vpop.f32.mrb[30].mxu1  ;;  %v924_v22 = vpop.f32.mrb[31].mxu0 }
 0x132   :  { %757 = vst.msk [vmem:[%s1370_s3 + $0x30] sm:$0xf] %vm744_vm0, %v858_v15  ;;  %v859_v23 = vpack.c.bf16 %v677_v16, %v677_v16  ;;  %v561_v24 = vadd.f32 %v922_v17, %v1285_v2  ;;  %v925_v25 = vadd.f32 %v924_v22, %v923_v19  ;;  %v988_v26 = vpop.f32.mrb[31].mxu1 }
 0x133   :  { %v989_v27 = vadd.f32 %v988_v26, %v987_v21 }
 0x134   :  { %758 = vst.msk [vmem:[%s1370_s3 + $0x34] sm:$0xf] %vm744_vm0, %v859_v23  ;;  %v658_v28 = vadd.f32 %v986_v20, %v561_v24  ;;  %v564_v29 = vadd.f32 %v925_v25, %v1285_v2 }
 0x136   :  { %v678_v30 = vmax.f32 %v658_v28, 0.0  ;;  %v661_v31 = vadd.f32 %v989_v27, %v564_v29 }
 0x138   :  { %v860_v32 = vpack.c.bf16 %v678_v30, %v678_v30  ;;  %v679_v33 = vmax.f32 %v661_v31, 0.0 }
 0x13a   :  { %759 = vst.msk [vmem:[%s1370_s3 + $0x38] sm:$0xf] %vm744_vm0, %v860_v32  ;;  %v861_v34 = vpack.c.bf16 %v679_v33, %v679_v33 }
 0x13c   :  { %760 = vst.msk [vmem:[%s1370_s3 + $0x3c] sm:$0xf] %vm744_vm0, %v861_v34 }

// kernel: vae_forward.12
= control target key start
LH: loop header
LB: loop body
LE: loop exit
PB: predicated region body
PF: predicated region fallthrough
CT: control target
= control target key end

     0   :  { %vm846_vm0 = vcmask 519168   ;;  %s1399_s1 = inlined_call_operand.vmem [shape: bf16[1024,64], index: 1, kind: input, shape index: {}]   ;;  %s1400_s0 = inlined_call_operand.vmem [shape: bf16[32,1024], index: 0, kind: input, shape index: {}]   ;;  %s1401_s2 = inlined_call_operand.vmem [shape: f32[1,64], index: 2, kind: input, shape index: {}]   ;;  %s1402_s3 = inlined_call_operand.vmem [shape: bf16[32,64], index: 3, kind: output, shape index: {}]  }
   0x1   :  { %v1056_v0 = vld [vmem:[%s1399_s1 + $0x40] sm:$0xff]   ;;  %v1060_v4 = vld [vmem:[%s1399_s1 + $0x48] sm:$0xff]   ;;  %v1064_v8 = vld [vmem:[%s1399_s1 + $0x50] sm:$0xff]  }
   0x2   :  { %v1057_v1 = vld [vmem:[%s1399_s1 + $0xc0] sm:$0xff]   ;;  %944 = vmatprep.subr.bf16.mxu0 %v1056_v0  ;;  %v1061_v5 = vld [vmem:[%s1399_s1 + $0xc8] sm:$0xff]   ;;  %v1065_v9 = vld [vmem:[%s1399_s1 + $0xd0] sm:$0xff]  }
   0x3   :  { %v1058_v2 = vld [vmem:[%s1399_s1] sm:$0xff]   ;;  %972 = vmatprep.subr.bf16.mxu1 %v1057_v1  ;;  %v1062_v6 = vld [vmem:[%s1399_s1 + $0x8] sm:$0xff]   ;;  %v1066_v10 = vld [vmem:[%s1399_s1 + $0x10] sm:$0xff]  }
   0x4   :  { %v1059_v3 = vld [vmem:[%s1399_s1 + $0x80] sm:$0xff]   ;;  %945 = vmatpush3.bf16.msra.mxu0 %v1058_v2  ;;  %v1063_v7 = vld [vmem:[%s1399_s1 + $0x88] sm:$0xff]   ;;  %v1067_v11 = vld [vmem:[%s1399_s1 + $0x90] sm:$0xff]  }
   0x5   :  { %973 = vmatpush3.bf16.msra.mxu1 %v1059_v3  ;;  %946 = vmatprep.subr.bf16.mxu0 %v1060_v4  ;;  %v1068_v12 = vld [vmem:[%s1399_s1 + $0x58] sm:$0xff]   ;;  %v1072_v16 = vld [vmem:[%s1399_s1 + $0x60] sm:$0xff]   ;;  %v1076_v20 = vld [vmem:[%s1399_s1 + $0x68] sm:$0xff]  }
   0x6   :  { %974 = vmatprep.subr.bf16.mxu1 %v1061_v5  ;;  %v1069_v13 = vld [vmem:[%s1399_s1 + $0xd8] sm:$0xff]   ;;  %v1073_v17 = vld [vmem:[%s1399_s1 + $0xe0] sm:$0xff]   ;;  %v1077_v21 = vld [vmem:[%s1399_s1 + $0xe8] sm:$0xff]  }
   0x7   :  { %v1070_v14 = vld [vmem:[%s1399_s1 + $0x18] sm:$0xff]   ;;  %v1074_v18 = vld [vmem:[%s1399_s1 + $0x20] sm:$0xff]   ;;  %v1078_v22 = vld [vmem:[%s1399_s1 + $0x28] sm:$0xff]  }
   0x8   :  { %947 = vmatpush3.bf16.msra.mxu0 %v1062_v6  ;;  %v1071_v15 = vld [vmem:[%s1399_s1 + $0x98] sm:$0xff]   ;;  %v1075_v19 = vld [vmem:[%s1399_s1 + $0xa0] sm:$0xff]   ;;  %v1079_v23 = vld [vmem:[%s1399_s1 + $0xa8] sm:$0xff]  }
   0x9   :  { %975 = vmatpush3.bf16.msra.mxu1 %v1063_v7  ;;  %948 = vmatprep.subr.bf16.mxu0 %v1064_v8  ;;  %v1080_v24 = vld [vmem:[%s1399_s1 + $0x70] sm:$0xff]   ;;  %v1084_v28 = vld [vmem:[%s1399_s1 + $0x78] sm:$0xff]   ;;  %v15_v32 = vld [vmem:[%s1400_s0] sm:$0xff] }
   0xa   :  { %976 = vmatprep.subr.bf16.mxu1 %v1065_v9  ;;  %v1081_v25 = vld [vmem:[%s1399_s1 + $0xf0] sm:$0xff]   ;;  %v1085_v29 = vld [vmem:[%s1399_s1 + $0xf8] sm:$0xff]   ;;  %v19_v33 = vld [vmem:[%s1400_s0 + $0x20] sm:$0xff] }
   0xb   :  { %v1082_v26 = vld [vmem:[%s1399_s1 + $0x30] sm:$0xff]   ;;  %v1086_v30 = vld [vmem:[%s1399_s1 + $0x38] sm:$0xff]   ;;  %v16_v34 = vld [vmem:[%s1400_s0 + $0x8] sm:$0xff]  ;;  %v856_v35 = vcombine.low %v15_v32, %v19_v33  ;;  %v857_v36 = vcombine.high %v15_v32, %v19_v33 }
   0xc   :  { %949 = vmatpush3.bf16.msra.mxu0 %v1066_v10  ;;  %v1083_v27 = vld [vmem:[%s1399_s1 + $0xb0] sm:$0xff]   ;;  %v1087_v31 = vld [vmem:[%s1399_s1 + $0xb8] sm:$0xff]   ;;  %v20_v37 = vld [vmem:[%s1400_s0 + $0x28] sm:$0xff] }
   0xd   :  { %977 = vmatpush3.bf16.msra.mxu1 %v1067_v11  ;;  %950 = vmatprep.subr.bf16.mxu0 %v1068_v12  ;;  %v858_v38 = vcombine.low %v16_v34, %v20_v37  ;;  %v859_v39 = vcombine.high %v16_v34, %v20_v37  ;;  %v1088_v40 = vld [vmem:[%s1399_s1 + $0x140] sm:$0xff]   ;;  %v1092_v44 = vld [vmem:[%s1399_s1 + $0x148] sm:$0xff]   ;;  %v1096_v48 = vld [vmem:[%s1399_s1 + $0x150] sm:$0xff]  }
   0xe   :  { %978 = vmatprep.subr.bf16.mxu1 %v1069_v13  ;;  %662 = vmatprep.mubr.bf16.mxu0 %v857_v36  ;;  %v1089_v41 = vld [vmem:[%s1399_s1 + $0x1c0] sm:$0xff]   ;;  %v1093_v45 = vld [vmem:[%s1399_s1 + $0x1c8] sm:$0xff]   ;;  %v1097_v49 = vld [vmem:[%s1399_s1 + $0x1d0] sm:$0xff]  }
   0xf   :  { %711 = vmatprep.mubr.bf16.mxu1 %v859_v39  ;;  %v1090_v42 = vld [vmem:[%s1399_s1 + $0x100] sm:$0xff]   ;;  %v1094_v46 = vld [vmem:[%s1399_s1 + $0x108] sm:$0xff]   ;;  %v1098_v50 = vld [vmem:[%s1399_s1 + $0x110] sm:$0xff]  }
  0x10   :  { %951 = vmatpush3.bf16.msra.mxu0 %v1070_v14  ;;  %v1091_v43 = vld [vmem:[%s1399_s1 + $0x180] sm:$0xff]   ;;  %v1095_v47 = vld [vmem:[%s1399_s1 + $0x188] sm:$0xff]   ;;  %v1099_v51 = vld [vmem:[%s1399_s1 + $0x190] sm:$0xff]  }
  0x11   :  { %979 = vmatpush3.bf16.msra.mxu1 %v1071_v15  ;;  %952 = vmatprep.subr.bf16.mxu0 %v1072_v16  ;;  %v1100_v52 = vld [vmem:[%s1399_s1 + $0x158] sm:$0xff]   ;;  %v1104_v56 = vld [vmem:[%s1399_s1 + $0x160] sm:$0xff]   ;;  %v1108_v63 = vld [vmem:[%s1399_s1 + $0x168] sm:$0xff]  }
  0x12   :  { %980 = vmatprep.subr.bf16.mxu1 %v1073_v17  ;;  %v1101_v53 = vld [vmem:[%s1399_s1 + $0x1d8] sm:$0xff]   ;;  %v1105_v57 = vld [vmem:[%s1399_s1 + $0x1e0] sm:$0xff]   ;;  %v1109_v1 = vld [vmem:[%s1399_s1 + $0x1e8] sm:$0xff]  }
  0x13   :  { %v1102_v54 = vld [vmem:[%s1399_s1 + $0x118] sm:$0xff]   ;;  %v1106_v58 = vld [vmem:[%s1399_s1 + $0x120] sm:$0xff]   ;;  %v1110_v2 = vld [vmem:[%s1399_s1 + $0x128] sm:$0xff]  }
  0x14   :  { %953 = vmatpush3.bf16.msra.mxu0 %v1074_v18  ;;  %v1103_v55 = vld [vmem:[%s1399_s1 + $0x198] sm:$0xff]   ;;  %v1107_v59 = vld [vmem:[%s1399_s1 + $0x1a0] sm:$0xff]   ;;  %v1111_v3 = vld [vmem:[%s1399_s1 + $0x1a8] sm:$0xff]  }
  0x15   :  { %981 = vmatpush3.bf16.msra.mxu1 %v1075_v19  ;;  %954 = vmatprep.subr.bf16.mxu0 %v1076_v20  ;;  %v23_v60 = vld [vmem:[%s1400_s0 + $0x40] sm:$0xff]  ;;  %v24_v4 = vld [vmem:[%s1400_s0 + $0x48] sm:$0xff]  ;;  %v1112_v8 = vld [vmem:[%s1399_s1 + $0x170] sm:$0xff]  }
  0x16   :  { %982 = vmatprep.subr.bf16.mxu1 %v1077_v21  ;;  %v27_v61 = vld [vmem:[%s1400_s0 + $0x60] sm:$0xff]  ;;  %v28_v5 = vld [vmem:[%s1400_s0 + $0x68] sm:$0xff]  ;;  %v1113_v9 = vld [vmem:[%s1399_s1 + $0x1f0] sm:$0xff]  }
  0x17   :  { %v865_v62 = vcombine.high %v23_v60, %v27_v61  ;;  %v864_v0 = vcombine.low %v23_v60, %v27_v61  ;;  %v867_v6 = vcombine.high %v24_v4, %v28_v5  ;;  %v866_v7 = vcombine.low %v24_v4, %v28_v5  ;;  %v1114_v10 = vld [vmem:[%s1399_s1 + $0x130] sm:$0xff]   ;;  %v1116_v12 = vld [vmem:[%s1399_s1 + $0x178] sm:$0xff]   ;;  %v855_v34 = vld [vmem:[%s1401_s2] ss:$0 sm:$0xff] }
  0x18   :  { %955 = vmatpush3.bf16.msra.mxu0 %v1078_v22  ;;  %v1115_v11 = vld [vmem:[%s1399_s1 + $0x1b0] sm:$0xff]   ;;  %v1117_v13 = vld [vmem:[%s1399_s1 + $0x1f8] sm:$0xff]  }
  0x19   :  { %983 = vmatpush3.bf16.msra.mxu1 %v1079_v23  ;;  %956 = vmatprep.subr.bf16.mxu0 %v1080_v24  ;;  %v1118_v14 = vld [vmem:[%s1399_s1 + $0x138] sm:$0xff]   ;;  %v17_v16 = vld [vmem:[%s1400_s0 + $0x10] sm:$0xff] }
  0x1a   :  { %984 = vmatprep.subr.bf16.mxu1 %v1081_v25  ;;  %v1119_v15 = vld [vmem:[%s1399_s1 + $0x1b8] sm:$0xff]   ;;  %v21_v17 = vld [vmem:[%s1400_s0 + $0x30] sm:$0xff] }
  0x1b   :  { %v18_v18 = vld [vmem:[%s1400_s0 + $0x18] sm:$0xff]  ;;  %v860_v20 = vcombine.low %v17_v16, %v21_v17  ;;  %v861_v21 = vcombine.high %v17_v16, %v21_v17  ;;  %v25_v24 = vld [vmem:[%s1400_s0 + $0x50] sm:$0xff] }
  0x1c   :  { %957 = vmatpush3.bf16.msra.mxu0 %v1082_v26  ;;  %v22_v19 = vld [vmem:[%s1400_s0 + $0x38] sm:$0xff]  ;;  %v29_v25 = vld [vmem:[%s1400_s0 + $0x70] sm:$0xff] }
  0x1d   :  { %985 = vmatpush3.bf16.msra.mxu1 %v1083_v27  ;;  %958 = vmatprep.subr.bf16.mxu0 %v1084_v28  ;;  %v862_v22 = vcombine.low %v18_v18, %v22_v19  ;;  %v863_v23 = vcombine.high %v18_v18, %v22_v19  ;;  %v26_v26 = vld [vmem:[%s1400_s0 + $0x58] sm:$0xff]  ;;  %v869_v27 = vcombine.high %v25_v24, %v29_v25 }
  0x1e   :  { %986 = vmatprep.subr.bf16.mxu1 %v1085_v29  ;;  %v30_v28 = vld [vmem:[%s1400_s0 + $0x78] sm:$0xff] }
  0x1f   :  { %v871_v29 = vcombine.high %v26_v26, %v30_v28 }
  0x20   :  { %959 = vmatpush3.bf16.msra.mxu0 %v1086_v30  ;;  %v868_v30 = vcombine.low %v25_v24, %v29_v25 }
  0x21   :  { %987 = vmatpush3.bf16.msra.mxu1 %v1087_v31  ;;  %1000 = vmatprep.subr.bf16.mxu0 %v1088_v40  ;;  %v870_v31 = vcombine.low %v26_v26, %v30_v28 }
  0x22   :  { %1028 = vmatprep.subr.bf16.mxu1 %v1089_v41 }
  0x23   :  { %663 = vmatmul.mubr.bf16.vlgmr.msra.gmra.mrb[0].mxu0 %v856_v35 }
  0x24   :  { %712 = vmatmul.mubr.bf16.vlgmr.msra.gmra.mrb[0].mxu1 %v858_v38  ;;  %1001 = vmatpush3.bf16.msra.mxu0 %v1090_v42 }
  0x25   :  { %1029 = vmatpush3.bf16.msra.mxu1 %v1091_v43  ;;  %1002 = vmatprep.subr.bf16.mxu0 %v1092_v44 }
  0x26   :  { %1030 = vmatprep.subr.bf16.mxu1 %v1093_v45  ;;  %670 = vmatprep.mubr.bf16.mxu0 %v865_v62 }
  0x27   :  { %719 = vmatprep.mubr.bf16.mxu1 %v867_v6 }
  0x28   :  { %1003 = vmatpush3.bf16.msra.mxu0 %v1094_v46 }
  0x29   :  { %1031 = vmatpush3.bf16.msra.mxu1 %v1095_v47  ;;  %1004 = vmatprep.subr.bf16.mxu0 %v1096_v48 }
  0x2a   :  { %1032 = vmatprep.subr.bf16.mxu1 %v1097_v49 }
  0x2b   :  { %671 = vmatmul.mubr.bf16.gmra.mrb[4].mxu0 %v864_v0 }
  0x2c   :  { %1005 = vmatpush3.bf16.msra.mxu0 %v1098_v50  ;;  %720 = vmatmul.mubr.bf16.gmra.mrb[4].mxu1 %v866_v7 }
  0x2d   :  { %1033 = vmatpush3.bf16.msra.mxu1 %v1099_v51  ;;  %1006 = vmatprep.subr.bf16.mxu0 %v1100_v52 }
  0x2e   :  { %1034 = vmatprep.subr.bf16.mxu1 %v1101_v53  ;;  %760 = vmatprep.mubr.bf16.mxu0 %v861_v21 }
  0x2f   :  { %809 = vmatprep.mubr.bf16.mxu1 %v863_v23 }
  0x30   :  { %1007 = vmatpush3.bf16.msra.mxu0 %v1102_v54 }
  0x31   :  { %1035 = vmatpush3.bf16.msra.mxu1 %v1103_v55  ;;  %1008 = vmatprep.subr.bf16.mxu0 %v1104_v56 }
  0x32   :  { %1036 = vmatprep.subr.bf16.mxu1 %v1105_v57 }
  0x34   :  { %1009 = vmatpush3.bf16.msra.mxu0 %v1106_v58 }
  0x35   :  { %1037 = vmatpush3.bf16.msra.mxu1 %v1107_v59  ;;  %1010 = vmatprep.subr.bf16.mxu0 %v1108_v63 }
  0x36   :  { %1038 = vmatprep.subr.bf16.mxu1 %v1109_v1 }
  0x38   :  { %1011 = vmatpush3.bf16.msra.mxu0 %v1110_v2 }
  0x39   :  { %1039 = vmatpush3.bf16.msra.mxu1 %v1111_v3  ;;  %1012 = vmatprep.subr.bf16.mxu0 %v1112_v8 }
  0x3a   :  { %1040 = vmatprep.subr.bf16.mxu1 %v1113_v9 }
  0x3c   :  { %1013 = vmatpush3.bf16.msra.mxu0 %v1114_v10 }
  0x3d   :  { %1041 = vmatpush3.bf16.msra.mxu1 %v1115_v11  ;;  %1014 = vmatprep.subr.bf16.mxu0 %v1116_v12 }
  0x3e   :  { %1042 = vmatprep.subr.bf16.mxu1 %v1117_v13 }
  0x40   :  { %1015 = vmatpush3.bf16.msra.mxu0 %v1118_v14 }
  0x41   :  { %1043 = vmatpush3.bf16.msra.mxu1 %v1119_v15 }
  0x43   :  { %761 = vmatmul.mubr.bf16.vlgmr.msra.gmra.mrb[8].mxu0 %v860_v20 }
  0x44   :  { %810 = vmatmul.mubr.bf16.vlgmr.msra.gmra.mrb[8].mxu1 %v862_v22  ;;  %768 = vmatprep.mubr.bf16.mxu0 %v869_v27 }
  0x45   :  { %817 = vmatprep.mubr.bf16.mxu1 %v871_v29 }
  0x4b   :  { %769 = vmatmul.mubr.bf16.gmra.mrb[12].mxu0 %v868_v30 }
  0x4c   :  { %818 = vmatmul.mubr.bf16.gmra.mrb[12].mxu1 %v870_v31 }
  0xf6   :  { %v960_v32 = vpop.f32.mrb[0].mxu0 }
  0xf7   :  { %v988_v33 = vpop.f32.mrb[0].mxu1  ;;  %v961_v35 = vpop.f32.mrb[1].mxu0 }
  0xf8   :  { %v962_v36 = vadd.f32 %v961_v35, %v960_v32  ;;  %v989_v37 = vpop.f32.mrb[1].mxu1  ;;  %v963_v38 = vpop.f32.mrb[2].mxu0 }
  0xf9   :  { %v990_v39 = vadd.f32 %v989_v37, %v988_v33  ;;  %v991_v40 = vpop.f32.mrb[2].mxu1  ;;  %v964_v41 = vpop.f32.mrb[3].mxu0 }
  0xfa   :  { %v665_v42 = vadd.f32 %v962_v36, %v855_v34  ;;  %v965_v43 = vadd.f32 %v964_v41, %v963_v38  ;;  %v992_v44 = vpop.f32.mrb[3].mxu1 }
  0xfb   :  { %v993_v45 = vadd.f32 %v992_v44, %v991_v40 }
  0xfc   :  { %v714_v46 = vadd.f32 %v990_v39, %v665_v42  ;;  %v668_v47 = vadd.f32 %v965_v43, %v855_v34 }
  0xfe   :  { %v717_v48 = vadd.f32 %v993_v45, %v668_v47  ;;  %v966_v49 = vpop.f32.mrb[4].mxu0 }
  0xff   :  { %v967_v50 = vpop.f32.mrb[5].mxu0  ;;  %v994_v56 = vpop.f32.mrb[4].mxu1 }
 0x100   :  { %v968_v51 = vadd.f32 %v967_v50, %v966_v49  ;;  %v969_v52 = vpop.f32.mrb[6].mxu0  ;;  %v995_v57 = vpop.f32.mrb[5].mxu1 }
 0x101   :  { %v970_v53 = vpop.f32.mrb[7].mxu0  ;;  %v996_v59 = vadd.f32 %v995_v57, %v994_v56  ;;  %v997_v60 = vpop.f32.mrb[6].mxu1 }
 0x102   :  { %v971_v54 = vadd.f32 %v970_v53, %v969_v52  ;;  %v673_v55 = vadd.f32 %v968_v51, %v855_v34  ;;  %v998_v61 = vpop.f32.mrb[7].mxu1 }
 0x103   :  { %v999_v63 = vadd.f32 %v998_v61, %v997_v60 }
 0x104   :  { %v676_v58 = vadd.f32 %v971_v54, %v855_v34  ;;  %v722_v62 = vadd.f32 %v996_v59, %v673_v55 }
 0x106   :  { %v725_v0 = vadd.f32 %v999_v63, %v676_v58 }
 0x116   :  { %v1016_v1 = vpop.f32.mrb[8].mxu0 }
 0x117   :  { %v1044_v2 = vpop.f32.mrb[8].mxu1  ;;  %v1017_v3 = vpop.f32.mrb[9].mxu0 }
 0x118   :  { %v1045_v4 = vpop.f32.mrb[9].mxu1  ;;  %v1018_v5 = vadd.f32 %v1017_v3, %v1016_v1  ;;  %v1019_v7 = vpop.f32.mrb[10].mxu0 }
 0x119   :  { %v1046_v6 = vadd.f32 %v1045_v4, %v1044_v2  ;;  %v1047_v8 = vpop.f32.mrb[10].mxu1  ;;  %v1020_v9 = vpop.f32.mrb[11].mxu0 }
 0x11a   :  { %v1048_v10 = vpop.f32.mrb[11].mxu1  ;;  %v763_v11 = vadd.f32 %v1018_v5, %v714_v46  ;;  %v1021_v12 = vadd.f32 %v1020_v9, %v1019_v7 }
 0x11b   :  { %v1049_v13 = vadd.f32 %v1048_v10, %v1047_v8 }
 0x11c   :  { %v812_v14 = vadd.f32 %v1046_v6, %v763_v11  ;;  %v766_v15 = vadd.f32 %v1021_v12, %v717_v48 }
 0x11e   :  { %v826_v16 = vmax.f32 %v812_v14, 0.0  ;;  %v815_v17 = vadd.f32 %v1049_v13, %v766_v15  ;;  %v1022_v18 = vpop.f32.mrb[12].mxu0 }
 0x11f   :  { %v1050_v19 = vpop.f32.mrb[12].mxu1  ;;  %v1023_v20 = vpop.f32.mrb[13].mxu0 }
 0x120   :  { %v1051_v21 = vpop.f32.mrb[13].mxu1  ;;  %v940_v22 = vpack.c.bf16 %v826_v16, %v826_v16  ;;  %v827_v23 = vmax.f32 %v815_v17, 0.0  ;;  %v1024_v24 = vadd.f32 %v1023_v20, %v1022_v18  ;;  %v1025_v26 = vpop.f32.mrb[14].mxu0 }
 0x121   :  { %v1052_v25 = vadd.f32 %v1051_v21, %v1050_v19  ;;  %v1053_v27 = vpop.f32.mrb[14].mxu1  ;;  %v1026_v28 = vpop.f32.mrb[15].mxu0 }
 0x122   :  { %v1054_v29 = vpop.f32.mrb[15].mxu1  ;;  %847 = vst.msk [vmem:[%s1402_s3] sm:$0xf] %vm846_vm0, %v940_v22  ;;  %v941_v30 = vpack.c.bf16 %v827_v23, %v827_v23  ;;  %v771_v31 = vadd.f32 %v1024_v24, %v722_v62  ;;  %v1027_v32 = vadd.f32 %v1026_v28, %v1025_v26 }
 0x123   :  { %v1055_v33 = vadd.f32 %v1054_v29, %v1053_v27 }
 0x124   :  { %848 = vst.msk [vmem:[%s1402_s3 + $0x4] sm:$0xf] %vm846_vm0, %v941_v30  ;;  %v820_v34 = vadd.f32 %v1052_v25, %v771_v31  ;;  %v774_v35 = vadd.f32 %v1027_v32, %v725_v0 }
 0x126   :  { %v828_v36 = vmax.f32 %v820_v34, 0.0  ;;  %v823_v37 = vadd.f32 %v1055_v33, %v774_v35 }
 0x128   :  { %v942_v38 = vpack.c.bf16 %v828_v36, %v828_v36  ;;  %v829_v39 = vmax.f32 %v823_v37, 0.0 }
 0x12a   :  { %849 = vst.msk [vmem:[%s1402_s3 + $0x8] sm:$0xf] %vm846_vm0, %v942_v38  ;;  %v943_v40 = vpack.c.bf16 %v829_v39, %v829_v39 }
 0x12c   :  { %850 = vst.msk [vmem:[%s1402_s3 + $0xc] sm:$0xf] %vm846_vm0, %v943_v40 }

// kernel: vae_forward.13
= control target key start
LH: loop header
LB: loop body
LE: loop exit
PB: predicated region body
PF: predicated region fallthrough
CT: control target
= control target key end

     0   :  { %20 = vsyncpa [#allocation3], 0  ;;  %v178_v7 = vlaneseq  ;;  %v3222_v8 = vmov 1966171168   ;;  %s4321_s0 = inlined_call_operand.vmem [shape: bf16[2,1024], index: 0, kind: input, shape index: {}]   ;;  %s4322_s1 = inlined_call_operand.vmem [shape: f32[2,32], index: 1, kind: input, shape index: {}]   ;;  %s4323_s2 = inlined_call_operand.vmem [shape: bf16[1024,256], index: 2, kind: input, shape index: {}]   ;;  %s4324_s3 = inlined_call_operand.vmem [shape: f32[1,256], index: 3, kind: input, shape index: {}]   ;;  %s4325_s4 = inlined_call_operand.vmem [shape: bf16[256,32], index: 4, kind: input, shape index: {}]   ;;  %s4326_s5 = inlined_call_operand.vmem [shape: f32[1,32], index: 5, kind: input, shape index: {}]   ;;  %s4327_s6 = inlined_call_operand.vmem [shape: bf16[256,32], index: 6, kind: input, shape index: {}]   ;;  %s4328_s7 = inlined_call_operand.vmem [shape: f32[1,32], index: 7, kind: input, shape index: {}]   ;;  %s4329_s8 = inlined_call_operand.vmem [shape: bf16[32,256], index: 8, kind: input, shape index: {}]   ;;  %s4330_s9 = inlined_call_operand.vmem [shape: f32[1,256], index: 9, kind: input, shape index: {}]   ;;  %s4331_s10 = inlined_call_operand.vmem [shape: bf16[256,1024], index: 10, kind: input, shape index: {}]   ;;  %s4332_s11 = inlined_call_operand.vmem [shape: f32[1,1024], index: 11, kind: input, shape index: {}]   ;;  %s4333_s12 = inlined_call_operand.vmem [shape: bf16[2,1024], index: 12, kind: output, shape index: {0}]   ;;  %s4334_s13 = inlined_call_operand.hbm [shape: f32[2,32], index: 13, kind: output, shape index: {1}]   ;;  %s4335_s14 = inlined_call_operand.hbm [shape: f32[2,32], index: 14, kind: output, shape index: {2}]  }
   0x1   :  { %v2941_v0 = vld [vmem:[%s4323_s2 + $0x4] ss:$8 sps:$4 sm:$0xff]   ;;  %v2943_v1 = vld [vmem:[%s4323_s2] ss:$8 sps:$4 sm:$0xff]   ;;  %v2944_v2 = vld [vmem:[%s4323_s2 + $0x14] ss:$8 sps:$4 sm:$0xff]   ;;  %v191_v9 = vunpack.c.l.s4 %v3222_v8 }
   0x2   :  { %886 = vmatprep.subr.bf16.mxu0 %v2941_v0  ;;  %v2946_v3 = vld [vmem:[%s4323_s2 + $0x10] ss:$8 sps:$4 sm:$0xff]   ;;  %v2947_v4 = vld [vmem:[%s4323_s2 + $0x24] ss:$8 sps:$4 sm:$0xff]   ;;  %v2949_v5 = vld [vmem:[%s4323_s2 + $0x20] ss:$8 sps:$4 sm:$0xff]  }
   0x3   :  { %887 = vmatpush1.bf16.msra.mxu0 %v2943_v1  ;;  %v2950_v6 = vld [vmem:[%s4323_s2 + $0x34] ss:$8 sps:$4 sm:$0xff]   ;;  %v2952_v10 = vld [vmem:[%s4323_s2 + $0x30] ss:$8 sps:$4 sm:$0xff]   ;;  %v2953_v11 = vld [vmem:[%s4323_s2 + $0x44] ss:$8 sps:$4 sm:$0xff]   ;;  %v192_v13 = vunpack.c.0.s8 %v191_v9 }
   0x4   :  { %888 = vmatprep.subr.bf16.mxu0 %v2944_v2  ;;  %v3328_v12 = vshrl.u32 %v178_v7, 7  ;;  %v2955_v14 = vld [vmem:[%s4323_s2 + $0x40] ss:$8 sps:$4 sm:$0xff]   ;;  %v2956_v15 = vld [vmem:[%s4323_s2 + $0x54] ss:$8 sps:$4 sm:$0xff]  }
   0x5   :  { %v2958_v17 = vld [vmem:[%s4323_s2 + $0x50] ss:$8 sps:$4 sm:$0xff]   ;;  %v2959_v18 = vld [vmem:[%s4323_s2 + $0x64] ss:$8 sps:$4 sm:$0xff]   ;;  %v2961_v21 = vld [vmem:[%s4323_s2 + $0x60] ss:$8 sps:$4 sm:$0xff]  }
   0x6   :  { %v3337_v16 = vsub.s32 %v192_v13, %v3328_v12  ;;  %v3348_v19 = vld [vmem:[%s4321_s0] sm:$0xff]  ;;  %v2962_v22 = vld [vmem:[%s4323_s2 + $0x74] ss:$8 sps:$4 sm:$0xff]   ;;  %v2964_v25 = vld [vmem:[%s4323_s2 + $0x70] ss:$8 sps:$4 sm:$0xff]  }
   0x7   :  { %889 = vmatpush1.bf16.msra.mxu0 %v2946_v3  ;;  %v2965_v26 = vld [vmem:[%s4323_s2 + $0x84] ss:$8 sps:$4 sm:$0xff]   ;;  %v2967_v27 = vld [vmem:[%s4323_s2 + $0x80] ss:$8 sps:$4 sm:$0xff]   ;;  %v2968_v28 = vld [vmem:[%s4323_s2 + $0x94] ss:$8 sps:$4 sm:$0xff]  }
   0x8   :  { %890 = vmatprep.subr.bf16.mxu0 %v2947_v4  ;;  %v196_v20 = vrot.slane %v3348_v19, %v3337_v16  ;;  %v2970_v29 = vld [vmem:[%s4323_s2 + $0x90] ss:$8 sps:$4 sm:$0xff]   ;;  %v2971_v30 = vld [vmem:[%s4323_s2 + $0xa4] ss:$8 sps:$4 sm:$0xff]   ;;  %v2973_v31 = vld [vmem:[%s4323_s2 + $0xa0] ss:$8 sps:$4 sm:$0xff]  }
   0x9   :  { %v2974_v32 = vld [vmem:[%s4323_s2 + $0xb4] ss:$8 sps:$4 sm:$0xff]   ;;  %v2976_v33 = vld [vmem:[%s4323_s2 + $0xb0] ss:$8 sps:$4 sm:$0xff]   ;;  %v2977_v34 = vld [vmem:[%s4323_s2 + $0xc4] ss:$8 sps:$4 sm:$0xff]  }
   0xa   :  { %v204_v23 = vcombine.high %v196_v20, %v196_v20  ;;  %v2979_v35 = vld [vmem:[%s4323_s2 + $0xc0] ss:$8 sps:$4 sm:$0xff]   ;;  %v2980_v36 = vld [vmem:[%s4323_s2 + $0xd4] ss:$8 sps:$4 sm:$0xff]   ;;  %v2982_v37 = vld [vmem:[%s4323_s2 + $0xd0] ss:$8 sps:$4 sm:$0xff]   ;;  %v3414_v43 = vrot.slane %v196_v20, %v3337_v16 }
   0xb   :  { %891 = vmatpush1.bf16.msra.mxu0 %v2949_v5  ;;  %v2983_v38 = vld [vmem:[%s4323_s2 + $0xe4] ss:$8 sps:$4 sm:$0xff]   ;;  %v2985_v39 = vld [vmem:[%s4323_s2 + $0xe0] ss:$8 sps:$4 sm:$0xff]   ;;  %v2986_v40 = vld [vmem:[%s4323_s2 + $0xf4] ss:$8 sps:$4 sm:$0xff]  }
   0xc   :  { %892 = vmatprep.subr.bf16.mxu0 %v2950_v6  ;;  %v226_v24 = vrot.slane %v204_v23, %v3337_v16  ;;  %v2988_v41 = vld [vmem:[%s4323_s2 + $0xf0] ss:$8 sps:$4 sm:$0xff]   ;;  %v2992_v42 = vld [vmem:[%s4323_s2 + $0x104] ss:$8 sps:$4 sm:$0xff]   ;;  %v2990_v45 = vld [vmem:[%s4323_s2 + $0x100] ss:$8 sps:$4 sm:$0xff]  }
   0xd   :  { %v2995_v46 = vld [vmem:[%s4323_s2 + $0x114] ss:$8 sps:$4 sm:$0xff]   ;;  %v2993_v47 = vld [vmem:[%s4323_s2 + $0x110] ss:$8 sps:$4 sm:$0xff]   ;;  %v2998_v48 = vld [vmem:[%s4323_s2 + $0x124] ss:$8 sps:$4 sm:$0xff]  }
   0xe   :  { %918 = vmatprep.mubr.bf16.mxu0 %v226_v24  ;;  %v236_v44 = vcombine.high %v226_v24, %v226_v24  ;;  %v2996_v49 = vld [vmem:[%s4323_s2 + $0x120] ss:$8 sps:$4 sm:$0xff]   ;;  %v3001_v50 = vld [vmem:[%s4323_s2 + $0x134] ss:$8 sps:$4 sm:$0xff]   ;;  %v2999_v51 = vld [vmem:[%s4323_s2 + $0x130] ss:$8 sps:$4 sm:$0xff]  }
   0xf   :  { %893 = vmatpush1.bf16.msra.mxu0 %v2952_v10  ;;  %v3004_v52 = vld [vmem:[%s4323_s2 + $0x144] ss:$8 sps:$4 sm:$0xff]   ;;  %v3002_v53 = vld [vmem:[%s4323_s2 + $0x140] ss:$8 sps:$4 sm:$0xff]   ;;  %v3007_v54 = vld [vmem:[%s4323_s2 + $0x154] ss:$8 sps:$4 sm:$0xff]  }
  0x10   :  { %894 = vmatprep.subr.bf16.mxu0 %v2953_v11  ;;  %v3005_v55 = vld [vmem:[%s4323_s2 + $0x150] ss:$8 sps:$4 sm:$0xff]   ;;  %v3010_v56 = vld [vmem:[%s4323_s2 + $0x164] ss:$8 sps:$4 sm:$0xff]   ;;  %v3008_v57 = vld [vmem:[%s4323_s2 + $0x160] ss:$8 sps:$4 sm:$0xff]  }
  0x11   :  { %v3013_v58 = vld [vmem:[%s4323_s2 + $0x174] ss:$8 sps:$4 sm:$0xff]   ;;  %v3011_v59 = vld [vmem:[%s4323_s2 + $0x170] ss:$8 sps:$4 sm:$0xff]   ;;  %v3016_v60 = vld [vmem:[%s4323_s2 + $0x184] ss:$8 sps:$4 sm:$0xff]  }
  0x12   :  { %v3014_v61 = vld [vmem:[%s4323_s2 + $0x180] ss:$8 sps:$4 sm:$0xff]   ;;  %v3019_v62 = vld [vmem:[%s4323_s2 + $0x194] ss:$8 sps:$4 sm:$0xff]   ;;  %v3017_v63 = vld [vmem:[%s4323_s2 + $0x190] ss:$8 sps:$4 sm:$0xff]  }
  0x13   :  { %895 = vmatpush1.bf16.msra.mxu0 %v2955_v14  ;;  %v3022_v0 = vld [vmem:[%s4323_s2 + $0x1a4] ss:$8 sps:$4 sm:$0xff]   ;;  %v3020_v1 = vld [vmem:[%s4323_s2 + $0x1a0] ss:$8 sps:$4 sm:$0xff]   ;;  %v3025_v2 = vld [vmem:[%s4323_s2 + $0x1b4] ss:$8 sps:$4 sm:$0xff]  }
  0x14   :  { %896 = vmatprep.subr.bf16.mxu0 %v2956_v15 }
  0x17   :  { %897 = vmatpush1.bf16.msra.mxu0 %v2958_v17 }
  0x18   :  { %898 = vmatprep.subr.bf16.mxu0 %v2959_v18 }
  0x1b   :  { %899 = vmatpush1.bf16.msra.mxu0 %v2961_v21 }
  0x1c   :  { %900 = vmatprep.subr.bf16.mxu0 %v2962_v22 }
  0x1f   :  { %901 = vmatpush1.bf16.msra.mxu0 %v2964_v25 }
  0x20   :  { %902 = vmatprep.subr.bf16.mxu0 %v2965_v26 }
  0x23   :  { %903 = vmatpush1.bf16.msra.mxu0 %v2967_v27 }
  0x24   :  { %904 = vmatprep.subr.bf16.mxu0 %v2968_v28 }
  0x27   :  { %905 = vmatpush1.bf16.msra.mxu0 %v2970_v29 }
  0x28   :  { %906 = vmatprep.subr.bf16.mxu0 %v2971_v30 }
  0x2b   :  { %907 = vmatpush1.bf16.msra.mxu0 %v2973_v31 }
  0x2c   :  { %908 = vmatprep.subr.bf16.mxu0 %v2974_v32 }
  0x2f   :  { %909 = vmatpush1.bf16.msra.mxu0 %v2976_v33 }
  0x30   :  { %910 = vmatprep.subr.bf16.mxu0 %v2977_v34 }
  0x33   :  { %911 = vmatpush1.bf16.msra.mxu0 %v2979_v35 }
  0x34   :  { %912 = vmatprep.subr.bf16.mxu0 %v2980_v36 }
  0x37   :  { %913 = vmatpush1.bf16.msra.mxu0 %v2982_v37 }
  0x38   :  { %914 = vmatprep.subr.bf16.mxu0 %v2983_v38 }
  0x3b   :  { %915 = vmatpush1.bf16.msra.mxu0 %v2985_v39 }
  0x3c   :  { %916 = vmatprep.subr.bf16.mxu0 %v2986_v40 }
  0x3f   :  { %917 = vmatpush1.bf16.msra.mxu0 %v2988_v41 }
  0x40   :  { %927 = vmatprep.subr.bf16.mxu0 %v2992_v42 }
  0x42   :  { %919 = vmatmul.mubr.bf16.vlgmr.msra.gmra.mrb[0].mxu0 %v3414_v43 }
  0x43   :  { %928 = vmatpush1.bf16.msra.mxu0 %v2990_v45  ;;  %959 = vmatprep.mubr.bf16.mxu0 %v236_v44 }
  0x44   :  { %929 = vmatprep.subr.bf16.mxu0 %v2995_v46 }
  0x47   :  { %930 = vmatpush1.bf16.msra.mxu0 %v2993_v47 }
  0x48   :  { %931 = vmatprep.subr.bf16.mxu0 %v2998_v48 }
  0x4b   :  { %932 = vmatpush1.bf16.msra.mxu0 %v2996_v49 }
  0x4c   :  { %933 = vmatprep.subr.bf16.mxu0 %v3001_v50 }
  0x4f   :  { %934 = vmatpush1.bf16.msra.mxu0 %v2999_v51 }
  0x50   :  { %935 = vmatprep.subr.bf16.mxu0 %v3004_v52 }
  0x53   :  { %936 = vmatpush1.bf16.msra.mxu0 %v3002_v53 }
  0x54   :  { %937 = vmatprep.subr.bf16.mxu0 %v3007_v54 }
  0x57   :  { %938 = vmatpush1.bf16.msra.mxu0 %v3005_v55 }
  0x58   :  { %939 = vmatprep.subr.bf16.mxu0 %v3010_v56 }
  0x5b   :  { %940 = vmatpush1.bf16.msra.mxu0 %v3008_v57 }
  0x5c   :  { %941 = vmatprep.subr.bf16.mxu0 %v3013_v58 }
  0x5f   :  { %942 = vmatpush1.bf16.msra.mxu0 %v3011_v59 }
  0x60   :  { %943 = vmatprep.subr.bf16.mxu0 %v3016_v60 }
  0x63   :  { %944 = vmatpush1.bf16.msra.mxu0 %v3014_v61 }
  0x64   :  { %945 = vmatprep.subr.bf16.mxu0 %v3019_v62 }
  0x67   :  { %946 = vmatpush1.bf16.msra.mxu0 %v3017_v63 }
  0x68   :  { %947 = vmatprep.subr.bf16.mxu0 %v3022_v0 }
  0x69   :  { %21 = vsyncpa [#allocation5], 0  ;;  %v3023_v3 = vld [vmem:[%s4323_s2 + $0x1b0] ss:$8 sps:$4 sm:$0xff]   ;;  %v3028_v4 = vld [vmem:[%s4323_s2 + $0x1c4] ss:$8 sps:$4 sm:$0xff]   ;;  %v189_v7 = vcombine.high %v3348_v19, %v3348_v19  ;;  %v234_v18 = vcombine.high %v3414_v43, %v3414_v43 }
  0x6a   :  { %v3026_v5 = vld [vmem:[%s4323_s2 + $0x1c0] ss:$8 sps:$4 sm:$0xff]   ;;  %v3031_v6 = vld [vmem:[%s4323_s2 + $0x1d4] ss:$8 sps:$4 sm:$0xff]   ;;  %v3029_v8 = vld [vmem:[%s4323_s2 + $0x1d0] ss:$8 sps:$4 sm:$0xff]  }
  0x6b   :  { %948 = vmatpush1.bf16.msra.mxu0 %v3020_v1  ;;  %v3034_v9 = vld [vmem:[%s4323_s2 + $0x1e4] ss:$8 sps:$4 sm:$0xff]   ;;  %v3032_v10 = vld [vmem:[%s4323_s2 + $0x1e0] ss:$8 sps:$4 sm:$0xff]   ;;  %v3507_v11 = vrot.slane %v189_v7, %v3337_v16  ;;  %v3037_v13 = vld [vmem:[%s4323_s2 + $0x1f4] ss:$8 sps:$4 sm:$0xff]  }
  0x6c   :  { %949 = vmatprep.subr.bf16.mxu0 %v3025_v2  ;;  %v3035_v14 = vld [vmem:[%s4323_s2 + $0x1f0] ss:$8 sps:$4 sm:$0xff]   ;;  %v3040_v17 = vld [vmem:[%s4323_s2 + $0x204] ss:$8 sps:$4 sm:$0xff]   ;;  %v3038_v19 = vld [vmem:[%s4323_s2 + $0x200] ss:$8 sps:$4 sm:$0xff]  }
  0x6d   :  { %v205_v15 = vcombine.high %v3507_v11, %v3507_v11  ;;  %v3043_v21 = vld [vmem:[%s4323_s2 + $0x214] ss:$8 sps:$4 sm:$0xff]   ;;  %v3134_v22 = vld [vmem:[%s4325_s4 + $0x40] sm:$0xff]   ;;  %v3136_v24 = vld [vmem:[%s4325_s4 + $0x48] sm:$0xff]   ;;  %v3660_v0 = vrot.slane %v3507_v11, %v3337_v16  ;;  %vm2545_vm0 = vcmask 254976   ;;  %vm1447_vm1 = vcmask 261120  }
  0x6e   :  { %v3135_v23 = vld [vmem:[%s4325_s4] sm:$0xff]   ;;  %v3041_v25 = vld [vmem:[%s4323_s2 + $0x210] ss:$8 sps:$4 sm:$0xff]   ;;  %2879 = vmatprep.subr.bf16.mxu1 %v3134_v22  ;;  %v3137_v27 = vld [vmem:[%s4325_s4 + $0x8] sm:$0xff]   ;;  %s3225_s29 = smov [#allocation4]  }
  0x6f   :  { %950 = vmatpush1.bf16.msra.mxu0 %v3023_v3  ;;  %v3526_v20 = vrot.slane %v205_v15, %v3337_v16  ;;  %v3046_v26 = vld [vmem:[%s4323_s2 + $0x224] ss:$8 sps:$4 sm:$0xff]   ;;  %2880 = vmatpush3.bf16.msra.mxu1 %v3135_v23  ;;  %v3138_v28 = vld [vmem:[%s4325_s4 + $0x50] sm:$0xff]   ;;  %v3044_v29 = vld [vmem:[%s4323_s2 + $0x220] ss:$8 sps:$4 sm:$0xff]  }
  0x70   :  { %951 = vmatprep.subr.bf16.mxu0 %v3028_v4  ;;  %2881 = vmatprep.subr.bf16.mxu1 %v3136_v24  ;;  %v3049_v30 = vld [vmem:[%s4323_s2 + $0x234] ss:$8 sps:$4 sm:$0xff]   ;;  %v3047_v33 = vld [vmem:[%s4323_s2 + $0x230] ss:$8 sps:$4 sm:$0xff]   ;;  %v3052_v34 = vld [vmem:[%s4323_s2 + $0x244] ss:$8 sps:$4 sm:$0xff]  }
  0x71   :  { %v3139_v31 = vld [vmem:[%s4325_s4 + $0x10] sm:$0xff]   ;;  %v3140_v32 = vld [vmem:[%s4325_s4 + $0x58] sm:$0xff]   ;;  %v3142_v36 = vld [vmem:[%s4325_s4 + $0x60] sm:$0xff]   ;;  %v237_v2 = vcombine.high %v3526_v20, %v3526_v20 }
  0x72   :  { %v3141_v35 = vld [vmem:[%s4325_s4 + $0x18] sm:$0xff]   ;;  %v3050_v37 = vld [vmem:[%s4323_s2 + $0x240] ss:$8 sps:$4 sm:$0xff]   ;;  %v3058_v42 = vld [vmem:[%s4323_s2 + $0x264] ss:$8 sps:$4 sm:$0xff]  }
  0x73   :  { %952 = vmatpush1.bf16.msra.mxu0 %v3026_v5  ;;  %2882 = vmatpush3.bf16.msra.mxu1 %v3137_v27  ;;  %v3055_v38 = vld [vmem:[%s4323_s2 + $0x254] ss:$8 sps:$4 sm:$0xff]   ;;  %v3143_v39 = vld [vmem:[%s4325_s4 + $0x20] sm:$0xff]   ;;  %v3144_v40 = vld [vmem:[%s4325_s4 + $0x68] sm:$0xff]  }
  0x74   :  { %953 = vmatprep.subr.bf16.mxu0 %v3031_v6  ;;  %2883 = vmatprep.subr.bf16.mxu1 %v3138_v28  ;;  %v3053_v41 = vld [vmem:[%s4323_s2 + $0x250] ss:$8 sps:$4 sm:$0xff]   ;;  %v3145_v43 = vld [vmem:[%s4325_s4 + $0x28] sm:$0xff]   ;;  %v3061_v45 = vld [vmem:[%s4323_s2 + $0x274] ss:$8 sps:$4 sm:$0xff]  }
  0x75   :  { %v3056_v44 = vld [vmem:[%s4323_s2 + $0x260] ss:$8 sps:$4 sm:$0xff]   ;;  %v3059_v46 = vld [vmem:[%s4323_s2 + $0x270] ss:$8 sps:$4 sm:$0xff]   ;;  %v3064_v47 = vld [vmem:[%s4323_s2 + $0x284] ss:$8 sps:$4 sm:$0xff]  }
  0x76   :  { %v3062_v48 = vld [vmem:[%s4323_s2 + $0x280] ss:$8 sps:$4 sm:$0xff]   ;;  %v3067_v49 = vld [vmem:[%s4323_s2 + $0x294] ss:$8 sps:$4 sm:$0xff]   ;;  %v3065_v50 = vld [vmem:[%s4323_s2 + $0x290] ss:$8 sps:$4 sm:$0xff]  }
  0x77   :  { %954 = vmatpush1.bf16.msra.mxu0 %v3029_v8  ;;  %2884 = vmatpush3.bf16.msra.mxu1 %v3139_v31  ;;  %v3070_v51 = vld [vmem:[%s4323_s2 + $0x2a4] ss:$8 sps:$4 sm:$0xff]   ;;  %v3068_v52 = vld [vmem:[%s4323_s2 + $0x2a0] ss:$8 sps:$4 sm:$0xff]   ;;  %v3073_v53 = vld [vmem:[%s4323_s2 + $0x2b4] ss:$8 sps:$4 sm:$0xff]  }
  0x78   :  { %955 = vmatprep.subr.bf16.mxu0 %v3034_v9  ;;  %2885 = vmatprep.subr.bf16.mxu1 %v3140_v32  ;;  %v3071_v54 = vld [vmem:[%s4323_s2 + $0x2b0] ss:$8 sps:$4 sm:$0xff]   ;;  %v3076_v55 = vld [vmem:[%s4323_s2 + $0x2c4] ss:$8 sps:$4 sm:$0xff]   ;;  %v3074_v56 = vld [vmem:[%s4323_s2 + $0x2c0] ss:$8 sps:$4 sm:$0xff]  }
  0x79   :  { %v3079_v57 = vld [vmem:[%s4323_s2 + $0x2d4] ss:$8 sps:$4 sm:$0xff]   ;;  %v3077_v58 = vld [vmem:[%s4323_s2 + $0x2d0] ss:$8 sps:$4 sm:$0xff]   ;;  %v3082_v59 = vld [vmem:[%s4323_s2 + $0x2e4] ss:$8 sps:$4 sm:$0xff]  }
  0x7a   :  { %v3080_v60 = vld [vmem:[%s4323_s2 + $0x2e0] ss:$8 sps:$4 sm:$0xff]   ;;  %v3085_v61 = vld [vmem:[%s4323_s2 + $0x2f4] ss:$8 sps:$4 sm:$0xff]   ;;  %v3083_v62 = vld [vmem:[%s4323_s2 + $0x2f0] ss:$8 sps:$4 sm:$0xff]  }
  0x7b   :  { %956 = vmatpush1.bf16.msra.mxu0 %v3032_v10  ;;  %2886 = vmatpush3.bf16.msra.mxu1 %v3141_v35  ;;  %v3088_v63 = vld [vmem:[%s4323_s2 + $0x304] ss:$8 sps:$4 sm:$0xff]   ;;  %v3086_v1 = vld [vmem:[%s4323_s2 + $0x300] ss:$8 sps:$4 sm:$0xff]   ;;  %v3091_v3 = vld [vmem:[%s4323_s2 + $0x314] ss:$8 sps:$4 sm:$0xff]   ;;  %v235_v35 = vcombine.high %v3660_v0, %v3660_v0 }
  0x7c   :  { %957 = vmatprep.subr.bf16.mxu0 %v3037_v13  ;;  %2887 = vmatprep.subr.bf16.mxu1 %v3142_v36  ;;  %v3089_v4 = vld [vmem:[%s4323_s2 + $0x310] ss:$8 sps:$4 sm:$0xff]   ;;  %v3094_v5 = vld [vmem:[%s4323_s2 + $0x324] ss:$8 sps:$4 sm:$0xff]   ;;  %v3092_v6 = vld [vmem:[%s4323_s2 + $0x320] ss:$8 sps:$4 sm:$0xff]  }
  0x7d   :  { %v3097_v7 = vld [vmem:[%s4323_s2 + $0x334] ss:$8 sps:$4 sm:$0xff]   ;;  %v3095_v8 = vld [vmem:[%s4323_s2 + $0x330] ss:$8 sps:$4 sm:$0xff]   ;;  %v3100_v9 = vld [vmem:[%s4323_s2 + $0x344] ss:$8 sps:$4 sm:$0xff]  }
  0x7e   :  { %v3098_v10 = vld [vmem:[%s4323_s2 + $0x340] ss:$8 sps:$4 sm:$0xff]   ;;  %v3103_v11 = vld [vmem:[%s4323_s2 + $0x354] ss:$8 sps:$4 sm:$0xff]   ;;  %v3101_v13 = vld [vmem:[%s4323_s2 + $0x350] ss:$8 sps:$4 sm:$0xff]  }
  0x7f   :  { %958 = vmatpush1.bf16.msra.mxu0 %v3035_v14  ;;  %2888 = vmatpush3.bf16.msra.mxu1 %v3143_v39  ;;  %v3106_v14 = vld [vmem:[%s4323_s2 + $0x364] ss:$8 sps:$4 sm:$0xff]   ;;  %v3104_v15 = vld [vmem:[%s4323_s2 + $0x360] ss:$8 sps:$4 sm:$0xff]   ;;  %v3113_v22 = vld [vmem:[%s4323_s2 + $0x390] ss:$8 sps:$4 sm:$0xff]  }
  0x80   :  { %968 = vmatprep.subr.bf16.mxu0 %v3040_v17  ;;  %2889 = vmatprep.subr.bf16.mxu1 %v3144_v40  ;;  %v3109_v17 = vld [vmem:[%s4323_s2 + $0x374] ss:$8 sps:$4 sm:$0xff]   ;;  %v3118_v23 = vld [vmem:[%s4323_s2 + $0x3a4] ss:$8 sps:$4 sm:$0xff]   ;;  %v3116_v24 = vld [vmem:[%s4323_s2 + $0x3a0] ss:$8 sps:$4 sm:$0xff]  }
  0x81   :  { %v3124_v27 = vld [vmem:[%s4323_s2 + $0x3c4] ss:$8 sps:$4 sm:$0xff]   ;;  %v3122_v28 = vld [vmem:[%s4323_s2 + $0x3c0] ss:$8 sps:$4 sm:$0xff]   ;;  %v3146_v36 = vld [vmem:[%s4325_s4 + $0x70] sm:$0xff]  }
  0x82   :  { %960 = vmatmul.mubr.bf16.vlgmr.msra.gmra.mrb[0].mxu0 %v234_v18  ;;  %v3107_v18 = vld [vmem:[%s4323_s2 + $0x370] ss:$8 sps:$4 sm:$0xff]   ;;  %v3130_v31 = vld [vmem:[%s4323_s2 + $0x3e4] ss:$8 sps:$4 sm:$0xff]   ;;  %v3128_v32 = vld [vmem:[%s4323_s2 + $0x3e0] ss:$8 sps:$4 sm:$0xff]  }
  0x83   :  { %969 = vmatpush1.bf16.msra.mxu0 %v3038_v19  ;;  %1000 = vmatprep.mubr.bf16.mxu0 %v3526_v20  ;;  %v3112_v19 = vld [vmem:[%s4323_s2 + $0x384] ss:$8 sps:$4 sm:$0xff]   ;;  %v3110_v20 = vld [vmem:[%s4323_s2 + $0x380] ss:$8 sps:$4 sm:$0xff]   ;;  %v3149_v39 = vld [vmem:[%s4325_s4 + $0x38] sm:$0xff]  }
  0x84   :  { %970 = vmatprep.subr.bf16.mxu0 %v3043_v21  ;;  %2890 = vmatpush3.bf16.msra.mxu1 %v3145_v43  ;;  %v3115_v21 = vld [vmem:[%s4323_s2 + $0x394] ss:$8 sps:$4 sm:$0xff]   ;;  %v3150_v40 = vld [vmem:[%s4327_s6 + $0x40] sm:$0xff]   ;;  %v3782_v43 = vsub.s32 1, %v3328_v12 }
  0x85   :  { %2891 = vmatprep.subr.bf16.mxu1 %v3146_v36 }
  0x87   :  { %971 = vmatpush1.bf16.msra.mxu0 %v3041_v25  ;;  %v3121_v25 = vld [vmem:[%s4323_s2 + $0x3b4] ss:$8 sps:$4 sm:$0xff]  }
  0x88   :  { %972 = vmatprep.subr.bf16.mxu0 %v3046_v26  ;;  %v3119_v26 = vld [vmem:[%s4323_s2 + $0x3b0] ss:$8 sps:$4 sm:$0xff]  }
  0x8b   :  { %973 = vmatpush1.bf16.msra.mxu0 %v3044_v29  ;;  %v3127_v29 = vld [vmem:[%s4323_s2 + $0x3d4] ss:$8 sps:$4 sm:$0xff]  }
  0x8c   :  { %974 = vmatprep.subr.bf16.mxu0 %v3049_v30  ;;  %v3125_v30 = vld [vmem:[%s4323_s2 + $0x3d0] ss:$8 sps:$4 sm:$0xff]  }
  0x8f   :  { %975 = vmatpush1.bf16.msra.mxu0 %v3047_v33  ;;  %v3133_v33 = vld [vmem:[%s4323_s2 + $0x3f4] ss:$8 sps:$4 sm:$0xff]  }
  0x90   :  { %976 = vmatprep.subr.bf16.mxu0 %v3052_v34  ;;  %v3131_v34 = vld [vmem:[%s4323_s2 + $0x3f0] ss:$8 sps:$4 sm:$0xff]   ;;  %s2566_s2 = sshll.u32 %s3225_s29, 4  ;;  %s2567_s2 = int_to_ptr.vmem [resolvable:$true] %s2566_s2 }
  0x93   :  { %977 = vmatpush1.bf16.msra.mxu0 %v3050_v37  ;;  %v3147_v37 = vld [vmem:[%s4325_s4 + $0x30] sm:$0xff]  }
  0x94   :  { %978 = vmatprep.subr.bf16.mxu0 %v3055_v38  ;;  %2892 = vmatpush3.bf16.msra.mxu1 %v3147_v37  ;;  %v3148_v38 = vld [vmem:[%s4325_s4 + $0x78] sm:$0xff]  }
  0x95   :  { %2893 = vmatprep.subr.bf16.mxu1 %v3148_v38  ;;  %v1539_v38 = vld [vmem:[%s4331_s10 + $0x158] sm:$0xff] }
  0x97   :  { %979 = vmatpush1.bf16.msra.mxu0 %v3053_v41  ;;  %v3776_v41 = vsub.s32 0, %v3328_v12 }
  0x98   :  { %980 = vmatprep.subr.bf16.mxu0 %v3058_v42  ;;  %2894 = vmatpush3.bf16.msra.mxu1 %v3149_v39  ;;  %v176_v42 = vld [vmem:[%s4324_s3] sm:$0x3]  ;;  %v1543_v39 = vld [vmem:[%s4331_s10 + $0x178] sm:$0xff] }
  0x99   :  { %2901 = vmatprep.subr.bf16.mxu1 %v3150_v40  ;;  %v2793_v40 = vcombine.low %v1539_v38, %v1543_v39 }
  0x9b   :  { %981 = vmatpush1.bf16.msra.mxu0 %v3056_v44  ;;  %v181_v44 = vrot.slane %v176_v42, %v3776_v41 }
  0x9c   :  { %982 = vmatprep.subr.bf16.mxu0 %v3061_v45  ;;  %v185_v45 = vrot.slane %v176_v42, %v3782_v43  ;;  %v2794_v42 = vcombine.high %v1539_v38, %v1543_v39 }
  0x9f   :  { %983 = vmatpush1.bf16.msra.mxu0 %v3059_v46 }
  0xa0   :  { %984 = vmatprep.subr.bf16.mxu0 %v3064_v47 }
  0xa3   :  { %985 = vmatpush1.bf16.msra.mxu0 %v3062_v48 }
  0xa4   :  { %986 = vmatprep.subr.bf16.mxu0 %v3067_v49 }
  0xa7   :  { %987 = vmatpush1.bf16.msra.mxu0 %v3065_v50 }
  0xa8   :  { %988 = vmatprep.subr.bf16.mxu0 %v3070_v51 }
  0xab   :  { %989 = vmatpush1.bf16.msra.mxu0 %v3068_v52 }
  0xac   :  { %990 = vmatprep.subr.bf16.mxu0 %v3073_v53 }
  0xaf   :  { %991 = vmatpush1.bf16.msra.mxu0 %v3071_v54 }
  0xb0   :  { %992 = vmatprep.subr.bf16.mxu0 %v3076_v55  ;;  %v3151_v55 = vld [vmem:[%s4327_s6] sm:$0xff]  }
  0xb3   :  { %993 = vmatpush1.bf16.msra.mxu0 %v3074_v56 }
  0xb4   :  { %994 = vmatprep.subr.bf16.mxu0 %v3079_v57  ;;  %v3152_v57 = vld [vmem:[%s4327_s6 + $0x48] sm:$0xff]  }
  0xb7   :  { %995 = vmatpush1.bf16.msra.mxu0 %v3077_v58  ;;  %v3153_v58 = vld [vmem:[%s4327_s6 + $0x8] sm:$0xff]  }
  0xb8   :  { %996 = vmatprep.subr.bf16.mxu0 %v3082_v59  ;;  %v3154_v59 = vld [vmem:[%s4327_s6 + $0x50] sm:$0xff]  }
  0xbb   :  { %997 = vmatpush1.bf16.msra.mxu0 %v3080_v60  ;;  %v3155_v60 = vld [vmem:[%s4327_s6 + $0x10] sm:$0xff]  }
  0xbc   :  { %998 = vmatprep.subr.bf16.mxu0 %v3085_v61  ;;  %v3156_v61 = vld [vmem:[%s4327_s6 + $0x58] sm:$0xff]  }
  0xbf   :  { %999 = vmatpush1.bf16.msra.mxu0 %v3083_v62  ;;  %v3157_v62 = vld [vmem:[%s4327_s6 + $0x18] sm:$0xff]  }
  0xc0   :  { %1009 = vmatprep.subr.bf16.mxu0 %v3088_v63  ;;  %v3158_v63 = vld [vmem:[%s4327_s6 + $0x60] sm:$0xff]  }
  0xc2   :  { %1001 = vmatmul.mubr.bf16.vlgmr.msra.gmra.mrb[0].mxu0 %v3660_v0  ;;  %v3159_v0 = vld [vmem:[%s4327_s6 + $0x20] sm:$0xff]  }
  0xc3   :  { %1010 = vmatpush1.bf16.msra.mxu0 %v3086_v1  ;;  %1041 = vmatprep.mubr.bf16.mxu0 %v237_v2  ;;  %v3160_v1 = vld [vmem:[%s4327_s6 + $0x68] sm:$0xff]  }
  0xc4   :  { %1011 = vmatprep.subr.bf16.mxu0 %v3091_v3  ;;  %v3161_v2 = vld [vmem:[%s4327_s6 + $0x28] sm:$0xff]   ;;  %v3162_v3 = vld [vmem:[%s4327_s6 + $0x70] sm:$0xff]  }
  0xc7   :  { %1012 = vmatpush1.bf16.msra.mxu0 %v3089_v4  ;;  %v3163_v4 = vld [vmem:[%s4327_s6 + $0x30] sm:$0xff]  }
  0xc8   :  { %1013 = vmatprep.subr.bf16.mxu0 %v3094_v5  ;;  %v3164_v5 = vld [vmem:[%s4327_s6 + $0x78] sm:$0xff]  }
  0xcb   :  { %1014 = vmatpush1.bf16.msra.mxu0 %v3092_v6  ;;  %v3165_v6 = vld [vmem:[%s4327_s6 + $0x38] sm:$0xff]  }
  0xcc   :  { %1015 = vmatprep.subr.bf16.mxu0 %v3097_v7  ;;  %v3166_v7 = vld [vmem:[%s4329_s8] ss:$8 sps:$4 sm:$0xff]  }
  0xcf   :  { %1016 = vmatpush1.bf16.msra.mxu0 %v3095_v8  ;;  %v3168_v8 = vld [vmem:[%s4329_s8 + $0x4] ss:$8 sps:$4 sm:$0xff]  }
  0xd0   :  { %1017 = vmatprep.subr.bf16.mxu0 %v3100_v9  ;;  %v3171_v9 = vld [vmem:[%s4329_s8 + $0x14] ss:$8 sps:$4 sm:$0xff]  }
  0xd3   :  { %1018 = vmatpush1.bf16.msra.mxu0 %v3098_v10  ;;  %v3223_v10 = vmov 0  }
  0xd4   :  { %1019 = vmatprep.subr.bf16.mxu0 %v3103_v11  ;;  %v3169_v11 = vld [vmem:[%s4329_s8 + $0x10] ss:$8 sps:$4 sm:$0xff]  }
  0xd7   :  { %1020 = vmatpush1.bf16.msra.mxu0 %v3101_v13  ;;  %v3846_v13 = vld [vmem:[%s4331_s10] sm:$0xff] }
  0xd8   :  { %1021 = vmatprep.subr.bf16.mxu0 %v3106_v14  ;;  %v3851_v14 = vld [vmem:[%s4331_s10 + $0x20] sm:$0xff] }
  0xdb   :  { %1022 = vmatpush1.bf16.msra.mxu0 %v3104_v15  ;;  %v2747_v15 = vcombine.low %v3846_v13, %v3851_v14 }
  0xdc   :  { %1023 = vmatprep.subr.bf16.mxu0 %v3109_v17  ;;  %v2748_v17 = vcombine.high %v3846_v13, %v3851_v14  ;;  %v1528_v13 = vld [vmem:[%s4331_s10 + $0x100] sm:$0xff] }
  0xdd   :  { %v1532_v14 = vld [vmem:[%s4331_s10 + $0x120] sm:$0xff] }
  0xdf   :  { %1024 = vmatpush1.bf16.msra.mxu0 %v3107_v18  ;;  %v1499_v18 = vld [vmem:[%s4331_s10 + $0x18] sm:$0xff] }
  0xe0   :  { %1025 = vmatprep.subr.bf16.mxu0 %v3112_v19  ;;  %v1503_v19 = vld [vmem:[%s4331_s10 + $0x38] sm:$0xff] }
  0xe3   :  { %1026 = vmatpush1.bf16.msra.mxu0 %v3110_v20  ;;  %v2753_v20 = vcombine.low %v1499_v18, %v1503_v19 }
  0xe4   :  { %1027 = vmatprep.subr.bf16.mxu0 %v3115_v21  ;;  %v2754_v21 = vcombine.high %v1499_v18, %v1503_v19  ;;  %v2708_v18 = vld [vmem:[%s4326_s5] ss:$0 sm:$0xff] }
  0xe7   :  { %1028 = vmatpush1.bf16.msra.mxu0 %v3113_v22  ;;  %v1507_v22 = vld [vmem:[%s4331_s10 + $0x58] sm:$0xff] }
  0xe8   :  { %1029 = vmatprep.subr.bf16.mxu0 %v3118_v23  ;;  %v1511_v23 = vld [vmem:[%s4331_s10 + $0x78] sm:$0xff] }
  0xeb   :  { %1030 = vmatpush1.bf16.msra.mxu0 %v3116_v24  ;;  %v2761_v24 = vcombine.low %v1507_v22, %v1511_v23 }
  0xec   :  { %1031 = vmatprep.subr.bf16.mxu0 %v3121_v25  ;;  %v2762_v25 = vcombine.high %v1507_v22, %v1511_v23 }
  0xef   :  { %1032 = vmatpush1.bf16.msra.mxu0 %v3119_v26  ;;  %v1515_v26 = vld [vmem:[%s4331_s10 + $0x98] sm:$0xff] }
  0xf0   :  { %1033 = vmatprep.subr.bf16.mxu0 %v3124_v27  ;;  %v1519_v27 = vld [vmem:[%s4331_s10 + $0xb8] sm:$0xff] }
  0xf3   :  { %1034 = vmatpush1.bf16.msra.mxu0 %v3122_v28  ;;  %v2769_v28 = vcombine.low %v1515_v26, %v1519_v27 }
  0xf4   :  { %1035 = vmatprep.subr.bf16.mxu0 %v3127_v29  ;;  %v2770_v29 = vcombine.high %v1515_v26, %v1519_v27 }
  0xf7   :  { %1036 = vmatpush1.bf16.msra.mxu0 %v3125_v30  ;;  %v1523_v30 = vld [vmem:[%s4331_s10 + $0xd8] sm:$0xff] }
  0xf8   :  { %1037 = vmatprep.subr.bf16.mxu0 %v3130_v31  ;;  %v1527_v31 = vld [vmem:[%s4331_s10 + $0xf8] sm:$0xff] }
  0xfb   :  { %1038 = vmatpush1.bf16.msra.mxu0 %v3128_v32  ;;  %v2777_v32 = vcombine.low %v1523_v30, %v1527_v31 }
  0xfc   :  { %1039 = vmatprep.subr.bf16.mxu0 %v3133_v33  ;;  %v2778_v33 = vcombine.high %v1523_v30, %v1527_v31 }
  0xff   :  { %1040 = vmatpush1.bf16.msra.mxu0 %v3131_v34  ;;  %v1531_v34 = vld [vmem:[%s4331_s10 + $0x118] sm:$0xff] }
 0x100   :  { %2429 = vmatprep.subr.bf16.mxu0 %v2754_v21 }
 0x102   :  { %1042 = vmatmul.mubr.bf16.vlgmr.msra.gmra.mrb[0].mxu0 %v235_v35  ;;  %v1535_v35 = vld [vmem:[%s4331_s10 + $0x138] sm:$0xff] }
 0x103   :  { %2430 = vmatpush1.bf16.msra.mxu0 %v2753_v20  ;;  %v2785_v36 = vcombine.low %v1531_v34, %v1535_v35  ;;  %v2786_v37 = vcombine.high %v1531_v34, %v1535_v35 }
 0x104   :  { %2431 = vmatprep.subr.bf16.mxu0 %v2762_v25  ;;  %v2725_v25 = vld [vmem:[%s4328_s7] ss:$0 sm:$0xff] }
 0x107   :  { %2432 = vmatpush1.bf16.msra.mxu0 %v2761_v24 }
 0x108   :  { %2433 = vmatprep.subr.bf16.mxu0 %v2770_v29 }
 0x10b   :  { %2434 = vmatpush1.bf16.msra.mxu0 %v2769_v28 }
 0x10c   :  { %2435 = vmatprep.subr.bf16.mxu0 %v2778_v33  ;;  %v1404_v33 = vld [vmem:[%s4322_s1] sm:$0x3] }
 0x10f   :  { %2436 = vmatpush1.bf16.msra.mxu0 %v2777_v32 }
 0x110   :  { %2437 = vmatprep.subr.bf16.mxu0 %v2786_v37  ;;  %v1508_v37 = vld [vmem:[%s4331_s10 + $0x60] sm:$0xff] }
 0x113   :  { %2438 = vmatpush1.bf16.msra.mxu0 %v2785_v36  ;;  %v1504_v36 = vld [vmem:[%s4331_s10 + $0x40] sm:$0xff] }
 0x114   :  { %2439 = vmatprep.subr.bf16.mxu0 %v2794_v42  ;;  %v1512_v42 = vld [vmem:[%s4331_s10 + $0x80] sm:$0xff] }
 0x117   :  { %2440 = vmatpush1.bf16.msra.mxu0 %v2793_v40  ;;  %v2756_v40 = vcombine.high %v1504_v36, %v1508_v37 }
 0x1d5   :  { %v1043_v46 = vpop.f32.mrb[0].mxu0 }
 0x1d6   :  { %v2923_v47 = vadd.f32 %v1043_v46, %v181_v44  ;;  %v1045_v48 = vpop.f32.mrb[1].mxu0  ;;  %v1547_v44 = vld [vmem:[%s4331_s10 + $0x198] sm:$0xff] }
 0x1d7   :  { %v2924_v49 = vadd.f32 %v1045_v48, %v185_v45  ;;  %v1047_v50 = vpop.f32.mrb[2].mxu0  ;;  %v1551_v45 = vld [vmem:[%s4331_s10 + $0x1b8] sm:$0xff] }
 0x1d8   :  { %v1050_v51 = vmax.f32 %v2923_v47, 0.0  ;;  %v1048_v52 = vpop.f32.mrb[3].mxu0  ;;  %v2801_v46 = vcombine.low %v1547_v44, %v1551_v45  ;;  %v2802_v47 = vcombine.high %v1547_v44, %v1551_v45  ;;  %v1555_v48 = vld [vmem:[%s4331_s10 + $0x1d8] sm:$0xff]  ;;  %v1516_v44 = vld [vmem:[%s4331_s10 + $0xa0] sm:$0xff]  ;;  %v2755_v45 = vcombine.low %v1504_v36, %v1508_v37 }
 0x1d9   :  { %v1051_v53 = vmax.f32 %v2924_v49, 0.0  ;;  %v1559_v49 = vld [vmem:[%s4331_s10 + $0x1f8] sm:$0xff] }
 0x1da   :  { %v1052_v56 = vpack.c.bf16 %v1050_v51, %v1050_v51  ;;  %2441 = vmatprep.subr.bf16.mxu0 %v2802_v47  ;;  %v2809_v50 = vcombine.low %v1555_v48, %v1559_v49  ;;  %v2810_v51 = vcombine.high %v1555_v48, %v1559_v49  ;;  %v1563_v52 = vld [vmem:[%s4331_s10 + $0x218] sm:$0xff]  ;;  %v1520_v47 = vld [vmem:[%s4331_s10 + $0xc0] sm:$0xff]  ;;  %v2763_v49 = vcombine.low %v1512_v42, %v1516_v44 }
 0x1db   :  { %v1053_v54 = vpack.c.bf16 %v1051_v53, %v1051_v53  ;;  %2442 = vmatpush1.bf16.msra.mxu0 %v2801_v46  ;;  %v1567_v53 = vld [vmem:[%s4331_s10 + $0x238] sm:$0xff]  ;;  %v2764_v46 = vcombine.high %v1512_v42, %v1516_v44  ;;  %v1524_v48 = vld [vmem:[%s4331_s10 + $0xe0] sm:$0xff] }
 0x1dc   :  { %2443 = vmatprep.subr.bf16.mxu0 %v2810_v51  ;;  %v2780_v51 = vcombine.high %v1528_v13, %v1532_v14  ;;  %v1619_v42 = vld [vmem:[%s4331_s10 + $0x3d8] sm:$0xff] }
 0x1dd   :  { %1221 = vmatprep.mubr.bf16.mxu1 %v1053_v54  ;;  %v1623_v44 = vld [vmem:[%s4331_s10 + $0x3f8] sm:$0xff] }
 0x1de   :  { %1222 = vmatmul.mubr.bf16.vlgmr.msra.gmra.mrb[0].mxu1 %v1052_v56 }
 0x1df   :  { %2902 = vmatpush3.bf16.msra.mxu1 %v3151_v55  ;;  %1396 = vmatprep.mubr.bf16.mxu1 %v1053_v54  ;;  %v2817_v54 = vcombine.low %v1563_v52, %v1567_v53  ;;  %v2818_v55 = vcombine.high %v1563_v52, %v1567_v53  ;;  %v1536_v52 = vld [vmem:[%s4331_s10 + $0x140] sm:$0xff] }
 0x1e0   :  { %2903 = vmatprep.subr.bf16.mxu1 %v3152_v57  ;;  %2444 = vmatpush1.bf16.msra.mxu0 %v2809_v50  ;;  %v1575_v57 = vld [vmem:[%s4331_s10 + $0x278] sm:$0xff]  ;;  %v2772_v50 = vcombine.high %v1520_v47, %v1524_v48  ;;  %v1540_v53 = vld [vmem:[%s4331_s10 + $0x160] sm:$0xff] }
 0x1e1   :  { %2445 = vmatprep.subr.bf16.mxu0 %v2818_v55  ;;  %v2788_v55 = vcombine.high %v1536_v52, %v1540_v53 }
 0x1e3   :  { %2904 = vmatpush3.bf16.msra.mxu1 %v3153_v58 }
 0x1e4   :  { %2905 = vmatprep.subr.bf16.mxu1 %v3154_v59  ;;  %2446 = vmatpush1.bf16.msra.mxu0 %v2817_v54  ;;  %v2779_v54 = vcombine.low %v1528_v13, %v1532_v14  ;;  %v1415_v14 = vld [vmem:[%s4330_s9] sm:$0x3] }
 0x1e7   :  { %2906 = vmatpush3.bf16.msra.mxu1 %v3155_v60  ;;  %v1579_v60 = vld [vmem:[%s4331_s10 + $0x298] sm:$0xff] }
 0x1e8   :  { %2907 = vmatprep.subr.bf16.mxu1 %v3156_v61  ;;  %v1583_v61 = vld [vmem:[%s4331_s10 + $0x2b8] sm:$0xff] }
 0x1eb   :  { %2908 = vmatpush3.bf16.msra.mxu1 %v3157_v62  ;;  %v2833_v62 = vcombine.low %v1579_v60, %v1583_v61 }
 0x1ec   :  { %2909 = vmatprep.subr.bf16.mxu1 %v3158_v63  ;;  %v2834_v63 = vcombine.high %v1579_v60, %v1583_v61  ;;  %v1552_v60 = vld [vmem:[%s4331_s10 + $0x1c0] sm:$0xff] }
 0x1ed   :  { %v1556_v61 = vld [vmem:[%s4331_s10 + $0x1e0] sm:$0xff] }
 0x1ef   :  { %2910 = vmatpush3.bf16.msra.mxu1 %v3159_v0  ;;  %v1587_v0 = vld [vmem:[%s4331_s10 + $0x2d8] sm:$0xff] }
 0x1f0   :  { %2911 = vmatprep.subr.bf16.mxu1 %v3160_v1  ;;  %v1591_v1 = vld [vmem:[%s4331_s10 + $0x2f8] sm:$0xff] }
 0x1f3   :  { %2912 = vmatpush3.bf16.msra.mxu1 %v3161_v2  ;;  %v2841_v2 = vcombine.low %v1587_v0, %v1591_v1 }
 0x1f4   :  { %2913 = vmatprep.subr.bf16.mxu1 %v3162_v3  ;;  %v2842_v3 = vcombine.high %v1587_v0, %v1591_v1  ;;  %v1560_v0 = vld [vmem:[%s4331_s10 + $0x200] sm:$0xff] }
 0x1f5   :  { %v1564_v1 = vld [vmem:[%s4331_s10 + $0x220] sm:$0xff] }
 0x1f7   :  { %2914 = vmatpush3.bf16.msra.mxu1 %v3163_v4  ;;  %v1595_v4 = vld [vmem:[%s4331_s10 + $0x318] sm:$0xff] }
 0x1f8   :  { %2915 = vmatprep.subr.bf16.mxu1 %v3164_v5  ;;  %v1599_v5 = vld [vmem:[%s4331_s10 + $0x338] sm:$0xff] }
 0x1fb   :  { %2916 = vmatpush3.bf16.msra.mxu1 %v3165_v6  ;;  %v2849_v6 = vcombine.low %v1595_v4, %v1599_v5 }
 0x1fc   :  { %1451 = vmatprep.subr.bf16.mxu1 %v3168_v8  ;;  %v1603_v8 = vld [vmem:[%s4331_s10 + $0x358] sm:$0xff] }
 0x1fe   :  { %1397 = vmatmul.mubr.bf16.vlgmr.msra.gmra.mrb[4].mxu1 %v1052_v56  ;;  %v1571_v56 = vld [vmem:[%s4331_s10 + $0x258] sm:$0xff] }
 0x1ff   :  { %1483 = vmatprep.mubr.bf16.mxu1 %v3223_v10  ;;  %1452 = vmatpush1.bf16.msra.mxu1 %v3166_v7  ;;  %v2825_v58 = vcombine.low %v1571_v56, %v1575_v57  ;;  %v2826_v59 = vcombine.high %v1571_v56, %v1575_v57  ;;  %v2850_v7 = vcombine.high %v1595_v4, %v1599_v5  ;;  %v1544_v56 = vld [vmem:[%s4331_s10 + $0x180] sm:$0xff] }
 0x200   :  { %1453 = vmatprep.subr.bf16.mxu1 %v3171_v9  ;;  %v1607_v9 = vld [vmem:[%s4331_s10 + $0x378] sm:$0xff]  ;;  %v1548_v57 = vld [vmem:[%s4331_s10 + $0x1a0] sm:$0xff] }
 0x201   :  { %2447 = vmatprep.subr.bf16.mxu0 %v2826_v59  ;;  %v2857_v10 = vcombine.low %v1603_v8, %v1607_v9  ;;  %v2796_v59 = vcombine.high %v1544_v56, %v1548_v57  ;;  %v1568_v4 = vld [vmem:[%s4331_s10 + $0x240] sm:$0xff] }
 0x202   :  { %2448 = vmatpush1.bf16.msra.mxu0 %v2825_v58  ;;  %v2787_v58 = vcombine.low %v1536_v52, %v1540_v53  ;;  %v1572_v5 = vld [vmem:[%s4331_s10 + $0x260] sm:$0xff] }
 0x203   :  { %1454 = vmatpush1.bf16.msra.mxu1 %v3169_v11  ;;  %2449 = vmatprep.subr.bf16.mxu0 %v2834_v63  ;;  %v2858_v11 = vcombine.high %v1603_v8, %v1607_v9  ;;  %v2804_v63 = vcombine.high %v1552_v60, %v1556_v61  ;;  %v1576_v8 = vld [vmem:[%s4331_s10 + $0x280] sm:$0xff] }
 0x204   :  { %2306 = vmatprep.subr.bf16.mxu1 %v2748_v17  ;;  %v1580_v9 = vld [vmem:[%s4331_s10 + $0x2a0] sm:$0xff] }
 0x206   :  { %2450 = vmatpush1.bf16.msra.mxu0 %v2833_v62  ;;  %v2795_v62 = vcombine.low %v1544_v56, %v1548_v57 }
 0x207   :  { %2451 = vmatprep.subr.bf16.mxu0 %v2842_v3  ;;  %v2812_v3 = vcombine.high %v1560_v0, %v1564_v1 }
 0x20a   :  { %2452 = vmatpush1.bf16.msra.mxu0 %v2841_v2  ;;  %v2803_v2 = vcombine.low %v1552_v60, %v1556_v61  ;;  %v1505_v60 = vld [vmem:[%s4331_s10 + $0x48] sm:$0xff] }
 0x20b   :  { %2453 = vmatprep.subr.bf16.mxu0 %v2850_v7  ;;  %v2820_v7 = vcombine.high %v1568_v4, %v1572_v5  ;;  %v1509_v61 = vld [vmem:[%s4331_s10 + $0x68] sm:$0xff] }
 0x20e   :  { %2454 = vmatpush1.bf16.msra.mxu0 %v2849_v6  ;;  %v2811_v6 = vcombine.low %v1560_v0, %v1564_v1  ;;  %v2758_v0 = vcombine.high %v1505_v60, %v1509_v61  ;;  %v1513_v1 = vld [vmem:[%s4331_s10 + $0x88] sm:$0xff] }
 0x20f   :  { %2455 = vmatprep.subr.bf16.mxu0 %v2858_v11  ;;  %v2828_v11 = vcombine.high %v1576_v8, %v1580_v9 }
 0x212   :  { %2456 = vmatpush1.bf16.msra.mxu0 %v2857_v10  ;;  %v2819_v10 = vcombine.low %v1568_v4, %v1572_v5  ;;  %v1521_v5 = vld [vmem:[%s4331_s10 + $0xc8] sm:$0xff] }
 0x2b1   :  { %v2895_v17 = vpop.f32.mrb[0].mxu1 }
 0x2b2   :  { %v2896_v19 = vpop.f32.mrb[1].mxu1 }
 0x2b3   :  { %v2897_v20 = vadd.f32 %v2896_v19, %v2895_v17  ;;  %v2898_v21 = vpop.f32.mrb[2].mxu1  ;;  %v1584_v17 = vld [vmem:[%s4331_s10 + $0x2c0] sm:$0xff]  ;;  %v2827_v19 = vcombine.low %v1576_v8, %v1580_v9  ;;  %v1529_v9 = vld [vmem:[%s4331_s10 + $0x108] sm:$0xff] }
 0x2b4   :  { %v2899_v22 = vpop.f32.mrb[3].mxu1  ;;  %v1592_v21 = vld [vmem:[%s4331_s10 + $0x300] sm:$0xff] }
 0x2b5   :  { %v1224_v23 = vadd.f32 %v2897_v20, %v2708_v18  ;;  %v1588_v18 = vld [vmem:[%s4331_s10 + $0x2e0] sm:$0xff] }
 0x2b6   :  { %v2836_v20 = vcombine.high %v1584_v17, %v1588_v18  ;;  %v1596_v22 = vld [vmem:[%s4331_s10 + $0x320] sm:$0xff] }
 0x2b7   :  { %2546 = vst.msk [vmem:[#allocation2] sm:$0x3] %vm2545_vm0, %v1224_v23 }
 0x2d1   :  { %v2917_v24 = vpop.f32.mrb[4].mxu1 }
 0x2d2   :  { %v2918_v26 = vpop.f32.mrb[5].mxu1 }
 0x2d3   :  { %v2919_v27 = vadd.f32 %v2918_v26, %v2917_v24  ;;  %v2920_v28 = vpop.f32.mrb[6].mxu1  ;;  %v2844_v24 = vcombine.high %v1592_v21, %v1596_v22  ;;  %v1604_v26 = vld [vmem:[%s4331_s10 + $0x360] sm:$0xff] }
 0x2d4   :  { %v2921_v29 = vpop.f32.mrb[7].mxu1 }
 0x2d5   :  { %v1399_v30 = vadd.f32 %v2919_v27, %v2725_v25  ;;  %v1600_v25 = vld [vmem:[%s4331_s10 + $0x340] sm:$0xff]  ;;  %v2843_v27 = vcombine.low %v1592_v21, %v1596_v22  ;;  %v1545_v22 = vld [vmem:[%s4331_s10 + $0x188] sm:$0xff] }
 0x2d6   :  { %v2852_v28 = vcombine.high %v1600_v25, %v1604_v26  ;;  %v2851_v29 = vcombine.low %v1600_v25, %v1604_v26  ;;  %v1553_v26 = vld [vmem:[%s4331_s10 + $0x1c8] sm:$0xff] }
 0x2d7   :  { %v1405_v31 = vmul.f32 0.5, %v1399_v30  ;;  %2547 = vst.msk [vmem:[#allocation4] sm:$0x3] %vm2545_vm0, %v1399_v30  ;;  %v1608_v30 = vld [vmem:[%s4331_s10 + $0x380] sm:$0xff] }
 0x2d9   :  { %v1406_v32 = vmul.f32 1.442695, %v1405_v31  ;;  %v1612_v31 = vld [vmem:[%s4331_s10 + $0x3a0] sm:$0xff] }
 0x2db   :  { %3172 = vpow2.f32 %v1406_v32  ;;  %v2860_v32 = vcombine.high %v1608_v30, %v1612_v31 }
 0x2e5   :  { %v3173_v34 = vpop.eup %3172 }
 0x2e6   :  { %v1408_v35 = vmul.f32 %v3173_v34, %v1404_v33  ;;  %v1611_v33 = vld [vmem:[%s4331_s10 + $0x398] sm:$0xff] }
 0x2e7   :  { %v1615_v34 = vld [vmem:[%s4331_s10 + $0x3b8] sm:$0xff] }
 0x2e8   :  { %v1409_v38 = vadd.f32 %v1408_v35, %v1224_v23  ;;  %v2835_v23 = vcombine.low %v1584_v17, %v1588_v18  ;;  %v2859_v35 = vcombine.low %v1608_v30, %v1612_v31  ;;  %v2866_v36 = vcombine.high %v1611_v33, %v1615_v34  ;;  %v1537_v18 = vld [vmem:[%s4331_s10 + $0x148] sm:$0xff] }
 0x2e9   :  { %v2865_v37 = vcombine.low %v1611_v33, %v1615_v34  ;;  %v1561_v30 = vld [vmem:[%s4331_s10 + $0x208] sm:$0xff] }
 0x2ea   :  { %v1410_v39 = vpack.c.bf16 %v1409_v38, %v1409_v38  ;;  %2457 = vmatprep.subr.bf16.mxu0 %v2866_v36  ;;  %v1616_v38 = vld [vmem:[%s4331_s10 + $0x3c0] sm:$0xff]  ;;  %v1565_v31 = vld [vmem:[%s4331_s10 + $0x228] sm:$0xff] }
 0x2eb   :  { %2458 = vmatpush1.bf16.msra.mxu0 %v2865_v37  ;;  %v2814_v33 = vcombine.high %v1561_v30, %v1565_v31  ;;  %v1569_v34 = vld [vmem:[%s4331_s10 + $0x248] sm:$0xff]  ;;  %v2813_v36 = vcombine.low %v1561_v30, %v1565_v31  ;;  %v1554_v31 = vld [vmem:[%s4331_s10 + $0x1d0] sm:$0xff] }
 0x2ec   :  { %2746 = vmatmul.mubr.msk.bf16.vlgmr.msra.gmra.mrb[8].mxu1 %vm1447_vm1, %v1410_v39  ;;  %v1620_v39 = vld [vmem:[%s4331_s10 + $0x3e0] sm:$0xff] }
 0x2ed   :  { %2307 = vmatpush1.bf16.msra.mxu1 %v2747_v15  ;;  %v2771_v15 = vcombine.low %v1520_v47, %v1524_v48  ;;  %v2873_v47 = vcombine.low %v1619_v42, %v1623_v44  ;;  %v1497_v48 = vld [vmem:[%s4331_s10 + $0x8] sm:$0xff] }
 0x2ee   :  { %2308 = vmatprep.subr.bf16.mxu1 %v2756_v40  ;;  %v2868_v40 = vcombine.high %v1616_v38, %v1620_v39 }
 0x2f1   :  { %2309 = vmatpush1.bf16.msra.mxu1 %v2755_v45  ;;  %v2867_v45 = vcombine.low %v1616_v38, %v1620_v39  ;;  %v1577_v38 = vld [vmem:[%s4331_s10 + $0x288] sm:$0xff] }
 0x2f2   :  { %2310 = vmatprep.subr.bf16.mxu1 %v2764_v46  ;;  %v2874_v46 = vcombine.high %v1619_v42, %v1623_v44  ;;  %v1581_v39 = vld [vmem:[%s4331_s10 + $0x2a8] sm:$0xff] }
 0x2f3   :  { %v2830_v42 = vcombine.high %v1577_v38, %v1581_v39  ;;  %v1585_v44 = vld [vmem:[%s4331_s10 + $0x2c8] sm:$0xff] }
 0x2f4   :  { %2459 = vmatprep.subr.bf16.mxu0 %v2874_v46  ;;  %v2829_v46 = vcombine.low %v1577_v38, %v1581_v39  ;;  %v1570_v39 = vld [vmem:[%s4331_s10 + $0x250] sm:$0xff] }
 0x2f5   :  { %2311 = vmatpush1.bf16.msra.mxu1 %v2763_v49  ;;  %v1501_v49 = vld [vmem:[%s4331_s10 + $0x28] sm:$0xff]  ;;  %2460 = vmatpush1.bf16.msra.mxu0 %v2873_v47 }
 0x2f6   :  { %2312 = vmatprep.subr.bf16.mxu1 %v2772_v50  ;;  %v2750_v50 = vcombine.high %v1497_v48, %v1501_v49  ;;  %v2749_v13 = vcombine.low %v1497_v48, %v1501_v49  ;;  %v1593_v48 = vld [vmem:[%s4331_s10 + $0x308] sm:$0xff] }
 0x2f7   :  { %v1597_v49 = vld [vmem:[%s4331_s10 + $0x328] sm:$0xff] }
 0x2f9   :  { %2313 = vmatpush1.bf16.msra.mxu1 %v2771_v15  ;;  %v1420_v15 = vrot.slane %v1415_v14, %v3776_v41 }
 0x2fa   :  { %2314 = vmatprep.subr.bf16.mxu1 %v2780_v51  ;;  %v1424_v51 = vrot.slane %v1415_v14, %v3782_v43  ;;  %v1601_v14 = vld [vmem:[%s4331_s10 + $0x348] sm:$0xff] }
 0x2fd   :  { %2315 = vmatpush1.bf16.msra.mxu1 %v2779_v54 }
 0x2fe   :  { %2316 = vmatprep.subr.bf16.mxu1 %v2788_v55 }
 0x301   :  { %2317 = vmatpush1.bf16.msra.mxu1 %v2787_v58 }
 0x302   :  { %2318 = vmatprep.subr.bf16.mxu1 %v2796_v59 }
 0x305   :  { %2319 = vmatpush1.bf16.msra.mxu1 %v2795_v62 }
 0x306   :  { %2320 = vmatprep.subr.bf16.mxu1 %v2804_v63 }
 0x309   :  { %2321 = vmatpush1.bf16.msra.mxu1 %v2803_v2  ;;  %v1517_v2 = vld [vmem:[%s4331_s10 + $0xa8] sm:$0xff] }
 0x30a   :  { %2322 = vmatprep.subr.bf16.mxu1 %v2812_v3  ;;  %v2757_v3 = vcombine.low %v1505_v60, %v1509_v61  ;;  %v2766_v4 = vcombine.high %v1513_v1, %v1517_v2  ;;  %v1498_v61 = vld [vmem:[%s4331_s10 + $0x10] sm:$0xff] }
 0x30d   :  { %2323 = vmatpush1.bf16.msra.mxu1 %v2811_v6  ;;  %v1525_v6 = vld [vmem:[%s4331_s10 + $0xe8] sm:$0xff] }
 0x30e   :  { %2324 = vmatprep.subr.bf16.mxu1 %v2820_v7  ;;  %v2765_v7 = vcombine.low %v1513_v1, %v1517_v2  ;;  %v2774_v8 = vcombine.high %v1521_v5, %v1525_v6 }
 0x311   :  { %2325 = vmatpush1.bf16.msra.mxu1 %v2819_v10  ;;  %v1533_v10 = vld [vmem:[%s4331_s10 + $0x128] sm:$0xff] }
 0x312   :  { %2326 = vmatprep.subr.bf16.mxu1 %v2828_v11  ;;  %v2773_v11 = vcombine.low %v1521_v5, %v1525_v6  ;;  %v2782_v17 = vcombine.high %v1529_v9, %v1533_v10 }
 0x315   :  { %2327 = vmatpush1.bf16.msra.mxu1 %v2827_v19  ;;  %v1541_v19 = vld [vmem:[%s4331_s10 + $0x168] sm:$0xff] }
 0x316   :  { %2328 = vmatprep.subr.bf16.mxu1 %v2836_v20  ;;  %v2781_v20 = vcombine.low %v1529_v9, %v1533_v10  ;;  %v2790_v21 = vcombine.high %v1537_v18, %v1541_v19 }
 0x319   :  { %2329 = vmatpush1.bf16.msra.mxu1 %v2835_v23  ;;  %v1549_v23 = vld [vmem:[%s4331_s10 + $0x1a8] sm:$0xff] }
 0x31a   :  { %2330 = vmatprep.subr.bf16.mxu1 %v2844_v24  ;;  %v2789_v24 = vcombine.low %v1537_v18, %v1541_v19  ;;  %v2798_v25 = vcombine.high %v1545_v22, %v1549_v23 }
 0x31d   :  { %2331 = vmatpush1.bf16.msra.mxu1 %v2843_v27  ;;  %v1557_v27 = vld [vmem:[%s4331_s10 + $0x1e8] sm:$0xff] }
 0x31e   :  { %2332 = vmatprep.subr.bf16.mxu1 %v2852_v28  ;;  %v2797_v28 = vcombine.low %v1545_v22, %v1549_v23  ;;  %v1538_v23 = vld [vmem:[%s4331_s10 + $0x150] sm:$0xff] }
 0x321   :  { %2333 = vmatpush1.bf16.msra.mxu1 %v2851_v29  ;;  %v2806_v29 = vcombine.high %v1553_v26, %v1557_v27 }
 0x322   :  { %2334 = vmatprep.subr.bf16.mxu1 %v2860_v32  ;;  %v2805_v32 = vcombine.low %v1553_v26, %v1557_v27  ;;  %v1546_v27 = vld [vmem:[%s4331_s10 + $0x190] sm:$0xff] }
 0x325   :  { %2335 = vmatpush1.bf16.msra.mxu1 %v2859_v35  ;;  %v1573_v35 = vld [vmem:[%s4331_s10 + $0x268] sm:$0xff] }
 0x326   :  { %2336 = vmatprep.subr.bf16.mxu1 %v2868_v40  ;;  %v2822_v37 = vcombine.high %v1569_v34, %v1573_v35  ;;  %v2821_v40 = vcombine.low %v1569_v34, %v1573_v35  ;;  %v1562_v35 = vld [vmem:[%s4331_s10 + $0x210] sm:$0xff] }
 0x329   :  { %2337 = vmatpush1.bf16.msra.mxu1 %v2867_v45  ;;  %v1589_v45 = vld [vmem:[%s4331_s10 + $0x2e8] sm:$0xff] }
 0x32a   :  { %2347 = vmatprep.subr.bf16.mxu1 %v2750_v50  ;;  %v2838_v47 = vcombine.high %v1585_v44, %v1589_v45  ;;  %v2837_v50 = vcombine.low %v1585_v44, %v1589_v45  ;;  %v1578_v45 = vld [vmem:[%s4331_s10 + $0x290] sm:$0xff] }
 0x3bf   :  { %v1485_v52 = vpop.f32.mrb[8].mxu1 }
 0x3c0   :  { %v1486_v53 = vadd.f32 %v1485_v52, %v1420_v15  ;;  %v1487_v54 = vpop.f32.mrb[9].mxu1  ;;  %v1605_v15 = vld [vmem:[%s4331_s10 + $0x368] sm:$0xff] }
 0x3c1   :  { %v1488_v55 = vadd.f32 %v1487_v54, %v1424_v51  ;;  %v1489_v56 = vpop.f32.mrb[10].mxu1  ;;  %v2845_v51 = vcombine.low %v1593_v48, %v1597_v49  ;;  %v2854_v52 = vcombine.high %v1601_v14, %v1605_v15  ;;  %v1613_v54 = vld [vmem:[%s4331_s10 + $0x3a8] sm:$0xff] }
 0x3c2   :  { %v1492_v57 = vmax.f32 %v1486_v53, 0.0  ;;  %v1490_v58 = vpop.f32.mrb[11].mxu1  ;;  %v1609_v53 = vld [vmem:[%s4331_s10 + $0x388] sm:$0xff] }
 0x3c3   :  { %v1493_v59 = vmax.f32 %v1488_v55, 0.0  ;;  %v2853_v55 = vcombine.low %v1601_v14, %v1605_v15  ;;  %v2862_v56 = vcombine.high %v1609_v53, %v1613_v54  ;;  %v1621_v58 = vld [vmem:[%s4331_s10 + $0x3e8] sm:$0xff]  ;;  %v1594_v15 = vld [vmem:[%s4331_s10 + $0x310] sm:$0xff] }
 0x3c4   :  { %v4074_v63 = vpack.c.bf16 %v1492_v57, %v1492_v57  ;;  %v1617_v57 = vld [vmem:[%s4331_s10 + $0x3c8] sm:$0xff] }
 0x3c5   :  { %v4072_v62 = vpack.c.bf16 %v1493_v59, %v1493_v59  ;;  %v2861_v59 = vcombine.low %v1609_v53, %v1613_v54  ;;  %v2870_v60 = vcombine.high %v1617_v57, %v1621_v58  ;;  %v2869_v1 = vcombine.low %v1617_v57, %v1621_v58  ;;  %v1602_v54 = vld [vmem:[%s4331_s10 + $0x350] sm:$0xff] }
 0x3c6   :  { %v1610_v58 = vld [vmem:[%s4331_s10 + $0x390] sm:$0xff] }
 0x3c7   :  { %2338 = vmatprep.mubr.bf16.mxu1 %v4072_v62  ;;  %2461 = vmatprep.mubr.bf16.mxu0 %v4072_v62 }
 0x3c8   :  { %2339 = vmatmul.mubr.bf16.vlgmr.msra.gmra.mrb[12].mxu1 %v4074_v63  ;;  %2462 = vmatmul.mubr.bf16.vlgmr.msra.gmra.mrb[4].mxu0 %v4074_v63 }
 0x3c9   :  { %2348 = vmatpush1.bf16.msra.mxu1 %v2749_v13  ;;  %2379 = vmatprep.mubr.bf16.mxu1 %v4072_v62  ;;  %v2846_v13 = vcombine.high %v1593_v48, %v1597_v49  ;;  %v1586_v49 = vld [vmem:[%s4331_s10 + $0x2d0] sm:$0xff] }
 0x3ca   :  { %2349 = vmatprep.subr.bf16.mxu1 %v2758_v0  ;;  %v1502_v0 = vld [vmem:[%s4331_s10 + $0x30] sm:$0xff] }
 0x3cb   :  { %v2752_v2 = vcombine.high %v1498_v61, %v1502_v0  ;;  %v2751_v5 = vcombine.low %v1498_v61, %v1502_v0  ;;  %v1618_v0 = vld [vmem:[%s4331_s10 + $0x3d0] sm:$0xff] }
 0x3cd   :  { %2350 = vmatpush1.bf16.msra.mxu1 %v2757_v3  ;;  %v1506_v3 = vld [vmem:[%s4331_s10 + $0x50] sm:$0xff] }
 0x3ce   :  { %2351 = vmatprep.subr.bf16.mxu1 %v2766_v4  ;;  %v1510_v4 = vld [vmem:[%s4331_s10 + $0x70] sm:$0xff] }
 0x3cf   :  { %v2760_v6 = vcombine.high %v1506_v3, %v1510_v4  ;;  %v2759_v9 = vcombine.low %v1506_v3, %v1510_v4 }
 0x3d1   :  { %2352 = vmatpush1.bf16.msra.mxu1 %v2765_v7  ;;  %v1514_v7 = vld [vmem:[%s4331_s10 + $0x90] sm:$0xff] }
 0x3d2   :  { %2353 = vmatprep.subr.bf16.mxu1 %v2774_v8  ;;  %v1518_v8 = vld [vmem:[%s4331_s10 + $0xb0] sm:$0xff] }
 0x3d3   :  { %v2768_v10 = vcombine.high %v1514_v7, %v1518_v8  ;;  %v2767_v18 = vcombine.low %v1514_v7, %v1518_v8  ;;  %v1656_v7 = vsub.s32 7, %v3328_v12 }
 0x3d5   :  { %2354 = vmatpush1.bf16.msra.mxu1 %v2773_v11  ;;  %v1522_v11 = vld [vmem:[%s4331_s10 + $0xd0] sm:$0xff] }
 0x3d6   :  { %2355 = vmatprep.subr.bf16.mxu1 %v2782_v17  ;;  %v1526_v17 = vld [vmem:[%s4331_s10 + $0xf0] sm:$0xff] }
 0x3d7   :  { %v2776_v19 = vcombine.high %v1522_v11, %v1526_v17 }
 0x3d9   :  { %2356 = vmatpush1.bf16.msra.mxu1 %v2781_v20  ;;  %v1530_v20 = vld [vmem:[%s4331_s10 + $0x110] sm:$0xff] }
 0x3da   :  { %2357 = vmatprep.subr.bf16.mxu1 %v2790_v21  ;;  %v2775_v21 = vcombine.low %v1522_v11, %v1526_v17 }
 0x3dd   :  { %2358 = vmatpush1.bf16.msra.mxu1 %v2789_v24  ;;  %v1542_v24 = vld [vmem:[%s4331_s10 + $0x170] sm:$0xff] }
 0x3de   :  { %2359 = vmatprep.subr.bf16.mxu1 %v2798_v25  ;;  %v2792_v26 = vcombine.high %v1538_v23, %v1542_v24 }
 0x3e1   :  { %2360 = vmatpush1.bf16.msra.mxu1 %v2797_v28  ;;  %v1550_v28 = vld [vmem:[%s4331_s10 + $0x1b0] sm:$0xff] }
 0x3e2   :  { %2361 = vmatprep.subr.bf16.mxu1 %v2806_v29  ;;  %v2791_v29 = vcombine.low %v1538_v23, %v1542_v24  ;;  %v2800_v30 = vcombine.high %v1546_v27, %v1550_v28 }
 0x3e5   :  { %2362 = vmatpush1.bf16.msra.mxu1 %v2805_v32  ;;  %v1558_v32 = vld [vmem:[%s4331_s10 + $0x1f0] sm:$0xff] }
 0x3e6   :  { %2363 = vmatprep.subr.bf16.mxu1 %v2814_v33  ;;  %v2799_v33 = vcombine.low %v1546_v27, %v1550_v28  ;;  %v2808_v34 = vcombine.high %v1554_v31, %v1558_v32 }
 0x3e9   :  { %2364 = vmatpush1.bf16.msra.mxu1 %v2813_v36  ;;  %v1566_v36 = vld [vmem:[%s4331_s10 + $0x230] sm:$0xff] }
 0x3ea   :  { %2365 = vmatprep.subr.bf16.mxu1 %v2822_v37  ;;  %v2807_v37 = vcombine.low %v1554_v31, %v1558_v32  ;;  %v2816_v38 = vcombine.high %v1562_v35, %v1566_v36 }
 0x3ed   :  { %2366 = vmatpush1.bf16.msra.mxu1 %v2821_v40  ;;  %v1574_v40 = vld [vmem:[%s4331_s10 + $0x270] sm:$0xff] }
 0x3ee   :  { %2367 = vmatprep.subr.bf16.mxu1 %v2830_v42  ;;  %v2815_v42 = vcombine.low %v1562_v35, %v1566_v36  ;;  %v2824_v44 = vcombine.high %v1570_v39, %v1574_v40 }
 0x3f1   :  { %2368 = vmatpush1.bf16.msra.mxu1 %v2829_v46  ;;  %v1582_v46 = vld [vmem:[%s4331_s10 + $0x2b0] sm:$0xff] }
 0x3f2   :  { %2369 = vmatprep.subr.bf16.mxu1 %v2838_v47  ;;  %v2823_v47 = vcombine.low %v1570_v39, %v1574_v40  ;;  %v2832_v48 = vcombine.high %v1578_v45, %v1582_v46 }
 0x3f5   :  { %2370 = vmatpush1.bf16.msra.mxu1 %v2837_v50  ;;  %v1590_v50 = vld [vmem:[%s4331_s10 + $0x2f0] sm:$0xff] }
 0x3f6   :  { %2371 = vmatprep.subr.bf16.mxu1 %v2846_v13  ;;  %v2831_v13 = vcombine.low %v1578_v45, %v1582_v46  ;;  %v2840_v14 = vcombine.high %v1586_v49, %v1590_v50 }
 0x3f9   :  { %2372 = vmatpush1.bf16.msra.mxu1 %v2845_v51  ;;  %v1598_v51 = vld [vmem:[%s4331_s10 + $0x330] sm:$0xff] }
 0x3fa   :  { %2373 = vmatprep.subr.bf16.mxu1 %v2854_v52  ;;  %v2839_v52 = vcombine.low %v1586_v49, %v1590_v50  ;;  %v2848_v53 = vcombine.high %v1594_v15, %v1598_v51 }
 0x3fd   :  { %2374 = vmatpush1.bf16.msra.mxu1 %v2853_v55  ;;  %v1606_v55 = vld [vmem:[%s4331_s10 + $0x370] sm:$0xff] }
 0x3fe   :  { %2375 = vmatprep.subr.bf16.mxu1 %v2862_v56  ;;  %v2847_v56 = vcombine.low %v1594_v15, %v1598_v51  ;;  %v2856_v57 = vcombine.high %v1602_v54, %v1606_v55 }
 0x401   :  { %2376 = vmatpush1.bf16.msra.mxu1 %v2861_v59  ;;  %v1614_v59 = vld [vmem:[%s4331_s10 + $0x3b0] sm:$0xff] }
 0x402   :  { %2377 = vmatprep.subr.bf16.mxu1 %v2870_v60  ;;  %v2855_v60 = vcombine.low %v1602_v54, %v1606_v55  ;;  %v2864_v61 = vcombine.high %v1610_v58, %v1614_v59 }
 0x405   :  { %2378 = vmatpush1.bf16.msra.mxu1 %v2869_v1  ;;  %v1622_v1 = vld [vmem:[%s4331_s10 + $0x3f0] sm:$0xff] }
 0x406   :  { %2388 = vmatprep.subr.bf16.mxu1 %v2752_v2  ;;  %v2863_v2 = vcombine.low %v1610_v58, %v1614_v59  ;;  %v2872_v3 = vcombine.high %v1618_v0, %v1622_v1  ;;  %v2871_v4 = vcombine.low %v1618_v0, %v1622_v1 }
 0x408   :  { %2380 = vmatmul.mubr.bf16.vlgmr.msra.gmra.mrb[16].mxu1 %v4074_v63 }
 0x409   :  { %2389 = vmatpush1.bf16.msra.mxu1 %v2751_v5  ;;  %2420 = vmatprep.mubr.bf16.mxu1 %v4072_v62  ;;  %v1534_v62 = vld [vmem:[%s4331_s10 + $0x130] sm:$0xff]  ;;  %v1652_v5 = vsub.s32 6, %v3328_v12  ;;  %s3224_s10 = smov [#allocation2]  }
 0x40a   :  { %2390 = vmatprep.subr.bf16.mxu1 %v2760_v6  ;;  %v2784_v22 = vcombine.high %v1530_v20, %v1534_v62  ;;  %v2783_v25 = vcombine.low %v1530_v20, %v1534_v62  ;;  %v4268_v6 = vld [vmem:[%s4332_s11] sm:$0xff]  ;;  %s2556_s11 = sshll.u32 %s3224_s10, 4  ;;  %s2557_s11 = int_to_ptr.vmem [resolvable:$true] %s2556_s11 }
 0x40b   :  { %v1629_v8 = vrot.slane %v4268_v6, %v3776_v41  ;;  %v1657_v11 = vrot.slane %v4268_v6, %v1656_v7  ;;  %s3174_s0 = scalar_lea.vmem %s2557_s11, 32  ;;  %p3179_p1 = scmp.lt.s32.totalorder %s2557_s11, %s2557_s11 }
 0x40c   :  { %p3175_p0 = scmp.ne.s32.totalorder %s2557_s11, %s3174_s0  ;;  %p3180_p2 = scmp.lt.s32.totalorder %s3174_s0, %s3174_s0 }
 0x40d   :  { %2391 = vmatpush1.bf16.msra.mxu1 %v2759_v9  ;;  %v1653_v9 = vrot.slane %v4268_v6, %v1652_v5 }
 0x40e   :  { %2392 = vmatprep.subr.bf16.mxu1 %v2768_v10  ;;  %v1633_v10 = vrot.slane %v4268_v6, %v3782_v43  ;;  %p3181_p3 = por %p3180_p2, %p3179_p1 }
 0x410   :  { %p3182_p4 = pnand %p3181_p3, %p3175_p0 }
 0x411   :  { %2393 = vmatpush1.bf16.msra.mxu1 %v2767_v18 }
 0x412   :  { %2394 = vmatprep.subr.bf16.mxu1 %v2776_v19 }
 0x415   :  { %2395 = vmatpush1.bf16.msra.mxu1 %v2775_v21 }
 0x416   :  { %2396 = vmatprep.subr.bf16.mxu1 %v2784_v22 }
 0x419   :  { %2397 = vmatpush1.bf16.msra.mxu1 %v2783_v25 }
 0x41a   :  { %2398 = vmatprep.subr.bf16.mxu1 %v2792_v26 }
 0x41d   :  { %2399 = vmatpush1.bf16.msra.mxu1 %v2791_v29 }
 0x41e   :  { %2400 = vmatprep.subr.bf16.mxu1 %v2800_v30 }
 0x421   :  { %2401 = vmatpush1.bf16.msra.mxu1 %v2799_v33 }
 0x422   :  { %2402 = vmatprep.subr.bf16.mxu1 %v2808_v34 }
 0x425   :  { %2403 = vmatpush1.bf16.msra.mxu1 %v2807_v37 }
 0x426   :  { %2404 = vmatprep.subr.bf16.mxu1 %v2816_v38 }
 0x429   :  { %2405 = vmatpush1.bf16.msra.mxu1 %v2815_v42 }
 0x42a   :  { %2406 = vmatprep.subr.bf16.mxu1 %v2824_v44 }
 0x42d   :  { %2407 = vmatpush1.bf16.msra.mxu1 %v2823_v47 }
 0x42e   :  { %2408 = vmatprep.subr.bf16.mxu1 %v2832_v48 }
 0x431   :  { %2409 = vmatpush1.bf16.msra.mxu1 %v2831_v13 }
 0x432   :  { %2410 = vmatprep.subr.bf16.mxu1 %v2840_v14 }
 0x435   :  { %2411 = vmatpush1.bf16.msra.mxu1 %v2839_v52 }
 0x436   :  { %2412 = vmatprep.subr.bf16.mxu1 %v2848_v53 }
 0x439   :  { %2413 = vmatpush1.bf16.msra.mxu1 %v2847_v56 }
 0x43a   :  { %2414 = vmatprep.subr.bf16.mxu1 %v2856_v57 }
 0x43d   :  { %2415 = vmatpush1.bf16.msra.mxu1 %v2855_v60 }
 0x43e   :  { %2416 = vmatprep.subr.bf16.mxu1 %v2864_v61 }
 0x441   :  { %2417 = vmatpush1.bf16.msra.mxu1 %v2863_v2 }
 0x442   :  { %2418 = vmatprep.subr.bf16.mxu1 %v2872_v3 }
 0x445   :  { %2419 = vmatpush1.bf16.msra.mxu1 %v2871_v4 }
 0x448   :  { %2421 = vmatmul.mubr.bf16.vlgmr.msra.gmra.mrb[20].mxu1 %v4074_v63 }
 0x49b   :  { %v2340_v63 = vpop.f32.mrb[12].mxu1  ;;  %v2463_v17 = vpop.f32.mrb[4].mxu0 }
 0x49c   :  { %v2341_v18 = vadd.f32 %v2340_v63, %v1629_v8  ;;  %v2464_v19 = vadd.f32 %v2463_v17, %v1653_v9  ;;  %v2342_v20 = vpop.f32.mrb[13].mxu1  ;;  %v2465_v62 = vpop.f32.mrb[5].mxu0 }
 0x49d   :  { %v2343_v21 = vadd.f32 %v2342_v20, %v1633_v10  ;;  %v2466_v22 = vadd.f32 %v2465_v62, %v1657_v11  ;;  %v2344_v23 = vpop.f32.mrb[14].mxu1  ;;  %v2467_v24 = vpop.f32.mrb[6].mxu0 }
 0x49e   :  { %v2470_v25 = vmax.f32 %v2341_v18, 0.0  ;;  %v2476_v26 = vmax.f32 %v2464_v19, 0.0  ;;  %v2345_v41 = vpop.f32.mrb[15].mxu1  ;;  %v2468_v27 = vpop.f32.mrb[7].mxu0 }
 0x49f   :  { %v2471_v28 = vmax.f32 %v2343_v21, 0.0  ;;  %v2477_v29 = vmax.f32 %v2466_v22, 0.0 }
 0x4a1   :  { %v2875_v30 = vpack.c.bf16 %v2471_v28, %v2470_v25  ;;  %v4277_v43 = vpack.c.bf16 %v2477_v29, %v2476_v26 }
 0x4a2   :  { %3185 = shalt.err (!%p3182_p4)
}
 0x4a3   :  { %s3186_s30 = scalar_lea.hbm %s4334_s13, 32 }
 0x4a4   :  { %p3187_p5 = scmp.ne.s32.totalorder %s4334_s13, %s3186_s30  ;;  %p3190_p6 = scmp.lt.u32.totalorder %s3186_s30, %s4334_s13 }
 0x4a6   :  { %p3192_p7 = pnand %p3190_p6, %p3187_p5 }
 0x4a8   :  { %3195 = shalt.err (!%p3192_p7)
}
 0x4a9   :  { %2559 = dma.vmem_to_hbm [thread:$0]  %s2557_s11, 32, %s4334_s13, [#allocation3]  }
 0x4aa   :  { %s3196_s18 = scalar_lea.vmem %s2567_s2, 32  ;;  %p3201_p9 = scmp.lt.s32.totalorder %s2567_s2, %s2567_s2 }
 0x4ab   :  { %p3197_p8 = scmp.ne.s32.totalorder %s2567_s2, %s3196_s18  ;;  %p3202_p10 = scmp.lt.s32.totalorder %s3196_s18, %s3196_s18 }
 0x4ad   :  { %p3203_p11 = por %p3202_p10, %p3201_p9 }
 0x4af   :  { %p3204_p12 = pnand %p3203_p11, %p3197_p8 }
 0x4b1   :  { %3207 = shalt.err (!%p3204_p12)
}
 0x4b2   :  { %s3208_s3 = scalar_lea.hbm %s4335_s14, 32 }
 0x4b3   :  { %p3209_p13 = scmp.ne.s32.totalorder %s4335_s14, %s3208_s3  ;;  %p3212_p0 = scmp.lt.u32.totalorder %s3208_s3, %s4335_s14 }
 0x4b5   :  { %p3214_p1 = pnand %p3212_p0, %p3209_p13 }
 0x4b7   :  { %3217 = shalt.err (!%p3214_p1)
}
 0x4b8   :  { %2569 = dma.vmem_to_hbm [thread:$0]  %s2567_s2, 32, %s4335_s14, [#allocation5]   ;;  %v1636_v31 = vsub.s32 2, %v3328_v12  ;;  %v1640_v32 = vsub.s32 3, %v3328_v12  ;;  %v2504_v46 = vrot.slane %v2875_v30, %v3337_v16  ;;  %v1644_v49 = vsub.s32 4, %v3328_v12 }
 0x4b9   :  { %v1648_v50 = vsub.s32 5, %v3328_v12  ;;  %v2525_v59 = vrot.slane %v4277_v43, %v3337_v16 }
 0x4ba   :  { %v1637_v33 = vrot.slane %v4268_v6, %v1636_v31  ;;  %v1641_v34 = vrot.slane %v4268_v6, %v1640_v32  ;;  %v1645_v13 = vrot.slane %v4268_v6, %v1644_v49 }
 0x4bb   :  { %v1649_v14 = vrot.slane %v4268_v6, %v1648_v50 }
 0x4db   :  { %v2381_v35 = vpop.f32.mrb[16].mxu1 }
 0x4dc   :  { %v2382_v36 = vadd.f32 %v2381_v35, %v1637_v33  ;;  %v2383_v37 = vpop.f32.mrb[17].mxu1 }
 0x4dd   :  { %v2384_v38 = vadd.f32 %v2383_v37, %v1641_v34  ;;  %v2385_v39 = vpop.f32.mrb[18].mxu1 }
 0x4de   :  { %v2472_v40 = vmax.f32 %v2382_v36, 0.0  ;;  %v2386_v42 = vpop.f32.mrb[19].mxu1 }
 0x4df   :  { %v2473_v44 = vmax.f32 %v2384_v38, 0.0 }
 0x4e1   :  { %v2876_v45 = vpack.c.bf16 %v2473_v44, %v2472_v40 }
 0x4e3   :  { %v2511_v47 = vrot.slane %v2876_v45, %v3337_v16 }
 0x4e5   :  { %v2526_v48 = vcombine.low %v2504_v46, %v2511_v47 }
 0x4e7   :  { %v2534_v12 = vrot.slane %v2526_v48, %v3337_v16 }
 0x51b   :  { %v2422_v15 = vpop.f32.mrb[20].mxu1 }
 0x51c   :  { %v2423_v51 = vadd.f32 %v2422_v15, %v1645_v13  ;;  %v2424_v52 = vpop.f32.mrb[21].mxu1 }
 0x51d   :  { %v2425_v53 = vadd.f32 %v2424_v52, %v1649_v14  ;;  %v2426_v54 = vpop.f32.mrb[22].mxu1 }
 0x51e   :  { %v2474_v55 = vmax.f32 %v2423_v51, 0.0  ;;  %v2427_v56 = vpop.f32.mrb[23].mxu1 }
 0x51f   :  { %v2475_v57 = vmax.f32 %v2425_v53, 0.0 }
 0x521   :  { %v2877_v58 = vpack.c.bf16 %v2475_v57, %v2474_v55 }
 0x523   :  { %v2518_v60 = vrot.slane %v2877_v58, %v3337_v16 }
 0x525   :  { %v2527_v61 = vcombine.low %v2518_v60, %v2525_v59 }
 0x527   :  { %v2541_v0 = vrot.slane %v2527_v61, %v3337_v16 }
 0x529   :  { %v2542_v1 = vcombine.low %v2534_v12, %v2541_v0 }
 0x52b   :  { %2544 = vst [vmem:[%s4333_s12] sm:$0xff] %v2542_v1 }
 0x52c   :  { %3218 = dma.done.wait [#allocation3], 32  }
 0x52d   :  { %3219 = vsyncadd [#allocation3], 4294967264 }
 0x52e   :  { %3220 = dma.done.wait [#allocation5], 32  }
 0x52f   :  { %3221 = vsyncadd [#allocation5], 4294967264 }
 0x530   :  { %2578 = vsyncpa [#allocation3], 1 }
 0x531   :  { %2579 = vsyncpa [#allocation5], 1 }

// kernel: vae_forward.14
= control target key start
LH: loop header
LB: loop body
LE: loop exit
PB: predicated region body
PF: predicated region fallthrough
CT: control target
= control target key end

     0   :  { %vm521_vm0 = vcmask 523264   ;;  %s1256_s1 = inlined_call_operand.vmem [shape: bf16[576,256], index: 1, kind: input, shape index: {}]   ;;  %s1257_s0 = inlined_call_operand.vmem [shape: bf16[32,576], index: 0, kind: input, shape index: {}]   ;;  %s1258_s2 = inlined_call_operand.vmem [shape: f32[1,256], index: 2, kind: input, shape index: {}]   ;;  %s1259_s3 = inlined_call_operand.vmem [shape: bf16[32,256], index: 3, kind: output, shape index: {}]  }
   0x1   :  { %v852_v0 = vld [vmem:[%s1256_s1 + $0x4] ss:$8 sps:$4 sm:$0xff]   ;;  %v856_v2 = vld [vmem:[%s1256_s1] ss:$8 sps:$4 sm:$0xff]   ;;  %v858_v4 = vld [vmem:[%s1256_s1 + $0x14] ss:$8 sps:$4 sm:$0xff]  }
   0x2   :  { %v854_v1 = vld [vmem:[%s1256_s1 + $0x104] ss:$8 sps:$4 sm:$0xff]   ;;  %528 = vmatprep.subr.bf16.mxu1 %v852_v0  ;;  %v857_v3 = vld [vmem:[%s1256_s1 + $0x100] ss:$8 sps:$4 sm:$0xff]   ;;  %v860_v5 = vld [vmem:[%s1256_s1 + $0x114] ss:$8 sps:$4 sm:$0xff]  }
   0x3   :  { %581 = vmatprep.subr.bf16.mxu0 %v854_v1  ;;  %529 = vmatpush1.bf16.msra.mxu1 %v856_v2  ;;  %v862_v6 = vld [vmem:[%s1256_s1 + $0x10] ss:$8 sps:$4 sm:$0xff]   ;;  %v864_v8 = vld [vmem:[%s1256_s1 + $0x24] ss:$8 sps:$4 sm:$0xff]   ;;  %v868_v10 = vld [vmem:[%s1256_s1 + $0x20] ss:$8 sps:$4 sm:$0xff]  }
   0x4   :  { %582 = vmatpush1.bf16.msra.mxu0 %v857_v3  ;;  %530 = vmatprep.subr.bf16.mxu1 %v858_v4  ;;  %v863_v7 = vld [vmem:[%s1256_s1 + $0x110] ss:$8 sps:$4 sm:$0xff]   ;;  %v866_v9 = vld [vmem:[%s1256_s1 + $0x124] ss:$8 sps:$4 sm:$0xff]   ;;  %v869_v11 = vld [vmem:[%s1256_s1 + $0x120] ss:$8 sps:$4 sm:$0xff]  }
   0x5   :  { %583 = vmatprep.subr.bf16.mxu0 %v860_v5  ;;  %v870_v12 = vld [vmem:[%s1256_s1 + $0x34] ss:$8 sps:$4 sm:$0xff]   ;;  %v874_v14 = vld [vmem:[%s1256_s1 + $0x30] ss:$8 sps:$4 sm:$0xff]   ;;  %v876_v16 = vld [vmem:[%s1256_s1 + $0x44] ss:$8 sps:$4 sm:$0xff]  }
   0x6   :  { %v872_v13 = vld [vmem:[%s1256_s1 + $0x134] ss:$8 sps:$4 sm:$0xff]   ;;  %v875_v15 = vld [vmem:[%s1256_s1 + $0x130] ss:$8 sps:$4 sm:$0xff]   ;;  %v878_v17 = vld [vmem:[%s1256_s1 + $0x144] ss:$8 sps:$4 sm:$0xff]  }
   0x7   :  { %531 = vmatpush1.bf16.msra.mxu1 %v862_v6  ;;  %v880_v18 = vld [vmem:[%s1256_s1 + $0x40] ss:$8 sps:$4 sm:$0xff]   ;;  %v882_v20 = vld [vmem:[%s1256_s1 + $0x54] ss:$8 sps:$4 sm:$0xff]   ;;  %v886_v22 = vld [vmem:[%s1256_s1 + $0x50] ss:$8 sps:$4 sm:$0xff]  }
   0x8   :  { %584 = vmatpush1.bf16.msra.mxu0 %v863_v7  ;;  %532 = vmatprep.subr.bf16.mxu1 %v864_v8  ;;  %v881_v19 = vld [vmem:[%s1256_s1 + $0x140] ss:$8 sps:$4 sm:$0xff]   ;;  %v884_v21 = vld [vmem:[%s1256_s1 + $0x154] ss:$8 sps:$4 sm:$0xff]   ;;  %v887_v23 = vld [vmem:[%s1256_s1 + $0x150] ss:$8 sps:$4 sm:$0xff]  }
   0x9   :  { %585 = vmatprep.subr.bf16.mxu0 %v866_v9  ;;  %v888_v24 = vld [vmem:[%s1256_s1 + $0x64] ss:$8 sps:$4 sm:$0xff]   ;;  %v892_v26 = vld [vmem:[%s1256_s1 + $0x60] ss:$8 sps:$4 sm:$0xff]   ;;  %v894_v28 = vld [vmem:[%s1256_s1 + $0x74] ss:$8 sps:$4 sm:$0xff]  }
   0xa   :  { %v890_v25 = vld [vmem:[%s1256_s1 + $0x164] ss:$8 sps:$4 sm:$0xff]   ;;  %v893_v27 = vld [vmem:[%s1256_s1 + $0x160] ss:$8 sps:$4 sm:$0xff]   ;;  %v896_v29 = vld [vmem:[%s1256_s1 + $0x174] ss:$8 sps:$4 sm:$0xff]  }
   0xb   :  { %533 = vmatpush1.bf16.msra.mxu1 %v868_v10  ;;  %v898_v30 = vld [vmem:[%s1256_s1 + $0x70] ss:$8 sps:$4 sm:$0xff]   ;;  %v900_v32 = vld [vmem:[%s1256_s1 + $0x84] ss:$8 sps:$4 sm:$0xff]   ;;  %v904_v34 = vld [vmem:[%s1256_s1 + $0x80] ss:$8 sps:$4 sm:$0xff]  }
   0xc   :  { %586 = vmatpush1.bf16.msra.mxu0 %v869_v11  ;;  %534 = vmatprep.subr.bf16.mxu1 %v870_v12  ;;  %v899_v31 = vld [vmem:[%s1256_s1 + $0x170] ss:$8 sps:$4 sm:$0xff]   ;;  %v902_v33 = vld [vmem:[%s1256_s1 + $0x184] ss:$8 sps:$4 sm:$0xff]   ;;  %v905_v35 = vld [vmem:[%s1256_s1 + $0x180] ss:$8 sps:$4 sm:$0xff]  }
   0xd   :  { %587 = vmatprep.subr.bf16.mxu0 %v872_v13  ;;  %v906_v36 = vld [vmem:[%s1256_s1 + $0x94] ss:$8 sps:$4 sm:$0xff]   ;;  %v910_v38 = vld [vmem:[%s1256_s1 + $0x90] ss:$8 sps:$4 sm:$0xff]   ;;  %v912_v40 = vld [vmem:[%s1256_s1 + $0xa4] ss:$8 sps:$4 sm:$0xff]  }
   0xe   :  { %v908_v37 = vld [vmem:[%s1256_s1 + $0x194] ss:$8 sps:$4 sm:$0xff]   ;;  %v911_v39 = vld [vmem:[%s1256_s1 + $0x190] ss:$8 sps:$4 sm:$0xff]   ;;  %v914_v41 = vld [vmem:[%s1256_s1 + $0x1a4] ss:$8 sps:$4 sm:$0xff]  }
   0xf   :  { %535 = vmatpush1.bf16.msra.mxu1 %v874_v14  ;;  %v916_v42 = vld [vmem:[%s1256_s1 + $0xa0] ss:$8 sps:$4 sm:$0xff]   ;;  %v918_v44 = vld [vmem:[%s1256_s1 + $0xb4] ss:$8 sps:$4 sm:$0xff]   ;;  %v922_v46 = vld [vmem:[%s1256_s1 + $0xb0] ss:$8 sps:$4 sm:$0xff]  }
  0x10   :  { %588 = vmatpush1.bf16.msra.mxu0 %v875_v15  ;;  %536 = vmatprep.subr.bf16.mxu1 %v876_v16  ;;  %v917_v43 = vld [vmem:[%s1256_s1 + $0x1a0] ss:$8 sps:$4 sm:$0xff]   ;;  %v920_v45 = vld [vmem:[%s1256_s1 + $0x1b4] ss:$8 sps:$4 sm:$0xff]   ;;  %v923_v47 = vld [vmem:[%s1256_s1 + $0x1b0] ss:$8 sps:$4 sm:$0xff]  }
  0x11   :  { %589 = vmatprep.subr.bf16.mxu0 %v878_v17  ;;  %v924_v48 = vld [vmem:[%s1256_s1 + $0xc4] ss:$8 sps:$4 sm:$0xff]   ;;  %v928_v52 = vld [vmem:[%s1256_s1 + $0xc0] ss:$8 sps:$4 sm:$0xff]   ;;  %v930_v54 = vld [vmem:[%s1256_s1 + $0xd4] ss:$8 sps:$4 sm:$0xff]  }
  0x12   :  { %v950_v49 = vld [vmem:[%s1257_s0 + $0x4] ss:$20 sps:$4 sm:$0xff]   ;;  %v953_v51 = vld [vmem:[%s1257_s0 + $0xc] ss:$20 sps:$4 sm:$0xff]   ;;  %v932_v55 = vld [vmem:[%s1256_s1 + $0x1d4] ss:$8 sps:$4 sm:$0xff]  }
  0x13   :  { %537 = vmatpush1.bf16.msra.mxu1 %v880_v18  ;;  %v926_v50 = vld [vmem:[%s1256_s1 + $0x1c4] ss:$8 sps:$4 sm:$0xff]   ;;  %560 = vmatprep.mubr.bf16.mxu1 %v950_v49  ;;  %v929_v53 = vld [vmem:[%s1256_s1 + $0x1c0] ss:$8 sps:$4 sm:$0xff]   ;;  %v934_v56 = vld [vmem:[%s1256_s1 + $0xd0] ss:$8 sps:$4 sm:$0xff]  }
  0x14   :  { %590 = vmatpush1.bf16.msra.mxu0 %v881_v19  ;;  %538 = vmatprep.subr.bf16.mxu1 %v882_v20  ;;  %v935_v57 = vld [vmem:[%s1256_s1 + $0x1d0] ss:$8 sps:$4 sm:$0xff]   ;;  %v936_v58 = vld [vmem:[%s1256_s1 + $0xe4] ss:$8 sps:$4 sm:$0xff]   ;;  %v940_v60 = vld [vmem:[%s1256_s1 + $0xe0] ss:$8 sps:$4 sm:$0xff]   ;;  %v101_v19 = vlaneseq }
  0x15   :  { %591 = vmatprep.subr.bf16.mxu0 %v884_v21  ;;  %613 = vmatprep.mubr.bf16.mxu0 %v953_v51  ;;  %v938_v59 = vld [vmem:[%s1256_s1 + $0x1e4] ss:$8 sps:$4 sm:$0xff]   ;;  %v941_v61 = vld [vmem:[%s1256_s1 + $0x1e0] ss:$8 sps:$4 sm:$0xff]   ;;  %v942_v62 = vld [vmem:[%s1256_s1 + $0xf4] ss:$8 sps:$4 sm:$0xff]  }
  0x16   :  { %v944_v63 = vld [vmem:[%s1256_s1 + $0x1f4] ss:$8 sps:$4 sm:$0xff]   ;;  %v946_v0 = vld [vmem:[%s1256_s1 + $0xf0] ss:$8 sps:$4 sm:$0xff]   ;;  %v956_v2 = vld [vmem:[%s1256_s1 + $0x204] ss:$8 sps:$4 sm:$0xff]  }
  0x17   :  { %539 = vmatpush1.bf16.msra.mxu1 %v886_v22  ;;  %v947_v1 = vld [vmem:[%s1256_s1 + $0x1f0] ss:$8 sps:$4 sm:$0xff]   ;;  %v948_v3 = vld [vmem:[%s1257_s0] ss:$20 sps:$4 sm:$0xff]   ;;  %v951_v4 = vld [vmem:[%s1257_s0 + $0x8] ss:$20 sps:$4 sm:$0xff]  }
  0x18   :  { %592 = vmatpush1.bf16.msra.mxu0 %v887_v23  ;;  %540 = vmatprep.subr.bf16.mxu1 %v888_v24  ;;  %v954_v5 = vld [vmem:[%s1256_s1 + $0x200] ss:$8 sps:$4 sm:$0xff]   ;;  %v959_v6 = vld [vmem:[%s1256_s1 + $0x214] ss:$8 sps:$4 sm:$0xff]   ;;  %v957_v9 = vld [vmem:[%s1256_s1 + $0x210] ss:$8 sps:$4 sm:$0xff]  }
  0x19   :  { %593 = vmatprep.subr.bf16.mxu0 %v890_v25  ;;  %v960_v7 = vld [vmem:[%s1257_s0 + $0x2c] ss:$20 sps:$4 sm:$0xff]   ;;  %v962_v8 = vld [vmem:[%s1257_s0 + $0x34] ss:$20 sps:$4 sm:$0xff]   ;;  %v965_v12 = vld [vmem:[%s1257_s0 + $0x30] ss:$20 sps:$4 sm:$0xff]  }
  0x1a   :  { %v968_v10 = vld [vmem:[%s1256_s1 + $0x224] ss:$8 sps:$4 sm:$0xff]   ;;  %v964_v11 = vld [vmem:[%s1257_s0 + $0x28] ss:$20 sps:$4 sm:$0xff]   ;;  %v969_v15 = vld [vmem:[%s1256_s1 + $0x230] ss:$8 sps:$4 sm:$0xff]  }
  0x1b   :  { %541 = vmatpush1.bf16.msra.mxu1 %v892_v26  ;;  %v966_v13 = vld [vmem:[%s1256_s1 + $0x220] ss:$8 sps:$4 sm:$0xff]   ;;  %v971_v14 = vld [vmem:[%s1256_s1 + $0x234] ss:$8 sps:$4 sm:$0xff]   ;;  %v974_v16 = vmov 0   ;;  %v102_v20 = vshrl.u32 %v101_v19, 7 }
  0x1c   :  { %594 = vmatpush1.bf16.msra.mxu0 %v893_v27  ;;  %542 = vmatprep.subr.bf16.mxu1 %v894_v28  ;;  %v972_v17 = vld [vmem:[%s1257_s0 + $0x10] ss:$20 sps:$4 sm:$0xff]   ;;  %v973_v18 = vld [vmem:[%s1257_s0 + $0x38] ss:$20 sps:$4 sm:$0xff]   ;;  %v99_v26 = vld [vmem:[%s1258_s2] sm:$0x3] }
  0x1d   :  { %595 = vmatprep.subr.bf16.mxu0 %v896_v29  ;;  %v103_v24 = vsub.s32 0, %v102_v20  ;;  %v107_v27 = vsub.s32 1, %v102_v20 }
  0x1f   :  { %543 = vmatpush1.bf16.msra.mxu1 %v898_v30  ;;  %v104_v28 = vrot.slane %v99_v26, %v103_v24  ;;  %v108_v29 = vrot.slane %v99_v26, %v107_v27 }
  0x20   :  { %596 = vmatpush1.bf16.msra.mxu0 %v899_v31  ;;  %544 = vmatprep.subr.bf16.mxu1 %v900_v32 }
  0x21   :  { %597 = vmatprep.subr.bf16.mxu0 %v902_v33 }
  0x23   :  { %545 = vmatpush1.bf16.msra.mxu1 %v904_v34 }
  0x24   :  { %598 = vmatpush1.bf16.msra.mxu0 %v905_v35  ;;  %546 = vmatprep.subr.bf16.mxu1 %v906_v36 }
  0x25   :  { %599 = vmatprep.subr.bf16.mxu0 %v908_v37 }
  0x27   :  { %547 = vmatpush1.bf16.msra.mxu1 %v910_v38 }
  0x28   :  { %600 = vmatpush1.bf16.msra.mxu0 %v911_v39  ;;  %548 = vmatprep.subr.bf16.mxu1 %v912_v40 }
  0x29   :  { %601 = vmatprep.subr.bf16.mxu0 %v914_v41 }
  0x2b   :  { %549 = vmatpush1.bf16.msra.mxu1 %v916_v42 }
  0x2c   :  { %602 = vmatpush1.bf16.msra.mxu0 %v917_v43  ;;  %550 = vmatprep.subr.bf16.mxu1 %v918_v44 }
  0x2d   :  { %603 = vmatprep.subr.bf16.mxu0 %v920_v45 }
  0x2f   :  { %551 = vmatpush1.bf16.msra.mxu1 %v922_v46 }
  0x30   :  { %604 = vmatpush1.bf16.msra.mxu0 %v923_v47  ;;  %552 = vmatprep.subr.bf16.mxu1 %v924_v48 }
  0x31   :  { %605 = vmatprep.subr.bf16.mxu0 %v926_v50 }
  0x33   :  { %553 = vmatpush1.bf16.msra.mxu1 %v928_v52 }
  0x34   :  { %606 = vmatpush1.bf16.msra.mxu0 %v929_v53  ;;  %554 = vmatprep.subr.bf16.mxu1 %v930_v54 }
  0x35   :  { %607 = vmatprep.subr.bf16.mxu0 %v932_v55 }
  0x37   :  { %555 = vmatpush1.bf16.msra.mxu1 %v934_v56 }
  0x38   :  { %608 = vmatpush1.bf16.msra.mxu0 %v935_v57  ;;  %556 = vmatprep.subr.bf16.mxu1 %v936_v58 }
  0x39   :  { %609 = vmatprep.subr.bf16.mxu0 %v938_v59 }
  0x3b   :  { %557 = vmatpush1.bf16.msra.mxu1 %v940_v60 }
  0x3c   :  { %610 = vmatpush1.bf16.msra.mxu0 %v941_v61  ;;  %558 = vmatprep.subr.bf16.mxu1 %v942_v62 }
  0x3d   :  { %611 = vmatprep.subr.bf16.mxu0 %v944_v63 }
  0x3f   :  { %559 = vmatpush1.bf16.msra.mxu1 %v946_v0 }
  0x40   :  { %612 = vmatpush1.bf16.msra.mxu0 %v947_v1  ;;  %819 = vmatprep.subr.bf16.mxu1 %v956_v2 }
  0x41   :  { %634 = vmatprep.subr.bf16.mxu0 %v956_v2 }
  0x42   :  { %561 = vmatmul.mubr.bf16.vlgmr.msra.gmra.mrb[0].mxu1 %v948_v3 }
  0x43   :  { %614 = vmatmul.mubr.bf16.vlgmr.msra.gmra.mrb[0].mxu0 %v951_v4  ;;  %823 = vmatpush1.bf16.msra.mxu1 %v954_v5 }
  0x44   :  { %635 = vmatpush1.bf16.msra.mxu0 %v954_v5  ;;  %820 = vmatprep.subr.bf16.mxu1 %v959_v6 }
  0x45   :  { %636 = vmatprep.subr.bf16.mxu0 %v959_v6  ;;  %570 = vmatprep.mubr.bf16.mxu1 %v960_v7 }
  0x46   :  { %623 = vmatprep.mubr.bf16.mxu0 %v962_v8 }
  0x47   :  { %824 = vmatpush1.bf16.msra.mxu1 %v957_v9 }
  0x48   :  { %637 = vmatpush1.bf16.msra.mxu0 %v957_v9  ;;  %821 = vmatprep.subr.bf16.mxu1 %v968_v10 }
  0x49   :  { %638 = vmatprep.subr.bf16.mxu0 %v968_v10 }
  0x4a   :  { %571 = vmatmul.mubr.bf16.gmra.mrb[4].mxu1 %v964_v11 }
  0x4b   :  { %624 = vmatmul.mubr.bf16.gmra.mrb[4].mxu0 %v965_v12  ;;  %825 = vmatpush1.bf16.msra.mxu1 %v966_v13 }
  0x4c   :  { %639 = vmatpush1.bf16.msra.mxu0 %v966_v13  ;;  %822 = vmatprep.subr.bf16.mxu1 %v971_v14 }
  0x4d   :  { %640 = vmatprep.subr.bf16.mxu0 %v971_v14  ;;  %666 = vmatprep.mubr.bf16.mxu0 %v974_v16 }
  0x4e   :  { %676 = vmatprep.mubr.bf16.mxu1 %v974_v16 }
  0x4f   :  { %826 = vmatpush1.bf16.msra.mxu1 %v969_v15 }
  0x50   :  { %641 = vmatpush1.bf16.msra.mxu0 %v969_v15 }
  0x52   :  { %810 = vmatmul.mubr.msk.bf16.vlgmr.msra.gmra.mrb[8].mxu1 %vm521_vm0, %v973_v18 }
  0x53   :  { %809 = vmatmul.mubr.msk.bf16.vlgmr.msra.gmra.mrb[0].mxu0 %vm521_vm0, %v972_v17 }
 0x115   :  { %v562_v21 = vpop.f32.mrb[0].mxu1 }
 0x116   :  { %v564_v22 = vpop.f32.mrb[1].mxu1  ;;  %v563_v46 = vadd.f32 %v562_v21, %v104_v28 }
 0x117   :  { %v566_v23 = vpop.f32.mrb[2].mxu1  ;;  %v565_v47 = vadd.f32 %v564_v22, %v108_v29 }
 0x118   :  { %v568_v25 = vpop.f32.mrb[3].mxu1  ;;  %v567_v50 = vadd.f32 %v566_v23, %v104_v28 }
 0x119   :  { %v569_v55 = vadd.f32 %v568_v25, %v108_v29 }
 0x11d   :  { %v572_v30 = vpop.f32.mrb[4].mxu1 }
 0x11e   :  { %v625_v31 = vpop.f32.mrb[4].mxu0  ;;  %v573_v32 = vadd.f32 %v572_v30, %v104_v28  ;;  %v574_v33 = vpop.f32.mrb[5].mxu1 }
 0x11f   :  { %v627_v34 = vpop.f32.mrb[5].mxu0  ;;  %v575_v35 = vadd.f32 %v574_v33, %v108_v29  ;;  %v576_v36 = vpop.f32.mrb[6].mxu1 }
 0x120   :  { %v629_v37 = vpop.f32.mrb[6].mxu0  ;;  %v626_v38 = vadd.f32 %v625_v31, %v573_v32  ;;  %v577_v39 = vadd.f32 %v576_v36, %v104_v28  ;;  %v578_v40 = vpop.f32.mrb[7].mxu1 }
 0x121   :  { %v631_v41 = vpop.f32.mrb[7].mxu0  ;;  %v628_v42 = vadd.f32 %v627_v34, %v575_v35  ;;  %v579_v43 = vadd.f32 %v578_v40, %v108_v29 }
 0x122   :  { %v630_v44 = vadd.f32 %v629_v37, %v577_v39 }
 0x123   :  { %v632_v45 = vadd.f32 %v631_v41, %v579_v43 }
 0x125   :  { %v678_v49 = vpop.f32.mrb[8].mxu1 }
 0x126   :  { %v668_v48 = vpop.f32.mrb[0].mxu0  ;;  %v679_v52 = vadd.f32 %v678_v49, %v626_v38  ;;  %v680_v54 = vpop.f32.mrb[9].mxu1 }
 0x127   :  { %v828_v51 = vadd.f32 %v668_v48, %v563_v46  ;;  %v670_v53 = vpop.f32.mrb[1].mxu0  ;;  %v681_v57 = vadd.f32 %v680_v54, %v628_v42  ;;  %v682_v59 = vpop.f32.mrb[10].mxu1 }
 0x128   :  { %v830_v56 = vadd.f32 %v670_v53, %v565_v47  ;;  %v672_v58 = vpop.f32.mrb[2].mxu0  ;;  %v691_v61 = vmax.f32 %v679_v52, 0.0  ;;  %v683_v63 = vadd.f32 %v682_v59, %v630_v44  ;;  %v684_v1 = vpop.f32.mrb[11].mxu1 }
 0x129   :  { %v687_v60 = vmax.f32 %v828_v51, 0.0  ;;  %v832_v62 = vadd.f32 %v672_v58, %v567_v50  ;;  %v674_v0 = vpop.f32.mrb[3].mxu0  ;;  %v692_v3 = vmax.f32 %v681_v57, 0.0  ;;  %v685_v5 = vadd.f32 %v684_v1, %v632_v45 }
 0x12a   :  { %v688_v2 = vmax.f32 %v830_v56, 0.0  ;;  %v834_v4 = vadd.f32 %v674_v0, %v569_v55  ;;  %v693_v7 = vmax.f32 %v683_v63, 0.0 }
 0x12b   :  { %v689_v6 = vmax.f32 %v832_v62, 0.0  ;;  %v817_v9 = vpack.c.bf16 %v692_v3, %v691_v61  ;;  %v694_v11 = vmax.f32 %v685_v5, 0.0 }
 0x12c   :  { %v815_v8 = vpack.c.bf16 %v688_v2, %v687_v60  ;;  %v690_v10 = vmax.f32 %v834_v4, 0.0 }
 0x12d   :  { %721 = vst [vmem:[%s1259_s3 + $0x10] sm:$0xff] %v817_v9  ;;  %v818_v13 = vpack.c.bf16 %v694_v11, %v693_v7 }
 0x12e   :  { %719 = vst [vmem:[%s1259_s3] sm:$0xff] %v815_v8  ;;  %v816_v12 = vpack.c.bf16 %v690_v10, %v689_v6 }
 0x12f   :  { %722 = vst [vmem:[%s1259_s3 + $0x18] sm:$0xff] %v818_v13 }
 0x130   :  { %720 = vst [vmem:[%s1259_s3 + $0x8] sm:$0xff] %v816_v12 }

// kernel: vae_forward.15
= control target key start
LH: loop header
LB: loop body
LE: loop exit
PB: predicated region body
PF: predicated region fallthrough
CT: control target
= control target key end

     0   :  { %vm558_vm0 = vcmask 523264   ;;  %s1733_s1 = inlined_call_operand.vmem [shape: bf16[576,128], index: 1, kind: input, shape index: {}]   ;;  %s1734_s0 = inlined_call_operand.vmem [shape: bf16[128,576], index: 0, kind: input, shape index: {}]   ;;  %s1735_s2 = inlined_call_operand.vmem [shape: f32[1,128], index: 2, kind: input, shape index: {}]   ;;  %s1736_s3 = inlined_call_operand.vmem [shape: bf16[128,128], index: 3, kind: output, shape index: {}]  }
   0x1   :  { %v1310_v0 = vld [vmem:[%s1733_s1 + $0x40] sm:$0xff]   ;;  %v1314_v4 = vld [vmem:[%s1733_s1 + $0x48] sm:$0xff]   ;;  %v1318_v8 = vld [vmem:[%s1733_s1 + $0x50] sm:$0xff]  }
   0x2   :  { %v1311_v1 = vld [vmem:[%s1733_s1 + $0xc0] sm:$0xff]   ;;  %1138 = vmatprep.subr.bf16.mxu0 %v1310_v0  ;;  %v1315_v5 = vld [vmem:[%s1733_s1 + $0xc8] sm:$0xff]   ;;  %v1319_v9 = vld [vmem:[%s1733_s1 + $0xd0] sm:$0xff]  }
   0x3   :  { %v1312_v2 = vld [vmem:[%s1733_s1] sm:$0xff]   ;;  %1202 = vmatprep.subr.bf16.mxu1 %v1311_v1  ;;  %v1316_v6 = vld [vmem:[%s1733_s1 + $0x8] sm:$0xff]   ;;  %v1320_v10 = vld [vmem:[%s1733_s1 + $0x10] sm:$0xff]  }
   0x4   :  { %v1313_v3 = vld [vmem:[%s1733_s1 + $0x80] sm:$0xff]   ;;  %1139 = vmatpush3.bf16.msra.mxu0 %v1312_v2  ;;  %v1317_v7 = vld [vmem:[%s1733_s1 + $0x88] sm:$0xff]   ;;  %v1321_v11 = vld [vmem:[%s1733_s1 + $0x90] sm:$0xff]  }
   0x5   :  { %1203 = vmatpush3.bf16.msra.mxu1 %v1313_v3  ;;  %1140 = vmatprep.subr.bf16.mxu0 %v1314_v4  ;;  %v1322_v12 = vld [vmem:[%s1733_s1 + $0x58] sm:$0xff]   ;;  %v1326_v16 = vld [vmem:[%s1733_s1 + $0x60] sm:$0xff]   ;;  %v1330_v20 = vld [vmem:[%s1733_s1 + $0x68] sm:$0xff]  }
   0x6   :  { %1204 = vmatprep.subr.bf16.mxu1 %v1315_v5  ;;  %v1323_v13 = vld [vmem:[%s1733_s1 + $0xd8] sm:$0xff]   ;;  %v1327_v17 = vld [vmem:[%s1733_s1 + $0xe0] sm:$0xff]   ;;  %v1331_v21 = vld [vmem:[%s1733_s1 + $0xe8] sm:$0xff]  }
   0x7   :  { %v1324_v14 = vld [vmem:[%s1733_s1 + $0x18] sm:$0xff]   ;;  %v1328_v18 = vld [vmem:[%s1733_s1 + $0x20] sm:$0xff]   ;;  %v1332_v22 = vld [vmem:[%s1733_s1 + $0x28] sm:$0xff]  }
   0x8   :  { %1141 = vmatpush3.bf16.msra.mxu0 %v1316_v6  ;;  %v1325_v15 = vld [vmem:[%s1733_s1 + $0x98] sm:$0xff]   ;;  %v1329_v19 = vld [vmem:[%s1733_s1 + $0xa0] sm:$0xff]   ;;  %v1333_v23 = vld [vmem:[%s1733_s1 + $0xa8] sm:$0xff]  }
   0x9   :  { %1205 = vmatpush3.bf16.msra.mxu1 %v1317_v7  ;;  %1142 = vmatprep.subr.bf16.mxu0 %v1318_v8  ;;  %v1334_v24 = vld [vmem:[%s1733_s1 + $0x70] sm:$0xff]   ;;  %v1338_v28 = vld [vmem:[%s1733_s1 + $0x78] sm:$0xff]   ;;  %v1347_v35 = vld [vmem:[%s1734_s0 + $0xc] ss:$20 sps:$4 sm:$0xff]  }
   0xa   :  { %1206 = vmatprep.subr.bf16.mxu1 %v1319_v9  ;;  %v1335_v25 = vld [vmem:[%s1733_s1 + $0xf0] sm:$0xff]   ;;  %v1339_v29 = vld [vmem:[%s1733_s1 + $0xf8] sm:$0xff]   ;;  %v1348_v36 = vld [vmem:[%s1733_s1 + $0x100] sm:$0xff]   ;;  %712 = vmatprep.mubr.bf16.mxu1 %v1347_v35 }
   0xb   :  { %v1336_v26 = vld [vmem:[%s1733_s1 + $0x30] sm:$0xff]   ;;  %v1340_v30 = vld [vmem:[%s1733_s1 + $0x38] sm:$0xff]   ;;  %v1349_v37 = vld [vmem:[%s1734_s0 + $0x2c] ss:$20 sps:$4 sm:$0xff]  }
   0xc   :  { %1143 = vmatpush3.bf16.msra.mxu0 %v1320_v10  ;;  %v1337_v27 = vld [vmem:[%s1733_s1 + $0xb0] sm:$0xff]   ;;  %v1341_v31 = vld [vmem:[%s1733_s1 + $0xb8] sm:$0xff]   ;;  %v1361_v42 = vld [vmem:[%s1733_s1 + $0x108] sm:$0xff]  }
   0xd   :  { %1207 = vmatpush3.bf16.msra.mxu1 %v1321_v11  ;;  %1144 = vmatprep.subr.bf16.mxu0 %v1322_v12  ;;  %v1342_v32 = vld [vmem:[%s1734_s0] ss:$20 sps:$4 sm:$0xff]   ;;  %v1344_v33 = vld [vmem:[%s1734_s0 + $0x4] ss:$20 sps:$4 sm:$0xff]   ;;  %v1345_v34 = vld [vmem:[%s1734_s0 + $0x8] ss:$20 sps:$4 sm:$0xff]  }
   0xe   :  { %1208 = vmatprep.subr.bf16.mxu1 %v1323_v13  ;;  %615 = vmatprep.mubr.bf16.mxu0 %v1344_v33  ;;  %v1351_v38 = vld [vmem:[%s1734_s0 + $0x34] ss:$20 sps:$4 sm:$0xff]   ;;  %v1354_v40 = vld [vmem:[%s1734_s0 + $0x30] ss:$20 sps:$4 sm:$0xff]   ;;  %v1360_v45 = vld [vmem:[%s1734_s0 + $0x58] ss:$20 sps:$4 sm:$0xff]  }
   0xf   :  { %v1353_v39 = vld [vmem:[%s1734_s0 + $0x28] ss:$20 sps:$4 sm:$0xff]   ;;  %v1359_v44 = vld [vmem:[%s1734_s0 + $0x50] ss:$20 sps:$4 sm:$0xff]   ;;  %v1366_v50 = vld [vmem:[%s1734_s0 + $0x78] ss:$20 sps:$4 sm:$0xff]  }
  0x10   :  { %1145 = vmatpush3.bf16.msra.mxu0 %v1324_v14  ;;  %v1355_v41 = vld [vmem:[%s1734_s0 + $0x54] ss:$20 sps:$4 sm:$0xff]   ;;  %v1357_v43 = vld [vmem:[%s1734_s0 + $0x5c] ss:$20 sps:$4 sm:$0xff]   ;;  %v1364_v48 = vld [vmem:[%s1734_s0 + $0x84] ss:$20 sps:$4 sm:$0xff]  }
  0x11   :  { %1209 = vmatpush3.bf16.msra.mxu1 %v1325_v15  ;;  %1146 = vmatprep.subr.bf16.mxu0 %v1326_v16  ;;  %v1374_v46 = vld [vmem:[%s1733_s1 + $0x110] sm:$0xff]   ;;  %v1387_v49 = vld [vmem:[%s1733_s1 + $0x118] sm:$0xff]   ;;  %v1370_v53 = vld [vmem:[%s1734_s0 + $0xac] ss:$20 sps:$4 sm:$0xff]  }
  0x12   :  { %1210 = vmatprep.subr.bf16.mxu1 %v1327_v17  ;;  %v1362_v47 = vld [vmem:[%s1734_s0 + $0x7c] ss:$20 sps:$4 sm:$0xff]   ;;  %v1367_v51 = vld [vmem:[%s1734_s0 + $0x80] ss:$20 sps:$4 sm:$0xff]   ;;  %v1368_v52 = vld [vmem:[%s1734_s0 + $0xa4] ss:$20 sps:$4 sm:$0xff]  }
  0x13   :  { %v1372_v54 = vld [vmem:[%s1734_s0 + $0xa0] ss:$20 sps:$4 sm:$0xff]   ;;  %v1373_v55 = vld [vmem:[%s1734_s0 + $0xa8] ss:$20 sps:$4 sm:$0xff]   ;;  %v1380_v59 = vld [vmem:[%s1734_s0 + $0xd0] ss:$20 sps:$4 sm:$0xff]  }
  0x14   :  { %1147 = vmatpush3.bf16.msra.mxu0 %v1328_v18  ;;  %v1375_v56 = vld [vmem:[%s1734_s0 + $0xcc] ss:$20 sps:$4 sm:$0xff]   ;;  %v1377_v57 = vld [vmem:[%s1734_s0 + $0xd4] ss:$20 sps:$4 sm:$0xff]   ;;  %v1383_v61 = vld [vmem:[%s1734_s0 + $0xfc] ss:$20 sps:$4 sm:$0xff]  }
  0x15   :  { %1211 = vmatpush3.bf16.msra.mxu1 %v1329_v19  ;;  %1148 = vmatprep.subr.bf16.mxu0 %v1330_v20  ;;  %v1379_v58 = vld [vmem:[%s1734_s0 + $0xc8] ss:$20 sps:$4 sm:$0xff]   ;;  %v1385_v62 = vld [vmem:[%s1734_s0 + $0xf0] ss:$20 sps:$4 sm:$0xff]   ;;  %v1386_v63 = vld [vmem:[%s1734_s0 + $0xf8] ss:$20 sps:$4 sm:$0xff]  }
  0x16   :  { %1212 = vmatprep.subr.bf16.mxu1 %v1331_v21  ;;  %v1381_v60 = vld [vmem:[%s1734_s0 + $0xf4] ss:$20 sps:$4 sm:$0xff]   ;;  %v1388_v0 = vld [vmem:[%s1734_s0 + $0x11c] ss:$20 sps:$4 sm:$0xff]   ;;  %v1390_v1 = vld [vmem:[%s1734_s0 + $0x124] ss:$20 sps:$4 sm:$0xff]  }
  0x17   :  { %v1392_v2 = vld [vmem:[%s1734_s0 + $0x118] ss:$20 sps:$4 sm:$0xff]   ;;  %v1393_v3 = vld [vmem:[%s1734_s0 + $0x120] ss:$20 sps:$4 sm:$0xff]   ;;  %v1394_v4 = vld [vmem:[%s1734_s0 + $0x10] ss:$20 sps:$4 sm:$0xff]  }
  0x18   :  { %1149 = vmatpush3.bf16.msra.mxu0 %v1332_v22  ;;  %v1395_v5 = vld [vmem:[%s1734_s0 + $0xb0] ss:$20 sps:$4 sm:$0xff]   ;;  %v1396_v6 = vld [vmem:[%s1734_s0 + $0x38] ss:$20 sps:$4 sm:$0xff]   ;;  %v1398_v8 = vld [vmem:[%s1734_s0 + $0x60] ss:$20 sps:$4 sm:$0xff]  }
  0x19   :  { %1213 = vmatpush3.bf16.msra.mxu1 %v1333_v23  ;;  %1150 = vmatprep.subr.bf16.mxu0 %v1334_v24  ;;  %v1397_v7 = vld [vmem:[%s1734_s0 + $0xd8] ss:$20 sps:$4 sm:$0xff]   ;;  %v1399_v9 = vld [vmem:[%s1734_s0 + $0x100] ss:$20 sps:$4 sm:$0xff]   ;;  %v1400_v10 = vld [vmem:[%s1734_s0 + $0x88] ss:$20 sps:$4 sm:$0xff]  }
  0x1a   :  { %1214 = vmatprep.subr.bf16.mxu1 %v1335_v25  ;;  %v1401_v11 = vld [vmem:[%s1734_s0 + $0x128] ss:$20 sps:$4 sm:$0xff]   ;;  %v1661_v14 = vld [vmem:[%s1735_s2] ss:$0 sm:$0xff] }
  0x1c   :  { %1151 = vmatpush3.bf16.msra.mxu0 %v1336_v26 }
  0x1d   :  { %1215 = vmatpush3.bf16.msra.mxu1 %v1337_v27  ;;  %1152 = vmatprep.subr.bf16.mxu0 %v1338_v28 }
  0x1e   :  { %1216 = vmatprep.subr.bf16.mxu1 %v1339_v29 }
  0x20   :  { %1153 = vmatpush3.bf16.msra.mxu0 %v1340_v30 }
  0x21   :  { %1217 = vmatpush3.bf16.msra.mxu1 %v1341_v31  ;;  %1278 = vmatprep.subr.bf16.mxu0 %v1348_v36 }
  0x22   :  { %1302 = vmatprep.subr.bf16.mxu1 %v1348_v36 }
  0x23   :  { %616 = vmatmul.mubr.bf16.vlgmr.msra.gmra.mrb[0].mxu0 %v1342_v32 }
  0x24   :  { %713 = vmatmul.mubr.bf16.vlgmr.msra.gmra.mrb[0].mxu1 %v1345_v34  ;;  %1279 = vmatpush3.bf16.msra.mxu0 %v1348_v36 }
  0x25   :  { %1306 = vmatpush3.bf16.msra.mxu1 %v1348_v36  ;;  %623 = vmatprep.mubr.bf16.mxu0 %v1349_v37 }
  0x26   :  { %720 = vmatprep.mubr.bf16.mxu1 %v1351_v38  ;;  %1280 = vmatprep.subr.bf16.mxu0 %v1361_v42 }
  0x27   :  { %1303 = vmatprep.subr.bf16.mxu1 %v1361_v42 }
  0x28   :  { %1281 = vmatpush3.bf16.msra.mxu0 %v1361_v42 }
  0x29   :  { %1307 = vmatpush3.bf16.msra.mxu1 %v1361_v42  ;;  %1282 = vmatprep.subr.bf16.mxu0 %v1374_v46 }
  0x2a   :  { %1304 = vmatprep.subr.bf16.mxu1 %v1374_v46 }
  0x2b   :  { %624 = vmatmul.mubr.bf16.gmra.mrb[4].mxu0 %v1353_v39 }
  0x2c   :  { %721 = vmatmul.mubr.bf16.gmra.mrb[4].mxu1 %v1354_v40  ;;  %631 = vmatprep.mubr.bf16.mxu0 %v1355_v41 }
  0x2d   :  { %728 = vmatprep.mubr.bf16.mxu1 %v1357_v43  ;;  %1283 = vmatpush3.bf16.msra.mxu0 %v1374_v46 }
  0x2e   :  { %1308 = vmatpush3.bf16.msra.mxu1 %v1374_v46  ;;  %1284 = vmatprep.subr.bf16.mxu0 %v1387_v49 }
  0x2f   :  { %1305 = vmatprep.subr.bf16.mxu1 %v1387_v49 }
  0x31   :  { %1285 = vmatpush3.bf16.msra.mxu0 %v1387_v49 }
  0x32   :  { %1309 = vmatpush3.bf16.msra.mxu1 %v1387_v49 }
  0x33   :  { %632 = vmatmul.mubr.bf16.gmra.mrb[8].mxu0 %v1359_v44 }
  0x34   :  { %729 = vmatmul.mubr.bf16.gmra.mrb[8].mxu1 %v1360_v45  ;;  %639 = vmatprep.mubr.bf16.mxu0 %v1362_v47 }
  0x35   :  { %736 = vmatprep.mubr.bf16.mxu1 %v1364_v48 }
  0x3b   :  { %640 = vmatmul.mubr.bf16.gmra.mrb[12].mxu0 %v1366_v50 }
  0x3c   :  { %737 = vmatmul.mubr.bf16.gmra.mrb[12].mxu1 %v1367_v51  ;;  %647 = vmatprep.mubr.bf16.mxu0 %v1368_v52 }
  0x3d   :  { %744 = vmatprep.mubr.bf16.mxu1 %v1370_v53 }
  0x43   :  { %648 = vmatmul.mubr.bf16.gmra.mrb[16].mxu0 %v1372_v54 }
  0x44   :  { %745 = vmatmul.mubr.bf16.gmra.mrb[16].mxu1 %v1373_v55  ;;  %655 = vmatprep.mubr.bf16.mxu0 %v1375_v56 }
  0x45   :  { %752 = vmatprep.mubr.bf16.mxu1 %v1377_v57 }
  0x4b   :  { %656 = vmatmul.mubr.bf16.gmra.mrb[20].mxu0 %v1379_v58 }
  0x4c   :  { %753 = vmatmul.mubr.bf16.gmra.mrb[20].mxu1 %v1380_v59  ;;  %663 = vmatprep.mubr.bf16.mxu0 %v1381_v60 }
  0x4d   :  { %760 = vmatprep.mubr.bf16.mxu1 %v1383_v61 }
  0x53   :  { %664 = vmatmul.mubr.bf16.gmra.mrb[24].mxu0 %v1385_v62 }
  0x54   :  { %761 = vmatmul.mubr.bf16.gmra.mrb[24].mxu1 %v1386_v63  ;;  %671 = vmatprep.mubr.bf16.mxu0 %v1388_v0 }
  0x55   :  { %768 = vmatprep.mubr.bf16.mxu1 %v1390_v1 }
  0x5b   :  { %672 = vmatmul.mubr.bf16.gmra.mrb[28].mxu0 %v1392_v2 }
  0x5c   :  { %769 = vmatmul.mubr.bf16.gmra.mrb[28].mxu1 %v1393_v3  ;;  %1286 = vmatprep.mubr.msk.bf16.mxu0 %vm558_vm0, %v1394_v4 }
  0x5d   :  { %1294 = vmatprep.mubr.msk.bf16.mxu1 %vm558_vm0, %v1395_v5 }
  0x63   :  { %1287 = vmatmul.mubr.msk.bf16.vlgmr.msra.gmra.mrb[32].mxu0 %vm558_vm0, %v1396_v6 }
  0x64   :  { %1295 = vmatmul.mubr.msk.bf16.vlgmr.msra.gmra.mrb[32].mxu1 %vm558_vm0, %v1397_v7  ;;  %1290 = vmatprep.mubr.msk.bf16.mxu0 %vm558_vm0, %v1398_v8 }
  0x65   :  { %1298 = vmatprep.mubr.msk.bf16.mxu1 %vm558_vm0, %v1399_v9 }
  0x6b   :  { %1291 = vmatmul.mubr.msk.bf16.gmra.mrb[36].mxu0 %vm558_vm0, %v1400_v10 }
  0x6c   :  { %1299 = vmatmul.mubr.msk.bf16.gmra.mrb[36].mxu1 %vm558_vm0, %v1401_v11 }
  0xf6   :  { %v1154_v12 = vpop.f32.mrb[0].mxu0 }
  0xf7   :  { %v1218_v13 = vpop.f32.mrb[0].mxu1  ;;  %v1155_v15 = vpop.f32.mrb[1].mxu0 }
  0xf8   :  { %v1156_v16 = vadd.f32 %v1155_v15, %v1154_v12  ;;  %v1219_v17 = vpop.f32.mrb[1].mxu1  ;;  %v1157_v18 = vpop.f32.mrb[2].mxu0 }
  0xf9   :  { %v1220_v19 = vadd.f32 %v1219_v17, %v1218_v13  ;;  %v1221_v20 = vpop.f32.mrb[2].mxu1  ;;  %v1158_v21 = vpop.f32.mrb[3].mxu0 }
  0xfa   :  { %v618_v22 = vadd.f32 %v1156_v16, %v1661_v14  ;;  %v1159_v23 = vadd.f32 %v1158_v21, %v1157_v18  ;;  %v1222_v24 = vpop.f32.mrb[3].mxu1 }
  0xfb   :  { %v1223_v25 = vadd.f32 %v1222_v24, %v1221_v20 }
  0xfc   :  { %v621_v26 = vadd.f32 %v1159_v23, %v1661_v14  ;;  %v1665_v27 = vadd.f32 %v1220_v19, %v618_v22 }
  0xfe   :  { %v1160_v28 = vpop.f32.mrb[4].mxu0  ;;  %v1667_v29 = vadd.f32 %v1223_v25, %v621_v26 }
  0xff   :  { %v1224_v30 = vpop.f32.mrb[4].mxu1  ;;  %v1161_v31 = vpop.f32.mrb[5].mxu0 }
 0x100   :  { %v1162_v32 = vadd.f32 %v1161_v31, %v1160_v28  ;;  %v1225_v33 = vpop.f32.mrb[5].mxu1  ;;  %v1163_v34 = vpop.f32.mrb[6].mxu0 }
 0x101   :  { %v1226_v35 = vadd.f32 %v1225_v33, %v1224_v30  ;;  %v1227_v36 = vpop.f32.mrb[6].mxu1  ;;  %v1164_v37 = vpop.f32.mrb[7].mxu0 }
 0x102   :  { %v626_v38 = vadd.f32 %v1162_v32, %v1661_v14  ;;  %v1165_v39 = vadd.f32 %v1164_v37, %v1163_v34  ;;  %v1228_v40 = vpop.f32.mrb[7].mxu1 }
 0x103   :  { %v1229_v41 = vadd.f32 %v1228_v40, %v1227_v36 }
 0x104   :  { %v629_v42 = vadd.f32 %v1165_v39, %v1661_v14  ;;  %v1671_v43 = vadd.f32 %v1226_v35, %v626_v38 }
 0x106   :  { %v1166_v44 = vpop.f32.mrb[8].mxu0  ;;  %v1673_v45 = vadd.f32 %v1229_v41, %v629_v42 }
 0x107   :  { %v1230_v46 = vpop.f32.mrb[8].mxu1  ;;  %v1167_v47 = vpop.f32.mrb[9].mxu0 }
 0x108   :  { %v1168_v48 = vadd.f32 %v1167_v47, %v1166_v44  ;;  %v1231_v49 = vpop.f32.mrb[9].mxu1  ;;  %v1169_v50 = vpop.f32.mrb[10].mxu0 }
 0x109   :  { %v1232_v51 = vadd.f32 %v1231_v49, %v1230_v46  ;;  %v1233_v52 = vpop.f32.mrb[10].mxu1  ;;  %v1170_v53 = vpop.f32.mrb[11].mxu0 }
 0x10a   :  { %v634_v54 = vadd.f32 %v1168_v48, %v1661_v14  ;;  %v1171_v55 = vadd.f32 %v1170_v53, %v1169_v50  ;;  %v1234_v56 = vpop.f32.mrb[11].mxu1 }
 0x10b   :  { %v1235_v57 = vadd.f32 %v1234_v56, %v1233_v52 }
 0x10c   :  { %v637_v58 = vadd.f32 %v1171_v55, %v1661_v14  ;;  %v1677_v59 = vadd.f32 %v1232_v51, %v634_v54 }
 0x10e   :  { %v1172_v60 = vpop.f32.mrb[12].mxu0  ;;  %v1679_v61 = vadd.f32 %v1235_v57, %v637_v58 }
 0x10f   :  { %v1236_v62 = vpop.f32.mrb[12].mxu1  ;;  %v1173_v63 = vpop.f32.mrb[13].mxu0 }
 0x110   :  { %v1174_v0 = vadd.f32 %v1173_v63, %v1172_v60  ;;  %v1237_v1 = vpop.f32.mrb[13].mxu1  ;;  %v1175_v2 = vpop.f32.mrb[14].mxu0 }
 0x111   :  { %v1238_v3 = vadd.f32 %v1237_v1, %v1236_v62  ;;  %v1239_v4 = vpop.f32.mrb[14].mxu1  ;;  %v1176_v5 = vpop.f32.mrb[15].mxu0 }
 0x112   :  { %v642_v6 = vadd.f32 %v1174_v0, %v1661_v14  ;;  %v1177_v7 = vadd.f32 %v1176_v5, %v1175_v2  ;;  %v1240_v8 = vpop.f32.mrb[15].mxu1 }
 0x113   :  { %v1241_v9 = vadd.f32 %v1240_v8, %v1239_v4 }
 0x114   :  { %v645_v10 = vadd.f32 %v1177_v7, %v1661_v14  ;;  %v1683_v11 = vadd.f32 %v1238_v3, %v642_v6 }
 0x116   :  { %v1178_v12 = vpop.f32.mrb[16].mxu0  ;;  %v1685_v13 = vadd.f32 %v1241_v9, %v645_v10 }
 0x117   :  { %v1242_v15 = vpop.f32.mrb[16].mxu1  ;;  %v1179_v16 = vpop.f32.mrb[17].mxu0 }
 0x118   :  { %v1180_v17 = vadd.f32 %v1179_v16, %v1178_v12  ;;  %v1243_v18 = vpop.f32.mrb[17].mxu1  ;;  %v1181_v19 = vpop.f32.mrb[18].mxu0 }
 0x119   :  { %v1244_v20 = vadd.f32 %v1243_v18, %v1242_v15  ;;  %v1245_v21 = vpop.f32.mrb[18].mxu1  ;;  %v1182_v22 = vpop.f32.mrb[19].mxu0 }
 0x11a   :  { %v650_v23 = vadd.f32 %v1180_v17, %v1661_v14  ;;  %v1183_v24 = vadd.f32 %v1182_v22, %v1181_v19  ;;  %v1246_v25 = vpop.f32.mrb[19].mxu1 }
 0x11b   :  { %v1247_v26 = vadd.f32 %v1246_v25, %v1245_v21 }
 0x11c   :  { %v653_v28 = vadd.f32 %v1183_v24, %v1661_v14  ;;  %v747_v30 = vadd.f32 %v1244_v20, %v650_v23 }
 0x11e   :  { %v1184_v31 = vpop.f32.mrb[20].mxu0  ;;  %v1689_v32 = vadd.f32 %v1247_v26, %v653_v28 }
 0x11f   :  { %v1248_v33 = vpop.f32.mrb[20].mxu1  ;;  %v1185_v34 = vpop.f32.mrb[21].mxu0 }
 0x120   :  { %v1186_v35 = vadd.f32 %v1185_v34, %v1184_v31  ;;  %v1249_v36 = vpop.f32.mrb[21].mxu1  ;;  %v1187_v37 = vpop.f32.mrb[22].mxu0 }
 0x121   :  { %v1250_v38 = vadd.f32 %v1249_v36, %v1248_v33  ;;  %v1251_v39 = vpop.f32.mrb[22].mxu1  ;;  %v1188_v40 = vpop.f32.mrb[23].mxu0 }
 0x122   :  { %v658_v41 = vadd.f32 %v1186_v35, %v1661_v14  ;;  %v1189_v42 = vadd.f32 %v1188_v40, %v1187_v37  ;;  %v1252_v44 = vpop.f32.mrb[23].mxu1 }
 0x123   :  { %v1253_v46 = vadd.f32 %v1252_v44, %v1251_v39 }
 0x124   :  { %v661_v47 = vadd.f32 %v1189_v42, %v1661_v14  ;;  %v755_v48 = vadd.f32 %v1250_v38, %v658_v41 }
 0x126   :  { %v1190_v49 = vpop.f32.mrb[24].mxu0  ;;  %v758_v50 = vadd.f32 %v1253_v46, %v661_v47 }
 0x127   :  { %v1254_v51 = vpop.f32.mrb[24].mxu1  ;;  %v1191_v52 = vpop.f32.mrb[25].mxu0 }
 0x128   :  { %v1192_v53 = vadd.f32 %v1191_v52, %v1190_v49  ;;  %v1255_v54 = vpop.f32.mrb[25].mxu1  ;;  %v1193_v55 = vpop.f32.mrb[26].mxu0 }
 0x129   :  { %v1256_v56 = vadd.f32 %v1255_v54, %v1254_v51  ;;  %v1257_v57 = vpop.f32.mrb[26].mxu1  ;;  %v1194_v58 = vpop.f32.mrb[27].mxu0 }
 0x12a   :  { %v666_v60 = vadd.f32 %v1192_v53, %v1661_v14  ;;  %v1195_v62 = vadd.f32 %v1194_v58, %v1193_v55  ;;  %v1258_v63 = vpop.f32.mrb[27].mxu1 }
 0x12b   :  { %v1259_v0 = vadd.f32 %v1258_v63, %v1257_v57 }
 0x12c   :  { %v669_v1 = vadd.f32 %v1195_v62, %v1661_v14  ;;  %v763_v2 = vadd.f32 %v1256_v56, %v666_v60 }
 0x12e   :  { %v1196_v3 = vpop.f32.mrb[28].mxu0  ;;  %v1695_v4 = vadd.f32 %v1259_v0, %v669_v1 }
 0x12f   :  { %v1260_v5 = vpop.f32.mrb[28].mxu1  ;;  %v1197_v6 = vpop.f32.mrb[29].mxu0 }
 0x130   :  { %v1198_v7 = vadd.f32 %v1197_v6, %v1196_v3  ;;  %v1261_v8 = vpop.f32.mrb[29].mxu1  ;;  %v1199_v9 = vpop.f32.mrb[30].mxu0 }
 0x131   :  { %v1262_v10 = vadd.f32 %v1261_v8, %v1260_v5  ;;  %v1263_v12 = vpop.f32.mrb[30].mxu1  ;;  %v1200_v15 = vpop.f32.mrb[31].mxu0 }
 0x132   :  { %v674_v16 = vadd.f32 %v1198_v7, %v1661_v14  ;;  %v1201_v17 = vadd.f32 %v1200_v15, %v1199_v9  ;;  %v1264_v18 = vpop.f32.mrb[31].mxu1 }
 0x133   :  { %v1265_v19 = vadd.f32 %v1264_v18, %v1263_v12 }
 0x134   :  { %v677_v20 = vadd.f32 %v1201_v17, %v1661_v14  ;;  %v771_v21 = vadd.f32 %v1262_v10, %v674_v16 }
 0x136   :  { %v1288_v22 = vpop.f32.mrb[32].mxu0  ;;  %v774_v23 = vadd.f32 %v1265_v19, %v677_v20 }
 0x137   :  { %v820_v24 = vadd.f32 %v1288_v22, %v1671_v43  ;;  %v1296_v25 = vpop.f32.mrb[32].mxu1  ;;  %v811_v26 = vpop.f32.mrb[33].mxu0 }
 0x138   :  { %v852_v28 = vadd.f32 %v1296_v25, %v755_v48  ;;  %v812_v31 = vadd.f32 %v811_v26, %v1665_v27  ;;  %v843_v33 = vpop.f32.mrb[33].mxu1  ;;  %v1289_v34 = vpop.f32.mrb[34].mxu0 }
 0x139   :  { %v844_v35 = vadd.f32 %v843_v33, %v747_v30  ;;  %v823_v36 = vadd.f32 %v1289_v34, %v1673_v45  ;;  %v1297_v37 = vpop.f32.mrb[34].mxu1  ;;  %v814_v38 = vpop.f32.mrb[35].mxu0  ;;  %v876_v41 = vmax.f32 %v820_v24, 0.0 }
 0x13a   :  { %v855_v39 = vadd.f32 %v1297_v37, %v758_v50  ;;  %v815_v14 = vadd.f32 %v814_v38, %v1667_v29  ;;  %v846_v40 = vpop.f32.mrb[35].mxu1  ;;  %v884_v44 = vmax.f32 %v852_v28, 0.0  ;;  %v874_v46 = vmax.f32 %v812_v31, 0.0 }
 0x13b   :  { %v877_v42 = vmax.f32 %v823_v36, 0.0  ;;  %v847_v43 = vadd.f32 %v846_v40, %v1689_v32  ;;  %v882_v27 = vmax.f32 %v844_v35, 0.0 }
 0x13c   :  { %v885_v47 = vmax.f32 %v855_v39, 0.0  ;;  %v875_v48 = vmax.f32 %v815_v14, 0.0 }
 0x13d   :  { %v1099_v49 = vpack.c.bf16 %v877_v42, %v876_v41  ;;  %v883_v51 = vmax.f32 %v847_v43, 0.0 }
 0x13e   :  { %v1119_v30 = vpack.c.bf16 %v885_v47, %v884_v44  ;;  %v1094_v52 = vpack.c.bf16 %v875_v48, %v874_v46  ;;  %v1292_v45 = vpop.f32.mrb[36].mxu0 }
 0x13f   :  { %1131 = vst [vmem:[%s1736_s3 + $0x8] sm:$0xff] %v1099_v49   ;;  %v1114_v29 = vpack.c.bf16 %v883_v51, %v882_v27  ;;  %v836_v50 = vadd.f32 %v1292_v45, %v1683_v11  ;;  %v1300_v53 = vpop.f32.mrb[36].mxu1  ;;  %v827_v54 = vpop.f32.mrb[37].mxu0 }
 0x140   :  { %1135 = vst [vmem:[%s1736_s3 + $0x28] sm:$0xff] %v1119_v30   ;;  %1095 = vst [vmem:[%s1736_s3] sm:$0xff] %v1094_v52   ;;  %v868_v32 = vadd.f32 %v1300_v53, %v771_v21  ;;  %v828_v55 = vadd.f32 %v827_v54, %v1677_v59  ;;  %v859_v56 = vpop.f32.mrb[37].mxu1  ;;  %v1293_v57 = vpop.f32.mrb[38].mxu0 }
 0x141   :  { %1134 = vst [vmem:[%s1736_s3 + $0x20] sm:$0xff] %v1114_v29   ;;  %v860_v11 = vadd.f32 %v859_v56, %v763_v2  ;;  %v839_v58 = vadd.f32 %v1293_v57, %v1685_v13  ;;  %v1301_v60 = vpop.f32.mrb[38].mxu1  ;;  %v830_v62 = vpop.f32.mrb[39].mxu0  ;;  %v880_v3 = vmax.f32 %v836_v50, 0.0 }
 0x142   :  { %v871_v63 = vadd.f32 %v1301_v60, %v774_v23  ;;  %v831_v0 = vadd.f32 %v830_v62, %v1679_v61  ;;  %v862_v1 = vpop.f32.mrb[39].mxu1  ;;  %v888_v59 = vmax.f32 %v868_v32, 0.0  ;;  %v878_v7 = vmax.f32 %v828_v55, 0.0 }
 0x143   :  { %v881_v5 = vmax.f32 %v839_v58, 0.0  ;;  %v863_v6 = vadd.f32 %v862_v1, %v1695_v4  ;;  %v886_v10 = vmax.f32 %v860_v11, 0.0 }
 0x144   :  { %v889_v8 = vmax.f32 %v871_v63, 0.0  ;;  %v879_v9 = vmax.f32 %v831_v0, 0.0 }
 0x145   :  { %v1109_v12 = vpack.c.bf16 %v881_v5, %v880_v3  ;;  %v887_v15 = vmax.f32 %v863_v6, 0.0 }
 0x146   :  { %v1129_v2 = vpack.c.bf16 %v889_v8, %v888_v59  ;;  %v1104_v16 = vpack.c.bf16 %v879_v9, %v878_v7 }
 0x147   :  { %1133 = vst [vmem:[%s1736_s3 + $0x18] sm:$0xff] %v1109_v12   ;;  %v1124_v13 = vpack.c.bf16 %v887_v15, %v886_v10 }
 0x148   :  { %1137 = vst [vmem:[%s1736_s3 + $0x38] sm:$0xff] %v1129_v2   ;;  %1132 = vst [vmem:[%s1736_s3 + $0x10] sm:$0xff] %v1104_v16  }
 0x149   :  { %1136 = vst [vmem:[%s1736_s3 + $0x30] sm:$0xff] %v1124_v13  }

// kernel: vae_forward.16
= control target key start
LH: loop header
LB: loop body
LE: loop exit
PB: predicated region body
PF: predicated region fallthrough
CT: control target
= control target key end

     0   :  { %s1806_s12 = smov 0   ;;  %s2032_s0 = inlined_call_operand.vmem [shape: bf16[512,288], index: 0, kind: input, shape index: {}]   ;;  %s2033_s1 = inlined_call_operand.vmem [shape: bf16[288,128], index: 1, kind: input, shape index: {}]   ;;  %s2034_s2 = inlined_call_operand.vmem [shape: f32[1,128], index: 2, kind: input, shape index: {}]   ;;  %s2035_s3 = inlined_call_operand.vmem [shape: bf16[512,128], index: 3, kind: output, shape index: {}]  }
   0x1 LB: > { %s1252_s13 = sadd.s32 4294967295, %s1784_s12   ;;  %p1256_p0 = scmp.ge.s32.totalorder %s1784_s12, 1  ;;  %s1784_s12 = sphi %s1806_s12, %s13_s12  }
   0x2   : > { %p139_p1 = scmp.lt.s32.totalorder %s1784_s12, 3 }
   0x4   : > { %p140_p2 = pnand %p1256_p0, %p139_p1 }
   0x5   : > { %v1696_v0 = vld [vmem:[%s2033_s1 + $0x40] sm:$0xff] (!%p140_p2)   ;;  %s1257_s16 = sshll.u32 (!%p140_p2), %s1252_s13, 5  ;;  %v1698_v2 = vld [vmem:[%s2033_s1 + $0x48] sm:$0xff] (!%p140_p2)   ;;  %v1700_v4 = vld [vmem:[%s2033_s1 + $0x50] sm:$0xff] (!%p140_p2)   ;;  %vm633_vm0 = vcmask (!%p140_p2), 261120  }
   0x6   : > { %143 = sbr.rel (%p140_p2) target bundleno = 352 (0x160), region = 32  ;;  %v1697_v1 = vld [vmem:[%s2033_s1] sm:$0xff] (!%p140_p2)   ;;  %1505 = vmatprep.subr.bf16.mxu0 (!%p140_p2), %v1696_v0  ;;  %1671 = vmatprep.subr.bf16.mxu1 (!%p140_p2), %v1696_v0  ;;  %p165_p3 = scmp.lt.s32.totalorder (!%p140_p2), %s1257_s16, 63  ;;  %v1699_v3 = vld [vmem:[%s2033_s1 + $0x8] sm:$0xff] (!%p140_p2)   ;;  %v1701_v5 = vld [vmem:[%s2033_s1 + $0x10] sm:$0xff] (!%p140_p2)  }
   0x7   : > { %1506 = vmatpush3.bf16.msra.mxu0 (!%p140_p2), %v1697_v1  ;;  %1679 = vmatpush3.bf16.msra.mxu1 (!%p140_p2), %v1697_v1  ;;  %v1702_v6 = vld [vmem:[%s2033_s1 + $0x58] sm:$0xff] (!%p140_p2)   ;;  %v1704_v8 = vld [vmem:[%s2033_s1 + $0x60] sm:$0xff] (!%p140_p2)   ;;  %v1706_v10 = vld [vmem:[%s2033_s1 + $0x68] sm:$0xff] (!%p140_p2)  }
   0x8   : > { %1507 = vmatprep.subr.bf16.mxu0 (!%p140_p2), %v1698_v2  ;;  %1672 = vmatprep.subr.bf16.mxu1 (!%p140_p2), %v1698_v2  ;;  %v1703_v7 = vld [vmem:[%s2033_s1 + $0x18] sm:$0xff] (!%p140_p2)   ;;  %v1705_v9 = vld [vmem:[%s2033_s1 + $0x20] sm:$0xff] (!%p140_p2)   ;;  %v1707_v13 = vld [vmem:[%s2033_s1 + $0x28] sm:$0xff] (!%p140_p2)  }
   0x9   : > { %v1708_v14 = vld [vmem:[%s2033_s1 + $0x70] sm:$0xff] (!%p140_p2)   ;;  %v1710_v16 = vld [vmem:[%s2033_s1 + $0x78] sm:$0xff] (!%p140_p2)   ;;  %v1718_v18 = vld [vmem:[%s2033_s1 + $0x80] sm:$0xff] (!%p140_p2)  }
   0xa   : > { %v1709_v15 = vld [vmem:[%s2033_s1 + $0x30] sm:$0xff] (!%p140_p2)   ;;  %v1711_v17 = vld [vmem:[%s2033_s1 + $0x38] sm:$0xff] (!%p140_p2)   ;;  %v1731_v23 = vld [vmem:[%s2033_s1 + $0x88] sm:$0xff] (!%p140_p2)  }
   0xb   : > { %1508 = vmatpush3.bf16.msra.mxu0 (!%p140_p2), %v1699_v3  ;;  %1680 = vmatpush3.bf16.msra.mxu1 (!%p140_p2), %v1699_v3 }
   0xc   : > { %1509 = vmatprep.subr.bf16.mxu0 (!%p140_p2), %v1700_v4  ;;  %1673 = vmatprep.subr.bf16.mxu1 (!%p140_p2), %v1700_v4 }
   0xd   : > { %s2037_s16 = smov (!%p165_p3, %s1257_s16), 63 }
   0xe   : > { %s1687_s29 = smul.u32 12, %s2037_s16  ;;  %s1260_s5 = sshll.u32 %s2037_s16, 2 }
   0xf   : > { %1510 = vmatpush3.bf16.msra.mxu0 %v1701_v5  ;;  %1681 = vmatpush3.bf16.msra.mxu1 %v1701_v5  ;;  %s1969_s8 = scalar_lea.vmem %s2035_s3, %s1260_s5 }
  0x10   : > { %1511 = vmatprep.subr.bf16.mxu0 %v1702_v6  ;;  %1674 = vmatprep.subr.bf16.mxu1 %v1702_v6  ;;  %s1847_s9 = scalar_lea.vmem %s2032_s0, %s1687_s29 }
  0x11   : > { %v1714_v11 = vld [vmem:[%s1847_s9 + $0x4] ss:$12 sps:$4 sm:$0xff]   ;;  %v1712_v19 = vld [vmem:[%s1847_s9] ss:$12 sps:$4 sm:$0xff]   ;;  %v1719_v21 = vld [vmem:[%s1847_s9 + $0x1c] ss:$12 sps:$4 sm:$0xff]  }
  0x12   : > { %v1717_v12 = vld [vmem:[%s1847_s9 + $0x124] ss:$12 sps:$4 sm:$0xff]   ;;  %714 = vmatprep.mubr.bf16.mxu0 %v1714_v11  ;;  %v1715_v20 = vld [vmem:[%s1847_s9 + $0x120] ss:$12 sps:$4 sm:$0xff]   ;;  %v1721_v22 = vld [vmem:[%s1847_s9 + $0x13c] ss:$12 sps:$4 sm:$0xff]  }
  0x13   : > { %1512 = vmatpush3.bf16.msra.mxu0 %v1703_v7  ;;  %1682 = vmatpush3.bf16.msra.mxu1 %v1703_v7  ;;  %v1723_v24 = vld [vmem:[%s1847_s9 + $0x18] ss:$12 sps:$4 sm:$0xff]   ;;  %v1725_v26 = vld [vmem:[%s1847_s9 + $0x34] ss:$12 sps:$4 sm:$0xff]   ;;  %v1729_v28 = vld [vmem:[%s1847_s9 + $0x30] ss:$12 sps:$4 sm:$0xff]  }
  0x14   : > { %1513 = vmatprep.subr.bf16.mxu0 %v1704_v8  ;;  %1675 = vmatprep.subr.bf16.mxu1 %v1704_v8  ;;  %v1724_v25 = vld [vmem:[%s1847_s9 + $0x138] ss:$12 sps:$4 sm:$0xff]   ;;  %v1727_v27 = vld [vmem:[%s1847_s9 + $0x154] ss:$12 sps:$4 sm:$0xff]   ;;  %v1730_v29 = vld [vmem:[%s1847_s9 + $0x150] ss:$12 sps:$4 sm:$0xff]  }
  0x15   : > { %810 = vmatprep.mubr.bf16.mxu1 %v1717_v12  ;;  %v1732_v30 = vld [vmem:[%s1847_s9 + $0x4c] ss:$12 sps:$4 sm:$0xff]   ;;  %v1736_v32 = vld [vmem:[%s1847_s9 + $0x48] ss:$12 sps:$4 sm:$0xff]   ;;  %v1738_v34 = vld [vmem:[%s1847_s9 + $0x64] ss:$12 sps:$4 sm:$0xff]  }
  0x16   : > { %v1734_v31 = vld [vmem:[%s1847_s9 + $0x16c] ss:$12 sps:$4 sm:$0xff]   ;;  %v1737_v33 = vld [vmem:[%s1847_s9 + $0x168] ss:$12 sps:$4 sm:$0xff]   ;;  %v1747_v41 = vld [vmem:[%s1847_s9 + $0x50] ss:$12 sps:$4 sm:$0xff]  }
  0x17   : > { %1514 = vmatpush3.bf16.msra.mxu0 %v1705_v9  ;;  %1683 = vmatpush3.bf16.msra.mxu1 %v1705_v9  ;;  %v1740_v35 = vld [vmem:[%s1847_s9 + $0x8] ss:$12 sps:$4 sm:$0xff]   ;;  %v1741_v36 = vld [vmem:[%s1847_s9 + $0x60] ss:$12 sps:$4 sm:$0xff]   ;;  %v1745_v39 = vld [vmem:[%s1847_s9 + $0x38] ss:$12 sps:$4 sm:$0xff]  }
  0x18   : > { %1515 = vmatprep.subr.bf16.mxu0 %v1706_v10  ;;  %1676 = vmatprep.subr.bf16.mxu1 %v1706_v10  ;;  %v1742_v37 = vld [vmem:[%s1847_s9 + $0x20] ss:$12 sps:$4 sm:$0xff]   ;;  %v1743_v38 = vld [vmem:[%s1847_s9 + $0x7c] ss:$12 sps:$4 sm:$0xff]   ;;  %v1746_v40 = vld [vmem:[%s1847_s9 + $0x78] ss:$12 sps:$4 sm:$0xff]  }
  0x19   : > { %v1748_v42 = vld [vmem:[%s1847_s9 + $0x94] ss:$12 sps:$4 sm:$0xff]   ;;  %v1751_v44 = vld [vmem:[%s1847_s9 + $0x90] ss:$12 sps:$4 sm:$0xff]   ;;  %v1753_v46 = vld [vmem:[%s1847_s9 + $0xac] ss:$12 sps:$4 sm:$0xff]  }
  0x1a   : > { %v1750_v43 = vld [vmem:[%s1847_s9 + $0x68] ss:$12 sps:$4 sm:$0xff]   ;;  %v1752_v45 = vld [vmem:[%s1847_s9 + $0x80] ss:$12 sps:$4 sm:$0xff]   ;;  %v1755_v47 = vld [vmem:[%s1847_s9 + $0x98] ss:$12 sps:$4 sm:$0xff]  }
  0x1b   : > { %1516 = vmatpush3.bf16.msra.mxu0 %v1707_v13  ;;  %1684 = vmatpush3.bf16.msra.mxu1 %v1707_v13  ;;  %v1756_v48 = vld [vmem:[%s1847_s9 + $0xa8] ss:$12 sps:$4 sm:$0xff]   ;;  %v1757_v49 = vld [vmem:[%s1847_s9 + $0xb0] ss:$12 sps:$4 sm:$0xff]   ;;  %v1761_v52 = vld [vmem:[%s1847_s9 + $0xc0] ss:$12 sps:$4 sm:$0xff]  }
  0x1c   : > { %1517 = vmatprep.subr.bf16.mxu0 %v1708_v14  ;;  %1677 = vmatprep.subr.bf16.mxu1 %v1708_v14  ;;  %v1758_v50 = vld [vmem:[%s1847_s9 + $0xc4] ss:$12 sps:$4 sm:$0xff]   ;;  %v1760_v51 = vld [vmem:[%s1847_s9 + $0xc8] ss:$12 sps:$4 sm:$0xff]   ;;  %v1762_v53 = vld [vmem:[%s1847_s9 + $0xe0] ss:$12 sps:$4 sm:$0xff]  }
  0x1d   : > { %v1763_v54 = vld [vmem:[%s1847_s9 + $0xdc] ss:$12 sps:$4 sm:$0xff]   ;;  %v1765_v55 = vld [vmem:[%s1847_s9 + $0xf8] ss:$12 sps:$4 sm:$0xff]   ;;  %v1768_v58 = vld [vmem:[%s1847_s9 + $0xf4] ss:$12 sps:$4 sm:$0xff]  }
  0x1e   : > { %v1766_v56 = vld [vmem:[%s1847_s9 + $0xd8] ss:$12 sps:$4 sm:$0xff]   ;;  %v1767_v57 = vld [vmem:[%s1847_s9 + $0x110] ss:$12 sps:$4 sm:$0xff]   ;;  %v1770_v59 = vld [vmem:[%s1847_s9 + $0x128] ss:$12 sps:$4 sm:$0xff]  }
  0x1f   : > { %1518 = vmatpush3.bf16.msra.mxu0 %v1709_v15  ;;  %1685 = vmatpush3.bf16.msra.mxu1 %v1709_v15  ;;  %v1771_v60 = vld [vmem:[%s1847_s9 + $0xf0] ss:$12 sps:$4 sm:$0xff]   ;;  %v1772_v61 = vld [vmem:[%s1847_s9 + $0x140] ss:$12 sps:$4 sm:$0xff]   ;;  %v1775_v63 = vld [vmem:[%s1847_s9 + $0x158] ss:$12 sps:$4 sm:$0xff]  }
  0x20   : > { %1519 = vmatprep.subr.bf16.mxu0 %v1710_v16  ;;  %1678 = vmatprep.subr.bf16.mxu1 %v1710_v16  ;;  %v1773_v62 = vld [vmem:[%s1847_s9 + $0x10c] ss:$12 sps:$4 sm:$0xff]   ;;  %v1776_v0 = vld [vmem:[%s1847_s9 + $0x108] ss:$12 sps:$4 sm:$0xff]   ;;  %v1777_v1 = vld [vmem:[%s1847_s9 + $0x170] ss:$12 sps:$4 sm:$0xff]  }
  0x23   : > { %1520 = vmatpush3.bf16.msra.mxu0 %v1711_v17  ;;  %1686 = vmatpush3.bf16.msra.mxu1 %v1711_v17 }
  0x24   : > { %1635 = vmatprep.subr.bf16.mxu1 %v1718_v18 }
  0x26   : > { %715 = vmatmul.mubr.bf16.vlgmr.msra.gmra.mrb[0].mxu0 %v1712_v19  ;;  %811 = vmatmul.mubr.bf16.vlgmr.msra.gmra.mrb[0].mxu1 %v1715_v20 }
  0x27   : > { %1636 = vmatpush3.bf16.msra.mxu1 %v1718_v18  ;;  %722 = vmatprep.mubr.bf16.mxu0 %v1719_v21 }
  0x28   : > { %818 = vmatprep.mubr.bf16.mxu1 %v1721_v22  ;;  %1637 = vmatprep.subr.bf16.mxu1 %v1731_v23 }
  0x2b   : > { %1638 = vmatpush3.bf16.msra.mxu1 %v1731_v23 }
  0x2e   : > { %723 = vmatmul.mubr.bf16.gmra.mrb[4].mxu0 %v1723_v24  ;;  %819 = vmatmul.mubr.bf16.gmra.mrb[4].mxu1 %v1724_v25 }
  0x2f   : > { %730 = vmatprep.mubr.bf16.mxu0 %v1725_v26  ;;  %826 = vmatprep.mubr.bf16.mxu1 %v1727_v27 }
  0x36   : > { %731 = vmatmul.mubr.bf16.gmra.mrb[8].mxu0 %v1729_v28  ;;  %827 = vmatmul.mubr.bf16.gmra.mrb[8].mxu1 %v1730_v29 }
  0x37   : > { %738 = vmatprep.mubr.bf16.mxu0 %v1732_v30  ;;  %834 = vmatprep.mubr.bf16.mxu1 %v1734_v31 }
  0x3e   : > { %739 = vmatmul.mubr.bf16.gmra.mrb[12].mxu0 %v1736_v32  ;;  %835 = vmatmul.mubr.bf16.gmra.mrb[12].mxu1 %v1737_v33 }
  0x3f   : > { %746 = vmatprep.mubr.bf16.mxu0 %v1738_v34  ;;  %1639 = vmatprep.mubr.msk.bf16.mxu1 %vm633_vm0, %v1740_v35 }
  0x46   : > { %747 = vmatmul.mubr.bf16.gmra.mrb[16].mxu0 %v1741_v36  ;;  %1640 = vmatmul.mubr.msk.bf16.vlgmr.msra.gmra.mrb[16].mxu1 %vm633_vm0, %v1742_v37 }
  0x47   : > { %754 = vmatprep.mubr.bf16.mxu0 %v1743_v38  ;;  %1643 = vmatprep.mubr.msk.bf16.mxu1 %vm633_vm0, %v1745_v39 }
  0x4e   : > { %755 = vmatmul.mubr.bf16.gmra.mrb[20].mxu0 %v1746_v40  ;;  %1644 = vmatmul.mubr.msk.bf16.gmra.mrb[20].mxu1 %vm633_vm0, %v1747_v41 }
  0x4f   : > { %762 = vmatprep.mubr.bf16.mxu0 %v1748_v42  ;;  %1647 = vmatprep.mubr.msk.bf16.mxu1 %vm633_vm0, %v1750_v43 }
  0x56   : > { %763 = vmatmul.mubr.bf16.gmra.mrb[24].mxu0 %v1751_v44  ;;  %1648 = vmatmul.mubr.msk.bf16.gmra.mrb[24].mxu1 %vm633_vm0, %v1752_v45 }
  0x57   : > { %770 = vmatprep.mubr.bf16.mxu0 %v1753_v46  ;;  %1651 = vmatprep.mubr.msk.bf16.mxu1 %vm633_vm0, %v1755_v47 }
  0x5e   : > { %771 = vmatmul.mubr.bf16.gmra.mrb[28].mxu0 %v1756_v48  ;;  %1652 = vmatmul.mubr.msk.bf16.gmra.mrb[28].mxu1 %vm633_vm0, %v1757_v49 }
  0x5f   : > { %778 = vmatprep.mubr.bf16.mxu0 %v1758_v50  ;;  %1655 = vmatprep.mubr.msk.bf16.mxu1 %vm633_vm0, %v1760_v51  ;;  %v1959_v50 = vld [vmem:[%s2034_s2] ss:$0 sm:$0xff] }
  0x66   : > { %779 = vmatmul.mubr.bf16.gmra.mrb[32].mxu0 %v1761_v52  ;;  %1656 = vmatmul.mubr.msk.bf16.gmra.mrb[32].mxu1 %vm633_vm0, %v1762_v53 }
  0x67   : > { %786 = vmatprep.mubr.bf16.mxu0 %v1763_v54  ;;  %1659 = vmatprep.mubr.msk.bf16.mxu1 %vm633_vm0, %v1765_v55 }
  0x6e   : > { %787 = vmatmul.mubr.bf16.gmra.mrb[36].mxu0 %v1766_v56  ;;  %1660 = vmatmul.mubr.msk.bf16.gmra.mrb[36].mxu1 %vm633_vm0, %v1767_v57 }
  0x6f   : > { %794 = vmatprep.mubr.bf16.mxu0 %v1768_v58  ;;  %1663 = vmatprep.mubr.msk.bf16.mxu1 %vm633_vm0, %v1770_v59 }
  0x76   : > { %795 = vmatmul.mubr.bf16.gmra.mrb[40].mxu0 %v1771_v60  ;;  %1664 = vmatmul.mubr.msk.bf16.gmra.mrb[40].mxu1 %vm633_vm0, %v1772_v61 }
  0x77   : > { %802 = vmatprep.mubr.bf16.mxu0 %v1773_v62  ;;  %1667 = vmatprep.mubr.msk.bf16.mxu1 %vm633_vm0, %v1775_v63 }
  0x7e   : > { %803 = vmatmul.mubr.bf16.gmra.mrb[44].mxu0 %v1776_v0  ;;  %1668 = vmatmul.mubr.msk.bf16.gmra.mrb[44].mxu1 %vm633_vm0, %v1777_v1 }
  0xf9   : > { %v1521_v2 = vpop.f32.mrb[0].mxu0  ;;  %v1593_v3 = vpop.f32.mrb[0].mxu1 }
  0xfa   : > { %v1522_v4 = vpop.f32.mrb[1].mxu0  ;;  %v1594_v5 = vpop.f32.mrb[1].mxu1 }
  0xfb   : > { %v1523_v6 = vadd.f32 %v1522_v4, %v1521_v2  ;;  %v1524_v7 = vpop.f32.mrb[2].mxu0  ;;  %v1940_v8 = vadd.f32 %v1594_v5, %v1593_v3  ;;  %v1596_v9 = vpop.f32.mrb[2].mxu1 }
  0xfc   : > { %v1525_v10 = vpop.f32.mrb[3].mxu0  ;;  %v1597_v11 = vpop.f32.mrb[3].mxu1 }
  0xfd   : > { %v1526_v12 = vadd.f32 %v1525_v10, %v1524_v7  ;;  %v1942_v13 = vadd.f32 %v1597_v11, %v1596_v9  ;;  %v717_v54 = vadd.f32 %v1523_v6, %v1959_v50 }
  0xff   : > { %v720_v63 = vadd.f32 %v1526_v12, %v1959_v50 }
 0x101   : > { %v1527_v14 = vpop.f32.mrb[4].mxu0  ;;  %v1599_v15 = vpop.f32.mrb[4].mxu1 }
 0x102   : > { %v1528_v16 = vpop.f32.mrb[5].mxu0  ;;  %v1600_v17 = vpop.f32.mrb[5].mxu1 }
 0x103   : > { %v1529_v18 = vadd.f32 %v1528_v16, %v1527_v14  ;;  %v1530_v19 = vpop.f32.mrb[6].mxu0  ;;  %v1944_v20 = vadd.f32 %v1600_v17, %v1599_v15  ;;  %v1602_v21 = vpop.f32.mrb[6].mxu1 }
 0x104   : > { %v1531_v22 = vpop.f32.mrb[7].mxu0  ;;  %v1603_v23 = vpop.f32.mrb[7].mxu1 }
 0x105   : > { %v1532_v24 = vadd.f32 %v1531_v22, %v1530_v19  ;;  %v1946_v25 = vadd.f32 %v1603_v23, %v1602_v21  ;;  %v725_v51 = vadd.f32 %v1529_v18, %v1959_v50 }
 0x107   : > { %v728_v58 = vadd.f32 %v1532_v24, %v1959_v50 }
 0x109   : > { %v1533_v26 = vpop.f32.mrb[8].mxu0  ;;  %v1605_v27 = vpop.f32.mrb[8].mxu1 }
 0x10a   : > { %v1534_v28 = vpop.f32.mrb[9].mxu0  ;;  %v1606_v29 = vpop.f32.mrb[9].mxu1 }
 0x10b   : > { %v1535_v30 = vadd.f32 %v1534_v28, %v1533_v26  ;;  %v1536_v31 = vpop.f32.mrb[10].mxu0  ;;  %v1948_v32 = vadd.f32 %v1606_v29, %v1605_v27  ;;  %v1608_v33 = vpop.f32.mrb[10].mxu1 }
 0x10c   : > { %v1537_v34 = vpop.f32.mrb[11].mxu0  ;;  %v1609_v35 = vpop.f32.mrb[11].mxu1 }
 0x10d   : > { %v1538_v36 = vadd.f32 %v1537_v34, %v1536_v31  ;;  %v1950_v37 = vadd.f32 %v1609_v35, %v1608_v33  ;;  %v733_v16 = vadd.f32 %v1535_v30, %v1959_v50 }
 0x10f   : > { %v736_v27 = vadd.f32 %v1538_v36, %v1959_v50 }
 0x111   : > { %v1539_v38 = vpop.f32.mrb[12].mxu0  ;;  %v1611_v39 = vpop.f32.mrb[12].mxu1 }
 0x112   : > { %v1540_v40 = vpop.f32.mrb[13].mxu0  ;;  %v1612_v41 = vpop.f32.mrb[13].mxu1 }
 0x113   : > { %v1541_v42 = vadd.f32 %v1540_v40, %v1539_v38  ;;  %v1542_v43 = vpop.f32.mrb[14].mxu0  ;;  %v1952_v44 = vadd.f32 %v1612_v41, %v1611_v39  ;;  %v1614_v45 = vpop.f32.mrb[14].mxu1 }
 0x114   : > { %v1543_v46 = vpop.f32.mrb[15].mxu0  ;;  %v1615_v47 = vpop.f32.mrb[15].mxu1 }
 0x115   : > { %v1544_v48 = vadd.f32 %v1543_v46, %v1542_v43  ;;  %v1954_v49 = vadd.f32 %v1615_v47, %v1614_v45  ;;  %v741_v11 = vadd.f32 %v1541_v42, %v1959_v50 }
 0x117   : > { %v744_v21 = vadd.f32 %v1544_v48, %v1959_v50 }
 0x119   : > { %v1545_v52 = vpop.f32.mrb[16].mxu0  ;;  %v1641_v53 = vpop.f32.mrb[16].mxu1 }
 0x11a   : > { %v886_v55 = vadd.f32 %v1641_v53, %v725_v51  ;;  %v1546_v56 = vpop.f32.mrb[17].mxu0  ;;  %v877_v57 = vpop.f32.mrb[17].mxu1 }
 0x11b   : > { %v1547_v59 = vadd.f32 %v1546_v56, %v1545_v52  ;;  %v878_v60 = vadd.f32 %v877_v57, %v717_v54  ;;  %v1548_v61 = vpop.f32.mrb[18].mxu0  ;;  %v1642_v62 = vpop.f32.mrb[18].mxu1 }
 0x11c   : > { %v889_v0 = vadd.f32 %v1642_v62, %v728_v58  ;;  %v1549_v1 = vpop.f32.mrb[19].mxu0  ;;  %v880_v2 = vpop.f32.mrb[19].mxu1  ;;  %v1006_v5 = vmax.f32 %v886_v55, 0.0 }
 0x11d   : > { %v1550_v3 = vadd.f32 %v1549_v1, %v1548_v61  ;;  %v881_v4 = vadd.f32 %v880_v2, %v720_v63  ;;  %v1004_v6 = vmax.f32 %v878_v60, 0.0  ;;  %v749_v46 = vadd.f32 %v1547_v59, %v1959_v50 }
 0x11e   : > { %v1007_v7 = vmax.f32 %v889_v0, 0.0 }
 0x11f   : > { %v1005_v9 = vmax.f32 %v881_v4, 0.0  ;;  %v752_v56 = vadd.f32 %v1550_v3, %v1959_v50 }
 0x120   : > { %v1418_v10 = vpack.c.bf16 %v1007_v7, %v1006_v5 }
 0x121   : > { %v1413_v12 = vpack.c.bf16 %v1005_v9, %v1004_v6  ;;  %v1551_v14 = vpop.f32.mrb[20].mxu0  ;;  %v1645_v15 = vpop.f32.mrb[20].mxu1 }
 0x122   : > { %1490 = vst [vmem:[%s1969_s8 + $0x8] sm:$0xff] %v1418_v10   ;;  %v902_v17 = vadd.f32 %v1645_v15, %v741_v11  ;;  %v1552_v18 = vpop.f32.mrb[21].mxu0  ;;  %v893_v19 = vpop.f32.mrb[21].mxu1 }
 0x123   : > { %1414 = vst [vmem:[%s1969_s8] sm:$0xff] %v1413_v12   ;;  %v1553_v22 = vadd.f32 %v1552_v18, %v1551_v14  ;;  %v894_v23 = vadd.f32 %v893_v19, %v733_v16  ;;  %v1554_v24 = vpop.f32.mrb[22].mxu0  ;;  %v1646_v26 = vpop.f32.mrb[22].mxu1 }
 0x124   : > { %v905_v28 = vadd.f32 %v1646_v26, %v744_v21  ;;  %v1555_v29 = vpop.f32.mrb[23].mxu0  ;;  %v896_v31 = vpop.f32.mrb[23].mxu1  ;;  %v1010_v30 = vmax.f32 %v902_v17, 0.0 }
 0x125   : > { %v1556_v33 = vadd.f32 %v1555_v29, %v1554_v24  ;;  %v897_v34 = vadd.f32 %v896_v31, %v736_v27  ;;  %v1008_v38 = vmax.f32 %v894_v23, 0.0  ;;  %v757_v41 = vadd.f32 %v1553_v22, %v1959_v50 }
 0x126   : > { %v1011_v35 = vmax.f32 %v905_v28, 0.0 }
 0x127   : > { %v1009_v39 = vmax.f32 %v897_v34, 0.0  ;;  %v760_v51 = vadd.f32 %v1556_v33, %v1959_v50 }
 0x128   : > { %v1428_v40 = vpack.c.bf16 %v1011_v35, %v1010_v30 }
 0x129   : > { %v1423_v42 = vpack.c.bf16 %v1009_v39, %v1008_v38  ;;  %v1557_v43 = vpop.f32.mrb[24].mxu0  ;;  %v1649_v45 = vpop.f32.mrb[24].mxu1 }
 0x12a   : > { %1492 = vst [vmem:[%s1969_s8 + $0x18] sm:$0xff] %v1428_v40   ;;  %v918_v36 = vadd.f32 %v1649_v45, %v757_v41  ;;  %v1558_v47 = vpop.f32.mrb[25].mxu0  ;;  %v909_v48 = vpop.f32.mrb[25].mxu1 }
 0x12b   : > { %1491 = vst [vmem:[%s1969_s8 + $0x10] sm:$0xff] %v1423_v42   ;;  %v1559_v52 = vadd.f32 %v1558_v47, %v1557_v43  ;;  %v910_v53 = vadd.f32 %v909_v48, %v749_v46  ;;  %v1560_v54 = vpop.f32.mrb[26].mxu0  ;;  %v1650_v55 = vpop.f32.mrb[26].mxu1 }
 0x12c   : > { %v921_v57 = vadd.f32 %v1650_v55, %v760_v51  ;;  %v1561_v58 = vpop.f32.mrb[27].mxu0  ;;  %v912_v60 = vpop.f32.mrb[27].mxu1  ;;  %v1014_v62 = vmax.f32 %v918_v36, 0.0 }
 0x12d   : > { %v1562_v61 = vadd.f32 %v1561_v58, %v1560_v54  ;;  %v913_v59 = vadd.f32 %v912_v60, %v752_v56  ;;  %v1012_v0 = vmax.f32 %v910_v53, 0.0  ;;  %v765_v6 = vadd.f32 %v1559_v52, %v1959_v50 }
 0x12e   : > { %v1015_v63 = vmax.f32 %v921_v57, 0.0 }
 0x12f   : > { %v1013_v1 = vmax.f32 %v913_v59, 0.0  ;;  %v768_v15 = vadd.f32 %v1562_v61, %v1959_v50 }
 0x130   : > { %v1438_v2 = vpack.c.bf16 %v1015_v63, %v1014_v62 }
 0x131   : > { %v1433_v4 = vpack.c.bf16 %v1013_v1, %v1012_v0  ;;  %v1563_v5 = vpop.f32.mrb[28].mxu0  ;;  %v1653_v7 = vpop.f32.mrb[28].mxu1 }
 0x132   : > { %1494 = vst [vmem:[%s1969_s8 + $0x28] sm:$0xff] %v1438_v2   ;;  %v1564_v9 = vpop.f32.mrb[29].mxu0  ;;  %v925_v10 = vpop.f32.mrb[29].mxu1 }
 0x133   : > { %1493 = vst [vmem:[%s1969_s8 + $0x20] sm:$0xff] %v1433_v4   ;;  %v1565_v3 = vadd.f32 %v1564_v9, %v1563_v5  ;;  %v926_v11 = vadd.f32 %v925_v10, %v765_v6  ;;  %v1566_v12 = vpop.f32.mrb[30].mxu0  ;;  %v1654_v14 = vpop.f32.mrb[30].mxu1  ;;  %v821_v4 = vadd.f32 %v1944_v20, %v1959_v50  ;;  %v813_v9 = vadd.f32 %v1940_v8, %v1959_v50 }
 0x134   : > { %v1567_v16 = vpop.f32.mrb[31].mxu0  ;;  %v928_v17 = vpop.f32.mrb[31].mxu1 }
 0x135   : > { %v773_v18 = vadd.f32 %v1565_v3, %v1959_v50  ;;  %v1568_v19 = vadd.f32 %v1567_v16, %v1566_v12  ;;  %v929_v21 = vadd.f32 %v928_v17, %v768_v15  ;;  %v1016_v23 = vmax.f32 %v926_v11, 0.0 }
 0x136   : > { %v824_v12 = vadd.f32 %v1946_v25, %v1959_v50 }
 0x137   : > { %v934_v22 = vadd.f32 %v1653_v7, %v773_v18  ;;  %v776_v24 = vadd.f32 %v1568_v19, %v1959_v50  ;;  %v1017_v26 = vmax.f32 %v929_v21, 0.0 }
 0x139   : > { %v937_v27 = vadd.f32 %v1654_v14, %v776_v24  ;;  %v1443_v28 = vpack.c.bf16 %v1017_v26, %v1016_v23  ;;  %v1569_v29 = vpop.f32.mrb[32].mxu0  ;;  %v1657_v31 = vpop.f32.mrb[32].mxu1  ;;  %v1018_v30 = vmax.f32 %v934_v22, 0.0  ;;  %v816_v22 = vadd.f32 %v1942_v13, %v1959_v50 }
 0x13a   : > { %v1570_v33 = vpop.f32.mrb[33].mxu0  ;;  %v941_v34 = vpop.f32.mrb[33].mxu1 }
 0x13b   : > { %v1019_v35 = vmax.f32 %v937_v27, 0.0  ;;  %1495 = vst [vmem:[%s1969_s8 + $0x30] sm:$0xff] %v1443_v28   ;;  %v1571_v38 = vadd.f32 %v1570_v33, %v1569_v29  ;;  %v1572_v39 = vpop.f32.mrb[34].mxu0  ;;  %v1658_v40 = vpop.f32.mrb[34].mxu1 }
 0x13c   : > { %v1573_v41 = vpop.f32.mrb[35].mxu0  ;;  %v944_v42 = vpop.f32.mrb[35].mxu1 }
 0x13d   : > { %v1448_v43 = vpack.c.bf16 %v1019_v35, %v1018_v30  ;;  %v781_v45 = vadd.f32 %v1571_v38, %v1959_v50  ;;  %v1574_v46 = vadd.f32 %v1573_v41, %v1572_v39  ;;  %v837_v35 = vadd.f32 %v1952_v44, %v1959_v50 }
 0x13f   : > { %1496 = vst [vmem:[%s1969_s8 + $0x38] sm:$0xff] %v1448_v43   ;;  %v942_v36 = vadd.f32 %v941_v34, %v781_v45  ;;  %v784_v47 = vadd.f32 %v1574_v46, %v1959_v50  ;;  %v840_v46 = vadd.f32 %v1954_v49, %v1959_v50 }
 0x141   : > { %v945_v48 = vadd.f32 %v944_v42, %v784_v47  ;;  %v1575_v51 = vpop.f32.mrb[36].mxu0  ;;  %v1993_v52 = vpop.f32.mrb[36].mxu1  ;;  %v1020_v55 = vmax.f32 %v942_v36, 0.0 }
 0x142   : > { %v1576_v53 = vpop.f32.mrb[37].mxu0  ;;  %v957_v54 = vpop.f32.mrb[37].mxu1 }
 0x143   : > { %v1021_v56 = vmax.f32 %v945_v48, 0.0  ;;  %v1577_v57 = vadd.f32 %v1576_v53, %v1575_v51  ;;  %v1578_v58 = vpop.f32.mrb[38].mxu0  ;;  %v1995_v60 = vpop.f32.mrb[38].mxu1 }
 0x144   : > { %v1579_v61 = vpop.f32.mrb[39].mxu0  ;;  %v960_v59 = vpop.f32.mrb[39].mxu1 }
 0x145   : > { %v1453_v62 = vpack.c.bf16 %v1021_v56, %v1020_v55  ;;  %v789_v63 = vadd.f32 %v1577_v57, %v1959_v50  ;;  %v1580_v0 = vadd.f32 %v1579_v61, %v1578_v58 }
 0x147   : > { %1497 = vst [vmem:[%s1969_s8 + $0x40] sm:$0xff] %v1453_v62   ;;  %v950_v1 = vadd.f32 %v1657_v31, %v789_v63  ;;  %v792_v2 = vadd.f32 %v1580_v0, %v1959_v50 }
 0x149   : > { %v953_v5 = vadd.f32 %v1658_v40, %v792_v2  ;;  %v1581_v7 = vpop.f32.mrb[40].mxu0  ;;  %v1665_v6 = vpop.f32.mrb[40].mxu1  ;;  %v1022_v14 = vmax.f32 %v950_v1, 0.0  ;;  %v829_v40 = vadd.f32 %v1948_v32, %v1959_v50  ;;  %v832_v32 = vadd.f32 %v1950_v37, %v1959_v50 }
 0x14a   : > { %v982_v10 = vadd.f32 %v1665_v6, %v821_v4  ;;  %v1582_v3 = vpop.f32.mrb[41].mxu0  ;;  %v973_v11 = vpop.f32.mrb[41].mxu1 }
 0x14b   : > { %v1023_v15 = vmax.f32 %v953_v5, 0.0  ;;  %v1583_v16 = vadd.f32 %v1582_v3, %v1581_v7  ;;  %v974_v17 = vadd.f32 %v973_v11, %v813_v9  ;;  %v1584_v18 = vpop.f32.mrb[42].mxu0  ;;  %v1666_v19 = vpop.f32.mrb[42].mxu1 }
 0x14c   : > { %v985_v20 = vadd.f32 %v1666_v19, %v824_v12  ;;  %v1585_v21 = vpop.f32.mrb[43].mxu0  ;;  %v976_v23 = vpop.f32.mrb[43].mxu1  ;;  %v1030_v27 = vmax.f32 %v982_v10, 0.0 }
 0x14d   : > { %v1458_v8 = vpack.c.bf16 %v1023_v15, %v1022_v14  ;;  %v797_v24 = vadd.f32 %v1583_v16, %v1959_v50  ;;  %v1586_v26 = vadd.f32 %v1585_v21, %v1584_v18  ;;  %v977_v28 = vadd.f32 %v976_v23, %v816_v22 }
 0x14e   : > { %v1031_v25 = vmax.f32 %v985_v20, 0.0  ;;  %v1028_v33 = vmax.f32 %v974_v17, 0.0 }
 0x14f   : > { %1498 = vst [vmem:[%s1969_s8 + $0x48] sm:$0xff] %v1458_v8   ;;  %v958_v29 = vadd.f32 %v957_v54, %v797_v24  ;;  %v800_v31 = vadd.f32 %v1586_v26, %v1959_v50  ;;  %v1029_v30 = vmax.f32 %v977_v28, 0.0 }
 0x150   : > { %v1478_v34 = vpack.c.bf16 %v1031_v25, %v1030_v27 }
 0x151   : > { %v961_v13 = vadd.f32 %v960_v59, %v800_v31  ;;  %v1587_v38 = vpop.f32.mrb[44].mxu0  ;;  %v1669_v39 = vpop.f32.mrb[44].mxu1  ;;  %v1473_v41 = vpack.c.bf16 %v1029_v30, %v1028_v33  ;;  %v1024_v36 = vmax.f32 %v958_v29, 0.0 }
 0x152   : > { %1502 = vst [vmem:[%s1969_s8 + $0x68] sm:$0xff] %v1478_v34   ;;  %v998_v42 = vadd.f32 %v1669_v39, %v837_v35  ;;  %v1588_v43 = vpop.f32.mrb[45].mxu0  ;;  %v989_v45 = vpop.f32.mrb[45].mxu1 }
 0x153   : > { %v1025_v47 = vmax.f32 %v961_v13, 0.0  ;;  %v1589_v48 = vadd.f32 %v1588_v43, %v1587_v38  ;;  %v990_v44 = vadd.f32 %v989_v45, %v829_v40  ;;  %v1590_v51 = vpop.f32.mrb[46].mxu0  ;;  %v1670_v53 = vpop.f32.mrb[46].mxu1  ;;  %1501 = vst [vmem:[%s1969_s8 + $0x60] sm:$0xff] %v1473_v41  }
 0x154   : > { %v1001_v54 = vadd.f32 %v1670_v53, %v840_v46  ;;  %v1591_v55 = vpop.f32.mrb[47].mxu0  ;;  %v992_v56 = vpop.f32.mrb[47].mxu1  ;;  %v1034_v61 = vmax.f32 %v998_v42, 0.0 }
 0x155   : > { %v1463_v57 = vpack.c.bf16 %v1025_v47, %v1024_v36  ;;  %v805_v58 = vadd.f32 %v1589_v48, %v1959_v50  ;;  %v1592_v49 = vadd.f32 %v1591_v55, %v1590_v51  ;;  %v993_v62 = vadd.f32 %v992_v56, %v832_v32 }
 0x156   : > { %v1035_v59 = vmax.f32 %v1001_v54, 0.0  ;;  %v1032_v1 = vmax.f32 %v990_v44, 0.0 }
 0x157   : > { %1499 = vst [vmem:[%s1969_s8 + $0x50] sm:$0xff] %v1463_v57   ;;  %v966_v63 = vadd.f32 %v1993_v52, %v805_v58  ;;  %v808_v0 = vadd.f32 %v1592_v49, %v1959_v50  ;;  %v1033_v4 = vmax.f32 %v993_v62, 0.0 }
 0x158   : > { %v1488_v2 = vpack.c.bf16 %v1035_v59, %v1034_v61 }
 0x159   : > { %v969_v37 = vadd.f32 %v1995_v60, %v808_v0  ;;  %v1483_v5 = vpack.c.bf16 %v1033_v4, %v1032_v1  ;;  %v1026_v7 = vmax.f32 %v966_v63, 0.0 }
 0x15a   : > { %1504 = vst [vmem:[%s1969_s8 + $0x78] sm:$0xff] %v1488_v2  }
 0x15b   : > { %v1027_v6 = vmax.f32 %v969_v37, 0.0  ;;  %1503 = vst [vmem:[%s1969_s8 + $0x70] sm:$0xff] %v1483_v5  }
 0x15d   : > { %v1468_v9 = vpack.c.bf16 %v1027_v6, %v1026_v7 }
 0x15f   : > { %1500 = vst [vmem:[%s1969_s8 + $0x58] sm:$0xff] %v1468_v9  }
 0x160 PF: > { %s13_s12 = sadd.s32 1, %s1784_s12  }
 0x161   : > { %p10_p4 = scmp.ge.s32.totalorder %s13_s12, 4  }
 0x163   :  { %12 = sbr.rel (!%p10_p4) target bundleno = 1 (0x1), region = 62 }

// kernel: vae_forward.17
= control target key start
LH: loop header
LB: loop body
LE: loop exit
PB: predicated region body
PF: predicated region fallthrough
CT: control target
= control target key end

     0   :  { %s3107_s12 = smov 0   ;;  %s4664_s0 = inlined_call_operand.vmem [shape: bf16[2048,288], index: 0, kind: input, shape index: {}]   ;;  %s4665_s1 = inlined_call_operand.vmem [shape: bf16[288,12], index: 1, kind: input, shape index: {}]   ;;  %s4666_s2 = inlined_call_operand.vmem [shape: f32[1,12], index: 2, kind: input, shape index: {}]   ;;  %s4667_s3 = inlined_call_operand.vmem [shape: f32[2048,12], index: 3, kind: output, shape index: {}]  }
   0x1 LB: > { %s2373_s13 = sadd.s32 4294967295, %s3084_s12   ;;  %p2377_p0 = scmp.ge.s32.totalorder %s3084_s12, 1  ;;  %s3084_s12 = sphi %s3107_s12, %s13_s12  }
   0x2   : > { %p139_p1 = scmp.lt.s32.totalorder %s3084_s12, 5 }
   0x4   : > { %p140_p2 = pnand %p2377_p0, %p139_p1 }
   0x6   : > { %143 = sbr.rel (%p140_p2) target bundleno = 552 (0x228), region = 32 }
   0xd   : > { %v2675_v0 = vld [vmem:[%s4665_s1] sm:$0xff]   ;;  %v3086_v1 = vmov 0   ;;  %s2378_s16 = sshll.u32 %s2373_s13, 6  ;;  %v2676_v2 = vld [vmem:[%s4665_s1 + $0x8] sm:$0xff]   ;;  %v2677_v3 = vld [vmem:[%s4665_s1 + $0x10] sm:$0xff]   ;;  %vm937_vm0 = vcmask 261120  }
   0xe   : > { %1034 = vmatprep.subr.bf16.mxu0 %v3086_v1  ;;  %2633 = vmatprep.subr.bf16.mxu1 %v3086_v1  ;;  %p165_p3 = scmp.lt.s32.totalorder %s2378_s16, 255  ;;  %v2678_v4 = vld [vmem:[%s4665_s1 + $0x18] sm:$0xff]   ;;  %v2679_v5 = vld [vmem:[%s4665_s1 + $0x20] sm:$0xff]   ;;  %v2680_v7 = vld [vmem:[%s4665_s1 + $0x28] sm:$0xff]   ;;  %vm2252_vm12 = vcmask 97280  }
   0xf   : > { %1035 = vmatpush1.bf16.msra.mxu0 %v2675_v0  ;;  %2649 = vmatpush1.bf16.msra.mxu1 %v2675_v0  ;;  %v2681_v9 = vld [vmem:[%s4665_s1 + $0x30] sm:$0xff]   ;;  %v2682_v10 = vld [vmem:[%s4665_s1 + $0x38] sm:$0xff]   ;;  %v2683_v11 = vld [vmem:[%s4665_s1 + $0x40] sm:$0xff]  }
  0x10   : > { %1036 = vmatprep.subr.bf16.mxu0 %v3086_v1  ;;  %2634 = vmatprep.subr.bf16.mxu1 %v3086_v1  ;;  %s4675_s16 = smov (!%p165_p3, %s2378_s16), 255  ;;  %v2684_v12 = vld [vmem:[%s4665_s1 + $0x48] sm:$0xff]   ;;  %v2685_v13 = vld [vmem:[%s4665_s1 + $0x50] sm:$0xff]   ;;  %v2686_v14 = vld [vmem:[%s4665_s1 + $0x58] sm:$0xff]  }
  0x11   : > { %s2665_s23 = smul.u32 12, %s4675_s16  ;;  %v2687_v15 = vld [vmem:[%s4665_s1 + $0x60] sm:$0xff]   ;;  %v2688_v16 = vld [vmem:[%s4665_s1 + $0x68] sm:$0xff]   ;;  %v2689_v17 = vld [vmem:[%s4665_s1 + $0x70] sm:$0xff]   ;;  %s2381_s5 = sshll.u32 %s4675_s16, 3 }
  0x12   : > { %v2690_v18 = vld [vmem:[%s4665_s1 + $0x78] sm:$0xff]   ;;  %v2697_v19 = vld [vmem:[%s4665_s1 + $0x80] sm:$0xff]   ;;  %v2722_v24 = vld [vmem:[%s4665_s1 + $0x88] sm:$0xff]   ;;  %s3635_s7 = scalar_lea.vmem %s4667_s3, %s2381_s5 }
  0x13   : > { %1037 = vmatpush1.bf16.msra.mxu0 %v2676_v2  ;;  %2650 = vmatpush1.bf16.msra.mxu1 %v2676_v2  ;;  %s3144_s28 = scalar_lea.vmem %s4664_s0, %s2665_s23 }
  0x14   : > { %1038 = vmatprep.subr.bf16.mxu0 %v3086_v1  ;;  %2635 = vmatprep.subr.bf16.mxu1 %v3086_v1  ;;  %v2693_v6 = vld [vmem:[%s3144_s28 + $0x4] ss:$12 sps:$4 sm:$0xff]   ;;  %v2691_v20 = vld [vmem:[%s3144_s28] ss:$12 sps:$4 sm:$0xff]   ;;  %v2698_v22 = vld [vmem:[%s3144_s28 + $0x1c] ss:$12 sps:$4 sm:$0xff]  }
  0x15   : > { %v2696_v8 = vld [vmem:[%s3144_s28 + $0x244] ss:$12 sps:$4 sm:$0xff]   ;;  %1066 = vmatprep.mubr.bf16.mxu0 %v2693_v6  ;;  %v2694_v21 = vld [vmem:[%s3144_s28 + $0x240] ss:$12 sps:$4 sm:$0xff]   ;;  %v2700_v23 = vld [vmem:[%s3144_s28 + $0x25c] ss:$12 sps:$4 sm:$0xff]  }
  0x16   : > { %1258 = vmatprep.mubr.bf16.mxu1 %v2696_v8  ;;  %v2702_v25 = vld [vmem:[%s3144_s28 + $0x18] ss:$12 sps:$4 sm:$0xff]   ;;  %v2704_v27 = vld [vmem:[%s3144_s28 + $0x34] ss:$12 sps:$4 sm:$0xff]   ;;  %v2708_v29 = vld [vmem:[%s3144_s28 + $0x30] ss:$12 sps:$4 sm:$0xff]  }
  0x17   : > { %1039 = vmatpush1.bf16.msra.mxu0 %v2677_v3  ;;  %2651 = vmatpush1.bf16.msra.mxu1 %v2677_v3  ;;  %v2703_v26 = vld [vmem:[%s3144_s28 + $0x258] ss:$12 sps:$4 sm:$0xff]   ;;  %v2706_v28 = vld [vmem:[%s3144_s28 + $0x274] ss:$12 sps:$4 sm:$0xff]   ;;  %v2709_v30 = vld [vmem:[%s3144_s28 + $0x270] ss:$12 sps:$4 sm:$0xff]  }
  0x18   : > { %1040 = vmatprep.subr.bf16.mxu0 %v3086_v1  ;;  %2636 = vmatprep.subr.bf16.mxu1 %v3086_v1  ;;  %v2710_v31 = vld [vmem:[%s3144_s28 + $0x4c] ss:$12 sps:$4 sm:$0xff]   ;;  %v2714_v33 = vld [vmem:[%s3144_s28 + $0x48] ss:$12 sps:$4 sm:$0xff]   ;;  %v2716_v35 = vld [vmem:[%s3144_s28 + $0x64] ss:$12 sps:$4 sm:$0xff]  }
  0x19   : > { %v2712_v32 = vld [vmem:[%s3144_s28 + $0x28c] ss:$12 sps:$4 sm:$0xff]   ;;  %v2715_v34 = vld [vmem:[%s3144_s28 + $0x288] ss:$12 sps:$4 sm:$0xff]   ;;  %v2718_v36 = vld [vmem:[%s3144_s28 + $0x2a4] ss:$12 sps:$4 sm:$0xff]  }
  0x1a   : > { %v2720_v37 = vld [vmem:[%s3144_s28 + $0x60] ss:$12 sps:$4 sm:$0xff]   ;;  %v2723_v39 = vld [vmem:[%s3144_s28 + $0x7c] ss:$12 sps:$4 sm:$0xff]   ;;  %v2727_v41 = vld [vmem:[%s3144_s28 + $0x78] ss:$12 sps:$4 sm:$0xff]  }
  0x1b   : > { %1041 = vmatpush1.bf16.msra.mxu0 %v2678_v4  ;;  %2652 = vmatpush1.bf16.msra.mxu1 %v2678_v4  ;;  %v2721_v38 = vld [vmem:[%s3144_s28 + $0x2a0] ss:$12 sps:$4 sm:$0xff]   ;;  %v2725_v40 = vld [vmem:[%s3144_s28 + $0x2bc] ss:$12 sps:$4 sm:$0xff]   ;;  %v2728_v42 = vld [vmem:[%s3144_s28 + $0x2b8] ss:$12 sps:$4 sm:$0xff]  }
  0x1c   : > { %1042 = vmatprep.subr.bf16.mxu0 %v3086_v1  ;;  %2637 = vmatprep.subr.bf16.mxu1 %v3086_v1  ;;  %v2729_v43 = vld [vmem:[%s3144_s28 + $0x94] ss:$12 sps:$4 sm:$0xff]   ;;  %v2733_v45 = vld [vmem:[%s3144_s28 + $0x90] ss:$12 sps:$4 sm:$0xff]   ;;  %v2735_v47 = vld [vmem:[%s3144_s28 + $0xac] ss:$12 sps:$4 sm:$0xff]  }
  0x1d   : > { %v2731_v44 = vld [vmem:[%s3144_s28 + $0x2d4] ss:$12 sps:$4 sm:$0xff]   ;;  %v2734_v46 = vld [vmem:[%s3144_s28 + $0x2d0] ss:$12 sps:$4 sm:$0xff]   ;;  %v2737_v48 = vld [vmem:[%s3144_s28 + $0x2ec] ss:$12 sps:$4 sm:$0xff]  }
  0x1e   : > { %v2739_v49 = vld [vmem:[%s3144_s28 + $0xa8] ss:$12 sps:$4 sm:$0xff]   ;;  %v2741_v51 = vld [vmem:[%s3144_s28 + $0xc4] ss:$12 sps:$4 sm:$0xff]   ;;  %v2744_v53 = vld [vmem:[%s3144_s28 + $0xc0] ss:$12 sps:$4 sm:$0xff]  }
  0x1f   : > { %1043 = vmatpush1.bf16.msra.mxu0 %v2679_v5  ;;  %2653 = vmatpush1.bf16.msra.mxu1 %v2679_v5  ;;  %v2740_v50 = vld [vmem:[%s3144_s28 + $0x2e8] ss:$12 sps:$4 sm:$0xff]   ;;  %v2745_v54 = vld [vmem:[%s3144_s28 + $0x20] ss:$12 sps:$4 sm:$0xff]   ;;  %v2748_v56 = vld [vmem:[%s3144_s28 + $0x38] ss:$12 sps:$4 sm:$0xff]  }
  0x20   : > { %1044 = vmatprep.subr.bf16.mxu0 %v3086_v1  ;;  %2638 = vmatprep.subr.bf16.mxu1 %v3086_v1  ;;  %v2743_v52 = vld [vmem:[%s3144_s28 + $0x8] ss:$12 sps:$4 sm:$0xff]   ;;  %v2749_v57 = vld [vmem:[%s3144_s28 + $0xd8] ss:$12 sps:$4 sm:$0xff]   ;;  %v2750_v58 = vld [vmem:[%s3144_s28 + $0x50] ss:$12 sps:$4 sm:$0xff]  }
  0x21   : > { %v2746_v55 = vld [vmem:[%s3144_s28 + $0xdc] ss:$12 sps:$4 sm:$0xff]   ;;  %v2751_v59 = vld [vmem:[%s3144_s28 + $0xf4] ss:$12 sps:$4 sm:$0xff]   ;;  %v2756_v63 = vld [vmem:[%s3144_s28 + $0x10c] ss:$12 sps:$4 sm:$0xff]  }
  0x22   : > { %v2753_v60 = vld [vmem:[%s3144_s28 + $0x68] ss:$12 sps:$4 sm:$0xff]   ;;  %v2754_v61 = vld [vmem:[%s3144_s28 + $0xf0] ss:$12 sps:$4 sm:$0xff]   ;;  %v2755_v62 = vld [vmem:[%s3144_s28 + $0x80] ss:$12 sps:$4 sm:$0xff]  }
  0x23   : > { %1045 = vmatpush1.bf16.msra.mxu0 %v2680_v7  ;;  %2654 = vmatpush1.bf16.msra.mxu1 %v2680_v7  ;;  %v2758_v0 = vld [vmem:[%s3144_s28 + $0x98] ss:$12 sps:$4 sm:$0xff]   ;;  %v2760_v2 = vld [vmem:[%s3144_s28 + $0xb0] ss:$12 sps:$4 sm:$0xff]   ;;  %v2763_v4 = vld [vmem:[%s3144_s28 + $0xc8] ss:$12 sps:$4 sm:$0xff]  }
  0x24   : > { %1046 = vmatprep.subr.bf16.mxu0 %v3086_v1  ;;  %2639 = vmatprep.subr.bf16.mxu1 %v3086_v1  ;;  %v2761_v3 = vld [vmem:[%s3144_s28 + $0x124] ss:$12 sps:$4 sm:$0xff]   ;;  %v2764_v5 = vld [vmem:[%s3144_s28 + $0x120] ss:$12 sps:$4 sm:$0xff]   ;;  %v2766_v7 = vld [vmem:[%s3144_s28 + $0x13c] ss:$12 sps:$4 sm:$0xff]  }
  0x25   : > { %v2765_v6 = vld [vmem:[%s3144_s28 + $0xe0] ss:$12 sps:$4 sm:$0xff]   ;;  %v2768_v8 = vld [vmem:[%s3144_s28 + $0xf8] ss:$12 sps:$4 sm:$0xff]  }
  0x27   : > { %1047 = vmatpush1.bf16.msra.mxu0 %v2681_v9  ;;  %2655 = vmatpush1.bf16.msra.mxu1 %v2681_v9  ;;  %v2769_v9 = vld [vmem:[%s3144_s28 + $0x138] ss:$12 sps:$4 sm:$0xff]  }
  0x28   : > { %1048 = vmatprep.subr.bf16.mxu0 %v3086_v1  ;;  %2640 = vmatprep.subr.bf16.mxu1 %v3086_v1 }
  0x2b   : > { %1049 = vmatpush1.bf16.msra.mxu0 %v2682_v10  ;;  %2656 = vmatpush1.bf16.msra.mxu1 %v2682_v10  ;;  %v2770_v10 = vld [vmem:[%s3144_s28 + $0x110] ss:$12 sps:$4 sm:$0xff]  }
  0x2c   : > { %1050 = vmatprep.subr.bf16.mxu0 %v3086_v1  ;;  %2641 = vmatprep.subr.bf16.mxu1 %v3086_v1 }
  0x2f   : > { %1051 = vmatpush1.bf16.msra.mxu0 %v2683_v11  ;;  %2657 = vmatpush1.bf16.msra.mxu1 %v2683_v11  ;;  %v2771_v11 = vld [vmem:[%s3144_s28 + $0x154] ss:$12 sps:$4 sm:$0xff]  }
  0x30   : > { %1052 = vmatprep.subr.bf16.mxu0 %v3086_v1  ;;  %2642 = vmatprep.subr.bf16.mxu1 %v3086_v1 }
  0x33   : > { %1053 = vmatpush1.bf16.msra.mxu0 %v2684_v12  ;;  %2658 = vmatpush1.bf16.msra.mxu1 %v2684_v12  ;;  %v2773_v12 = vld [vmem:[%s3144_s28 + $0x128] ss:$12 sps:$4 sm:$0xff]  }
  0x34   : > { %1054 = vmatprep.subr.bf16.mxu0 %v3086_v1  ;;  %2643 = vmatprep.subr.bf16.mxu1 %v3086_v1 }
  0x37   : > { %1055 = vmatpush1.bf16.msra.mxu0 %v2685_v13  ;;  %2659 = vmatpush1.bf16.msra.mxu1 %v2685_v13  ;;  %v2774_v13 = vld [vmem:[%s3144_s28 + $0x150] ss:$12 sps:$4 sm:$0xff]  }
  0x38   : > { %1056 = vmatprep.subr.bf16.mxu0 %v3086_v1  ;;  %2644 = vmatprep.subr.bf16.mxu1 %v3086_v1 }
  0x3b   : > { %1057 = vmatpush1.bf16.msra.mxu0 %v2686_v14  ;;  %2660 = vmatpush1.bf16.msra.mxu1 %v2686_v14  ;;  %v2775_v14 = vld [vmem:[%s3144_s28 + $0x140] ss:$12 sps:$4 sm:$0xff]  }
  0x3c   : > { %1058 = vmatprep.subr.bf16.mxu0 %v3086_v1  ;;  %2645 = vmatprep.subr.bf16.mxu1 %v3086_v1 }
  0x3f   : > { %1059 = vmatpush1.bf16.msra.mxu0 %v2687_v15  ;;  %2661 = vmatpush1.bf16.msra.mxu1 %v2687_v15  ;;  %v2776_v15 = vld [vmem:[%s3144_s28 + $0x16c] ss:$12 sps:$4 sm:$0xff]  }
  0x40   : > { %1060 = vmatprep.subr.bf16.mxu0 %v3086_v1  ;;  %2646 = vmatprep.subr.bf16.mxu1 %v3086_v1 }
  0x43   : > { %1061 = vmatpush1.bf16.msra.mxu0 %v2688_v16  ;;  %2662 = vmatpush1.bf16.msra.mxu1 %v2688_v16  ;;  %v2778_v16 = vld [vmem:[%s3144_s28 + $0x158] ss:$12 sps:$4 sm:$0xff]  }
  0x44   : > { %1062 = vmatprep.subr.bf16.mxu0 %v3086_v1  ;;  %2647 = vmatprep.subr.bf16.mxu1 %v3086_v1 }
  0x47   : > { %1063 = vmatpush1.bf16.msra.mxu0 %v2689_v17  ;;  %2663 = vmatpush1.bf16.msra.mxu1 %v2689_v17  ;;  %v2779_v17 = vld [vmem:[%s3144_s28 + $0x168] ss:$12 sps:$4 sm:$0xff]  }
  0x48   : > { %1064 = vmatprep.subr.bf16.mxu0 %v3086_v1  ;;  %2648 = vmatprep.subr.bf16.mxu1 %v3086_v1  ;;  %v2759_v1 = vld [vmem:[%s3144_s28 + $0x108] ss:$12 sps:$4 sm:$0xff]  }
  0x4b   : > { %1065 = vmatpush1.bf16.msra.mxu0 %v2690_v18  ;;  %2664 = vmatpush1.bf16.msra.mxu1 %v2690_v18  ;;  %v2780_v18 = vld [vmem:[%s3144_s28 + $0x170] ss:$12 sps:$4 sm:$0xff]  }
  0x4c   : > { %2565 = vmatprep.subr.bf16.mxu1 %v2697_v19 }
  0x4e   : > { %1067 = vmatmul.mubr.bf16.vlgmr.msra.gmra.mrb[0].mxu0 %v2691_v20  ;;  %1259 = vmatmul.mubr.bf16.vlgmr.msra.gmra.mrb[0].mxu1 %v2694_v21  ;;  %v2783_v20 = vld [vmem:[%s3144_s28 + $0x188] ss:$12 sps:$4 sm:$0xff]   ;;  %v2784_v21 = vld [vmem:[%s3144_s28 + $0x180] ss:$12 sps:$4 sm:$0xff]  }
  0x4f   : > { %2566 = vmatpush3.bf16.msra.mxu1 %v2697_v19  ;;  %1074 = vmatprep.mubr.bf16.mxu0 %v2698_v22  ;;  %v2781_v19 = vld [vmem:[%s3144_s28 + $0x184] ss:$12 sps:$4 sm:$0xff]   ;;  %v2785_v22 = vld [vmem:[%s3144_s28 + $0x1a0] ss:$12 sps:$4 sm:$0xff]  }
  0x50   : > { %1266 = vmatprep.mubr.bf16.mxu1 %v2700_v23  ;;  %2567 = vmatprep.subr.bf16.mxu1 %v2722_v24  ;;  %v2786_v23 = vld [vmem:[%s3144_s28 + $0x19c] ss:$12 sps:$4 sm:$0xff]  }
  0x53   : > { %2568 = vmatpush3.bf16.msra.mxu1 %v2722_v24  ;;  %v2788_v24 = vld [vmem:[%s3144_s28 + $0x1b8] ss:$12 sps:$4 sm:$0xff]  }
  0x56   : > { %1075 = vmatmul.mubr.bf16.gmra.mrb[4].mxu0 %v2702_v25  ;;  %1267 = vmatmul.mubr.bf16.gmra.mrb[4].mxu1 %v2703_v26  ;;  %v2789_v25 = vld [vmem:[%s3144_s28 + $0x198] ss:$12 sps:$4 sm:$0xff]   ;;  %v2790_v26 = vld [vmem:[%s3144_s28 + $0x1d0] ss:$12 sps:$4 sm:$0xff]  }
  0x57   : > { %1082 = vmatprep.mubr.bf16.mxu0 %v2704_v27  ;;  %1274 = vmatprep.mubr.bf16.mxu1 %v2706_v28  ;;  %v2791_v27 = vld [vmem:[%s3144_s28 + $0x1b4] ss:$12 sps:$4 sm:$0xff]  }
  0x58   : > { %v2793_v28 = vld [vmem:[%s3144_s28 + $0x1e8] ss:$12 sps:$4 sm:$0xff]  }
  0x5e   : > { %1083 = vmatmul.mubr.bf16.gmra.mrb[8].mxu0 %v2708_v29  ;;  %1275 = vmatmul.mubr.bf16.gmra.mrb[8].mxu1 %v2709_v30  ;;  %v2794_v29 = vld [vmem:[%s3144_s28 + $0x1b0] ss:$12 sps:$4 sm:$0xff]   ;;  %v2795_v30 = vld [vmem:[%s3144_s28 + $0x200] ss:$12 sps:$4 sm:$0xff]  }
  0x5f   : > { %1090 = vmatprep.mubr.bf16.mxu0 %v2710_v31  ;;  %1282 = vmatprep.mubr.bf16.mxu1 %v2712_v32  ;;  %v2796_v31 = vld [vmem:[%s3144_s28 + $0x1cc] ss:$12 sps:$4 sm:$0xff]  }
  0x60   : > { %v2798_v32 = vld [vmem:[%s3144_s28 + $0x218] ss:$12 sps:$4 sm:$0xff]  }
  0x66   : > { %1091 = vmatmul.mubr.bf16.gmra.mrb[12].mxu0 %v2714_v33  ;;  %1283 = vmatmul.mubr.bf16.gmra.mrb[12].mxu1 %v2715_v34  ;;  %v2799_v33 = vld [vmem:[%s3144_s28 + $0x1c8] ss:$12 sps:$4 sm:$0xff]   ;;  %v2800_v34 = vld [vmem:[%s3144_s28 + $0x230] ss:$12 sps:$4 sm:$0xff]  }
  0x67   : > { %1098 = vmatprep.mubr.bf16.mxu0 %v2716_v35  ;;  %1290 = vmatprep.mubr.bf16.mxu1 %v2718_v36  ;;  %v2801_v35 = vld [vmem:[%s3144_s28 + $0x1e4] ss:$12 sps:$4 sm:$0xff]   ;;  %v2803_v36 = vld [vmem:[%s3144_s28 + $0x248] ss:$12 sps:$4 sm:$0xff]  }
  0x6e   : > { %1099 = vmatmul.mubr.bf16.gmra.mrb[16].mxu0 %v2720_v37  ;;  %1291 = vmatmul.mubr.bf16.gmra.mrb[16].mxu1 %v2721_v38  ;;  %v2804_v37 = vld [vmem:[%s3144_s28 + $0x1e0] ss:$12 sps:$4 sm:$0xff]  }
  0x6f   : > { %1106 = vmatprep.mubr.bf16.mxu0 %v2723_v39  ;;  %1298 = vmatprep.mubr.bf16.mxu1 %v2725_v40  ;;  %v2805_v38 = vld [vmem:[%s3144_s28 + $0x260] ss:$12 sps:$4 sm:$0xff]   ;;  %v2806_v39 = vld [vmem:[%s3144_s28 + $0x1fc] ss:$12 sps:$4 sm:$0xff]   ;;  %v2808_v40 = vld [vmem:[%s3144_s28 + $0x278] ss:$12 sps:$4 sm:$0xff]  }
  0x76   : > { %1107 = vmatmul.mubr.bf16.gmra.mrb[20].mxu0 %v2727_v41  ;;  %1299 = vmatmul.mubr.bf16.gmra.mrb[20].mxu1 %v2728_v42  ;;  %v2809_v41 = vld [vmem:[%s3144_s28 + $0x1f8] ss:$12 sps:$4 sm:$0xff]   ;;  %v2810_v42 = vld [vmem:[%s3144_s28 + $0x290] ss:$12 sps:$4 sm:$0xff]  }
  0x77   : > { %1114 = vmatprep.mubr.bf16.mxu0 %v2729_v43  ;;  %1306 = vmatprep.mubr.bf16.mxu1 %v2731_v44  ;;  %v2811_v43 = vld [vmem:[%s3144_s28 + $0x214] ss:$12 sps:$4 sm:$0xff]  }
  0x78   : > { %v2813_v44 = vld [vmem:[%s3144_s28 + $0x2a8] ss:$12 sps:$4 sm:$0xff]  }
  0x7e   : > { %1115 = vmatmul.mubr.bf16.gmra.mrb[24].mxu0 %v2733_v45  ;;  %1307 = vmatmul.mubr.bf16.gmra.mrb[24].mxu1 %v2734_v46  ;;  %v2814_v45 = vld [vmem:[%s3144_s28 + $0x210] ss:$12 sps:$4 sm:$0xff]   ;;  %v2815_v46 = vld [vmem:[%s3144_s28 + $0x2c0] ss:$12 sps:$4 sm:$0xff]  }
  0x7f   : > { %1122 = vmatprep.mubr.bf16.mxu0 %v2735_v47  ;;  %1314 = vmatprep.mubr.bf16.mxu1 %v2737_v48  ;;  %v2816_v47 = vld [vmem:[%s3144_s28 + $0x22c] ss:$12 sps:$4 sm:$0xff]  }
  0x80   : > { %v2818_v48 = vld [vmem:[%s3144_s28 + $0x2d8] ss:$12 sps:$4 sm:$0xff]  }
  0x86   : > { %1123 = vmatmul.mubr.bf16.gmra.mrb[28].mxu0 %v2739_v49  ;;  %1315 = vmatmul.mubr.bf16.gmra.mrb[28].mxu1 %v2740_v50  ;;  %v2819_v49 = vld [vmem:[%s3144_s28 + $0x228] ss:$12 sps:$4 sm:$0xff]   ;;  %v2820_v50 = vld [vmem:[%s3144_s28 + $0x2f0] ss:$12 sps:$4 sm:$0xff]  }
  0x87   : > { %1130 = vmatprep.mubr.bf16.mxu0 %v2741_v51  ;;  %2569 = vmatprep.mubr.msk.bf16.mxu1 %vm937_vm0, %v2743_v52 }
  0x8e   : > { %1131 = vmatmul.mubr.bf16.gmra.mrb[32].mxu0 %v2744_v53  ;;  %2570 = vmatmul.mubr.msk.bf16.vlgmr.msra.gmra.mrb[32].mxu1 %vm937_vm0, %v2745_v54 }
  0x8f   : > { %1138 = vmatprep.mubr.bf16.mxu0 %v2746_v55  ;;  %2573 = vmatprep.mubr.msk.bf16.mxu1 %vm937_vm0, %v2748_v56 }
  0x96   : > { %1139 = vmatmul.mubr.bf16.gmra.mrb[36].mxu0 %v2749_v57  ;;  %2574 = vmatmul.mubr.msk.bf16.gmra.mrb[36].mxu1 %vm937_vm0, %v2750_v58 }
  0x97   : > { %1146 = vmatprep.mubr.bf16.mxu0 %v2751_v59  ;;  %2577 = vmatprep.mubr.msk.bf16.mxu1 %vm937_vm0, %v2753_v60 }
  0x9e   : > { %1147 = vmatmul.mubr.bf16.gmra.mrb[40].mxu0 %v2754_v61  ;;  %2578 = vmatmul.mubr.msk.bf16.gmra.mrb[40].mxu1 %vm937_vm0, %v2755_v62 }
  0x9f   : > { %1154 = vmatprep.mubr.bf16.mxu0 %v2756_v63  ;;  %2581 = vmatprep.mubr.msk.bf16.mxu1 %vm937_vm0, %v2758_v0 }
  0xa6   : > { %1155 = vmatmul.mubr.bf16.gmra.mrb[44].mxu0 %v2759_v1  ;;  %2582 = vmatmul.mubr.msk.bf16.gmra.mrb[44].mxu1 %vm937_vm0, %v2760_v2 }
  0xa7   : > { %1162 = vmatprep.mubr.bf16.mxu0 %v2761_v3  ;;  %2585 = vmatprep.mubr.msk.bf16.mxu1 %vm937_vm0, %v2763_v4 }
  0xae   : > { %1163 = vmatmul.mubr.bf16.gmra.mrb[48].mxu0 %v2764_v5  ;;  %2586 = vmatmul.mubr.msk.bf16.gmra.mrb[48].mxu1 %vm937_vm0, %v2765_v6 }
  0xaf   : > { %1170 = vmatprep.mubr.bf16.mxu0 %v2766_v7  ;;  %2589 = vmatprep.mubr.msk.bf16.mxu1 %vm937_vm0, %v2768_v8 }
  0xb6   : > { %1171 = vmatmul.mubr.bf16.gmra.mrb[52].mxu0 %v2769_v9  ;;  %2590 = vmatmul.mubr.msk.bf16.gmra.mrb[52].mxu1 %vm937_vm0, %v2770_v10 }
  0xb7   : > { %1178 = vmatprep.mubr.bf16.mxu0 %v2771_v11  ;;  %2593 = vmatprep.mubr.msk.bf16.mxu1 %vm937_vm0, %v2773_v12 }
  0xbe   : > { %1179 = vmatmul.mubr.bf16.gmra.mrb[56].mxu0 %v2774_v13  ;;  %2594 = vmatmul.mubr.msk.bf16.gmra.mrb[56].mxu1 %vm937_vm0, %v2775_v14 }
  0xbf   : > { %1186 = vmatprep.mubr.bf16.mxu0 %v2776_v15  ;;  %2597 = vmatprep.mubr.msk.bf16.mxu1 %vm937_vm0, %v2778_v16 }
  0xc6   : > { %1187 = vmatmul.mubr.bf16.gmra.mrb[60].mxu0 %v2779_v17  ;;  %2598 = vmatmul.mubr.msk.bf16.gmra.mrb[60].mxu1 %vm937_vm0, %v2780_v18 }
  0xc7   : > { %1194 = vmatprep.mubr.bf16.mxu0 %v2781_v19  ;;  %2601 = vmatprep.mubr.msk.bf16.mxu1 %vm937_vm0, %v2783_v20 }
  0xce   : > { %1195 = vmatmul.mubr.bf16.gmra.mrb[64].mxu0 %v2784_v21  ;;  %2602 = vmatmul.mubr.msk.bf16.gmra.mrb[64].mxu1 %vm937_vm0, %v2785_v22 }
  0xcf   : > { %1202 = vmatprep.mubr.bf16.mxu0 %v2786_v23  ;;  %2605 = vmatprep.mubr.msk.bf16.mxu1 %vm937_vm0, %v2788_v24 }
  0xd6   : > { %1203 = vmatmul.mubr.bf16.gmra.mrb[68].mxu0 %v2789_v25  ;;  %2606 = vmatmul.mubr.msk.bf16.gmra.mrb[68].mxu1 %vm937_vm0, %v2790_v26 }
  0xd7   : > { %1210 = vmatprep.mubr.bf16.mxu0 %v2791_v27  ;;  %2609 = vmatprep.mubr.msk.bf16.mxu1 %vm937_vm0, %v2793_v28 }
  0xde   : > { %1211 = vmatmul.mubr.bf16.gmra.mrb[72].mxu0 %v2794_v29  ;;  %2610 = vmatmul.mubr.msk.bf16.gmra.mrb[72].mxu1 %vm937_vm0, %v2795_v30 }
  0xdf   : > { %1218 = vmatprep.mubr.bf16.mxu0 %v2796_v31  ;;  %2613 = vmatprep.mubr.msk.bf16.mxu1 %vm937_vm0, %v2798_v32 }
  0xe6   : > { %1219 = vmatmul.mubr.bf16.gmra.mrb[76].mxu0 %v2799_v33  ;;  %2614 = vmatmul.mubr.msk.bf16.gmra.mrb[76].mxu1 %vm937_vm0, %v2800_v34 }
  0xe7   : > { %1226 = vmatprep.mubr.bf16.mxu0 %v2801_v35  ;;  %2617 = vmatprep.mubr.msk.bf16.mxu1 %vm937_vm0, %v2803_v36 }
  0xee   : > { %1227 = vmatmul.mubr.bf16.gmra.mrb[80].mxu0 %v2804_v37  ;;  %2618 = vmatmul.mubr.msk.bf16.gmra.mrb[80].mxu1 %vm937_vm0, %v2805_v38 }
  0xef   : > { %1234 = vmatprep.mubr.bf16.mxu0 %v2806_v39  ;;  %2621 = vmatprep.mubr.msk.bf16.mxu1 %vm937_vm0, %v2808_v40 }
  0xf6   : > { %1235 = vmatmul.mubr.bf16.gmra.mrb[84].mxu0 %v2809_v41  ;;  %2622 = vmatmul.mubr.msk.bf16.gmra.mrb[84].mxu1 %vm937_vm0, %v2810_v42 }
  0xf7   : > { %1242 = vmatprep.mubr.bf16.mxu0 %v2811_v43  ;;  %2625 = vmatprep.mubr.msk.bf16.mxu1 %vm937_vm0, %v2813_v44 }
  0xfe   : > { %1243 = vmatmul.mubr.bf16.gmra.mrb[88].mxu0 %v2814_v45  ;;  %2626 = vmatmul.mubr.msk.bf16.gmra.mrb[88].mxu1 %vm937_vm0, %v2815_v46 }
  0xff   : > { %1250 = vmatprep.mubr.bf16.mxu0 %v2816_v47  ;;  %2629 = vmatprep.mubr.msk.bf16.mxu1 %vm937_vm0, %v2818_v48 }
 0x106   : > { %1251 = vmatmul.mubr.bf16.gmra.mrb[92].mxu0 %v2819_v49  ;;  %2630 = vmatmul.mubr.msk.bf16.gmra.mrb[92].mxu1 %vm937_vm0, %v2820_v50  ;;  %v3374_v49 = vld [vmem:[%s4666_s2] ss:$0 sm:$0xff] }
 0x121   : > { %v3337_v51 = vpop.f32.mrb[0].mxu0  ;;  %v3339_v52 = vpop.f32.mrb[0].mxu1 }
 0x122   : > { %v1070_v53 = vpop.f32.mrb[1].mxu0  ;;  %v1262_v54 = vpop.f32.mrb[1].mxu1 }
 0x123   : > { %v3341_v55 = vpop.f32.mrb[2].mxu0  ;;  %v3343_v56 = vpop.f32.mrb[2].mxu1  ;;  %v1069_v54 = vadd.f32 %v3374_v49, %v3337_v51 }
 0x124   : > { %v1073_v57 = vpop.f32.mrb[3].mxu0  ;;  %v1265_v58 = vpop.f32.mrb[3].mxu1 }
 0x125   : > { %v3380_v57 = vadd.f32 %v3374_v49, %v3339_v52  ;;  %v1072_v58 = vadd.f32 %v3374_v49, %v3341_v55 }
 0x129   : > { %v1076_v59 = vpop.f32.mrb[4].mxu0  ;;  %v1268_v60 = vpop.f32.mrb[4].mxu1 }
 0x12a   : > { %v1078_v61 = vpop.f32.mrb[5].mxu0  ;;  %v1270_v62 = vpop.f32.mrb[5].mxu1 }
 0x12b   : > { %v1079_v63 = vpop.f32.mrb[6].mxu0  ;;  %v1271_v0 = vpop.f32.mrb[6].mxu1  ;;  %v3386_v61 = vadd.f32 %v3374_v49, %v3343_v56  ;;  %v1077_v62 = vadd.f32 %v3374_v49, %v1076_v59 }
 0x12c   : > { %v1081_v1 = vpop.f32.mrb[7].mxu0  ;;  %v1273_v2 = vpop.f32.mrb[7].mxu1  ;;  %v3394_v51 = vadd.f32 %v3374_v49, %v1271_v0 }
 0x12d   : > { %v3390_v1 = vadd.f32 %v3374_v49, %v1268_v60  ;;  %v1080_v2 = vadd.f32 %v3374_v49, %v1079_v63 }
 0x131   : > { %v1084_v3 = vpop.f32.mrb[8].mxu0  ;;  %v1276_v4 = vpop.f32.mrb[8].mxu1 }
 0x132   : > { %v1086_v5 = vpop.f32.mrb[9].mxu0  ;;  %v1278_v6 = vpop.f32.mrb[9].mxu1  ;;  %v1085_v52 = vadd.f32 %v3374_v49, %v1084_v3 }
 0x133   : > { %v1087_v7 = vpop.f32.mrb[10].mxu0  ;;  %v1279_v8 = vpop.f32.mrb[10].mxu1  ;;  %v3398_v5 = vadd.f32 %v3374_v49, %v1276_v4 }
 0x134   : > { %v1089_v9 = vpop.f32.mrb[11].mxu0  ;;  %v1281_v10 = vpop.f32.mrb[11].mxu1  ;;  %v3401_v55 = vadd.f32 %v3374_v49, %v1087_v7  ;;  %v3406_v59 = vadd.f32 %v3374_v49, %v1279_v8 }
 0x139   : > { %v1092_v11 = vpop.f32.mrb[12].mxu0  ;;  %v1284_v12 = vpop.f32.mrb[12].mxu1 }
 0x13a   : > { %v1094_v13 = vpop.f32.mrb[13].mxu0  ;;  %v1286_v14 = vpop.f32.mrb[13].mxu1  ;;  %v1093_v60 = vadd.f32 %v3374_v49, %v1092_v11  ;;  %v3410_v63 = vadd.f32 %v3374_v49, %v1284_v12 }
 0x13b   : > { %v1095_v15 = vpop.f32.mrb[14].mxu0  ;;  %v1287_v16 = vpop.f32.mrb[14].mxu1 }
 0x13c   : > { %v1097_v17 = vpop.f32.mrb[15].mxu0  ;;  %v1289_v18 = vpop.f32.mrb[15].mxu1  ;;  %v1096_v4 = vadd.f32 %v3374_v49, %v1095_v15  ;;  %v3416_v7 = vadd.f32 %v3374_v49, %v1287_v16 }
 0x141   : > { %v1100_v19 = vpop.f32.mrb[16].mxu0  ;;  %v1292_v20 = vpop.f32.mrb[16].mxu1 }
 0x142   : > { %v1102_v21 = vpop.f32.mrb[17].mxu0  ;;  %v1294_v22 = vpop.f32.mrb[17].mxu1  ;;  %v3419_v10 = vadd.f32 %v3374_v49, %v1100_v19  ;;  %v3426_v12 = vadd.f32 %v3374_v49, %v1292_v20 }
 0x143   : > { %v1103_v23 = vpop.f32.mrb[18].mxu0  ;;  %v3345_v24 = vpop.f32.mrb[18].mxu1 }
 0x144   : > { %v1105_v25 = vpop.f32.mrb[19].mxu0  ;;  %v1297_v26 = vpop.f32.mrb[19].mxu1  ;;  %v3433_v18 = vadd.f32 %v3374_v49, %v1103_v23  ;;  %v3441_v20 = vadd.f32 %v3374_v49, %v3345_v24 }
 0x149   : > { %v3347_v27 = vpop.f32.mrb[20].mxu0  ;;  %v3349_v28 = vpop.f32.mrb[20].mxu1 }
 0x14a   : > { %v1110_v29 = vpop.f32.mrb[21].mxu0  ;;  %v1302_v30 = vpop.f32.mrb[21].mxu1  ;;  %v1109_v24 = vadd.f32 %v3374_v49, %v3347_v27 }
 0x14b   : > { %v3351_v31 = vpop.f32.mrb[22].mxu0  ;;  %v3353_v32 = vpop.f32.mrb[22].mxu1  ;;  %v3457_v30 = vadd.f32 %v3374_v49, %v3349_v28 }
 0x14c   : > { %v1113_v33 = vpop.f32.mrb[23].mxu0  ;;  %v1305_v34 = vpop.f32.mrb[23].mxu1  ;;  %v3471_v28 = vadd.f32 %v3374_v49, %v3353_v32 }
 0x151   : > { %v3355_v35 = vpop.f32.mrb[24].mxu0  ;;  %v3357_v36 = vpop.f32.mrb[24].mxu1 }
 0x152   : > { %v1118_v37 = vpop.f32.mrb[25].mxu0  ;;  %v1310_v38 = vpop.f32.mrb[25].mxu1 }
 0x153   : > { %v3359_v39 = vpop.f32.mrb[26].mxu0  ;;  %v3361_v40 = vpop.f32.mrb[26].mxu1  ;;  %v3464_v37 = vadd.f32 %v3374_v49, %v3351_v31  ;;  %v3477_v31 = vadd.f32 %v3374_v49, %v3355_v35 }
 0x154   : > { %v1121_v41 = vpop.f32.mrb[27].mxu0  ;;  %v1313_v42 = vpop.f32.mrb[27].mxu1 }
 0x159   : > { %v3363_v43 = vpop.f32.mrb[28].mxu0  ;;  %v3365_v44 = vpop.f32.mrb[28].mxu1 }
 0x15a   : > { %v1126_v45 = vpop.f32.mrb[29].mxu0  ;;  %v1318_v46 = vpop.f32.mrb[29].mxu1 }
 0x15b   : > { %v3367_v47 = vpop.f32.mrb[30].mxu0  ;;  %v3369_v48 = vpop.f32.mrb[30].mxu1 }
 0x15c   : > { %v1129_v50 = vpop.f32.mrb[31].mxu0  ;;  %v1321_v53 = vpop.f32.mrb[31].mxu1 }
 0x161   : > { %v3403_v56 = vpop.f32.mrb[32].mxu0  ;;  %v2571_v6 = vpop.f32.mrb[32].mxu1 }
 0x162   : > { %v3412_v0 = vadd.f32 %v2571_v6, %v1077_v62  ;;  %v1134_v3 = vpop.f32.mrb[33].mxu0  ;;  %v1357_v9 = vpop.f32.mrb[33].mxu1 }
 0x163   : > { %v3421_v13 = vadd.f32 %v1357_v9, %v1069_v54  ;;  %v3423_v8 = vpop.f32.mrb[34].mxu0  ;;  %v2572_v11 = vpop.f32.mrb[34].mxu1  ;;  %v3481_v54 = vadd.f32 %v3374_v49, %v3357_v36  ;;  %v3504_v9 = vadd.f32 %v3374_v49, %v3363_v43  ;;  %v3520_v43 = vadd.f32 %v3374_v49, %v3367_v47 }
 0x164   : > { %vm1614_vm1 = vcmp.ge.f32.partialorder %v3412_v0, 0.0  ;;  %v1678_v14 = vsub.f32 0.0, %v3412_v0  ;;  %v3430_v17 = vadd.f32 %v2572_v11, %v1080_v2  ;;  %v1137_v15 = vpop.f32.mrb[35].mxu0  ;;  %v1360_v16 = vpop.f32.mrb[35].mxu1  ;;  %v3487_v2 = vadd.f32 %v3374_v49, %v3359_v39 }
 0x165   : > { %vm1612_vm2 = vcmp.ge.f32.partialorder %v3421_v13, 0.0  ;;  %v1676_v19 = vsub.f32 0.0, %v3421_v13  ;;  %v3437_v21 = vadd.f32 %v1360_v16, %v1072_v58  ;;  %4668 = vst [vmem:[#allocation2_spill] sm:$0xff] %v3481_v54  ;;  %v3500_v39 = vadd.f32 %v3374_v49, %v3361_v40 }
 0x166   : > { %v1742_v22 = vsel %vm1614_vm1, %v1678_v14, %v3412_v0  ;;  %vm1615_vm3 = vcmp.ge.f32.partialorder %v3430_v17, 0.0  ;;  %v1679_v25 = vsub.f32 0.0, %v3430_v17  ;;  %v3508_v11 = vadd.f32 %v3374_v49, %v3365_v44 }
 0x167   : > { %v1808_v23 = vmul.f32 1.442695, %v1742_v22  ;;  %v1740_v26 = vsel %vm1612_vm2, %v1676_v19, %v3421_v13  ;;  %vm1613_vm4 = vcmp.ge.f32.partialorder %v3437_v21, 0.0  ;;  %v1677_v29 = vsub.f32 0.0, %v3437_v21  ;;  %4669 = vst [vmem:[#allocation3_spill] sm:$0xff] %v3500_v39 }
 0x168   : > { %v1804_v33 = vmul.f32 1.442695, %v1740_v26  ;;  %v1743_v34 = vsel %vm1615_vm3, %v1679_v25, %v3430_v17  ;;  %v3526_v16 = vadd.f32 %v3374_v49, %v3369_v48  ;;  %v3530_v19 = vadd.f32 %v3374_v49, %v3403_v56 }
 0x169   : > { %2821 = vpow2.f32 %v1808_v23  ;;  %v1810_v38 = vmul.f32 1.442695, %v1743_v34  ;;  %v1741_v41 = vsel %vm1613_vm4, %v1677_v29, %v3437_v21  ;;  %v1140_v27 = vpop.f32.mrb[36].mxu0  ;;  %v2575_v42 = vpop.f32.mrb[36].mxu1  ;;  %v3537_v23 = vadd.f32 %v3374_v49, %v3423_v8 }
 0x16a   : > { %2823 = vpow2.f32 %v1804_v33  ;;  %v1806_v45 = vmul.f32 1.442695, %v1741_v41  ;;  %v3473_v46 = vadd.f32 %v2575_v42, %v1093_v60  ;;  %v1142_v50 = vpop.f32.mrb[37].mxu0  ;;  %v1373_v53 = vpop.f32.mrb[37].mxu1  ;;  %4670 = vst [vmem:[#allocation4_spill] sm:$0xff] %v3526_v16  ;;  %v3545_v34 = vadd.f32 %v3374_v49, %v1140_v27 }
 0x16b   : > { %2825 = vpow2.f32 %v1810_v38  ;;  %v3483_v58 = vadd.f32 %v1373_v53, %v1085_v52  ;;  %v1143_v62 = vpop.f32.mrb[38].mxu0  ;;  %v2576_v32 = vpop.f32.mrb[38].mxu1 }
 0x16c   : > { %2827 = vpow2.f32 %v1806_v45  ;;  %vm1618_vm5 = vcmp.ge.f32.partialorder %v3473_v46, 0.0  ;;  %v1682_v6 = vsub.f32 0.0, %v3473_v46  ;;  %v1145_v35 = vpop.f32.mrb[39].mxu0  ;;  %v1376_v60 = vpop.f32.mrb[39].mxu1  ;;  %v3493_v3 = vadd.f32 %v2576_v32, %v1096_v4 }
 0x16d   : > { %vm1616_vm6 = vcmp.ge.f32.partialorder %v3483_v58, 0.0  ;;  %v1680_v36 = vsub.f32 0.0, %v3483_v58  ;;  %v3496_v52 = vadd.f32 %v1376_v60, %v3401_v55  ;;  %v3556_v32 = vadd.f32 %v3374_v49, %v1143_v62 }
 0x16e   : > { %v1746_v4 = vsel %vm1618_vm5, %v1682_v6, %v3473_v46  ;;  %vm1619_vm7 = vcmp.ge.f32.partialorder %v3493_v3, 0.0  ;;  %v1683_v40 = vsub.f32 0.0, %v3493_v3 }
 0x16f   : > { %v1816_v14 = vmul.f32 1.442695, %v1746_v4  ;;  %v1744_v55 = vsel %vm1616_vm6, %v1680_v36, %v3483_v58  ;;  %vm1617_vm8 = vcmp.ge.f32.partialorder %v3496_v52, 0.0  ;;  %v1681_v44 = vsub.f32 0.0, %v3496_v52 }
 0x170   : > { %v1812_v15 = vmul.f32 1.442695, %v1744_v55  ;;  %v1747_v22 = vsel %vm1619_vm7, %v1683_v40, %v3493_v3 }
 0x171   : > { %2829 = vpow2.f32 %v1816_v14  ;;  %v1148_v47 = vpop.f32.mrb[40].mxu0  ;;  %v2579_v25 = vpop.f32.mrb[40].mxu1  ;;  %v1818_v26 = vmul.f32 1.442695, %v1747_v22  ;;  %v1745_v48 = vsel %vm1617_vm8, %v1681_v44, %v3496_v52 }
 0x172   : > { %2831 = vpow2.f32 %v1812_v15  ;;  %v1150_v29 = vpop.f32.mrb[41].mxu0  ;;  %v1389_v56 = vpop.f32.mrb[41].mxu1  ;;  %v1814_v38 = vmul.f32 1.442695, %v1745_v48  ;;  %v3547_v41 = vadd.f32 %v2579_v25, %v1109_v24  ;;  %v3581_v44 = vadd.f32 %v3374_v49, %v1148_v47 }
 0x173   : > { %v3542_v33 = vpop.eup %2821  ;;  %v3550_v42 = vadd.f32 %v1389_v56, %v3419_v10  ;;  %v1151_v8 = vpop.f32.mrb[42].mxu0  ;;  %2833 = vpow2.f32 %v1818_v26 }
 0x174   : > { %v2580_v45 = vpop.f32.mrb[42].mxu1  ;;  %v3552_v50 = vpop.eup %2823  ;;  %v1934_v53 = vadd.f32 1.0, %v3542_v33  ;;  %2835 = vpow2.f32 %v1814_v38  ;;  %vm1622_vm9 = vcmp.ge.f32.partialorder %v3547_v41, 0.0  ;;  %v1686_v60 = vsub.f32 0.0, %v3547_v41 }
 0x175   : > { %v3559_v6 = vadd.f32 %v2580_v45, %v3464_v37  ;;  %v1153_v27 = vpop.f32.mrb[43].mxu0  ;;  %v1392_v35 = vpop.f32.mrb[43].mxu1  ;;  %v1932_v10 = vadd.f32 1.0, %v3552_v50  ;;  %vm1620_vm10 = vcmp.ge.f32.partialorder %v3550_v42, 0.0  ;;  %v1684_v37 = vsub.f32 0.0, %v3550_v42 }
 0x176   : > { %v3561_v24 = vpop.eup %2825  ;;  %2837 = vrcp.f32 %v1934_v53  ;;  %v1750_v14 = vsel %vm1622_vm9, %v1686_v60, %v3547_v41  ;;  %v3584_v25 = vadd.f32 %v1392_v35, %v3433_v18  ;;  %v3587_v29 = vadd.f32 %v3374_v49, %v1151_v8 }
 0x177   : > { %v3566_v36 = vpop.eup %2827  ;;  %v1935_v62 = vadd.f32 1.0, %v3561_v24  ;;  %2839 = vrcp.f32 %v1932_v10  ;;  %vm1623_vm11 = vcmp.ge.f32.partialorder %v3559_v6, 0.0  ;;  %v1824_v55 = vmul.f32 1.442695, %v1750_v14 }
 0x178   : > { %v1933_v4 = vadd.f32 1.0, %v3566_v36  ;;  %v1748_v40 = vsel %vm1620_vm10, %v1684_v37, %v3550_v42  ;;  %v1687_v15 = vsub.f32 0.0, %v3559_v6  ;;  %vm1621_vm13 = vcmp.ge.f32.partialorder %v3584_v25, 0.0 }
 0x179   : > { %2841 = vrcp.f32 %v1935_v62  ;;  %v1820_v22 = vmul.f32 1.442695, %v1748_v40  ;;  %v1156_v26 = vpop.f32.mrb[44].mxu0  ;;  %v2583_v48 = vpop.f32.mrb[44].mxu1  ;;  %v1685_v27 = vsub.f32 0.0, %v3584_v25 }
 0x17a   : > { %2843 = vrcp.f32 %v1933_v4  ;;  %v1751_v56 = vsel %vm1623_vm11, %v1687_v15, %v3559_v6  ;;  %v3593_v38 = vadd.f32 %v2583_v48, %v3504_v9  ;;  %v1158_v45 = vpop.f32.mrb[45].mxu0  ;;  %v1405_v47 = vpop.f32.mrb[45].mxu1  ;;  %v3612_v40 = vadd.f32 %v3374_v49, %v1156_v26 }
 0x17b   : > { %2845 = vpow2.f32 %v1824_v55  ;;  %v3595_v53 = vpop.eup %2829  ;;  %v1826_v18 = vmul.f32 1.442695, %v1751_v56  ;;  %v1159_v8 = vpop.f32.mrb[46].mxu0  ;;  %v3605_v62 = vadd.f32 %v1405_v47, %v3477_v31  ;;  %v1749_v55 = vsel %vm1621_vm13, %v1685_v27, %v3584_v25 }
 0x17c   : > { %2847 = vpow2.f32 %v1820_v22  ;;  %v2584_v35 = vpop.f32.mrb[46].mxu1  ;;  %v3599_v10 = vpop.eup %2831  ;;  %v1938_v60 = vadd.f32 1.0, %v3595_v53  ;;  %vm1626_vm14 = vcmp.ge.f32.partialorder %v3593_v38, 0.0  ;;  %v1690_v9 = vsub.f32 0.0, %v3593_v38 }
 0x17d   : > { %v1161_v37 = vpop.f32.mrb[47].mxu0  ;;  %v1408_v4 = vpop.f32.mrb[47].mxu1  ;;  %v1936_v14 = vadd.f32 1.0, %v3599_v10  ;;  %2849 = vpow2.f32 %v1826_v18  ;;  %v1822_v22 = vmul.f32 1.442695, %v1749_v55  ;;  %vm1624_vm15 = vcmp.ge.f32.partialorder %v3605_v62, 0.0 }
 0x17e   : > { %v3614_v15 = vpop.eup %2833  ;;  %2851 = vrcp.f32 %v1938_v60  ;;  %v1754_v31 = vsel %vm1626_vm14, %v1690_v9, %v3593_v38  ;;  %v1688_v26 = vsub.f32 0.0, %v3605_v62  ;;  %v3627_v27 = vadd.f32 %v2584_v35, %v3520_v43 }
 0x17f   : > { %v3621_v48 = vpop.eup %2835  ;;  %2853 = vrcp.f32 %v1936_v14  ;;  %v1939_v56 = vadd.f32 1.0, %v3614_v15  ;;  %v1832_v45 = vmul.f32 1.442695, %v1754_v31  ;;  %v3630_v60 = vadd.f32 %v1408_v4, %v3487_v2 }
 0x180   : > { %v2838_v47 = vpop.eup %2837  ;;  %v1937_v18 = vadd.f32 1.0, %v3621_v48  ;;  %2855 = vpow2.f32 %v1822_v22  ;;  %v1752_v14 = vsel %vm1624_vm15, %v1688_v26, %v3605_v62  ;;  %v3642_v55 = vadd.f32 %v3374_v49, %v1159_v8 }
 0x181   : > { %v2840_v9 = vpop.eup %2839  ;;  %v2126_v37 = vmul.f32 %v2838_v47, %v3542_v33  ;;  %2857 = vrcp.f32 %v1939_v56  ;;  %v1164_v43 = vpop.f32.mrb[48].mxu0  ;;  %v1828_v22 = vmul.f32 1.442695, %v1752_v14  ;;  %vm1627_vm0 = vcmp.ge.f32.partialorder %v3627_v27, 0.0 }
 0x182   : > { %v2587_v35 = vpop.f32.mrb[48].mxu1  ;;  %v2124_v4 = vmul.f32 %v2840_v9, %v3552_v50  ;;  %2859 = vrcp.f32 %v1937_v18  ;;  %v1166_v31 = vpop.f32.mrb[49].mxu0  ;;  %v1691_v39 = vsub.f32 0.0, %v3627_v27 }
 0x183   : > { %v2842_v2 = vpop.eup %2841  ;;  %v1421_v33 = vpop.f32.mrb[49].mxu1  ;;  %v2190_v26 = vsel %vm1614_vm1, %v2838_v47, %v2126_v37  ;;  %2861 = vpow2.f32 %v1832_v45  ;;  %vm1625_vm1 = vcmp.ge.f32.partialorder %v3630_v60, 0.0  ;;  %v3677_v31 = vadd.f32 %v3374_v49, %v1164_v43 }
 0x184   : > { %v2844_v56 = vpop.eup %2843  ;;  %v2127_v8 = vmul.f32 %v2842_v2, %v3561_v24  ;;  %v1167_v16 = vpop.f32.mrb[50].mxu0  ;;  %2255 = vst.msk [vmem:[%s3635_s7 + $0x10] sm:$0xff] %vm2252_vm12, %v2190_v26  ;;  %v2188_v18 = vsel %vm1612_vm2, %v2840_v9, %v2124_v4  ;;  %2863 = vpow2.f32 %v1828_v22  ;;  %v1755_v13 = vsel %vm1627_vm0, %v1691_v39, %v3627_v27 }
 0x185   : > { %v3650_v54 = vpop.f32.mrb[50].mxu1  ;;  %v3652_v50 = vpop.eup %2845  ;;  %v2125_v0 = vmul.f32 %v2844_v56, %v3566_v36  ;;  %2253 = vst.msk [vmem:[%s3635_s7] sm:$0xff] %vm2252_vm12, %v2188_v18  ;;  %v1689_v36 = vsub.f32 0.0, %v3630_v60  ;;  %v1834_v22 = vmul.f32 1.442695, %v1755_v13  ;;  %v3690_v21 = vadd.f32 %v1421_v33, %v3530_v19 }
 0x186   : > { %v1169_v24 = vpop.f32.mrb[51].mxu0  ;;  %v1424_v45 = vpop.f32.mrb[51].mxu1  ;;  %v2191_v37 = vsel %vm1615_vm3, %v2842_v2, %v2127_v8  ;;  %v1942_v14 = vadd.f32 1.0, %v3652_v50  ;;  %v3687_v2 = vadd.f32 %v2587_v35, %v3545_v34  ;;  %v3694_v8 = vadd.f32 %v3374_v49, %v1167_v16 }
 0x187   : > { %v3660_v47 = vpop.eup %2847  ;;  %2256 = vst.msk [vmem:[%s3635_s7 + $0x18] sm:$0xff] %vm2252_vm12, %v2191_v37  ;;  %v2189_v9 = vsel %vm1613_vm4, %v2844_v56, %v2125_v0  ;;  %v1753_v39 = vsel %vm1625_vm1, %v1689_v36, %v3630_v60  ;;  %vm1628_vm3 = vcmp.ge.f32.partialorder %v3690_v21, 0.0  ;;  %v1692_v16 = vsub.f32 0.0, %v3690_v21 }
 0x188   : > { %v1940_v4 = vadd.f32 1.0, %v3660_v47  ;;  %v3679_v17 = vpop.eup %2849  ;;  %2254 = vst.msk [vmem:[%s3635_s7 + $0x8] sm:$0xff] %vm2252_vm12, %v2189_v9  ;;  %2865 = vrcp.f32 %v1942_v14  ;;  %v1830_v26 = vmul.f32 1.442695, %v1753_v39  ;;  %vm1630_vm2 = vcmp.ge.f32.partialorder %v3687_v2, 0.0 }
 0x189   : > { %v2852_v56 = vpop.eup %2851  ;;  %v1943_v43 = vadd.f32 1.0, %v3679_v17  ;;  %v1694_v34 = vsub.f32 0.0, %v3687_v2  ;;  %v1172_v35 = vpop.f32.mrb[52].mxu0 }
 0x18a   : > { %2867 = vrcp.f32 %v1940_v4  ;;  %v2854_v18 = vpop.eup %2853  ;;  %v2130_v0 = vmul.f32 %v2852_v56, %v3595_v53  ;;  %v2591_v24 = vpop.f32.mrb[52].mxu1 }
 0x18b   : > { %2869 = vpow2.f32 %v1834_v22  ;;  %v3699_v19 = vpop.eup %2855  ;;  %v2128_v33 = vmul.f32 %v2854_v18, %v3599_v10  ;;  %v1174_v37 = vpop.f32.mrb[53].mxu0  ;;  %v1758_v9 = vsel %vm1630_vm2, %v1694_v34, %v3687_v2  ;;  %v3754_v52 = vadd.f32 %v2591_v24, %v3612_v40 }
 0x18c   : > { %2871 = vrcp.f32 %v1943_v43  ;;  %v1437_v14 = vpop.f32.mrb[53].mxu1  ;;  %v2858_v53 = vpop.eup %2857  ;;  %v2194_v13 = vsel %vm1618_vm5, %v2852_v56, %v2130_v0  ;;  %v1941_v36 = vadd.f32 1.0, %v3699_v19  ;;  %v1840_v56 = vmul.f32 1.442695, %v1758_v9 }
 0x18d   : > { %2873 = vpow2.f32 %v1830_v26  ;;  %v1175_v10 = vpop.f32.mrb[54].mxu0  ;;  %v3710_v4 = vpop.f32.mrb[54].mxu1  ;;  %2259 = vst.msk [vmem:[%s3635_s7 + $0x30] sm:$0xff] %vm2252_vm12, %v2194_v13  ;;  %v2192_v39 = vsel %vm1616_vm6, %v2854_v18, %v2128_v33  ;;  %v2131_v46 = vmul.f32 %v2858_v53, %v3614_v15  ;;  %v1756_v43 = vsel %vm1628_vm3, %v1692_v16, %v3690_v21 }
 0x18e   : > { %v2860_v22 = vpop.eup %2859  ;;  %v1177_v26 = vpop.f32.mrb[55].mxu0  ;;  %2257 = vst.msk [vmem:[%s3635_s7 + $0x20] sm:$0xff] %vm2252_vm12, %v2192_v39  ;;  %2875 = vrcp.f32 %v1941_v36  ;;  %v1836_v58 = vmul.f32 1.442695, %v1756_v43  ;;  %v3729_v15 = vadd.f32 %v3650_v54, %v3556_v32  ;;  %v3737_v13 = vadd.f32 %v1424_v45, %v3537_v23 }
 0x18f   : > { %v3720_v0 = vpop.f32.mrb[55].mxu1  ;;  %v3722_v34 = vpop.eup %2861  ;;  %v2129_v37 = vmul.f32 %v2860_v22, %v3621_v48  ;;  %v2195_v33 = vsel %vm1619_vm7, %v2858_v53, %v2131_v46  ;;  %2877 = vpow2.f32 %v1840_v56  ;;  %v3751_v32 = vadd.f32 %v3374_v49, %v1172_v35 }
 0x190   : > { %v3731_v18 = vpop.eup %2863  ;;  %v1946_v16 = vadd.f32 1.0, %v3722_v34  ;;  %2260 = vst.msk [vmem:[%s3635_s7 + $0x38] sm:$0xff] %vm2252_vm12, %v2195_v33  ;;  %2879 = vpow2.f32 %v1836_v58  ;;  %vm1631_vm4 = vcmp.ge.f32.partialorder %v3729_v15, 0.0  ;;  %v1695_v54 = vsub.f32 0.0, %v3729_v15 }
 0x191   : > { %v2193_v48 = vsel %vm1617_vm8, %v2860_v22, %v2129_v37  ;;  %v1944_v36 = vadd.f32 1.0, %v3731_v18  ;;  %vm1629_vm5 = vcmp.ge.f32.partialorder %v3737_v13, 0.0  ;;  %v1693_v3 = vsub.f32 0.0, %v3737_v13  ;;  %v1180_v53 = vpop.f32.mrb[56].mxu0  ;;  %v3759_v9 = vpop.f32.mrb[56].mxu1 }
 0x192   : > { %2258 = vst.msk [vmem:[%s3635_s7 + $0x28] sm:$0xff] %vm2252_vm12, %v2193_v48  ;;  %2881 = vrcp.f32 %v1946_v16  ;;  %v2866_v23 = vpop.eup %2865  ;;  %v3757_v45 = vadd.f32 %v1437_v14, %v3581_v44  ;;  %v1759_v46 = vsel %vm1631_vm4, %v1695_v54, %v3729_v15  ;;  %v3769_v40 = vadd.f32 %v3374_v49, %v1175_v10  ;;  %v1182_v24 = vpop.f32.mrb[57].mxu0 }
 0x193   : > { %2883 = vrcp.f32 %v1944_v36  ;;  %v2134_v39 = vmul.f32 %v2866_v23, %v3652_v50  ;;  %v1757_v35 = vsel %vm1629_vm5, %v1693_v3, %v3737_v13  ;;  %v3771_v44 = vpop.f32.mrb[57].mxu1  ;;  %v1842_v50 = vmul.f32 1.442695, %v1759_v46  ;;  %v1183_v26 = vpop.f32.mrb[58].mxu0 }
 0x194   : > { %v2868_v22 = vpop.eup %2867  ;;  %v1838_v43 = vmul.f32 1.442695, %v1757_v35  ;;  %vm1634_vm6 = vcmp.ge.f32.partialorder %v3754_v52, 0.0  ;;  %v1698_v33 = vsub.f32 0.0, %v3754_v52  ;;  %vm1632_vm7 = vcmp.ge.f32.partialorder %v3757_v45, 0.0  ;;  %v2596_v16 = vpop.f32.mrb[58].mxu1 }
 0x195   : > { %v3773_v14 = vpop.eup %2869  ;;  %v2132_v56 = vmul.f32 %v2868_v22, %v3660_v47  ;;  %v2198_v58 = vsel %vm1622_vm9, %v2866_v23, %v2134_v39  ;;  %v1185_v48 = vpop.f32.mrb[59].mxu0  ;;  %2885 = vpow2.f32 %v1842_v50  ;;  %v1696_v41 = vsub.f32 0.0, %v3757_v45 }
 0x196   : > { %v2872_v37 = vpop.eup %2871  ;;  %v1947_v10 = vadd.f32 1.0, %v3773_v14  ;;  %2263 = vst.msk [vmem:[%s3635_s7 + $0x50] sm:$0xff] %vm2252_vm12, %v2198_v58  ;;  %v3790_v3 = vpop.f32.mrb[59].mxu1  ;;  %v1762_v39 = vsel %vm1634_vm6, %v1698_v33, %v3754_v52  ;;  %v3800_v42 = vadd.f32 %v3710_v4, %v3642_v55  ;;  %v3829_v48 = vadd.f32 %v3374_v49, %v1180_v53 }
 0x197   : > { %v3782_v36 = vpop.eup %2873  ;;  %v2196_v47 = vsel %vm1620_vm10, %v2868_v22, %v2132_v56  ;;  %v2135_v54 = vmul.f32 %v2872_v37, %v3679_v17  ;;  %v1848_v46 = vmul.f32 1.442695, %v1762_v39  ;;  %v1760_v35 = vsel %vm1632_vm7, %v1696_v41, %v3757_v45 }
 0x198   : > { %2261 = vst.msk [vmem:[%s3635_s7 + $0x40] sm:$0xff] %vm2252_vm12, %v2196_v47  ;;  %2887 = vrcp.f32 %v1947_v10  ;;  %v1945_v23 = vadd.f32 1.0, %v3782_v36  ;;  %v2876_v22 = vpop.eup %2875  ;;  %v1844_v50 = vmul.f32 1.442695, %v1760_v35  ;;  %vm1635_vm8 = vcmp.ge.f32.partialorder %v3800_v42, 0.0 }
 0x199   : > { %v2199_v17 = vsel %vm1623_vm11, %v2872_v37, %v2135_v54  ;;  %2889 = vpow2.f32 %v1838_v43  ;;  %v3807_v24 = vpop.eup %2877  ;;  %v2133_v56 = vmul.f32 %v2876_v22, %v3699_v19  ;;  %v1699_v4 = vsub.f32 0.0, %v3800_v42  ;;  %v3821_v37 = vpop.f32.mrb[60].mxu0 }
 0x19a   : > { %2264 = vst.msk [vmem:[%s3635_s7 + $0x58] sm:$0xff] %vm2252_vm12, %v2199_v17  ;;  %2891 = vrcp.f32 %v1945_v23  ;;  %v3813_v55 = vpop.eup %2879  ;;  %v1950_v6 = vadd.f32 1.0, %v3807_v24  ;;  %v3819_v43 = vadd.f32 %v3720_v0, %v3587_v29  ;;  %v3823_v58 = vpop.f32.mrb[60].mxu1  ;;  %v3852_v35 = vadd.f32 %v3759_v9, %v3751_v32 }
 0x19b   : > { %2893 = vpow2.f32 %v1848_v46  ;;  %v2197_v10 = vsel %vm1621_vm13, %v2876_v22, %v2133_v56  ;;  %v1948_v33 = vadd.f32 1.0, %v3813_v55  ;;  %v1190_v47 = vpop.f32.mrb[61].mxu0  ;;  %v3831_v54 = vpop.f32.mrb[61].mxu1  ;;  %v1763_v25 = vsel %vm1635_vm8, %v1699_v4, %v3800_v42 }
 0x19c   : > { %v2882_v19 = vpop.eup %2881  ;;  %2895 = vpow2.f32 %v1844_v50  ;;  %2262 = vst.msk [vmem:[%s3635_s7 + $0x48] sm:$0xff] %vm2252_vm12, %v2197_v10  ;;  %vm1633_vm9 = vcmp.ge.f32.partialorder %v3819_v43, 0.0  ;;  %v3840_v0 = vpop.f32.mrb[62].mxu0  ;;  %v1850_v39 = vmul.f32 1.442695, %v1763_v25  ;;  %v1697_v22 = vsub.f32 0.0, %v3819_v43 }
 0x19d   : > { %v2884_v41 = vpop.eup %2883  ;;  %v2138_v29 = vmul.f32 %v2882_v19, %v3722_v34  ;;  %2897 = vrcp.f32 %v1950_v6  ;;  %v3842_v53 = vpop.f32.mrb[62].mxu1  ;;  %v3856_v56 = vadd.f32 %v3771_v44, %v3677_v31  ;;  %v3869_v32 = vadd.f32 %v2596_v16, %v3769_v40 }
 0x19e   : > { %v2136_v23 = vmul.f32 %v2884_v41, %v3731_v18  ;;  %2899 = vrcp.f32 %v1948_v33  ;;  %v1193_v34 = vpop.f32.mrb[63].mxu0  ;;  %v3846_v17 = vpop.f32.mrb[63].mxu1  ;;  %v3859_v18 = vadd.f32 %v3374_v49, %v1183_v26  ;;  %v1761_v38 = vsel %vm1633_vm9, %v1697_v22, %v3819_v43 }
 0x19f   : > { %v2202_v46 = vsel %vm1626_vm14, %v2882_v19, %v2138_v29  ;;  %2901 = vpow2.f32 %v1850_v39  ;;  %v3871_v9 = vpop.eup %2885  ;;  %v1846_v31 = vmul.f32 1.442695, %v1761_v38  ;;  %vm1638_vm10 = vcmp.ge.f32.partialorder %v3852_v35, 0.0 }
 0x1a0   : > { %2267 = vst.msk [vmem:[%s3635_s7 + $0x70] sm:$0xff] %vm2252_vm12, %v2202_v46  ;;  %v2200_v50 = vsel %vm1624_vm15, %v2884_v41, %v2136_v23  ;;  %v1702_v44 = vsub.f32 0.0, %v3852_v35  ;;  %vm1636_vm11 = vcmp.ge.f32.partialorder %v3856_v56, 0.0  ;;  %v1951_v26 = vadd.f32 1.0, %v3871_v9 }
 0x1a1   : > { %2265 = vst.msk [vmem:[%s3635_s7 + $0x60] sm:$0xff] %vm2252_vm12, %v2200_v50  ;;  %v1700_v6 = vsub.f32 0.0, %v3856_v56  ;;  %vm1639_vm13 = vcmp.ge.f32.partialorder %v3869_v32, 0.0  ;;  %v1703_v40 = vsub.f32 0.0, %v3869_v32  ;;  %2903 = vpow2.f32 %v1846_v31  ;;  %v1196_v33 = vpop.f32.mrb[64].mxu0  ;;  %v3892_v47 = vpop.f32.mrb[64].mxu1 }
 0x1a2   : > { %v2888_v62 = vpop.eup %2887  ;;  %v1766_v19 = vsel %vm1638_vm10, %v1702_v44, %v3852_v35  ;;  %v3890_v10 = vadd.f32 %v3790_v3, %v3694_v8  ;;  %2905 = vrcp.f32 %v1951_v26  ;;  %v1198_v23 = vpop.f32.mrb[65].mxu0 }
 0x1a3   : > { %v3882_v16 = vpop.eup %2889  ;;  %v2139_v4 = vmul.f32 %v2888_v62, %v3773_v14  ;;  %v1856_v25 = vmul.f32 1.442695, %v1766_v19  ;;  %v1764_v14 = vsel %vm1636_vm11, %v1700_v6, %v3856_v56  ;;  %v3898_v39 = vpop.f32.mrb[65].mxu1  ;;  %v1767_v46 = vsel %vm1639_vm13, %v1703_v40, %v3869_v32 }
 0x1a4   : > { %v2892_v41 = vpop.eup %2891  ;;  %v1949_v29 = vadd.f32 1.0, %v3882_v16  ;;  %v1852_v34 = vmul.f32 1.442695, %v1764_v14  ;;  %v1199_v50 = vpop.f32.mrb[66].mxu0  ;;  %v1858_v27 = vmul.f32 1.442695, %v1767_v46  ;;  %v1189_v14 = vadd.f32 %v3374_v49, %v3821_v37 }
 0x1a5   : > { %v3900_v22 = vpop.eup %2893  ;;  %v2203_v8 = vsel %vm1627_vm0, %v2888_v62, %v2139_v4  ;;  %v2137_v3 = vmul.f32 %v2892_v41, %v3782_v36  ;;  %v3908_v38 = vpop.f32.mrb[66].mxu1  ;;  %vm1637_vm14 = vcmp.ge.f32.partialorder %v3890_v10, 0.0  ;;  %v1701_v4 = vsub.f32 0.0, %v3890_v10 }
 0x1a6   : > { %v3910_v31 = vpop.eup %2895  ;;  %2268 = vst.msk [vmem:[%s3635_s7 + $0x78] sm:$0xff] %vm2252_vm12, %v2203_v8  ;;  %2907 = vrcp.f32 %v1949_v29  ;;  %v1954_v44 = vadd.f32 1.0, %v3900_v22  ;;  %v1201_v36 = vpop.f32.mrb[67].mxu0  ;;  %v3929_v23 = vadd.f32 %v3831_v54, %v3829_v48  ;;  %v3942_v48 = vadd.f32 %v3823_v58, %v1189_v14 }
 0x1a7   : > { %v3916_v62 = vpop.f32.mrb[67].mxu1  ;;  %v2898_v26 = vpop.eup %2897  ;;  %v2201_v6 = vsel %vm1625_vm1, %v2892_v41, %v2137_v3  ;;  %v1952_v40 = vadd.f32 1.0, %v3910_v31  ;;  %2909 = vpow2.f32 %v1856_v25  ;;  %v1765_v41 = vsel %vm1637_vm14, %v1701_v4, %v3890_v10 }
 0x1a8   : > { %v2900_v19 = vpop.eup %2899  ;;  %2266 = vst.msk [vmem:[%s3635_s7 + $0x68] sm:$0xff] %vm2252_vm12, %v2201_v6  ;;  %v2142_v29 = vmul.f32 %v2898_v26, %v3807_v24  ;;  %2911 = vrcp.f32 %v1954_v44  ;;  %v1192_v25 = vadd.f32 %v3374_v49, %v3840_v0  ;;  %v1854_v8 = vmul.f32 1.442695, %v1765_v41 }
 0x1a9   : > { %v2140_v60 = vmul.f32 %v2900_v19, %v3813_v55  ;;  %2913 = vrcp.f32 %v1952_v40  ;;  %v3937_v24 = vpop.eup %2901  ;;  %vm1640_vm15 = vcmp.ge.f32.partialorder %v3929_v23, 0.0  ;;  %v3950_v0 = vpop.f32.mrb[68].mxu0  ;;  %vm1642_vm0 = vcmp.ge.f32.partialorder %v3942_v48, 0.0 }
 0x1aa   : > { %v2206_v37 = vsel %vm1630_vm2, %v2898_v26, %v2142_v29  ;;  %2915 = vpow2.f32 %v1852_v34  ;;  %v1955_v54 = vadd.f32 1.0, %v3937_v24  ;;  %v3952_v3 = vpop.f32.mrb[68].mxu1  ;;  %v1706_v2 = vsub.f32 0.0, %v3942_v48  ;;  %v1206_v21 = vpop.f32.mrb[69].mxu0 }
 0x1ab   : > { %2271 = vst.msk [vmem:[%s3635_s7 + $0x90] sm:$0xff] %vm2252_vm12, %v2206_v37  ;;  %v2204_v55 = vsel %vm1628_vm3, %v2900_v19, %v2140_v60  ;;  %2917 = vpow2.f32 %v1858_v27  ;;  %v1704_v58 = vsub.f32 0.0, %v3929_v23  ;;  %v3959_v34 = vpop.f32.mrb[69].mxu1  ;;  %v3961_v46 = vpop.eup %2903  ;;  %v3964_v44 = vadd.f32 %v3842_v53, %v1192_v25 }
 0x1ac   : > { %2269 = vst.msk [vmem:[%s3635_s7 + $0x80] sm:$0xff] %vm2252_vm12, %v2204_v55  ;;  %2919 = vpow2.f32 %v1854_v8  ;;  %v3968_v27 = vadd.f32 %v3846_v17, %v3859_v18  ;;  %v1197_v36 = vadd.f32 %v3374_v49, %v1196_v33  ;;  %v3971_v26 = vpop.f32.mrb[70].mxu0  ;;  %v3973_v6 = vpop.f32.mrb[70].mxu1  ;;  %v1953_v4 = vadd.f32 1.0, %v3961_v46 }
 0x1ad   : > { %2921 = vrcp.f32 %v1955_v54  ;;  %v2906_v40 = vpop.eup %2905  ;;  %v1770_v19 = vsel %vm1642_vm0, %v1706_v2, %v3942_v48  ;;  %v1768_v53 = vsel %vm1640_vm15, %v1704_v58, %v3929_v23  ;;  %v1200_v17 = vadd.f32 %v3374_v49, %v1199_v50  ;;  %v1209_v18 = vpop.f32.mrb[71].mxu0 }
 0x1ae   : > { %v3983_v29 = vpop.f32.mrb[71].mxu1  ;;  %v2143_v33 = vmul.f32 %v2906_v40, %v3871_v9  ;;  %v1864_v14 = vmul.f32 1.442695, %v1770_v19  ;;  %v1860_v60 = vmul.f32 1.442695, %v1768_v53  ;;  %vm1643_vm1 = vcmp.ge.f32.partialorder %v3964_v44, 0.0 }
 0x1af   : > { %2923 = vrcp.f32 %v1953_v4  ;;  %v1707_v25 = vsub.f32 0.0, %v3964_v44  ;;  %vm1641_vm2 = vcmp.ge.f32.partialorder %v3968_v27, 0.0  ;;  %v1705_v37 = vsub.f32 0.0, %v3968_v27 }
 0x1b0   : > { %v2908_v41 = vpop.eup %2907  ;;  %v2207_v49 = vsel %vm1631_vm4, %v2906_v40, %v2143_v33  ;;  %2925 = vpow2.f32 %v1864_v14  ;;  %v3996_v9 = vadd.f32 %v3898_v39, %v1197_v36 }
 0x1b1   : > { %v3990_v8 = vpop.eup %2909  ;;  %v2141_v50 = vmul.f32 %v2908_v41, %v3882_v16  ;;  %2272 = vst.msk [vmem:[%s3635_s7 + $0x98] sm:$0xff] %vm2252_vm12, %v2207_v49  ;;  %2927 = vpow2.f32 %v1860_v60  ;;  %v1771_v2 = vsel %vm1643_vm1, %v1707_v25, %v3964_v44  ;;  %v1769_v15 = vsel %vm1641_vm2, %v1705_v37, %v3968_v27  ;;  %v1212_v40 = vpop.f32.mrb[72].mxu0 }
 0x1b2   : > { %v2912_v55 = vpop.eup %2911  ;;  %v1958_v54 = vadd.f32 1.0, %v3990_v8  ;;  %v1866_v21 = vmul.f32 1.442695, %v1771_v2  ;;  %v1862_v36 = vmul.f32 1.442695, %v1769_v15  ;;  %v4010_v4 = vpop.f32.mrb[72].mxu1 }
 0x1b3   : > { %v2914_v16 = vpop.eup %2913  ;;  %v2205_v58 = vsel %vm1629_vm5, %v2908_v41, %v2141_v50  ;;  %v2146_v39 = vmul.f32 %v2912_v55, %v3900_v22  ;;  %vm1644_vm3 = vcmp.ge.f32.partialorder %v3996_v9, 0.0  ;;  %v1708_v13 = vsub.f32 0.0, %v3996_v9  ;;  %v1214_v18 = vpop.f32.mrb[73].mxu0 }
 0x1b4   : > { %v4012_v19 = vpop.eup %2915  ;;  %2270 = vst.msk [vmem:[%s3635_s7 + $0x88] sm:$0xff] %vm2252_vm12, %v2205_v58  ;;  %v2144_v53 = vmul.f32 %v2914_v16, %v3910_v31  ;;  %2929 = vrcp.f32 %v1958_v54  ;;  %v4019_v33 = vpop.f32.mrb[73].mxu1  ;;  %v4027_v41 = vadd.f32 %v3916_v62, %v1200_v17 }
 0x1b5   : > { %v4021_v22 = vpop.eup %2917  ;;  %v2210_v14 = vsel %vm1634_vm6, %v2912_v55, %v2146_v39  ;;  %v1956_v60 = vadd.f32 1.0, %v4012_v19  ;;  %2931 = vpow2.f32 %v1866_v21  ;;  %v1215_v31 = vpop.f32.mrb[74].mxu0  ;;  %v1772_v50 = vsel %vm1644_vm3, %v1708_v13, %v3996_v9 }
 0x1b6   : > { %v4029_v25 = vpop.f32.mrb[74].mxu1  ;;  %v4031_v37 = vpop.eup %2919  ;;  %2275 = vst.msk [vmem:[%s3635_s7 + $0xb0] sm:$0xff] %vm2252_vm12, %v2210_v14  ;;  %v2208_v49 = vsel %vm1632_vm7, %v2914_v16, %v2144_v53  ;;  %v1959_v52 = vadd.f32 1.0, %v4021_v22  ;;  %2933 = vpow2.f32 %v1862_v36  ;;  %v1868_v2 = vmul.f32 1.442695, %v1772_v50 }
 0x1b7   : > { %v1217_v55 = vpop.f32.mrb[75].mxu0  ;;  %v4041_v62 = vpop.f32.mrb[75].mxu1  ;;  %2273 = vst.msk [vmem:[%s3635_s7 + $0xa0] sm:$0xff] %vm2252_vm12, %v2208_v49  ;;  %2935 = vrcp.f32 %v1956_v60  ;;  %v1957_v54 = vadd.f32 1.0, %v4031_v37  ;;  %vm1645_vm4 = vcmp.ge.f32.partialorder %v4027_v41, 0.0  ;;  %v1709_v15 = vsub.f32 0.0, %v4027_v41 }
 0x1b8   : > { %v2922_v17 = vpop.eup %2921  ;;  %2937 = vrcp.f32 %v1959_v52  ;;  %v4052_v16 = vld [vmem:[%s4666_s2] ss:$0 sm:$0xff] }
 0x1b9   : > { %v2147_v45 = vmul.f32 %v2922_v17, %v3937_v24  ;;  %v1205_v58 = vadd.f32 %v4052_v16, %v3950_v0  ;;  %2939 = vrcp.f32 %v1957_v54  ;;  %v1208_v39 = vadd.f32 %v4052_v16, %v3971_v26  ;;  %v2924_v24 = vpop.eup %2923  ;;  %v1220_v60 = vpop.f32.mrb[76].mxu0 }
 0x1ba   : > { %v1213_v21 = vadd.f32 %v4052_v16, %v1212_v40  ;;  %v1216_v36 = vadd.f32 %v4052_v16, %v1215_v31  ;;  %2941 = vpow2.f32 %v1868_v2  ;;  %v1773_v13 = vsel %vm1645_vm4, %v1709_v15, %v4027_v41  ;;  %v4068_v0 = vpop.eup %2925  ;;  %v4079_v31 = vpop.f32.mrb[76].mxu1 }
 0x1bb   : > { %v2211_v53 = vsel %vm1635_vm8, %v2922_v17, %v2147_v45  ;;  %v4066_v18 = vadd.f32 %v3892_v47, %v1205_v58  ;;  %v2145_v26 = vmul.f32 %v2924_v24, %v3961_v46  ;;  %v1870_v40 = vmul.f32 1.442695, %v1773_v13  ;;  %v4081_v49 = vpop.eup %2927  ;;  %v4089_v50 = vpop.f32.mrb[77].mxu1 }
 0x1bc   : > { %2276 = vst.msk [vmem:[%s3635_s7 + $0xb8] sm:$0xff] %vm2252_vm12, %v2211_v53  ;;  %v4074_v14 = vadd.f32 %v3908_v38, %v1208_v39  ;;  %v4077_v42 = vadd.f32 %v3959_v34, %v1213_v21  ;;  %v1962_v47 = vadd.f32 1.0, %v4068_v0  ;;  %v4087_v46 = vadd.f32 %v3983_v29, %v1216_v36  ;;  %v1222_v38 = vpop.f32.mrb[77].mxu0  ;;  %v4095_v54 = vpop.f32.mrb[78].mxu1 }
 0x1bd   : > { %vm1646_vm5 = vcmp.ge.f32.partialorder %v4066_v18, 0.0  ;;  %v1710_v52 = vsub.f32 0.0, %v4066_v18  ;;  %v2209_v34 = vsel %vm1633_vm9, %v2924_v24, %v2145_v26  ;;  %v1960_v55 = vadd.f32 1.0, %v4081_v49  ;;  %v1223_v17 = vpop.f32.mrb[78].mxu0  ;;  %v4104_v15 = vpop.f32.mrb[79].mxu1 }
 0x1be   : > { %2943 = vpow2.f32 %v1870_v40  ;;  %vm1647_vm6 = vcmp.ge.f32.partialorder %v4074_v14, 0.0  ;;  %v2930_v2 = vpop.eup %2929  ;;  %2274 = vst.msk [vmem:[%s3635_s7 + $0xa8] sm:$0xff] %vm2252_vm12, %v2209_v34  ;;  %v1711_v45 = vsub.f32 0.0, %v4074_v14  ;;  %vm1648_vm7 = vcmp.ge.f32.partialorder %v4077_v42, 0.0  ;;  %v1225_v43 = vpop.f32.mrb[79].mxu0 }
 0x1bf   : > { %2945 = vrcp.f32 %v1962_v47  ;;  %v1774_v29 = vsel %vm1646_vm5, %v1710_v52, %v4066_v18  ;;  %v4106_v58 = vpop.eup %2931  ;;  %v2150_v39 = vmul.f32 %v2930_v2, %v3990_v8  ;;  %v1712_v36 = vsub.f32 0.0, %v4077_v42 }
 0x1c0   : > { %2947 = vrcp.f32 %v1960_v55  ;;  %v1872_v21 = vmul.f32 1.442695, %v1774_v29  ;;  %v4110_v24 = vpop.eup %2933  ;;  %v1963_v53 = vadd.f32 1.0, %v4106_v58  ;;  %v1775_v13 = vsel %vm1647_vm6, %v1711_v45, %v4074_v14 }
 0x1c1   : > { %vm1649_vm8 = vcmp.ge.f32.partialorder %v4087_v46, 0.0  ;;  %v1713_v26 = vsub.f32 0.0, %v4087_v46  ;;  %v2936_v40 = vpop.eup %2935  ;;  %v2214_v8 = vsel %vm1638_vm10, %v2930_v2, %v2150_v39  ;;  %v1961_v47 = vadd.f32 1.0, %v4110_v24  ;;  %v1228_v39 = vpop.f32.mrb[80].mxu0 }
 0x1c2   : > { %2949 = vpow2.f32 %v1872_v21  ;;  %v1874_v52 = vmul.f32 1.442695, %v1775_v13  ;;  %v2938_v38 = vpop.eup %2937  ;;  %2279 = vst.msk [vmem:[%s3635_s7 + $0xd0] sm:$0xff] %vm2252_vm12, %v2214_v8  ;;  %v2148_v34 = vmul.f32 %v2936_v40, %v4012_v19  ;;  %v1776_v55 = vsel %vm1648_vm7, %v1712_v36, %v4077_v42  ;;  %v2619_v21 = vpop.f32.mrb[80].mxu1 }
 0x1c3   : > { %2951 = vrcp.f32 %v1963_v53  ;;  %v1777_v35 = vsel %vm1649_vm8, %v1713_v26, %v4087_v46  ;;  %v2940_v2 = vpop.eup %2939  ;;  %v2151_v29 = vmul.f32 %v2938_v38, %v4021_v22  ;;  %v1876_v45 = vmul.f32 1.442695, %v1776_v55  ;;  %v1230_v26 = vpop.f32.mrb[81].mxu0 }
 0x1c4   : > { %2953 = vrcp.f32 %v1961_v47  ;;  %v1878_v43 = vmul.f32 1.442695, %v1777_v35  ;;  %v4131_v19 = vpop.eup %2941  ;;  %v2212_v53 = vsel %vm1636_vm11, %v2936_v40, %v2148_v34  ;;  %v2149_v36 = vmul.f32 %v2940_v2, %v4031_v37  ;;  %v1549_v8 = vpop.f32.mrb[81].mxu1 }
 0x1c5   : > { %2955 = vpow2.f32 %v1874_v52  ;;  %v1221_v13 = vadd.f32 %v4052_v16, %v1220_v60  ;;  %2277 = vst.msk [vmem:[%s3635_s7 + $0xc0] sm:$0xff] %vm2252_vm12, %v2212_v53  ;;  %v2215_v22 = vsel %vm1639_vm13, %v2938_v38, %v2151_v29  ;;  %v1964_v47 = vadd.f32 1.0, %v4131_v19  ;;  %v4143_v56 = vpop.f32.mrb[82].mxu0  ;;  %v4145_v40 = vpop.f32.mrb[82].mxu1 }
 0x1c6   : > { %2957 = vpow2.f32 %v1876_v45  ;;  %v1224_v55 = vadd.f32 %v4052_v16, %v1223_v17  ;;  %2280 = vst.msk [vmem:[%s3635_s7 + $0xd8] sm:$0xff] %vm2252_vm12, %v2215_v22  ;;  %v2213_v37 = vsel %vm1637_vm14, %v2940_v2, %v2149_v36  ;;  %v1229_v32 = vadd.f32 %v4052_v16, %v1228_v39  ;;  %v1233_v52 = vpop.f32.mrb[83].mxu0  ;;  %v4155_v38 = vpop.f32.mrb[83].mxu1 }
 0x1c7   : > { %2959 = vpow2.f32 %v1878_v43  ;;  %v4152_v60 = vadd.f32 %v3952_v3, %v1221_v13  ;;  %2278 = vst.msk [vmem:[%s3635_s7 + $0xc8] sm:$0xff] %vm2252_vm12, %v2213_v37  ;;  %v4165_v10 = vadd.f32 %v2619_v21, %v3390_v1  ;;  %v4168_v35 = vadd.f32 %v1549_v8, %v3380_v57 }
 0x1c8   : > { %v4157_v34 = vpop.eup %2943  ;;  %2961 = vrcp.f32 %v1964_v47  ;;  %v4162_v17 = vadd.f32 %v3973_v6, %v1224_v55  ;;  %v4174_v45 = vadd.f32 %v4019_v33, %v1229_v32 }
 0x1c9   : > { %v2946_v3 = vpop.eup %2945  ;;  %v1965_v2 = vadd.f32 1.0, %v4157_v34  ;;  %vm1650_vm9 = vcmp.ge.f32.partialorder %v4152_v60, 0.0  ;;  %v1714_v29 = vsub.f32 0.0, %v4152_v60  ;;  %vm1662_vm11 = vcmp.ge.f32.partialorder %v4165_v10, 0.0  ;;  %v4193_v36 = vpop.f32.mrb[84].mxu0 }
 0x1ca   : > { %v2948_v43 = vpop.eup %2947  ;;  %v2154_v6 = vmul.f32 %v2946_v3, %v4068_v0  ;;  %vm1651_vm10 = vcmp.ge.f32.partialorder %v4162_v17, 0.0  ;;  %v1715_v1 = vsub.f32 0.0, %v4162_v17  ;;  %vm1652_vm13 = vcmp.ge.f32.partialorder %v4174_v45, 0.0  ;;  %v4195_v13 = vpop.f32.mrb[84].mxu1 }
 0x1cb   : > { %v2152_v57 = vmul.f32 %v2948_v43, %v4081_v49  ;;  %2963 = vrcp.f32 %v1965_v2  ;;  %v1778_v39 = vsel %vm1650_vm9, %v1714_v29, %v4152_v60  ;;  %v1716_v49 = vsub.f32 0.0, %v4174_v45  ;;  %v1238_v55 = vpop.f32.mrb[85].mxu0  ;;  %v4203_v37 = vpop.f32.mrb[85].mxu1 }
 0x1cc   : > { %v4185_v33 = vpop.eup %2949  ;;  %v2218_v0 = vsel %vm1642_vm0, %v2946_v3, %v2154_v6  ;;  %v1880_v21 = vmul.f32 1.442695, %v1778_v39  ;;  %v1779_v53 = vsel %vm1651_vm10, %v1715_v1, %v4162_v17  ;;  %v1726_v47 = vsub.f32 0.0, %v4165_v10  ;;  %v4212_v23 = vpop.f32.mrb[86].mxu0 }
 0x1cd   : > { %v2952_v26 = vpop.eup %2951  ;;  %2283 = vst.msk [vmem:[%s3635_s7 + $0xf0] sm:$0xff] %vm2252_vm12, %v2218_v0  ;;  %v2216_v8 = vsel %vm1640_vm15, %v2948_v43, %v2152_v57  ;;  %v1966_v48 = vadd.f32 1.0, %v4185_v33  ;;  %v1882_v22 = vmul.f32 1.442695, %v1779_v53  ;;  %v1780_v3 = vsel %vm1652_vm13, %v1716_v49, %v4174_v45  ;;  %v4214_v2 = vpop.f32.mrb[86].mxu1 }
 0x1ce   : > { %v2954_v32 = vpop.eup %2953  ;;  %2281 = vst.msk [vmem:[%s3635_s7 + $0xe0] sm:$0xff] %vm2252_vm12, %v2216_v8  ;;  %v2155_v52 = vmul.f32 %v2952_v26, %v4106_v58  ;;  %2965 = vpow2.f32 %v1880_v21  ;;  %vm1660_vm14 = vcmp.ge.f32.partialorder %v4168_v35, 0.0  ;;  %v1884_v6 = vmul.f32 1.442695, %v1780_v3  ;;  %v1241_v1 = vpop.f32.mrb[87].mxu0 }
 0x1cf   : > { %v4216_v29 = vpop.eup %2955  ;;  %v2153_v43 = vmul.f32 %v2954_v32, %v4110_v24  ;;  %2967 = vrcp.f32 %v1966_v48  ;;  %v1790_v58 = vsel %vm1662_vm11, %v1726_v47, %v4165_v10  ;;  %v4222_v57 = vpop.f32.mrb[87].mxu1  ;;  %v1724_v48 = vsub.f32 0.0, %v4168_v35 }
 0x1d0   : > { %v4224_v39 = vpop.eup %2957  ;;  %v2219_v0 = vsel %vm1643_vm1, %v2952_v26, %v2155_v52  ;;  %v1967_v21 = vadd.f32 1.0, %v4216_v29  ;;  %2969 = vpow2.f32 %v1882_v22  ;;  %v1904_v53 = vmul.f32 1.442695, %v1790_v58 }
 0x1d1   : > { %v4229_v24 = vpop.eup %2959  ;;  %2284 = vst.msk [vmem:[%s3635_s7 + $0xf8] sm:$0xff] %vm2252_vm12, %v2219_v0  ;;  %v2217_v49 = vsel %vm1641_vm2, %v2954_v32, %v2153_v43  ;;  %v1968_v8 = vadd.f32 1.0, %v4224_v39  ;;  %2971 = vpow2.f32 %v1884_v6  ;;  %v1232_v26 = vadd.f32 %v4052_v16, %v4143_v56 }
 0x1d2   : > { %v2962_v47 = vpop.eup %2961  ;;  %2282 = vst.msk [vmem:[%s3635_s7 + $0xe8] sm:$0xff] %vm2252_vm12, %v2217_v49  ;;  %2973 = vrcp.f32 %v1967_v21  ;;  %v1969_v44 = vadd.f32 1.0, %v4229_v24  ;;  %v4244_v22 = vadd.f32 %v4145_v40, %v3394_v51  ;;  %v1788_v55 = vsel %vm1660_vm14, %v1724_v48, %v4168_v35  ;;  %v4258_v51 = vpop.f32.mrb[88].mxu0 }
 0x1d3   : > { %v2156_v27 = vmul.f32 %v2962_v47, %v4131_v19  ;;  %2975 = vrcp.f32 %v1968_v8  ;;  %v4252_v32 = vadd.f32 %v4155_v38, %v3386_v61  ;;  %v1900_v52 = vmul.f32 1.442695, %v1788_v55  ;;  %v4260_v19 = vpop.f32.mrb[88].mxu1  ;;  %v1246_v61 = vpop.f32.mrb[89].mxu0 }
 0x1d4   : > { %2977 = vrcp.f32 %v1969_v44  ;;  %v4255_v56 = vadd.f32 %v4041_v62, %v1232_v26  ;;  %vm1663_vm15 = vcmp.ge.f32.partialorder %v4244_v22, 0.0  ;;  %v1727_v43 = vsub.f32 0.0, %v4244_v22  ;;  %v4266_v38 = vpop.f32.mrb[89].mxu1  ;;  %v4273_v9 = vpop.f32.mrb[90].mxu0 }
 0x1d5   : > { %v2964_v40 = vpop.eup %2963  ;;  %v2220_v3 = vsel %vm1644_vm3, %v2962_v47, %v2156_v27  ;;  %2979 = vpow2.f32 %v1904_v53  ;;  %vm1661_vm0 = vcmp.ge.f32.partialorder %v4252_v32, 0.0  ;;  %v4275_v58 = vpop.f32.mrb[90].mxu1  ;;  %v1725_v0 = vsub.f32 0.0, %v4252_v32 }
 0x1d6   : > { %2285 = vst.msk [vmem:[%s3635_s7 + $0x100] sm:$0xff] %vm2252_vm12, %v2220_v3  ;;  %v2157_v62 = vmul.f32 %v2964_v40, %v4157_v34  ;;  %2981 = vpow2.f32 %v1900_v52  ;;  %vm1653_vm1 = vcmp.ge.f32.partialorder %v4255_v56, 0.0  ;;  %v1717_v6 = vsub.f32 0.0, %v4255_v56  ;;  %v1249_v53 = vpop.f32.mrb[91].mxu0  ;;  %v4287_v49 = vpop.f32.mrb[91].mxu1 }
 0x1d7   : > { %v1791_v1 = vsel %vm1663_vm15, %v1727_v43, %v4244_v22  ;;  %v1237_v21 = vadd.f32 %v4052_v16, %v4193_v36  ;;  %v4285_v34 = vadd.f32 %v4195_v13, %v3410_v63  ;;  %v4298_v36 = vadd.f32 %v4203_v37, %v3398_v5 }
 0x1d8   : > { %v4289_v8 = vpop.eup %2965  ;;  %v2221_v48 = vsel %vm1645_vm4, %v2964_v40, %v2157_v62  ;;  %v1781_v47 = vsel %vm1653_vm1, %v1717_v6, %v4255_v56  ;;  %v1906_v44 = vmul.f32 1.442695, %v1791_v1  ;;  %v1789_v41 = vsel %vm1661_vm0, %v1725_v0, %v4252_v32 }
 0x1d9   : > { %v2968_v26 = vpop.eup %2967  ;;  %2286 = vst.msk [vmem:[%s3635_s7 + $0x108] sm:$0xff] %vm2252_vm12, %v2221_v48  ;;  %v1970_v63 = vadd.f32 1.0, %v4289_v8  ;;  %v1886_v13 = vmul.f32 1.442695, %v1781_v47  ;;  %v4307_v27 = vadd.f32 %v4010_v4, %v1237_v21  ;;  %v1902_v5 = vmul.f32 1.442695, %v1789_v41 }
 0x1da   : > { %v4309_v55 = vpop.eup %2969  ;;  %v2158_v52 = vmul.f32 %v2968_v26, %v4185_v33  ;;  %2983 = vpow2.f32 %v1906_v44  ;;  %vm1666_vm2 = vcmp.ge.f32.partialorder %v4285_v34, 0.0  ;;  %v1730_v61 = vsub.f32 0.0, %v4285_v34  ;;  %v4322_v62 = vpop.f32.mrb[92].mxu0 }
 0x1db   : > { %v4313_v37 = vpop.eup %2971  ;;  %2985 = vrcp.f32 %v1970_v63  ;;  %v1971_v40 = vadd.f32 1.0, %v4309_v55  ;;  %vm1654_vm3 = vcmp.ge.f32.partialorder %v4307_v27, 0.0  ;;  %v1718_v3 = vsub.f32 0.0, %v4307_v27  ;;  %v4324_v6 = vpop.f32.mrb[92].mxu1 }
 0x1dc   : > { %v2974_v4 = vpop.eup %2973  ;;  %v2222_v43 = vsel %vm1646_vm5, %v2968_v26, %v2158_v52  ;;  %v1972_v33 = vadd.f32 1.0, %v4313_v37  ;;  %2987 = vpow2.f32 %v1886_v13  ;;  %vm1664_vm4 = vcmp.ge.f32.partialorder %v4298_v36, 0.0  ;;  %v1254_v21 = vpop.f32.mrb[93].mxu0 }
 0x1dd   : > { %v2976_v1 = vpop.eup %2975  ;;  %2287 = vst.msk [vmem:[%s3635_s7 + $0x110] sm:$0xff] %vm2252_vm12, %v2222_v43  ;;  %v2159_v0 = vmul.f32 %v2974_v4, %v4216_v29  ;;  %2989 = vrcp.f32 %v1971_v40  ;;  %v1782_v18 = vsel %vm1654_vm3, %v1718_v3, %v4307_v27  ;;  %v4333_v53 = vpop.f32.mrb[93].mxu1  ;;  %v1794_v29 = vsel %vm1666_vm2, %v1730_v61, %v4285_v34 }
 0x1de   : > { %v2978_v48 = vpop.eup %2977  ;;  %v2160_v47 = vmul.f32 %v2976_v1, %v4224_v39  ;;  %2991 = vrcp.f32 %v1972_v33  ;;  %v1888_v44 = vmul.f32 1.442695, %v1782_v18  ;;  %v4339_v26 = vpop.f32.mrb[94].mxu0  ;;  %v1912_v39 = vmul.f32 1.442695, %v1794_v29 }
 0x1df   : > { %v4341_v63 = vpop.f32.mrb[94].mxu1  ;;  %v4343_v13 = vpop.eup %2979  ;;  %v2223_v41 = vsel %vm1647_vm6, %v2974_v4, %v2159_v0  ;;  %v2161_v52 = vmul.f32 %v2978_v48, %v4229_v24  ;;  %2993 = vpow2.f32 %v1902_v5  ;;  %v1728_v14 = vsub.f32 0.0, %v4298_v36 }
 0x1e0   : > { %v1257_v40 = vpop.f32.mrb[95].mxu0  ;;  %v4348_v3 = vpop.f32.mrb[95].mxu1  ;;  %2288 = vst.msk [vmem:[%s3635_s7 + $0x118] sm:$0xff] %vm2252_vm12, %v2223_v41  ;;  %v2224_v33 = vsel %vm1648_vm7, %v2976_v1, %v2160_v47  ;;  %v1982_v61 = vadd.f32 1.0, %v4343_v13  ;;  %2995 = vpow2.f32 %v1888_v44  ;;  %v1240_v4 = vadd.f32 %v4052_v16, %v4212_v23 }
 0x1e1   : > { %v4350_v43 = vpop.eup %2981  ;;  %2289 = vst.msk [vmem:[%s3635_s7 + $0x120] sm:$0xff] %vm2252_vm12, %v2224_v33  ;;  %v2225_v24 = vsel %vm1649_vm8, %v2978_v48, %v2161_v52  ;;  %2997 = vpow2.f32 %v1912_v39  ;;  %v1792_v42 = vsel %vm1664_vm4, %v1728_v14, %v4298_v36  ;;  %v4372_v1 = vadd.f32 %v4214_v2, %v3416_v7 }
 0x1e2   : > { %v1980_v5 = vadd.f32 1.0, %v4350_v43  ;;  %2290 = vst.msk [vmem:[%s3635_s7 + $0x128] sm:$0xff] %vm2252_vm12, %v2225_v24  ;;  %2999 = vrcp.f32 %v1982_v61  ;;  %v4376_v46 = vadd.f32 %v4222_v57, %v3406_v59  ;;  %v1908_v0 = vmul.f32 1.442695, %v1792_v42 }
 0x1e3   : > { %v4379_v18 = vadd.f32 %v4029_v25, %v1240_v4  ;;  %v1245_v23 = vadd.f32 %v4052_v16, %v4258_v51  ;;  %vm1667_vm5 = vcmp.ge.f32.partialorder %v4372_v1, 0.0  ;;  %v1731_v48 = vsub.f32 0.0, %v4372_v1 }
 0x1e4   : > { %3001 = vrcp.f32 %v1980_v5  ;;  %v4383_v21 = vpop.eup %2983  ;;  %vm1665_vm6 = vcmp.ge.f32.partialorder %v4376_v46, 0.0  ;;  %v1729_v7 = vsub.f32 0.0, %v4376_v46 }
 0x1e5   : > { %v2986_v59 = vpop.eup %2985  ;;  %v1983_v2 = vadd.f32 1.0, %v4383_v21  ;;  %3003 = vpow2.f32 %v1908_v0  ;;  %vm1655_vm7 = vcmp.ge.f32.partialorder %v4379_v18, 0.0  ;;  %v1719_v25 = vsub.f32 0.0, %v4379_v18 }
 0x1e6   : > { %v4392_v57 = vpop.eup %2987  ;;  %v2162_v51 = vmul.f32 %v2986_v59, %v4289_v8  ;;  %v1795_v47 = vsel %vm1667_vm5, %v1731_v48, %v4372_v1  ;;  %v1793_v44 = vsel %vm1665_vm6, %v1729_v7, %v4376_v46  ;;  %v4402_v29 = vadd.f32 %v4089_v50, %v1245_v23 }
 0x1e7   : > { %v2990_v41 = vpop.eup %2989  ;;  %v1973_v52 = vadd.f32 1.0, %v4392_v57  ;;  %3005 = vrcp.f32 %v1983_v2  ;;  %v1783_v39 = vsel %vm1655_vm7, %v1719_v25, %v4379_v18  ;;  %v1914_v8 = vmul.f32 1.442695, %v1795_v47 }
 0x1e8   : > { %v2992_v40 = vpop.eup %2991  ;;  %v2226_v33 = vsel %vm1650_vm9, %v2986_v59, %v2162_v51  ;;  %v2163_v61 = vmul.f32 %v2990_v41, %v4309_v55  ;;  %v1890_v14 = vmul.f32 1.442695, %v1783_v39  ;;  %v1910_v24 = vmul.f32 1.442695, %v1793_v44 }
 0x1e9   : > { %v4411_v50 = vpop.eup %2993  ;;  %2291 = vst.msk [vmem:[%s3635_s7 + $0x130] sm:$0xff] %vm2252_vm12, %v2226_v33  ;;  %v2164_v5 = vmul.f32 %v2992_v40, %v4313_v37  ;;  %3007 = vrcp.f32 %v1973_v52  ;;  %vm1656_vm8 = vcmp.ge.f32.partialorder %v4402_v29, 0.0  ;;  %v1720_v4 = vsub.f32 0.0, %v4402_v29 }
 0x1ea   : > { %v4418_v42 = vpop.eup %2995  ;;  %v2227_v60 = vsel %vm1651_vm10, %v2990_v41, %v2163_v61  ;;  %v1981_v55 = vadd.f32 1.0, %v4411_v50  ;;  %3009 = vpow2.f32 %v1890_v14  ;;  %v4425_v0 = vadd.f32 %v4260_v19, %v3457_v30 }
 0x1eb   : > { %v4427_v23 = vpop.eup %2997  ;;  %2292 = vst.msk [vmem:[%s3635_s7 + $0x138] sm:$0xff] %vm2252_vm12, %v2227_v60  ;;  %v2228_v37 = vsel %vm1652_vm13, %v2992_v40, %v2164_v5  ;;  %v1974_v48 = vadd.f32 1.0, %v4418_v42  ;;  %3011 = vpow2.f32 %v1914_v8  ;;  %v1784_v17 = vsel %vm1656_vm8, %v1720_v4, %v4402_v29 }
 0x1ec   : > { %v3000_v7 = vpop.eup %2999  ;;  %2293 = vst.msk [vmem:[%s3635_s7 + $0x140] sm:$0xff] %vm2252_vm12, %v2228_v37  ;;  %3013 = vrcp.f32 %v1981_v55  ;;  %v1986_v30 = vadd.f32 1.0, %v4427_v23  ;;  %v1892_v19 = vmul.f32 1.442695, %v1784_v17  ;;  %vm1670_vm9 = vcmp.ge.f32.partialorder %v4425_v0, 0.0 }
 0x1ed   : > { %v2174_v45 = vmul.f32 %v3000_v7, %v4343_v13  ;;  %3015 = vrcp.f32 %v1974_v48  ;;  %v1734_v2 = vsub.f32 0.0, %v4425_v0  ;;  %v4445_v25 = vadd.f32 %v4266_v38, %v3426_v12 }
 0x1ee   : > { %v3002_v59 = vpop.eup %3001  ;;  %3017 = vrcp.f32 %v1986_v30  ;;  %v1248_v47 = vadd.f32 %v4052_v16, %v4273_v9  ;;  %v4452_v44 = vadd.f32 %v4275_v58, %v3471_v28  ;;  %v4478_v39 = vadd.f32 %v4287_v49, %v3441_v20 }
 0x1ef   : > { %v2172_v51 = vmul.f32 %v3002_v59, %v4350_v43  ;;  %v4454_v41 = vpop.eup %3003  ;;  %v2238_v13 = vsel %vm1662_vm11, %v3000_v7, %v2174_v45  ;;  %3019 = vpow2.f32 %v1910_v24  ;;  %v1798_v12 = vsel %vm1670_vm9, %v1734_v2, %v4425_v0 }
 0x1f0   : > { %vm1668_vm10 = vcmp.ge.f32.partialorder %v4445_v25, 0.0  ;;  %2303 = vst.msk [vmem:[%s3635_s7 + $0x190] sm:$0xff] %vm2252_vm12, %v2238_v13  ;;  %v1984_v28 = vadd.f32 1.0, %v4454_v41  ;;  %3021 = vpow2.f32 %v1892_v19  ;;  %v1920_v9 = vmul.f32 1.442695, %v1798_v12 }
 0x1f1   : > { %v2236_v38 = vsel %vm1660_vm14, %v3002_v59, %v2172_v51  ;;  %v3006_v58 = vpop.eup %3005  ;;  %v1732_v10 = vsub.f32 0.0, %v4445_v25  ;;  %v4471_v43 = vadd.f32 %v4104_v15, %v1248_v47  ;;  %vm1671_vm11 = vcmp.ge.f32.partialorder %v4452_v44, 0.0  ;;  %v4671_v59 = vld [vmem:[#allocation2_spill] sm:$0xff] }
 0x1f2   : > { %2301 = vst.msk [vmem:[%s3635_s7 + $0x180] sm:$0xff] %vm2252_vm12, %v2236_v38  ;;  %v1735_v52 = vsub.f32 0.0, %v4452_v44  ;;  %v2175_v35 = vmul.f32 %v3006_v58, %v4383_v21  ;;  %3023 = vrcp.f32 %v1984_v28  ;;  %v1253_v8 = vadd.f32 %v4052_v16, %v4322_v62 }
 0x1f3   : > { %v3008_v40 = vpop.eup %3007  ;;  %3025 = vpow2.f32 %v1920_v9  ;;  %v1796_v15 = vsel %vm1668_vm10, %v1732_v10, %v4445_v25  ;;  %vm1657_vm13 = vcmp.ge.f32.partialorder %v4471_v43, 0.0  ;;  %v1721_v33 = vsub.f32 0.0, %v4471_v43 }
 0x1f4   : > { %v4487_v61 = vpop.eup %3009  ;;  %v2165_v21 = vmul.f32 %v3008_v40, %v4392_v57  ;;  %v2239_v20 = vsel %vm1663_vm15, %v3006_v58, %v2175_v35  ;;  %v1916_v49 = vmul.f32 1.442695, %v1796_v15  ;;  %v1799_v62 = vsel %vm1671_vm11, %v1735_v52, %v4452_v44 }
 0x1f5   : > { %v4495_v14 = vpop.eup %3011  ;;  %2304 = vst.msk [vmem:[%s3635_s7 + $0x198] sm:$0xff] %vm2252_vm12, %v2239_v20  ;;  %v1975_v24 = vadd.f32 1.0, %v4487_v61  ;;  %v1785_v5 = vsel %vm1657_vm13, %v1721_v33, %v4471_v43  ;;  %v1922_v57 = vmul.f32 1.442695, %v1799_v62  ;;  %vm1669_vm14 = vcmp.ge.f32.partialorder %v4478_v39, 0.0  ;;  %v4672_v33 = vld [vmem:[#allocation4_spill] sm:$0xff] }
 0x1f6   : > { %v3014_v22 = vpop.eup %3013  ;;  %v2229_v4 = vsel %vm1653_vm1, %v3008_v40, %v2165_v21  ;;  %v1987_v60 = vadd.f32 1.0, %v4495_v14  ;;  %3027 = vpow2.f32 %v1916_v49  ;;  %v1894_v55 = vmul.f32 1.442695, %v1785_v5  ;;  %v4673_v20 = vld [vmem:[#allocation3_spill] sm:$0xff] }
 0x1f7   : > { %v3016_v37 = vpop.eup %3015  ;;  %2294 = vst.msk [vmem:[%s3635_s7 + $0x148] sm:$0xff] %vm2252_vm12, %v2229_v4  ;;  %v2173_v48 = vmul.f32 %v3014_v22, %v4411_v50  ;;  %3029 = vrcp.f32 %v1975_v24  ;;  %v1733_v17 = vsub.f32 0.0, %v4478_v39  ;;  %v4512_v7 = vadd.f32 %v4079_v31, %v1253_v8 }
 0x1f8   : > { %v3018_v30 = vpop.eup %3017  ;;  %v2166_v56 = vmul.f32 %v3016_v37, %v4418_v42  ;;  %3031 = vrcp.f32 %v1987_v60  ;;  %v4517_v19 = vadd.f32 %v4324_v6, %v3508_v11  ;;  %v4521_v45 = vadd.f32 %v4333_v53, %v4671_v59 }
 0x1f9   : > { %v4523_v50 = vpop.eup %3019  ;;  %v2237_v2 = vsel %vm1661_vm0, %v3014_v22, %v2173_v48  ;;  %v2178_v31 = vmul.f32 %v3018_v30, %v4427_v23  ;;  %3033 = vpow2.f32 %v1894_v55  ;;  %v1797_v42 = vsel %vm1669_vm14, %v1733_v17, %v4478_v39 }
 0x1fa   : > { %v4531_v51 = vpop.eup %3021  ;;  %2302 = vst.msk [vmem:[%s3635_s7 + $0x188] sm:$0xff] %vm2252_vm12, %v2237_v2  ;;  %v2230_v11 = vsel %vm1654_vm3, %v3016_v37, %v2166_v56  ;;  %v1985_v6 = vadd.f32 1.0, %v4523_v50  ;;  %3035 = vpow2.f32 %v1922_v57  ;;  %v1918_v32 = vmul.f32 1.442695, %v1797_v42 }
 0x1fb   : > { %2295 = vst.msk [vmem:[%s3635_s7 + $0x150] sm:$0xff] %vm2252_vm12, %v2230_v11  ;;  %v2242_v53 = vsel %vm1666_vm2, %v3018_v30, %v2178_v31  ;;  %v1976_v23 = vadd.f32 1.0, %v4531_v51  ;;  %vm1658_vm15 = vcmp.ge.f32.partialorder %v4512_v7, 0.0  ;;  %v1722_v47 = vsub.f32 0.0, %v4512_v7 }
 0x1fc   : > { %v3024_v13 = vpop.eup %3023  ;;  %2307 = vst.msk [vmem:[%s3635_s7 + $0x1b0] sm:$0xff] %vm2252_vm12, %v2242_v53  ;;  %3037 = vrcp.f32 %v1985_v6  ;;  %vm1674_vm0 = vcmp.ge.f32.partialorder %v4517_v19, 0.0  ;;  %v1738_v27 = vsub.f32 0.0, %v4517_v19  ;;  %vm1672_vm1 = vcmp.ge.f32.partialorder %v4521_v45, 0.0 }
 0x1fd   : > { %v4550_v12 = vpop.eup %3025  ;;  %v2176_v34 = vmul.f32 %v3024_v13, %v4454_v41  ;;  %3039 = vrcp.f32 %v1976_v23  ;;  %v1786_v38 = vsel %vm1658_vm15, %v1722_v47, %v4512_v7  ;;  %v1736_v28 = vsub.f32 0.0, %v4521_v45 }
 0x1fe   : > { %v1990_v9 = vadd.f32 1.0, %v4550_v12  ;;  %3041 = vpow2.f32 %v1918_v32  ;;  %v1896_v58 = vmul.f32 1.442695, %v1786_v38  ;;  %v1802_v10 = vsel %vm1674_vm0, %v1738_v27, %v4517_v19 }
 0x1ff   : > { %v2240_v52 = vsel %vm1664_vm4, %v3024_v13, %v2176_v34  ;;  %v1928_v35 = vmul.f32 1.442695, %v1802_v10  ;;  %v1800_v41 = vsel %vm1672_vm1, %v1736_v28, %v4521_v45  ;;  %v1256_v8 = vadd.f32 %v4052_v16, %v4339_v26 }
 0x200   : > { %v3028_v40 = vpop.eup %3027  ;;  %2305 = vst.msk [vmem:[%s3635_s7 + $0x1a0] sm:$0xff] %vm2252_vm12, %v2240_v52  ;;  %3043 = vrcp.f32 %v1990_v9  ;;  %v1924_v15 = vmul.f32 1.442695, %v1800_v41  ;;  %v4572_v21 = vadd.f32 %v4341_v63, %v4672_v33  ;;  %v4576_v36 = vadd.f32 %v4348_v3, %v4673_v20 }
 0x201   : > { %v3030_v49 = vpop.eup %3029  ;;  %v1988_v62 = vadd.f32 1.0, %v3028_v40  ;;  %3045 = vpow2.f32 %v1896_v58  ;;  %v4579_v24 = vadd.f32 %v4095_v54, %v1256_v8 }
 0x202   : > { %v3032_v16 = vpop.eup %3031  ;;  %v2167_v26 = vmul.f32 %v3030_v49, %v4487_v61  ;;  %3047 = vpow2.f32 %v1928_v35  ;;  %vm1675_vm2 = vcmp.ge.f32.partialorder %v4572_v21, 0.0  ;;  %v1739_v63 = vsub.f32 0.0, %v4572_v21 }
 0x203   : > { %v3034_v5 = vpop.eup %3033  ;;  %v2179_v3 = vmul.f32 %v3032_v16, %v4495_v14  ;;  %3049 = vrcp.f32 %v1988_v62  ;;  %vm1659_vm3 = vcmp.ge.f32.partialorder %v4579_v24, 0.0  ;;  %v1723_v57 = vsub.f32 0.0, %v4579_v24 }
 0x204   : > { %v3036_v54 = vpop.eup %3035  ;;  %v2231_v22 = vsel %vm1655_vm7, %v3030_v49, %v2167_v26  ;;  %v1977_v4 = vadd.f32 1.0, %v3034_v5  ;;  %3051 = vpow2.f32 %v1924_v15  ;;  %v1803_v61 = vsel %vm1675_vm2, %v1739_v63, %v4572_v21 }
 0x205   : > { %2296 = vst.msk [vmem:[%s3635_s7 + $0x158] sm:$0xff] %vm2252_vm12, %v2231_v22  ;;  %v2243_v14 = vsel %vm1667_vm5, %v3032_v16, %v2179_v3  ;;  %v1991_v60 = vadd.f32 1.0, %v3036_v54  ;;  %v1787_v55 = vsel %vm1659_vm3, %v1723_v57, %v4579_v24  ;;  %v1930_v37 = vmul.f32 1.442695, %v1803_v61 }
 0x206   : > { %v3038_v48 = vpop.eup %3037  ;;  %2308 = vst.msk [vmem:[%s3635_s7 + $0x1b8] sm:$0xff] %vm2252_vm12, %v2243_v14  ;;  %3053 = vrcp.f32 %v1977_v4  ;;  %v1898_v18 = vmul.f32 1.442695, %v1787_v55  ;;  %vm1673_vm4 = vcmp.ge.f32.partialorder %v4576_v36, 0.0  ;;  %v1737_v17 = vsub.f32 0.0, %v4576_v36 }
 0x207   : > { %v3040_v30 = vpop.eup %3039  ;;  %v2177_v1 = vmul.f32 %v3038_v48, %v4523_v50  ;;  %3055 = vrcp.f32 %v1991_v60 }
 0x208   : > { %v3042_v56 = vpop.eup %3041  ;;  %v2168_v59 = vmul.f32 %v3040_v30, %v4531_v51  ;;  %3057 = vpow2.f32 %v1898_v18  ;;  %v1801_v2 = vsel %vm1673_vm4, %v1737_v17, %v4576_v36 }
 0x209   : > { %v2241_v31 = vsel %vm1665_vm6, %v3038_v48, %v2177_v1  ;;  %v1989_v42 = vadd.f32 1.0, %v3042_v56  ;;  %3059 = vpow2.f32 %v1930_v37  ;;  %v1926_v11 = vmul.f32 1.442695, %v1801_v2 }
 0x20a   : > { %v3044_v6 = vpop.eup %3043  ;;  %2306 = vst.msk [vmem:[%s3635_s7 + $0x1a8] sm:$0xff] %vm2252_vm12, %v2241_v31  ;;  %v2232_v50 = vsel %vm1656_vm8, %v3040_v30, %v2168_v59 }
 0x20b   : > { %v3046_v32 = vpop.eup %3045  ;;  %2297 = vst.msk [vmem:[%s3635_s7 + $0x160] sm:$0xff] %vm2252_vm12, %v2232_v50  ;;  %v2182_v51 = vmul.f32 %v3044_v6, %v4550_v12  ;;  %3061 = vrcp.f32 %v1989_v42 }
 0x20c   : > { %v3048_v53 = vpop.eup %3047  ;;  %v1978_v46 = vadd.f32 1.0, %v3046_v32  ;;  %3063 = vpow2.f32 %v1926_v11 }
 0x20d   : > { %v3050_v23 = vpop.eup %3049  ;;  %v2246_v47 = vsel %vm1670_vm9, %v3044_v6, %v2182_v51  ;;  %v1994_v13 = vadd.f32 1.0, %v3048_v53 }
 0x20e   : > { %v3052_v27 = vpop.eup %3051  ;;  %2311 = vst.msk [vmem:[%s3635_s7 + $0x1d0] sm:$0xff] %vm2252_vm12, %v2246_v47  ;;  %v2180_v29 = vmul.f32 %v3050_v23, %v3028_v40  ;;  %3065 = vrcp.f32 %v1978_v46 }
 0x20f   : > { %3067 = vrcp.f32 %v1994_v13  ;;  %v1992_v34 = vadd.f32 1.0, %v3052_v27 }
 0x210   : > { %v3054_v12 = vpop.eup %3053  ;;  %v2244_v38 = vsel %vm1668_vm10, %v3050_v23, %v2180_v29 }
 0x211   : > { %v3056_v28 = vpop.eup %3055  ;;  %2309 = vst.msk [vmem:[%s3635_s7 + $0x1c0] sm:$0xff] %vm2252_vm12, %v2244_v38  ;;  %v2169_v9 = vmul.f32 %v3054_v12, %v3034_v5  ;;  %3069 = vrcp.f32 %v1992_v34 }
 0x212   : > { %v3058_v0 = vpop.eup %3057  ;;  %v2183_v58 = vmul.f32 %v3056_v28, %v3036_v54 }
 0x213   : > { %v3060_v10 = vpop.eup %3059  ;;  %v2233_v52 = vsel %vm1657_vm13, %v3054_v12, %v2169_v9  ;;  %v1979_v35 = vadd.f32 1.0, %v3058_v0 }
 0x214   : > { %2298 = vst.msk [vmem:[%s3635_s7 + $0x168] sm:$0xff] %vm2252_vm12, %v2233_v52  ;;  %v2247_v41 = vsel %vm1671_vm11, %v3056_v28, %v2183_v58  ;;  %v1995_v25 = vadd.f32 1.0, %v3060_v10 }
 0x215   : > { %v3062_v8 = vpop.eup %3061  ;;  %2312 = vst.msk [vmem:[%s3635_s7 + $0x1d8] sm:$0xff] %vm2252_vm12, %v2247_v41  ;;  %3071 = vrcp.f32 %v1979_v35 }
 0x216   : > { %v3064_v40 = vpop.eup %3063  ;;  %v2181_v15 = vmul.f32 %v3062_v8, %v3042_v56  ;;  %3073 = vrcp.f32 %v1995_v25 }
 0x217   : > { %v1993_v33 = vadd.f32 1.0, %v3064_v40 }
 0x218   : > { %v3066_v43 = vpop.eup %3065  ;;  %v2245_v20 = vsel %vm1669_vm14, %v3062_v8, %v2181_v15 }
 0x219   : > { %v3068_v49 = vpop.eup %3067  ;;  %2310 = vst.msk [vmem:[%s3635_s7 + $0x1c8] sm:$0xff] %vm2252_vm12, %v2245_v20  ;;  %v2170_v44 = vmul.f32 %v3066_v43, %v3046_v32  ;;  %3075 = vrcp.f32 %v1993_v33 }
 0x21a   : > { %v2186_v62 = vmul.f32 %v3068_v49, %v3048_v53 }
 0x21b   : > { %v3070_v16 = vpop.eup %3069  ;;  %v2234_v26 = vsel %vm1658_vm15, %v3066_v43, %v2170_v44 }
 0x21c   : > { %2299 = vst.msk [vmem:[%s3635_s7 + $0x170] sm:$0xff] %vm2252_vm12, %v2234_v26  ;;  %v2250_v63 = vsel %vm1674_vm0, %v3068_v49, %v2186_v62  ;;  %v2184_v39 = vmul.f32 %v3070_v16, %v3052_v27 }
 0x21d   : > { %2315 = vst.msk [vmem:[%s3635_s7 + $0x1f0] sm:$0xff] %vm2252_vm12, %v2250_v63 }
 0x21e   : > { %v2248_v5 = vsel %vm1672_vm1, %v3070_v16, %v2184_v39 }
 0x21f   : > { %v3072_v3 = vpop.eup %3071  ;;  %2313 = vst.msk [vmem:[%s3635_s7 + $0x1e0] sm:$0xff] %vm2252_vm12, %v2248_v5 }
 0x220   : > { %v3074_v57 = vpop.eup %3073  ;;  %v2171_v54 = vmul.f32 %v3072_v3, %v3058_v0 }
 0x221   : > { %v2187_v7 = vmul.f32 %v3074_v57, %v3060_v10 }
 0x222   : > { %v2235_v22 = vsel %vm1659_vm3, %v3072_v3, %v2171_v54 }
 0x223   : > { %v3076_v4 = vpop.eup %3075  ;;  %2300 = vst.msk [vmem:[%s3635_s7 + $0x178] sm:$0xff] %vm2252_vm12, %v2235_v22  ;;  %v2251_v19 = vsel %vm1675_vm2, %v3074_v57, %v2187_v7 }
 0x224   : > { %2316 = vst.msk [vmem:[%s3635_s7 + $0x1f8] sm:$0xff] %vm2252_vm12, %v2251_v19  ;;  %v2185_v61 = vmul.f32 %v3076_v4, %v3064_v40 }
 0x226   : > { %v2249_v45 = vsel %vm1673_vm4, %v3076_v4, %v2185_v61 }
 0x227   : > { %2314 = vst.msk [vmem:[%s3635_s7 + $0x1e8] sm:$0xff] %vm2252_vm12, %v2249_v45 }
 0x228 PF: > { %s13_s12 = sadd.s32 1, %s3084_s12  }
 0x229   : > { %p10_p4 = scmp.ge.s32.totalorder %s13_s12, 6  }
 0x22b   :  { %12 = sbr.rel (!%p10_p4) target bundleno = 1 (0x1), region = 62 }

</bundles_post_ra>
